<compile_context>
chip_gen: v7x
topology: tpu7x:2x2x1
jax: 0.10.0
libtpu: 0.0.40
codegen_flags: <defaults>
</compile_context>

<pallas_src>
import functools

import jax
import jax.numpy as jnp
from jax import lax
from jax.experimental import pallas as pl
from jax.experimental.pallas import tpu as pltpu

K = 3                 # conv kernel size
P = (K - 1) // 2      # padding
KK = K * K


# ---------------------------------------------------------------------------
# Pallas kernel (one batch element per grid step)
# ---------------------------------------------------------------------------
def _acell_kernel(
    xp_ref, hp_ref, c_ref,
    w_xh_ref, b_xh_ref, w_z_ref, w_if_ref, b_if_ref,
    out_ref,
    slab, zpad,
    *, H, W, Cin, Ch,
):
    HW = H * W
    Hp, Wp = H + 2 * P, W + 2 * P
    h_cols = KK * Ch            # h-tap columns occupy [0, h_cols)
    x_off = h_cols              # x-tap columns occupy [x_off, x_off + KK*Cin)

    # ---- build the fused im2col slab: [ 9 h-taps | 9 x-taps ] ----------------
    for ky in range(K):
        for kx in range(K):
            t = ky * K + kx
            hwin = hp_ref[0, ky:ky + H, kx:kx + W, :].reshape(HW, Ch)
            slab[:, t * Ch:(t + 1) * Ch] = hwin
            xwin = xp_ref[0, ky:ky + H, kx:kx + W, :].reshape(HW, Cin)
            slab[:, x_off + t * Cin:x_off + (t + 1) * Cin] = xwin

    # global average pooling: the center-tap columns of the slab are exactly
    # the unpadded x / h, so AdaptiveAvgPool2d(1) is a sublane sum here.
    tc = (K // 2) * K + (K // 2)
    inv_hw = 1.0 / float(HW)
    h_glob = jnp.sum(slab[:, tc * Ch:(tc + 1) * Ch],
                     axis=0, keepdims=True) * inv_hw               # (1, Ch)
    x_glob = jnp.sum(slab[:, x_off + tc * Cin:x_off + (tc + 1) * Cin],
                     axis=0, keepdims=True) * inv_hw               # (1, Cin)
    g_in = jnp.concatenate([x_glob, h_glob], axis=-1)              # (1, Cin+Ch)

    # ---- one fat matmul -> [ a-gate | c-gate ] pre-activations --------------
    pre = jnp.dot(slab[...], w_xh_ref[...],
                  preferred_element_type=jnp.float32) + b_xh_ref[...]
    act = jnp.tanh(pre)                                            # (HW, 2*Ch)
    pre_z = act[:, :Ch]                                            # tanh(xa+ha)
    G = act[:, Ch:]                                                # tanh(xc+hc)

    # ---- Wz: pad pre_z (halo-only zeroing), reuse slab h-columns as im2col --
    zpad[0:P, :, :] = jnp.zeros((P, Wp, Ch), jnp.float32)
    zpad[P + H:P + H + P, :, :] = jnp.zeros((P, Wp, Ch), jnp.float32)
    zpad[:, 0:P, :] = jnp.zeros((Hp, P, Ch), jnp.float32)
    zpad[:, P + W:P + W + P, :] = jnp.zeros((Hp, P, Ch), jnp.float32)
    zpad[P:P + H, P:P + W, :] = pre_z.reshape(H, W, Ch)
    for ky in range(K):
        for kx in range(K):
            t = ky * K + kx
            zwin = zpad[ky:ky + H, kx:kx + W, :].reshape(HW, Ch)
            slab[:, t * Ch:(t + 1) * Ch] = zwin
    zt = jnp.dot(slab[:, :h_cols], w_z_ref[...],
                 preferred_element_type=jnp.float32)               # (HW, Ch)

    # SoftmaxPixel_Max(zt) == exp(zt - max_spatial(zt))  (exact identity:
    # softmax(z)/max(softmax(z)) = exp(z - max z)), removes both divides.
    co = jnp.exp(zt - jnp.max(zt, axis=0, keepdims=True))          # (HW, Ch)

    # ---- pooled i / f gates: fused center-tap matmul ------------------------
    g = jnp.dot(g_in, w_if_ref[...],
                preferred_element_type=jnp.float32) + b_if_ref[...]
    g = 1.0 / (1.0 + jnp.exp(-g))                                  # (1, 2*Ch)
    ci = g[:, :Ch]
    cf = g[:, Ch:]

    # ---- state update --------------------------------------------------------
    c = c_ref[0]                                                   # (HW, Ch)
    cc = cf * c + ci * G
    ch = co * jnp.tanh(cc)
    out_ref[0] = jnp.concatenate([ch, cc], axis=-1)                # (HW, 2*Ch)


# ---------------------------------------------------------------------------
# Host-side weight preprocessing (PyTorch conv layouts -> fused kernel mats)
# ---------------------------------------------------------------------------
def _grouped_to_dense(w, groups):
    # w: (Cout, Cin_per_group, K, K) torch layout -> dense (K*K, Cin, Cout)
    Cout, Cpg, k, _ = w.shape
    Cin = Cpg * groups
    Opg = Cout // groups
    dense = jnp.zeros((k, k, Cin, Cout), jnp.float32)
    for g in range(groups):
        blk = jnp.transpose(w[g * Opg:(g + 1) * Opg], (2, 3, 1, 0))  # (k,k,Cpg,Opg)
        dense = dense.at[:, :, g * Cpg:(g + 1) * Cpg,
                         g * Opg:(g + 1) * Opg].set(blk)
    return dense.reshape(k * k, Cin, Cout)


def _prepare_kernel_params(p, Cin, Ch):
    def pw(w):      # 1x1 (O,I,1,1) -> (I,O)
        return w[:, :, 0, 0].T

    def center(w):  # KxK conv on 1x1 input with pad P -> only center tap acts
        return w[:, :, P, P].T

    wxa_p = pw(p["Wxa_p_w"])                      # (Cin, Ch)
    wxc_p = pw(p["Wxc_p_w"])                      # (Cin, Ch)
    wha_p = pw(p["Wha_p_w"])                      # (Ch, Ch)
    whc_p = pw(p["Whc_p_w"])                      # (Ch, Ch)

    wxa_d = p["Wxa_d_w"][:, 0]                    # (Cin, K, K) depthwise
    wxc_d = p["Wxc_d_w"][:, 0]                    # (Cin, K, K)
    whc_d = p["Whc_d_w"][:, 0]                    # (Ch, K, K)
    wha_dense = _grouped_to_dense(p["Wha_d_w"], Cin)   # (KK, Ch, Ch)

    # fused im2col weight: rows = [9 h-taps (Ch each) | 9 x-taps (Cin each)],
    # cols = [ a-gate (Ch) | c-gate (Ch) ]
    w_xh = jnp.zeros((KK * Ch + KK * Cin, 2 * Ch), jnp.float32)
    for t in range(KK):
        ky, kx = t // K, t % K
        w_ha_t = wha_dense[t] @ wha_p                       # (Ch, Ch)
        w_hc_t = whc_d[:, ky, kx][:, None] * whc_p          # (Ch, Ch)
        w_xh = w_xh.at[t * Ch:(t + 1) * Ch, :Ch].set(w_ha_t)
        w_xh = w_xh.at[t * Ch:(t + 1) * Ch, Ch:].set(w_hc_t)
        w_xa_t = wxa_d[:, ky, kx][:, None] * wxa_p          # (Cin, Ch)
        w_xc_t = wxc_d[:, ky, kx][:, None] * wxc_p          # (Cin, Ch)
        r0 = KK * Ch + t * Cin
        w_xh = w_xh.at[r0:r0 + Cin, :Ch].set(w_xa_t)
        w_xh = w_xh.at[r0:r0 + Cin, Ch:].set(w_xc_t)

    b_a = p["Wxa_d_b"] @ wxa_p + p["Wha_d_b"] @ wha_p                 # (Ch,)
    b_c = p["Wxc_d_b"] @ wxc_p + p["Wxc_p_b"] + p["Whc_p_b"]          # (Ch,)
    b_xh = jnp.concatenate([b_a, b_c]).reshape(1, 2 * Ch)

    # Wz: (O, I, K, K) -> (KK*I, O), row index = tap*Ch + in_channel
    w_z = jnp.transpose(p["Wz_w"], (2, 3, 1, 0)).reshape(KK * Ch, Ch)

    # pooled i/f gate weights (center taps) -> one (Cin+Ch, 2*Ch) matrix
    w_if_x = jnp.concatenate([center(p["Wxi_w"]), center(p["Wxf_w"])], axis=1)
    w_if_h = jnp.concatenate([center(p["Whi_w"]), center(p["Whf_w"])], axis=1)
    w_if = jnp.concatenate([w_if_x, w_if_h], axis=0)                  # (Cin+Ch, 2Ch)
    b_if = jnp.concatenate([p["Wxi_b"], p["Wxf_b"]]).reshape(1, 2 * Ch)

    return w_xh, b_xh, w_z, w_if, b_if


# ---------------------------------------------------------------------------
# Wrapper: NCHW in / NCHW out (PyTorch convention)
# ---------------------------------------------------------------------------
def aconvlstm_cell_d(x_nchw, h_nchw, c_nchw, params):
    B, Cin, H, W = x_nchw.shape
    Ch = h_nchw.shape[1]
    HW = H * W
    Hp, Wp = H + 2 * P, W + 2 * P

    x = jnp.transpose(x_nchw, (0, 2, 3, 1)).astype(jnp.float32)
    h = jnp.transpose(h_nchw, (0, 2, 3, 1)).astype(jnp.float32)
    c = jnp.transpose(c_nchw, (0, 2, 3, 1)).astype(jnp.float32).reshape(B, HW, Ch)
    xp = jnp.pad(x, ((0, 0), (P, P), (P, P), (0, 0)))
    hp = jnp.pad(h, ((0, 0), (P, P), (P, P), (0, 0)))

    w_xh, b_xh, w_z, w_if, b_if = _prepare_kernel_params(params, Cin, Ch)

    def wspec(a):
        nd = a.ndim
        return pl.BlockSpec(a.shape, lambda b, _nd=nd: (0,) * _nd)

    in_specs = [
        pl.BlockSpec((1, Hp, Wp, Cin), lambda b: (b, 0, 0, 0)),
        pl.BlockSpec((1, Hp, Wp, Ch), lambda b: (b, 0, 0, 0)),
        pl.BlockSpec((1, HW, Ch), lambda b: (b, 0, 0)),
        wspec(w_xh), wspec(b_xh), wspec(w_z), wspec(w_if), wspec(b_if),
    ]
    out_spec = pl.BlockSpec((1, HW, 2 * Ch), lambda b: (b, 0, 0))

    grid_spec = pltpu.PrefetchScalarGridSpec(
        num_scalar_prefetch=0,
        grid=(B,),
        in_specs=in_specs,
        out_specs=out_spec,
        scratch_shapes=[
            pltpu.VMEM((HW, KK * (Ch + Cin)), jnp.float32),   # im2col slab
            pltpu.VMEM((Hp, Wp, Ch), jnp.float32),            # padded pre_z
        ],
    )

    kernel = functools.partial(_acell_kernel, H=H, W=W, Cin=Cin, Ch=Ch)
    out = pl.pallas_call(
        kernel,
        out_shape=jax.ShapeDtypeStruct((B, HW, 2 * Ch), jnp.float32),
        grid_spec=grid_spec,
        compiler_params=pltpu.CompilerParams(
            dimension_semantics=("parallel",)),   # batch is independent (v7x 2 TCs)
    )(xp, hp, c, w_xh, b_xh, w_z, w_if, b_if)

    ch = out[:, :, :Ch].reshape(B, H, W, Ch)
    cc = out[:, :, Ch:].reshape(B, H, W, Ch)
    return (jnp.transpose(ch, (0, 3, 1, 2)),
            jnp.transpose(cc, (0, 3, 1, 2)))


# ---------------------------------------------------------------------------
# Deterministic parameter init (shapes from the PyTorch __init__)
# ---------------------------------------------------------------------------
def init_params(key, Cin, Ch):
    def xavier(k, shape):
        fan_in = shape[1] * shape[2] * shape[3]
        fan_out = shape[0] * shape[2] * shape[3]
        std = (2.0 / (fan_in + fan_out)) ** 0.5
        return std * jax.random.normal(k, shape, jnp.float32)

    names_shapes = {
        "Wxa_d_w": (Cin, 1, K, K), "Wxa_d_b": (Cin,),
        "Wxa_p_w": (Ch, Cin, 1, 1),
        "Wha_d_w": (Ch, Ch // Cin, K, K), "Wha_d_b": (Ch,),
        "Wha_p_w": (Ch, Ch, 1, 1),
        "Wz_w": (Ch, Ch, K, K),
        "Wxi_w": (Ch, Cin, K, K), "Wxi_b": (Ch,),
        "Whi_w": (Ch, Ch, K, K),
        "Wxf_w": (Ch, Cin, K, K), "Wxf_b": (Ch,),
        "Whf_w": (Ch, Ch, K, K),
        "Wxc_d_w": (Cin, 1, K, K), "Wxc_d_b": (Cin,),
        "Wxc_p_w": (Ch, Cin, 1, 1), "Wxc_p_b": (Ch,),
        "Whc_d_w": (Ch, 1, K, K),
        "Whc_p_w": (Ch, Ch, 1, 1), "Whc_p_b": (Ch,),
    }
    items = sorted(names_shapes.items())
    keys = jax.random.split(key, len(items))
    params = {}
    for kk, (name, shape) in zip(keys, items):
        if name.endswith("_b"):
            params[name] = 0.1 * jax.random.normal(kk, shape, jnp.float32)
        else:
            params[name] = xavier(kk, shape)
    return params


# ---------------------------------------------------------------------------
# Pure-JAX NCHW reference (mirrors the PyTorch forward) for verification
# ---------------------------------------------------------------------------
def _conv(x, w, b=None, padding=P, groups=1):
    out = lax.conv_general_dilated(
        x, w, window_strides=(1, 1),
        padding=[(padding, padding), (padding, padding)],
        dimension_numbers=("NCHW", "OIHW", "NCHW"),
        feature_group_count=groups)
    if b is not None:
        out = out + b[None, :, None, None]
    return out


def reference_forward(x, h, c, p, Cin, Ch):
    xa = _conv(_conv(x, p["Wxa_d_w"], p["Wxa_d_b"], groups=Cin),
               p["Wxa_p_w"], None, padding=0)
    ha = _conv(_conv(h, p["Wha_d_w"], p["Wha_d_b"], groups=Cin),
               p["Wha_p_w"], None, padding=0)
    zt = _conv(jnp.tanh(xa + ha), p["Wz_w"], None)
    B, C, H, W = zt.shape
    zf = zt.reshape(B, C, H * W)
    soft = jax.nn.softmax(zf, axis=2)
    soft = soft / jnp.max(soft, axis=2, keepdims=True)
    co = soft.reshape(B, C, H, W)
    x_g = jnp.mean(x, axis=(2, 3), keepdims=True)
    h_g = jnp.mean(h, axis=(2, 3), keepdims=True)
    ci = jax.nn.sigmoid(_conv(x_g, p["Wxi_w"], p["Wxi_b"])
                        + _conv(h_g, p["Whi_w"], None))
    cf = jax.nn.sigmoid(_conv(x_g, p["Wxf_w"], p["Wxf_b"])
                        + _conv(h_g, p["Whf_w"], None))
    G = jnp.tanh(
        _conv(_conv(x, p["Wxc_d_w"], p["Wxc_d_b"], groups=Cin),
              p["Wxc_p_w"], p["Wxc_p_b"], padding=0)
        + _conv(_conv(h, p["Whc_d_w"], None, groups=Ch),
                p["Whc_p_w"], p["Whc_p_b"], padding=0))
    cc = cf * c + ci * G
    ch = co * jnp.tanh(cc)
    return ch, cc


if __name__ == "__main__":
    B, Cin, Ch, H, W = 2, 4, 32, 16, 16
    key = jax.random.PRNGKey(0)
    kx, kh, kc, kp = jax.random.split(key, 4)
    x = jax.random.normal(kx, (B, Cin, H, W), jnp.float32)
    h = jax.random.normal(kh, (B, Ch, H, W), jnp.float32)
    c = jax.random.normal(kc, (B, Ch, H, W), jnp.float32)
    params = init_params(kp, Cin, Ch)

    ch, cc = aconvlstm_cell_d(x, h, c, params)
    jax.block_until_ready((ch, cc))

    ch_ref, cc_ref = reference_forward(x, h, c, params, Cin, Ch)
    err = max(float(jnp.max(jnp.abs(ch - ch_ref))),
              float(jnp.max(jnp.abs(cc - cc_ref))))
    assert err < 5e-4, f"mismatch vs reference: {err}"
    print("KERNEL_OK")
</pallas_src>

<mosaic_0001>
module attributes {stable_mosaic.version = 11 : i64} {
  func.func @_acell_kernel(%arg0: i32, %arg1: memref<1x18x18x4xf32, #tpu.memory_space<vmem>>, %arg2: memref<1x18x18x32xf32, #tpu.memory_space<vmem>>, %arg3: memref<1x256x32xf32, #tpu.memory_space<vmem>>, %arg4: memref<324x64xf32, #tpu.memory_space<vmem>>, %arg5: memref<1x64xf32, #tpu.memory_space<vmem>>, %arg6: memref<288x32xf32, #tpu.memory_space<vmem>>, %arg7: memref<36x64xf32, #tpu.memory_space<vmem>>, %arg8: memref<1x64xf32, #tpu.memory_space<vmem>>, %arg9: memref<1x256x64xf32, #tpu.memory_space<vmem>>, %arg10: memref<256x324xf32, #tpu.memory_space<vmem>>, %arg11: memref<18x18x32xf32, #tpu.memory_space<vmem>>) attributes {dimension_semantics = [#tpu.dimension_semantics<parallel>], iteration_bounds = array<i64: 2>, scalar_prefetch = 0 : i64, scratch_operands = 2 : i64, tpu.core_type = #tpu.core_type<tc>, window_params = [{transform_indices = @transform_0, window_bounds = array<i64: 1, 18, 18, 4>}, {transform_indices = @transform_1, window_bounds = array<i64: 1, 18, 18, 32>}, {transform_indices = @transform_2, window_bounds = array<i64: 1, 256, 32>}, {pipeline_mode = #tpu.pipeline_mode<synchronous>, transform_indices = @transform_3, window_bounds = array<i64: 324, 64>}, {pipeline_mode = #tpu.pipeline_mode<synchronous>, transform_indices = @transform_4, window_bounds = array<i64: 1, 64>}, {pipeline_mode = #tpu.pipeline_mode<synchronous>, transform_indices = @transform_5, window_bounds = array<i64: 288, 32>}, {pipeline_mode = #tpu.pipeline_mode<synchronous>, transform_indices = @transform_6, window_bounds = array<i64: 36, 64>}, {pipeline_mode = #tpu.pipeline_mode<synchronous>, transform_indices = @transform_7, window_bounds = array<i64: 1, 64>}, {transform_indices = @transform_8, window_bounds = array<i64: 1, 256, 64>}]} {
    %c0 = arith.constant 0 : index
    %c0_0 = arith.constant 0 : index
    %c0_1 = arith.constant 0 : index
    %c0_2 = arith.constant 0 : index
    %0 = vector.load %arg2[%c0, %c0_0, %c0_1, %c0_2] : memref<1x18x18x32xf32, #tpu.memory_space<vmem>>, vector<1x16x16x32xf32>
    %1 = vector.shape_cast %0 : vector<1x16x16x32xf32> to vector<16x16x32xf32>
    %2 = vector.shape_cast %1 : vector<16x16x32xf32> to vector<256x32xf32>
    %c0_3 = arith.constant 0 : index
    %c0_4 = arith.constant 0 : index
    %3 = vector.load %arg10[%c0_3, %c0_4] : memref<256x324xf32, #tpu.memory_space<vmem>>, vector<256x32xf32>
    tpu.vector_store %arg10[%c0_3, %c0_4], %2 {strides = array<i32>} : memref<256x324xf32, #tpu.memory_space<vmem>>, vector<256x32xf32>,
    %c0_5 = arith.constant 0 : index
    %c0_6 = arith.constant 0 : index
    %c0_7 = arith.constant 0 : index
    %c0_8 = arith.constant 0 : index
    %4 = vector.load %arg1[%c0_5, %c0_6, %c0_7, %c0_8] : memref<1x18x18x4xf32, #tpu.memory_space<vmem>>, vector<1x16x16x4xf32>
    %5 = vector.shape_cast %4 : vector<1x16x16x4xf32> to vector<16x16x4xf32>
    %6 = vector.shape_cast %5 : vector<16x16x4xf32> to vector<256x4xf32>
    %c0_9 = arith.constant 0 : index
    %c288 = arith.constant 288 : index
    %7 = vector.load %arg10[%c0_9, %c288] : memref<256x324xf32, #tpu.memory_space<vmem>>, vector<256x4xf32>
    tpu.vector_store %arg10[%c0_9, %c288], %6 {strides = array<i32>} : memref<256x324xf32, #tpu.memory_space<vmem>>, vector<256x4xf32>,
    %c0_10 = arith.constant 0 : index
    %c0_11 = arith.constant 0 : index
    %c1 = arith.constant 1 : index
    %c0_12 = arith.constant 0 : index
    %8 = vector.load %arg2[%c0_10, %c0_11, %c1, %c0_12] : memref<1x18x18x32xf32, #tpu.memory_space<vmem>>, vector<1x16x16x32xf32>
    %9 = vector.shape_cast %8 : vector<1x16x16x32xf32> to vector<16x16x32xf32>
    %10 = vector.shape_cast %9 : vector<16x16x32xf32> to vector<256x32xf32>
    %c0_13 = arith.constant 0 : index
    %c32 = arith.constant 32 : index
    %11 = vector.load %arg10[%c0_13, %c32] : memref<256x324xf32, #tpu.memory_space<vmem>>, vector<256x32xf32>
    tpu.vector_store %arg10[%c0_13, %c32], %10 {strides = array<i32>} : memref<256x324xf32, #tpu.memory_space<vmem>>, vector<256x32xf32>,
    %c0_14 = arith.constant 0 : index
    %c0_15 = arith.constant 0 : index
    %c1_16 = arith.constant 1 : index
    %c0_17 = arith.constant 0 : index
    %12 = vector.load %arg1[%c0_14, %c0_15, %c1_16, %c0_17] : memref<1x18x18x4xf32, #tpu.memory_space<vmem>>, vector<1x16x16x4xf32>
    %13 = vector.shape_cast %12 : vector<1x16x16x4xf32> to vector<16x16x4xf32>
    %14 = vector.shape_cast %13 : vector<16x16x4xf32> to vector<256x4xf32>
    %c0_18 = arith.constant 0 : index
    %c292 = arith.constant 292 : index
    %15 = vector.load %arg10[%c0_18, %c292] : memref<256x324xf32, #tpu.memory_space<vmem>>, vector<256x4xf32>
    tpu.vector_store %arg10[%c0_18, %c292], %14 {strides = array<i32>} : memref<256x324xf32, #tpu.memory_space<vmem>>, vector<256x4xf32>,
    %c0_19 = arith.constant 0 : index
    %c0_20 = arith.constant 0 : index
    %c2 = arith.constant 2 : index
    %c0_21 = arith.constant 0 : index
    %16 = vector.load %arg2[%c0_19, %c0_20, %c2, %c0_21] : memref<1x18x18x32xf32, #tpu.memory_space<vmem>>, vector<1x16x16x32xf32>
    %17 = vector.shape_cast %16 : vector<1x16x16x32xf32> to vector<16x16x32xf32>
    %18 = vector.shape_cast %17 : vector<16x16x32xf32> to vector<256x32xf32>
    %c0_22 = arith.constant 0 : index
    %c64 = arith.constant 64 : index
    %19 = vector.load %arg10[%c0_22, %c64] : memref<256x324xf32, #tpu.memory_space<vmem>>, vector<256x32xf32>
    tpu.vector_store %arg10[%c0_22, %c64], %18 {strides = array<i32>} : memref<256x324xf32, #tpu.memory_space<vmem>>, vector<256x32xf32>,
    %c0_23 = arith.constant 0 : index
    %c0_24 = arith.constant 0 : index
    %c2_25 = arith.constant 2 : index
    %c0_26 = arith.constant 0 : index
    %20 = vector.load %arg1[%c0_23, %c0_24, %c2_25, %c0_26] : memref<1x18x18x4xf32, #tpu.memory_space<vmem>>, vector<1x16x16x4xf32>
    %21 = vector.shape_cast %20 : vector<1x16x16x4xf32> to vector<16x16x4xf32>
    %22 = vector.shape_cast %21 : vector<16x16x4xf32> to vector<256x4xf32>
    %c0_27 = arith.constant 0 : index
    %c296 = arith.constant 296 : index
    %23 = vector.load %arg10[%c0_27, %c296] : memref<256x324xf32, #tpu.memory_space<vmem>>, vector<256x4xf32>
    tpu.vector_store %arg10[%c0_27, %c296], %22 {strides = array<i32>} : memref<256x324xf32, #tpu.memory_space<vmem>>, vector<256x4xf32>,
    %c0_28 = arith.constant 0 : index
    %c1_29 = arith.constant 1 : index
    %c0_30 = arith.constant 0 : index
    %c0_31 = arith.constant 0 : index
    %24 = vector.load %arg2[%c0_28, %c1_29, %c0_30, %c0_31] : memref<1x18x18x32xf32, #tpu.memory_space<vmem>>, vector<1x16x16x32xf32>
    %25 = vector.shape_cast %24 : vector<1x16x16x32xf32> to vector<16x16x32xf32>
    %26 = vector.shape_cast %25 : vector<16x16x32xf32> to vector<256x32xf32>
    %c0_32 = arith.constant 0 : index
    %c96 = arith.constant 96 : index
    %27 = vector.load %arg10[%c0_32, %c96] : memref<256x324xf32, #tpu.memory_space<vmem>>, vector<256x32xf32>
    tpu.vector_store %arg10[%c0_32, %c96], %26 {strides = array<i32>} : memref<256x324xf32, #tpu.memory_space<vmem>>, vector<256x32xf32>,
    %c0_33 = arith.constant 0 : index
    %c1_34 = arith.constant 1 : index
    %c0_35 = arith.constant 0 : index
    %c0_36 = arith.constant 0 : index
    %28 = vector.load %arg1[%c0_33, %c1_34, %c0_35, %c0_36] : memref<1x18x18x4xf32, #tpu.memory_space<vmem>>, vector<1x16x16x4xf32>
    %29 = vector.shape_cast %28 : vector<1x16x16x4xf32> to vector<16x16x4xf32>
    %30 = vector.shape_cast %29 : vector<16x16x4xf32> to vector<256x4xf32>
    %c0_37 = arith.constant 0 : index
    %c300 = arith.constant 300 : index
    %31 = vector.load %arg10[%c0_37, %c300] : memref<256x324xf32, #tpu.memory_space<vmem>>, vector<256x4xf32>
    tpu.vector_store %arg10[%c0_37, %c300], %30 {strides = array<i32>} : memref<256x324xf32, #tpu.memory_space<vmem>>, vector<256x4xf32>,
    %c0_38 = arith.constant 0 : index
    %c1_39 = arith.constant 1 : index
    %c1_40 = arith.constant 1 : index
    %c0_41 = arith.constant 0 : index
    %32 = vector.load %arg2[%c0_38, %c1_39, %c1_40, %c0_41] : memref<1x18x18x32xf32, #tpu.memory_space<vmem>>, vector<1x16x16x32xf32>
    %33 = vector.shape_cast %32 : vector<1x16x16x32xf32> to vector<16x16x32xf32>
    %34 = vector.shape_cast %33 : vector<16x16x32xf32> to vector<256x32xf32>
    %c0_42 = arith.constant 0 : index
    %c128 = arith.constant 128 : index
    %35 = vector.load %arg10[%c0_42, %c128] : memref<256x324xf32, #tpu.memory_space<vmem>>, vector<256x32xf32>
    tpu.vector_store %arg10[%c0_42, %c128], %34 {strides = array<i32>} : memref<256x324xf32, #tpu.memory_space<vmem>>, vector<256x32xf32>,
    %c0_43 = arith.constant 0 : index
    %c1_44 = arith.constant 1 : index
    %c1_45 = arith.constant 1 : index
    %c0_46 = arith.constant 0 : index
    %36 = vector.load %arg1[%c0_43, %c1_44, %c1_45, %c0_46] : memref<1x18x18x4xf32, #tpu.memory_space<vmem>>, vector<1x16x16x4xf32>
    %37 = vector.shape_cast %36 : vector<1x16x16x4xf32> to vector<16x16x4xf32>
    %38 = vector.shape_cast %37 : vector<16x16x4xf32> to vector<256x4xf32>
    %c0_47 = arith.constant 0 : index
    %c304 = arith.constant 304 : index
    %39 = vector.load %arg10[%c0_47, %c304] : memref<256x324xf32, #tpu.memory_space<vmem>>, vector<256x4xf32>
    tpu.vector_store %arg10[%c0_47, %c304], %38 {strides = array<i32>} : memref<256x324xf32, #tpu.memory_space<vmem>>, vector<256x4xf32>,
    %c0_48 = arith.constant 0 : index
    %c1_49 = arith.constant 1 : index
    %c2_50 = arith.constant 2 : index
    %c0_51 = arith.constant 0 : index
    %40 = vector.load %arg2[%c0_48, %c1_49, %c2_50, %c0_51] : memref<1x18x18x32xf32, #tpu.memory_space<vmem>>, vector<1x16x16x32xf32>
    %41 = vector.shape_cast %40 : vector<1x16x16x32xf32> to vector<16x16x32xf32>
    %42 = vector.shape_cast %41 : vector<16x16x32xf32> to vector<256x32xf32>
    %c0_52 = arith.constant 0 : index
    %c160 = arith.constant 160 : index
    %43 = vector.load %arg10[%c0_52, %c160] : memref<256x324xf32, #tpu.memory_space<vmem>>, vector<256x32xf32>
    tpu.vector_store %arg10[%c0_52, %c160], %42 {strides = array<i32>} : memref<256x324xf32, #tpu.memory_space<vmem>>, vector<256x32xf32>,
    %c0_53 = arith.constant 0 : index
    %c1_54 = arith.constant 1 : index
    %c2_55 = arith.constant 2 : index
    %c0_56 = arith.constant 0 : index
    %44 = vector.load %arg1[%c0_53, %c1_54, %c2_55, %c0_56] : memref<1x18x18x4xf32, #tpu.memory_space<vmem>>, vector<1x16x16x4xf32>
    %45 = vector.shape_cast %44 : vector<1x16x16x4xf32> to vector<16x16x4xf32>
    %46 = vector.shape_cast %45 : vector<16x16x4xf32> to vector<256x4xf32>
    %c0_57 = arith.constant 0 : index
    %c308 = arith.constant 308 : index
    %47 = vector.load %arg10[%c0_57, %c308] : memref<256x324xf32, #tpu.memory_space<vmem>>, vector<256x4xf32>
    tpu.vector_store %arg10[%c0_57, %c308], %46 {strides = array<i32>} : memref<256x324xf32, #tpu.memory_space<vmem>>, vector<256x4xf32>,
    %c0_58 = arith.constant 0 : index
    %c2_59 = arith.constant 2 : index
    %c0_60 = arith.constant 0 : index
    %c0_61 = arith.constant 0 : index
    %48 = vector.load %arg2[%c0_58, %c2_59, %c0_60, %c0_61] : memref<1x18x18x32xf32, #tpu.memory_space<vmem>>, vector<1x16x16x32xf32>
    %49 = vector.shape_cast %48 : vector<1x16x16x32xf32> to vector<16x16x32xf32>
    %50 = vector.shape_cast %49 : vector<16x16x32xf32> to vector<256x32xf32>
    %c0_62 = arith.constant 0 : index
    %c192 = arith.constant 192 : index
    %51 = vector.load %arg10[%c0_62, %c192] : memref<256x324xf32, #tpu.memory_space<vmem>>, vector<256x32xf32>
    tpu.vector_store %arg10[%c0_62, %c192], %50 {strides = array<i32>} : memref<256x324xf32, #tpu.memory_space<vmem>>, vector<256x32xf32>,
    %c0_63 = arith.constant 0 : index
    %c2_64 = arith.constant 2 : index
    %c0_65 = arith.constant 0 : index
    %c0_66 = arith.constant 0 : index
    %52 = vector.load %arg1[%c0_63, %c2_64, %c0_65, %c0_66] : memref<1x18x18x4xf32, #tpu.memory_space<vmem>>, vector<1x16x16x4xf32>
    %53 = vector.shape_cast %52 : vector<1x16x16x4xf32> to vector<16x16x4xf32>
    %54 = vector.shape_cast %53 : vector<16x16x4xf32> to vector<256x4xf32>
    %c0_67 = arith.constant 0 : index
    %c312 = arith.constant 312 : index
    %55 = vector.load %arg10[%c0_67, %c312] : memref<256x324xf32, #tpu.memory_space<vmem>>, vector<256x4xf32>
    tpu.vector_store %arg10[%c0_67, %c312], %54 {strides = array<i32>} : memref<256x324xf32, #tpu.memory_space<vmem>>, vector<256x4xf32>,
    %c0_68 = arith.constant 0 : index
    %c2_69 = arith.constant 2 : index
    %c1_70 = arith.constant 1 : index
    %c0_71 = arith.constant 0 : index
    %56 = vector.load %arg2[%c0_68, %c2_69, %c1_70, %c0_71] : memref<1x18x18x32xf32, #tpu.memory_space<vmem>>, vector<1x16x16x32xf32>
    %57 = vector.shape_cast %56 : vector<1x16x16x32xf32> to vector<16x16x32xf32>
    %58 = vector.shape_cast %57 : vector<16x16x32xf32> to vector<256x32xf32>
    %c0_72 = arith.constant 0 : index
    %c224 = arith.constant 224 : index
    %59 = vector.load %arg10[%c0_72, %c224] : memref<256x324xf32, #tpu.memory_space<vmem>>, vector<256x32xf32>
    tpu.vector_store %arg10[%c0_72, %c224], %58 {strides = array<i32>} : memref<256x324xf32, #tpu.memory_space<vmem>>, vector<256x32xf32>,
    %c0_73 = arith.constant 0 : index
    %c2_74 = arith.constant 2 : index
    %c1_75 = arith.constant 1 : index
    %c0_76 = arith.constant 0 : index
    %60 = vector.load %arg1[%c0_73, %c2_74, %c1_75, %c0_76] : memref<1x18x18x4xf32, #tpu.memory_space<vmem>>, vector<1x16x16x4xf32>
    %61 = vector.shape_cast %60 : vector<1x16x16x4xf32> to vector<16x16x4xf32>
    %62 = vector.shape_cast %61 : vector<16x16x4xf32> to vector<256x4xf32>
    %c0_77 = arith.constant 0 : index
    %c316 = arith.constant 316 : index
    %63 = vector.load %arg10[%c0_77, %c316] : memref<256x324xf32, #tpu.memory_space<vmem>>, vector<256x4xf32>
    tpu.vector_store %arg10[%c0_77, %c316], %62 {strides = array<i32>} : memref<256x324xf32, #tpu.memory_space<vmem>>, vector<256x4xf32>,
    %c0_78 = arith.constant 0 : index
    %c2_79 = arith.constant 2 : index
    %c2_80 = arith.constant 2 : index
    %c0_81 = arith.constant 0 : index
    %64 = vector.load %arg2[%c0_78, %c2_79, %c2_80, %c0_81] : memref<1x18x18x32xf32, #tpu.memory_space<vmem>>, vector<1x16x16x32xf32>
    %65 = vector.shape_cast %64 : vector<1x16x16x32xf32> to vector<16x16x32xf32>
    %66 = vector.shape_cast %65 : vector<16x16x32xf32> to vector<256x32xf32>
    %c0_82 = arith.constant 0 : index
    %c256 = arith.constant 256 : index
    %67 = vector.load %arg10[%c0_82, %c256] : memref<256x324xf32, #tpu.memory_space<vmem>>, vector<256x32xf32>
    tpu.vector_store %arg10[%c0_82, %c256], %66 {strides = array<i32>} : memref<256x324xf32, #tpu.memory_space<vmem>>, vector<256x32xf32>,
    %c0_83 = arith.constant 0 : index
    %c2_84 = arith.constant 2 : index
    %c2_85 = arith.constant 2 : index
    %c0_86 = arith.constant 0 : index
    %68 = vector.load %arg1[%c0_83, %c2_84, %c2_85, %c0_86] : memref<1x18x18x4xf32, #tpu.memory_space<vmem>>, vector<1x16x16x4xf32>
    %69 = vector.shape_cast %68 : vector<1x16x16x4xf32> to vector<16x16x4xf32>
    %70 = vector.shape_cast %69 : vector<16x16x4xf32> to vector<256x4xf32>
    %c0_87 = arith.constant 0 : index
    %c320 = arith.constant 320 : index
    %71 = vector.load %arg10[%c0_87, %c320] : memref<256x324xf32, #tpu.memory_space<vmem>>, vector<256x4xf32>
    tpu.vector_store %arg10[%c0_87, %c320], %70 {strides = array<i32>} : memref<256x324xf32, #tpu.memory_space<vmem>>, vector<256x4xf32>,
    %c0_88 = arith.constant 0 : index
    %c128_89 = arith.constant 128 : index
    %72 = vector.load %arg10[%c0_88, %c128_89] : memref<256x324xf32, #tpu.memory_space<vmem>>, vector<256x32xf32>
    %cst = arith.constant dense<0.000000e+00> : vector<32xf32>
    %73 = vector.multi_reduction <add>, %72, %cst [0] : vector<256x32xf32> to vector<32xf32>
    %74 = vector.shape_cast %73 : vector<32xf32> to vector<1x32xf32>
    %cst_90 = arith.constant 3.906250e-03 : f32
    %75 = vector.broadcast %cst_90 : f32 to vector<1x32xf32>
    %76 = arith.mulf %74, %75 : vector<1x32xf32>
    %c0_91 = arith.constant 0 : index
    %c304_92 = arith.constant 304 : index
    %77 = vector.load %arg10[%c0_91, %c304_92] : memref<256x324xf32, #tpu.memory_space<vmem>>, vector<256x4xf32>
    %cst_93 = arith.constant dense<0.000000e+00> : vector<4xf32>
    %78 = vector.multi_reduction <add>, %77, %cst_93 [0] : vector<256x4xf32> to vector<4xf32>
    %79 = vector.shape_cast %78 : vector<4xf32> to vector<1x4xf32>
    %cst_94 = arith.constant 3.906250e-03 : f32
    %80 = vector.broadcast %cst_94 : f32 to vector<1x4xf32>
    %81 = arith.mulf %79, %80 : vector<1x4xf32>
    %82 = tpu.concatenate %81, %76 in 1 : vector<1x4xf32>, vector<1x32xf32> -> vector<1x36xf32>
    %c0_95 = arith.constant 0 : index
    %c0_96 = arith.constant 0 : index
    %83 = vector.load %arg10[%c0_95, %c0_96] : memref<256x324xf32, #tpu.memory_space<vmem>>, vector<256x324xf32>
    %c0_97 = arith.constant 0 : index
    %c0_98 = arith.constant 0 : index
    %84 = vector.load %arg4[%c0_97, %c0_98] : memref<324x64xf32, #tpu.memory_space<vmem>>, vector<324x64xf32>
    %cst_99 = arith.constant dense<0.000000e+00> : vector<256x64xf32>
    %85 = tpu.matmul %83, %84, %cst_99 {dimension_numbers = #tpu.dot_dimension_numbers<[1], [0], [0], [1], [0, 0, 1, 1], [], []>} : vector<256x324xf32>, vector<324x64xf32>, vector<256x64xf32> -> vector<256x64xf32>
    %c0_100 = arith.constant 0 : index
    %c0_101 = arith.constant 0 : index
    %86 = vector.load %arg5[%c0_100, %c0_101] : memref<1x64xf32, #tpu.memory_space<vmem>>, vector<1x64xf32>
    %87 = vector.broadcast %86 : vector<1x64xf32> to vector<256x64xf32>
    %88 = arith.addf %85, %87 : vector<256x64xf32>
    %89 = math.tanh %88 : vector<256x64xf32>
    %90 = vector.extract_strided_slice %89 {offsets = [0, 0], sizes = [256, 32], strides = [1, 1]} : vector<256x64xf32> to vector<256x32xf32>
    %91 = vector.extract_strided_slice %89 {offsets = [0, 32], sizes = [256, 32], strides = [1, 1]} : vector<256x64xf32> to vector<256x32xf32>
    %cst_102 = arith.constant 0.000000e+00 : f32
    %92 = vector.broadcast %cst_102 : f32 to vector<1x18x32xf32>
    %c0_103 = arith.constant 0 : index
    %c0_104 = arith.constant 0 : index
    %c0_105 = arith.constant 0 : index
    %93 = vector.load %arg11[%c0_103, %c0_104, %c0_105] : memref<18x18x32xf32, #tpu.memory_space<vmem>>, vector<1x18x32xf32>
    tpu.vector_store %arg11[%c0_103, %c0_104, %c0_105], %92 {strides = array<i32>} : memref<18x18x32xf32, #tpu.memory_space<vmem>>, vector<1x18x32xf32>,
    %cst_106 = arith.constant 0.000000e+00 : f32
    %94 = vector.broadcast %cst_106 : f32 to vector<1x18x32xf32>
    %c17 = arith.constant 17 : index
    %c0_107 = arith.constant 0 : index
    %c0_108 = arith.constant 0 : index
    %95 = vector.load %arg11[%c17, %c0_107, %c0_108] : memref<18x18x32xf32, #tpu.memory_space<vmem>>, vector<1x18x32xf32>
    tpu.vector_store %arg11[%c17, %c0_107, %c0_108], %94 {strides = array<i32>} : memref<18x18x32xf32, #tpu.memory_space<vmem>>, vector<1x18x32xf32>,
    %cst_109 = arith.constant 0.000000e+00 : f32
    %96 = vector.broadcast %cst_109 : f32 to vector<18x1x32xf32>
    %c0_110 = arith.constant 0 : index
    %c0_111 = arith.constant 0 : index
    %c0_112 = arith.constant 0 : index
    %97 = vector.load %arg11[%c0_110, %c0_111, %c0_112] : memref<18x18x32xf32, #tpu.memory_space<vmem>>, vector<18x1x32xf32>
    tpu.vector_store %arg11[%c0_110, %c0_111, %c0_112], %96 {strides = array<i32>} : memref<18x18x32xf32, #tpu.memory_space<vmem>>, vector<18x1x32xf32>,
    %cst_113 = arith.constant 0.000000e+00 : f32
    %98 = vector.broadcast %cst_113 : f32 to vector<18x1x32xf32>
    %c0_114 = arith.constant 0 : index
    %c17_115 = arith.constant 17 : index
    %c0_116 = arith.constant 0 : index
    %99 = vector.load %arg11[%c0_114, %c17_115, %c0_116] : memref<18x18x32xf32, #tpu.memory_space<vmem>>, vector<18x1x32xf32>
    tpu.vector_store %arg11[%c0_114, %c17_115, %c0_116], %98 {strides = array<i32>} : memref<18x18x32xf32, #tpu.memory_space<vmem>>, vector<18x1x32xf32>,
    %100 = vector.shape_cast %90 : vector<256x32xf32> to vector<16x16x32xf32>
    %c1_117 = arith.constant 1 : index
    %c1_118 = arith.constant 1 : index
    %c0_119 = arith.constant 0 : index
    %101 = vector.load %arg11[%c1_117, %c1_118, %c0_119] : memref<18x18x32xf32, #tpu.memory_space<vmem>>, vector<16x16x32xf32>
    tpu.vector_store %arg11[%c1_117, %c1_118, %c0_119], %100 {strides = array<i32>} : memref<18x18x32xf32, #tpu.memory_space<vmem>>, vector<16x16x32xf32>,
    %c0_120 = arith.constant 0 : index
    %c0_121 = arith.constant 0 : index
    %c0_122 = arith.constant 0 : index
    %102 = vector.load %arg11[%c0_120, %c0_121, %c0_122] : memref<18x18x32xf32, #tpu.memory_space<vmem>>, vector<16x16x32xf32>
    %103 = vector.shape_cast %102 : vector<16x16x32xf32> to vector<256x32xf32>
    %c0_123 = arith.constant 0 : index
    %c0_124 = arith.constant 0 : index
    %104 = vector.load %arg10[%c0_123, %c0_124] : memref<256x324xf32, #tpu.memory_space<vmem>>, vector<256x32xf32>
    tpu.vector_store %arg10[%c0_123, %c0_124], %103 {strides = array<i32>} : memref<256x324xf32, #tpu.memory_space<vmem>>, vector<256x32xf32>,
    %c0_125 = arith.constant 0 : index
    %c1_126 = arith.constant 1 : index
    %c0_127 = arith.constant 0 : index
    %105 = vector.load %arg11[%c0_125, %c1_126, %c0_127] : memref<18x18x32xf32, #tpu.memory_space<vmem>>, vector<16x16x32xf32>
    %106 = vector.shape_cast %105 : vector<16x16x32xf32> to vector<256x32xf32>
    %c0_128 = arith.constant 0 : index
    %c32_129 = arith.constant 32 : index
    %107 = vector.load %arg10[%c0_128, %c32_129] : memref<256x324xf32, #tpu.memory_space<vmem>>, vector<256x32xf32>
    tpu.vector_store %arg10[%c0_128, %c32_129], %106 {strides = array<i32>} : memref<256x324xf32, #tpu.memory_space<vmem>>, vector<256x32xf32>,
    %c0_130 = arith.constant 0 : index
    %c2_131 = arith.constant 2 : index
    %c0_132 = arith.constant 0 : index
    %108 = vector.load %arg11[%c0_130, %c2_131, %c0_132] : memref<18x18x32xf32, #tpu.memory_space<vmem>>, vector<16x16x32xf32>
    %109 = vector.shape_cast %108 : vector<16x16x32xf32> to vector<256x32xf32>
    %c0_133 = arith.constant 0 : index
    %c64_134 = arith.constant 64 : index
    %110 = vector.load %arg10[%c0_133, %c64_134] : memref<256x324xf32, #tpu.memory_space<vmem>>, vector<256x32xf32>
    tpu.vector_store %arg10[%c0_133, %c64_134], %109 {strides = array<i32>} : memref<256x324xf32, #tpu.memory_space<vmem>>, vector<256x32xf32>,
    %c1_135 = arith.constant 1 : index
    %c0_136 = arith.constant 0 : index
    %c0_137 = arith.constant 0 : index
    %111 = vector.load %arg11[%c1_135, %c0_136, %c0_137] : memref<18x18x32xf32, #tpu.memory_space<vmem>>, vector<16x16x32xf32>
    %112 = vector.shape_cast %111 : vector<16x16x32xf32> to vector<256x32xf32>
    %c0_138 = arith.constant 0 : index
    %c96_139 = arith.constant 96 : index
    %113 = vector.load %arg10[%c0_138, %c96_139] : memref<256x324xf32, #tpu.memory_space<vmem>>, vector<256x32xf32>
    tpu.vector_store %arg10[%c0_138, %c96_139], %112 {strides = array<i32>} : memref<256x324xf32, #tpu.memory_space<vmem>>, vector<256x32xf32>,
    %c1_140 = arith.constant 1 : index
    %c1_141 = arith.constant 1 : index
    %c0_142 = arith.constant 0 : index
    %114 = vector.load %arg11[%c1_140, %c1_141, %c0_142] : memref<18x18x32xf32, #tpu.memory_space<vmem>>, vector<16x16x32xf32>
    %115 = vector.shape_cast %114 : vector<16x16x32xf32> to vector<256x32xf32>
    %c0_143 = arith.constant 0 : index
    %c128_144 = arith.constant 128 : index
    %116 = vector.load %arg10[%c0_143, %c128_144] : memref<256x324xf32, #tpu.memory_space<vmem>>, vector<256x32xf32>
    tpu.vector_store %arg10[%c0_143, %c128_144], %115 {strides = array<i32>} : memref<256x324xf32, #tpu.memory_space<vmem>>, vector<256x32xf32>,
    %c1_145 = arith.constant 1 : index
    %c2_146 = arith.constant 2 : index
    %c0_147 = arith.constant 0 : index
    %117 = vector.load %arg11[%c1_145, %c2_146, %c0_147] : memref<18x18x32xf32, #tpu.memory_space<vmem>>, vector<16x16x32xf32>
    %118 = vector.shape_cast %117 : vector<16x16x32xf32> to vector<256x32xf32>
    %c0_148 = arith.constant 0 : index
    %c160_149 = arith.constant 160 : index
    %119 = vector.load %arg10[%c0_148, %c160_149] : memref<256x324xf32, #tpu.memory_space<vmem>>, vector<256x32xf32>
    tpu.vector_store %arg10[%c0_148, %c160_149], %118 {strides = array<i32>} : memref<256x324xf32, #tpu.memory_space<vmem>>, vector<256x32xf32>,
    %c2_150 = arith.constant 2 : index
    %c0_151 = arith.constant 0 : index
    %c0_152 = arith.constant 0 : index
    %120 = vector.load %arg11[%c2_150, %c0_151, %c0_152] : memref<18x18x32xf32, #tpu.memory_space<vmem>>, vector<16x16x32xf32>
    %121 = vector.shape_cast %120 : vector<16x16x32xf32> to vector<256x32xf32>
    %c0_153 = arith.constant 0 : index
    %c192_154 = arith.constant 192 : index
    %122 = vector.load %arg10[%c0_153, %c192_154] : memref<256x324xf32, #tpu.memory_space<vmem>>, vector<256x32xf32>
    tpu.vector_store %arg10[%c0_153, %c192_154], %121 {strides = array<i32>} : memref<256x324xf32, #tpu.memory_space<vmem>>, vector<256x32xf32>,
    %c2_155 = arith.constant 2 : index
    %c1_156 = arith.constant 1 : index
    %c0_157 = arith.constant 0 : index
    %123 = vector.load %arg11[%c2_155, %c1_156, %c0_157] : memref<18x18x32xf32, #tpu.memory_space<vmem>>, vector<16x16x32xf32>
    %124 = vector.shape_cast %123 : vector<16x16x32xf32> to vector<256x32xf32>
    %c0_158 = arith.constant 0 : index
    %c224_159 = arith.constant 224 : index
    %125 = vector.load %arg10[%c0_158, %c224_159] : memref<256x324xf32, #tpu.memory_space<vmem>>, vector<256x32xf32>
    tpu.vector_store %arg10[%c0_158, %c224_159], %124 {strides = array<i32>} : memref<256x324xf32, #tpu.memory_space<vmem>>, vector<256x32xf32>,
    %c2_160 = arith.constant 2 : index
    %c2_161 = arith.constant 2 : index
    %c0_162 = arith.constant 0 : index
    %126 = vector.load %arg11[%c2_160, %c2_161, %c0_162] : memref<18x18x32xf32, #tpu.memory_space<vmem>>, vector<16x16x32xf32>
    %127 = vector.shape_cast %126 : vector<16x16x32xf32> to vector<256x32xf32>
    %c0_163 = arith.constant 0 : index
    %c256_164 = arith.constant 256 : index
    %128 = vector.load %arg10[%c0_163, %c256_164] : memref<256x324xf32, #tpu.memory_space<vmem>>, vector<256x32xf32>
    tpu.vector_store %arg10[%c0_163, %c256_164], %127 {strides = array<i32>} : memref<256x324xf32, #tpu.memory_space<vmem>>, vector<256x32xf32>,
    %c0_165 = arith.constant 0 : index
    %c0_166 = arith.constant 0 : index
    %129 = vector.load %arg10[%c0_165, %c0_166] : memref<256x324xf32, #tpu.memory_space<vmem>>, vector<256x288xf32>
    %c0_167 = arith.constant 0 : index
    %c0_168 = arith.constant 0 : index
    %130 = vector.load %arg6[%c0_167, %c0_168] : memref<288x32xf32, #tpu.memory_space<vmem>>, vector<288x32xf32>
    %cst_169 = arith.constant dense<0.000000e+00> : vector<256x32xf32>
    %131 = tpu.matmul %129, %130, %cst_169 {dimension_numbers = #tpu.dot_dimension_numbers<[1], [0], [0], [1], [0, 0, 1, 1], [], []>} : vector<256x288xf32>, vector<288x32xf32>, vector<256x32xf32> -> vector<256x32xf32>
    %cst_170 = arith.constant dense<0xFF800000> : vector<32xf32>
    %132 = vector.multi_reduction <maximumf>, %131, %cst_170 [0] : vector<256x32xf32> to vector<32xf32>
    %133 = vector.shape_cast %132 : vector<32xf32> to vector<1x32xf32>
    %134 = vector.broadcast %133 : vector<1x32xf32> to vector<256x32xf32>
    %135 = arith.subf %131, %134 : vector<256x32xf32>
    %136 = math.exp %135 : vector<256x32xf32>
    %c0_171 = arith.constant 0 : index
    %c0_172 = arith.constant 0 : index
    %137 = vector.load %arg7[%c0_171, %c0_172] : memref<36x64xf32, #tpu.memory_space<vmem>>, vector<36x64xf32>
    %cst_173 = arith.constant dense<0.000000e+00> : vector<1x64xf32>
    %138 = tpu.matmul %82, %137, %cst_173 {dimension_numbers = #tpu.dot_dimension_numbers<[1], [0], [0], [1], [0, 0, 1, 1], [], []>} : vector<1x36xf32>, vector<36x64xf32>, vector<1x64xf32> -> vector<1x64xf32>
    %c0_174 = arith.constant 0 : index
    %c0_175 = arith.constant 0 : index
    %139 = vector.load %arg8[%c0_174, %c0_175] : memref<1x64xf32, #tpu.memory_space<vmem>>, vector<1x64xf32>
    %140 = arith.addf %138, %139 : vector<1x64xf32>
    %cst_176 = arith.constant 0.000000e+00 : f32
    %141 = vector.broadcast %cst_176 : f32 to vector<1x64xf32>
    %142 = arith.subf %141, %140 : vector<1x64xf32>
    %143 = math.exp %142 : vector<1x64xf32>
    %cst_177 = arith.constant 1.000000e+00 : f32
    %144 = vector.broadcast %cst_177 : f32 to vector<1x64xf32>
    %145 = arith.addf %144, %143 : vector<1x64xf32>
    %cst_178 = arith.constant 1.000000e+00 : f32
    %146 = vector.broadcast %cst_178 : f32 to vector<1x64xf32>
    %147 = arith.divf %146, %145 : vector<1x64xf32>
    %148 = vector.extract_strided_slice %147 {offsets = [0, 0], sizes = [1, 32], strides = [1, 1]} : vector<1x64xf32> to vector<1x32xf32>
    %149 = vector.extract_strided_slice %147 {offsets = [0, 32], sizes = [1, 32], strides = [1, 1]} : vector<1x64xf32> to vector<1x32xf32>
    %c0_179 = arith.constant 0 : index
    %c0_180 = arith.constant 0 : index
    %c0_181 = arith.constant 0 : index
    %150 = vector.load %arg3[%c0_179, %c0_180, %c0_181] : memref<1x256x32xf32, #tpu.memory_space<vmem>>, vector<1x256x32xf32>
    %151 = vector.shape_cast %150 : vector<1x256x32xf32> to vector<256x32xf32>
    %152 = vector.broadcast %149 : vector<1x32xf32> to vector<256x32xf32>
    %153 = arith.mulf %152, %151 : vector<256x32xf32>
    %154 = vector.broadcast %148 : vector<1x32xf32> to vector<256x32xf32>
    %155 = arith.mulf %154, %91 : vector<256x32xf32>
    %156 = arith.addf %153, %155 : vector<256x32xf32>
    %157 = math.tanh %156 : vector<256x32xf32>
    %158 = arith.mulf %136, %157 : vector<256x32xf32>
    %159 = tpu.concatenate %158, %156 in 1 : vector<256x32xf32>, vector<256x32xf32> -> vector<256x64xf32>
    %c0_182 = arith.constant 0 : index
    %c0_183 = arith.constant 0 : index
    %c0_184 = arith.constant 0 : index
    %160 = vector.load %arg9[%c0_182, %c0_183, %c0_184] : memref<1x256x64xf32, #tpu.memory_space<vmem>>, vector<1x256x64xf32>
    %161 = vector.shape_cast %160 : vector<1x256x64xf32> to vector<256x64xf32>
    %162 = vector.shape_cast %159 : vector<256x64xf32> to vector<1x256x64xf32>
    tpu.vector_store %arg9[%c0_182, %c0_183, %c0_184], %162 {strides = array<i32>} : memref<1x256x64xf32, #tpu.memory_space<vmem>>, vector<1x256x64xf32>,
    return
  }
  func.func @transform_0(%arg0: i32) -> (i32, i32, i32, i32) {
    %c0_i32 = arith.constant 0 : i32
    %c0_i32_0 = arith.constant 0 : i32
    %c0_i32_1 = arith.constant 0 : i32
    %c0_i32_2 = arith.constant 0 : i32
    return %arg0, %c0_i32, %c0_i32_0, %c0_i32_1 : i32, i32, i32, i32
  }
  func.func @transform_1(%arg0: i32) -> (i32, i32, i32, i32) {
    %c0_i32 = arith.constant 0 : i32
    %c0_i32_0 = arith.constant 0 : i32
    %c0_i32_1 = arith.constant 0 : i32
    %c0_i32_2 = arith.constant 0 : i32
    return %arg0, %c0_i32, %c0_i32_0, %c0_i32_1 : i32, i32, i32, i32
  }
  func.func @transform_2(%arg0: i32) -> (i32, i32, i32) {
    %c0_i32 = arith.constant 0 : i32
    %c0_i32_0 = arith.constant 0 : i32
    %c0_i32_1 = arith.constant 0 : i32
    return %arg0, %c0_i32, %c0_i32_0 : i32, i32, i32
  }
  func.func @transform_3(%arg0: i32) -> (i32, i32) {
    %c0_i32 = arith.constant 0 : i32
    %c0_i32_0 = arith.constant 0 : i32
    %c0_i32_1 = arith.constant 0 : i32
    return %c0_i32, %c0_i32_0 : i32, i32
  }
  func.func @transform_4(%arg0: i32) -> (i32, i32) {
    %c0_i32 = arith.constant 0 : i32
    %c0_i32_0 = arith.constant 0 : i32
    %c0_i32_1 = arith.constant 0 : i32
    return %c0_i32, %c0_i32_0 : i32, i32
  }
  func.func @transform_5(%arg0: i32) -> (i32, i32) {
    %c0_i32 = arith.constant 0 : i32
    %c0_i32_0 = arith.constant 0 : i32
    %c0_i32_1 = arith.constant 0 : i32
    return %c0_i32, %c0_i32_0 : i32, i32
  }
  func.func @transform_6(%arg0: i32) -> (i32, i32) {
    %c0_i32 = arith.constant 0 : i32
    %c0_i32_0 = arith.constant 0 : i32
    %c0_i32_1 = arith.constant 0 : i32
    return %c0_i32, %c0_i32_0 : i32, i32
  }
  func.func @transform_7(%arg0: i32) -> (i32, i32) {
    %c0_i32 = arith.constant 0 : i32
    %c0_i32_0 = arith.constant 0 : i32
    %c0_i32_1 = arith.constant 0 : i32
    return %c0_i32, %c0_i32_0 : i32, i32
  }
  func.func @transform_8(%arg0: i32) -> (i32, i32, i32) {
    %c0_i32 = arith.constant 0 : i32
    %c0_i32_0 = arith.constant 0 : i32
    %c0_i32_1 = arith.constant 0 : i32
    return %arg0, %c0_i32, %c0_i32_0 : i32, i32, i32
  }
}

</mosaic_0001>

<bundles_post_ra>
// kernel: tpu_custom_call.1
= control target key start
LH: loop header
LB: loop body
LE: loop exit
PB: predicated region body
PF: predicated region fallthrough
CT: control target
= control target key end

     0   :  { %s8629_s27 = smov 0   ;;  %s13130_s0 = inlined_call_operand.vmem [shape: f32[2,18,18,4], index: 0, kind: input, shape index: {}]   ;;  %s13131_s1 = inlined_call_operand.vmem [shape: f32[2,18,18,32], index: 1, kind: input, shape index: {}]   ;;  %s13132_s2 = inlined_call_operand.vmem [shape: f32[2,256,32], index: 2, kind: input, shape index: {}]   ;;  %s13133_s3 = inlined_call_operand.vmem [shape: f32[324,64], index: 3, kind: input, shape index: {}]   ;;  %s13134_s4 = inlined_call_operand.vmem [shape: f32[1,64], index: 4, kind: input, shape index: {}]   ;;  %s13135_s5 = inlined_call_operand.vmem [shape: f32[288,32], index: 5, kind: input, shape index: {}]   ;;  %s13136_s6 = inlined_call_operand.vmem [shape: f32[36,64], index: 6, kind: input, shape index: {}]   ;;  %s13137_s7 = inlined_call_operand.vmem [shape: f32[1,64], index: 7, kind: input, shape index: {}]   ;;  %s13138_s8 = inlined_call_operand.vmem [shape: f32[2,256,64], index: 8, kind: output, shape index: {}]  }
   0x1 LB: > { %s7519_s28 = sadd.s32 4294967295, %s8567_s27   ;;  %p7523_p0 = scmp.ge.s32.totalorder %s8567_s27, 1  ;;  %s8567_s27 = sphi %s8629_s27, %s18_s27  }
   0x2   : > { %p282_p1 = scmp.lt.s32.totalorder %s8567_s27, 3 }
   0x4   : > { %p283_p2 = pnand %p7523_p0, %p282_p1 }
   0x6   : > { %286 = sbr.rel (%p283_p2) target bundleno = 2290 (0x8f2), region = 52 }
   0xd   : > { %p326_p3 = scmp.lt.s32.totalorder %s7519_s28, 1  ;;  %s8569_s11 = smov 32   ;;  %vm378_vm0 = vcmask 261120   ;;  %vm571_vm1 = vcmask 294144   ;;  %vm764_vm2 = vcmask 523520   ;;  %vm957_vm3 = vcmask 326944  }
   0xe   : > { %s8570_s15 = smov 36   ;;  %s8571_s16 = smov 64   ;;  %vm1150_vm4 = vcmask 785920   ;;  %vm1343_vm5 = vcmask 359744   ;;  %vm1537_vm6 = vcmask 1048320   ;;  %vm1731_vm7 = vcmask 392544  }
   0xf   : > { %s13336_s28 = smov (!%p326_p3, %s7519_s28), 1  ;;  %s8572_s17 = smov 40   ;;  %vm1988_vm8 = vcmask 425344   ;;  %vm2373_vm9 = vcmask 458144   ;;  %vm3826_vm10 = vcmask 1043456   ;;  %vm2760_vm11 = vcmask 490944  }
  0x10   : > { %s8334_s29 = smul.u32 432, %s13336_s28  ;;  %s8573_s18 = smov 96   ;;  %vm3145_vm12 = vcmask 523744   ;;  %vm3402_vm13 = vcmask 556544   ;;  %vm3729_vm14 = vcmask 556032   ;;  %vm4320_vm15 = vcmask 253952  }
  0x11   : > { %s8574_s19 = smov 44   ;;  %s8575_s20 = smov 48  }
  0x12   : > { %s8645_s10 = scalar_lea.vmem %s13130_s0, %s8334_s29  ;;  %s8702_s14 = scalar_lea.vmem %s13131_s1, %s8334_s29 }
  0x13   : > { %v413_v0 = vld [vmem:[%s8645_s10 + $0x18] sm:$0xff]  ;;  %v411_v1 = vld [vmem:[%s8645_s10] sm:$0xff]  ;;  %v412_v3 = vld [vmem:[%s8645_s10 + $0x8] sm:$0xff]  ;;  %s8576_s21 = smov 52   ;;  %s8578_s23 = smov 56  }
  0x14   : > { %479 = vrot.lane.b32.xlu1 %v413_v0, %s8569_s11  ;;  %475 = vrot.lane.b32.xlu0 %v411_v1, %s8569_s11  ;;  %v414_v2 = vld [vmem:[%s8645_s10 + $0x20] sm:$0xff]  ;;  %v416_v4 = vld [vmem:[%s8645_s10 + $0x38] sm:$0xff]  ;;  %s8579_s30 = smov 60   ;;  %s8582_s25 = smov 4  }
  0x15   : > { %v415_v5 = vld [vmem:[%s8645_s10 + $0x30] sm:$0xff]  ;;  %v417_v7 = vld [vmem:[%s8645_s10 + $0x48] sm:$0xff]  ;;  %v419_v9 = vld [vmem:[%s8645_s10 + $0x60] sm:$0xff] }
  0x16   : > { %v418_v6 = vld [vmem:[%s8645_s10 + $0x50] sm:$0xff]  ;;  %v420_v8 = vld [vmem:[%s8645_s10 + $0x68] sm:$0xff]  ;;  %v422_v10 = vld [vmem:[%s8645_s10 + $0x80] sm:$0xff] }
  0x17   : > { %v421_v11 = vld [vmem:[%s8645_s10 + $0x78] sm:$0xff]  ;;  %v423_v13 = vld [vmem:[%s8645_s10 + $0x90] sm:$0xff]  ;;  %v425_v15 = vld [vmem:[%s8645_s10 + $0xa8] sm:$0xff] }
  0x18   : > { %481 = vrot.lane.b32.xlu1 %v414_v2, %s8569_s11  ;;  %477 = vrot.lane.b32.xlu0 %v412_v3, %s8569_s11  ;;  %v424_v12 = vld [vmem:[%s8645_s10 + $0x98] sm:$0xff]  ;;  %v426_v14 = vld [vmem:[%s8645_s10 + $0xb0] sm:$0xff] }
  0x19   : > { %v428_v16 = vld [vmem:[%s8645_s10 + $0xc8] sm:$0xff]  ;;  %v427_v17 = vld [vmem:[%s8645_s10 + $0xc0] sm:$0xff]  ;;  %v429_v19 = vld [vmem:[%s8645_s10 + $0xd8] sm:$0xff] }
  0x1a   : > { %v430_v18 = vld [vmem:[%s8645_s10 + $0xe0] sm:$0xff]  ;;  %v432_v20 = vld [vmem:[%s8645_s10 + $0xf8] sm:$0xff]  ;;  %v431_v21 = vld [vmem:[%s8645_s10 + $0xf0] sm:$0xff] }
  0x1b   : > { %v434_v22 = vld [vmem:[%s8645_s10 + $0x110] sm:$0xff]  ;;  %v433_v23 = vld [vmem:[%s8645_s10 + $0x108] sm:$0xff]  ;;  %v435_v25 = vld [vmem:[%s8645_s10 + $0x120] sm:$0xff] }
  0x1c   : > { %485 = vrot.lane.b32.xlu1 %v416_v4, %s8569_s11  ;;  %483 = vrot.lane.b32.xlu0 %v415_v5, %s8569_s11  ;;  %v436_v24 = vld [vmem:[%s8645_s10 + $0x128] sm:$0xff]  ;;  %v438_v27 = vld [vmem:[%s8645_s10 + $0x140] sm:$0xff] }
  0x1d   : > { %v347_v26 = vld [vmem:[%s8702_s14 + $0x8] sm:$0xff]  ;;  %v437_v28 = vld [vmem:[%s8645_s10 + $0x138] sm:$0xff]  ;;  %v346_v29 = vld [vmem:[%s8702_s14] sm:$0xff] }
  0x1e   : > { %380 = vst.msk [vmem:[#allocation2 + $0x18] sm:$0xff] %vm378_vm0, %v347_v26  ;;  %379 = vst.msk [vmem:[#allocation2] sm:$0xff] %vm378_vm0, %v346_v29  ;;  %v8715_v30 = vld [vmem:[%s8702_s14 + $0x20] sm:$0xff]  ;;  %v440_v31 = vld [vmem:[%s8645_s10 + $0x158] sm:$0xff] }
  0x1f   : > { %v439_v32 = vld [vmem:[%s8645_s10 + $0x150] sm:$0xff]  ;;  %382 = vst.msk [vmem:[#allocation2 + $0x48] sm:$0xff] %vm378_vm0, %v8715_v30  ;;  %v8722_v33 = vld [vmem:[%s8702_s14 + $0x18] sm:$0xff]  ;;  %v441_v36 = vld [vmem:[%s8645_s10 + $0x168] sm:$0xff] }
  0x20   : > { %489 = vrot.lane.b32.xlu1 %v418_v6, %s8569_s11  ;;  %487 = vrot.lane.b32.xlu0 %v417_v7, %s8569_s11  ;;  %381 = vst.msk [vmem:[#allocation2 + $0x30] sm:$0xff] %vm378_vm0, %v8722_v33  ;;  %v8729_v34 = vld [vmem:[%s8702_s14 + $0x38] sm:$0xff]  ;;  %v442_v35 = vld [vmem:[%s8645_s10 + $0x170] sm:$0xff] }
  0x21   : > { %384 = vst.msk [vmem:[#allocation2 + $0x78] sm:$0xff] %vm378_vm0, %v8729_v34  ;;  %v8736_v37 = vld [vmem:[%s8702_s14 + $0x30] sm:$0xff]  ;;  %v604_v40 = vld [vmem:[%s8702_s14 + $0x1] sm:$0xff]  ;;  %v606_v44 = vld [vmem:[%s8702_s14 + $0x19] sm:$0xff] }
  0x22   : > { %383 = vst.msk [vmem:[#allocation2 + $0x60] sm:$0xff] %vm378_vm0, %v8736_v37  ;;  %v8743_v38 = vld [vmem:[%s8702_s14 + $0x50] sm:$0xff]  ;;  %v8750_v41 = vld [vmem:[%s8702_s14 + $0x48] sm:$0xff]  ;;  %v8764_v45 = vld [vmem:[%s8702_s14 + $0x60] sm:$0xff] }
  0x23   : > { %v605_v39 = vld [vmem:[%s8702_s14 + $0x9] sm:$0xff]  ;;  %386 = vst.msk [vmem:[#allocation2 + $0xa8] sm:$0xff] %vm378_vm0, %v8743_v38  ;;  %385 = vst.msk [vmem:[#allocation2 + $0x90] sm:$0xff] %vm378_vm0, %v8750_v41  ;;  %v607_v43 = vld [vmem:[%s8702_s14 + $0x21] sm:$0xff] }
  0x24   : > { %493 = vrot.lane.b32.xlu1 %v420_v8, %s8569_s11  ;;  %491 = vrot.lane.b32.xlu0 %v419_v9, %s8569_s11  ;;  %v8757_v42 = vld [vmem:[%s8702_s14 + $0x68] sm:$0xff]  ;;  %387 = vst.msk [vmem:[#allocation2 + $0xc0] sm:$0xff] %vm378_vm0, %v8764_v45  ;;  %v8771_v46 = vld [vmem:[%s8702_s14 + $0x80] sm:$0xff] }
  0x25   : > { %388 = vst.msk [vmem:[#allocation2 + $0xd8] sm:$0xff] %vm378_vm0, %v8757_v42  ;;  %v609_v47 = vld [vmem:[%s8702_s14 + $0x39] sm:$0xff]  ;;  %v608_v48 = vld [vmem:[%s8702_s14 + $0x31] sm:$0xff]  ;;  %390 = vst.msk [vmem:[#allocation2 + $0x108] sm:$0xff] %vm378_vm0, %v8771_v46 }
  0x26   : > { %v8778_v49 = vld [vmem:[%s8702_s14 + $0x78] sm:$0xff]  ;;  %v610_v52 = vld [vmem:[%s8702_s14 + $0x49] sm:$0xff]  ;;  %v612_v56 = vld [vmem:[%s8702_s14 + $0x61] sm:$0xff] }
  0x27   : > { %389 = vst.msk [vmem:[#allocation2 + $0xf0] sm:$0xff] %vm378_vm0, %v8778_v49  ;;  %v8785_v50 = vld [vmem:[%s8702_s14 + $0x98] sm:$0xff]  ;;  %v8792_v53 = vld [vmem:[%s8702_s14 + $0x90] sm:$0xff]  ;;  %v8806_v57 = vld [vmem:[%s8702_s14 + $0xa8] sm:$0xff] }
  0x28   : > { %497 = vrot.lane.b32.xlu1 %v422_v10, %s8569_s11  ;;  %495 = vrot.lane.b32.xlu0 %v421_v11, %s8569_s11  ;;  %v611_v51 = vld [vmem:[%s8702_s14 + $0x51] sm:$0xff]  ;;  %392 = vst.msk [vmem:[#allocation2 + $0x138] sm:$0xff] %vm378_vm0, %v8785_v50  ;;  %391 = vst.msk [vmem:[#allocation2 + $0x120] sm:$0xff] %vm378_vm0, %v8792_v53  ;;  %v613_v55 = vld [vmem:[%s8702_s14 + $0x69] sm:$0xff] }
  0x29   : > { %v8799_v54 = vld [vmem:[%s8702_s14 + $0xb0] sm:$0xff]  ;;  %393 = vst.msk [vmem:[#allocation2 + $0x150] sm:$0xff] %vm378_vm0, %v8806_v57  ;;  %v8813_v58 = vld [vmem:[%s8702_s14 + $0xc8] sm:$0xff]  ;;  %v614_v60 = vld [vmem:[%s8702_s14 + $0x79] sm:$0xff] }
  0x2a   : > { %394 = vst.msk [vmem:[#allocation2 + $0x168] sm:$0xff] %vm378_vm0, %v8799_v54  ;;  %v615_v59 = vld [vmem:[%s8702_s14 + $0x81] sm:$0xff]  ;;  %396 = vst.msk [vmem:[#allocation2 + $0x198] sm:$0xff] %vm378_vm0, %v8813_v58  ;;  %v617_v63 = vld [vmem:[%s8702_s14 + $0x99] sm:$0xff] }
  0x2b   : > { %v8820_v61 = vld [vmem:[%s8702_s14 + $0xc0] sm:$0xff]  ;;  %v616_v0 = vld [vmem:[%s8702_s14 + $0x91] sm:$0xff]  ;;  %v618_v4 = vld [vmem:[%s8702_s14 + $0xa9] sm:$0xff] }
  0x2c   : > { %501 = vrot.lane.b32.xlu1 %v424_v12, %s8569_s11  ;;  %499 = vrot.lane.b32.xlu0 %v423_v13, %s8569_s11  ;;  %395 = vst.msk [vmem:[#allocation2 + $0x180] sm:$0xff] %vm378_vm0, %v8820_v61  ;;  %v8827_v62 = vld [vmem:[%s8702_s14 + $0xe0] sm:$0xff]  ;;  %v8834_v1 = vld [vmem:[%s8702_s14 + $0xd8] sm:$0xff] }
  0x2d   : > { %398 = vst.msk [vmem:[#allocation2 + $0x1c8] sm:$0xff] %vm378_vm0, %v8827_v62  ;;  %397 = vst.msk [vmem:[#allocation2 + $0x1b0] sm:$0xff] %vm378_vm0, %v8834_v1  ;;  %v8841_v2 = vld [vmem:[%s8702_s14 + $0xf8] sm:$0xff]  ;;  %v8848_v5 = vld [vmem:[%s8702_s14 + $0xf0] sm:$0xff] }
  0x2e   : > { %v619_v3 = vld [vmem:[%s8702_s14 + $0xb1] sm:$0xff]  ;;  %400 = vst.msk [vmem:[#allocation2 + $0x1f8] sm:$0xff] %vm378_vm0, %v8841_v2  ;;  %399 = vst.msk [vmem:[#allocation2 + $0x1e0] sm:$0xff] %vm378_vm0, %v8848_v5  ;;  %v621_v7 = vld [vmem:[%s8702_s14 + $0xc9] sm:$0xff] }
  0x2f   : > { %v8855_v6 = vld [vmem:[%s8702_s14 + $0x110] sm:$0xff]  ;;  %v620_v8 = vld [vmem:[%s8702_s14 + $0xc1] sm:$0xff]  ;;  %v622_v12 = vld [vmem:[%s8702_s14 + $0xd9] sm:$0xff] }
  0x30   : > { %505 = vrot.lane.b32.xlu1 %v426_v14, %s8569_s11  ;;  %503 = vrot.lane.b32.xlu0 %v425_v15, %s8569_s11  ;;  %402 = vst.msk [vmem:[#allocation2 + $0x228] sm:$0xff] %vm378_vm0, %v8855_v6  ;;  %v8862_v9 = vld [vmem:[%s8702_s14 + $0x108] sm:$0xff]  ;;  %v8876_v13 = vld [vmem:[%s8702_s14 + $0x120] sm:$0xff] }
  0x31   : > { %401 = vst.msk [vmem:[#allocation2 + $0x210] sm:$0xff] %vm378_vm0, %v8862_v9  ;;  %v8869_v10 = vld [vmem:[%s8702_s14 + $0x128] sm:$0xff]  ;;  %403 = vst.msk [vmem:[#allocation2 + $0x240] sm:$0xff] %vm378_vm0, %v8876_v13  ;;  %v8883_v14 = vld [vmem:[%s8702_s14 + $0x140] sm:$0xff] }
  0x32   : > { %v623_v11 = vld [vmem:[%s8702_s14 + $0xe1] sm:$0xff]  ;;  %404 = vst.msk [vmem:[#allocation2 + $0x258] sm:$0xff] %vm378_vm0, %v8869_v10  ;;  %v625_v15 = vld [vmem:[%s8702_s14 + $0xf9] sm:$0xff]  ;;  %406 = vst.msk [vmem:[#allocation2 + $0x288] sm:$0xff] %vm378_vm0, %v8883_v14 }
  0x33   : > { %v631_v26 = vld [vmem:[%s8702_s14 + $0x141] sm:$0xff] }
  0x34   : > { %509 = vrot.lane.b32.xlu1 %v428_v16, %s8569_s11  ;;  %507 = vrot.lane.b32.xlu0 %v427_v17, %s8569_s11  ;;  %v624_v16 = vld [vmem:[%s8702_s14 + $0xf1] sm:$0xff] }
  0x35   : > { %v8890_v17 = vld [vmem:[%s8702_s14 + $0x138] sm:$0xff] }
  0x36   : > { %405 = vst.msk [vmem:[#allocation2 + $0x270] sm:$0xff] %vm378_vm0, %v8890_v17 }
  0x38   : > { %513 = vrot.lane.b32.xlu1 %v430_v18, %s8569_s11  ;;  %511 = vrot.lane.b32.xlu0 %v429_v19, %s8569_s11  ;;  %v8897_v18 = vld [vmem:[%s8702_s14 + $0x158] sm:$0xff] }
  0x39   : > { %v627_v19 = vld [vmem:[%s8702_s14 + $0x111] sm:$0xff]  ;;  %408 = vst.msk [vmem:[#allocation2 + $0x2b8] sm:$0xff] %vm378_vm0, %v8897_v18 }
  0x3c   : > { %517 = vrot.lane.b32.xlu1 %v432_v20, %s8569_s11  ;;  %515 = vrot.lane.b32.xlu0 %v431_v21, %s8569_s11  ;;  %v626_v20 = vld [vmem:[%s8702_s14 + $0x109] sm:$0xff] }
  0x3d   : > { %v8904_v21 = vld [vmem:[%s8702_s14 + $0x150] sm:$0xff] }
  0x3e   : > { %407 = vst.msk [vmem:[#allocation2 + $0x2a0] sm:$0xff] %vm378_vm0, %v8904_v21 }
  0x40   : > { %521 = vrot.lane.b32.xlu1 %v434_v22, %s8569_s11  ;;  %519 = vrot.lane.b32.xlu0 %v433_v23, %s8569_s11  ;;  %v8911_v22 = vld [vmem:[%s8702_s14 + $0x170] sm:$0xff] }
  0x41   : > { %v629_v23 = vld [vmem:[%s8702_s14 + $0x129] sm:$0xff]  ;;  %410 = vst.msk [vmem:[#allocation2 + $0x2e8] sm:$0xff] %vm378_vm0, %v8911_v22 }
  0x44   : > { %525 = vrot.lane.b32.xlu1 %v436_v24, %s8569_s11  ;;  %523 = vrot.lane.b32.xlu0 %v435_v25, %s8569_s11  ;;  %v628_v24 = vld [vmem:[%s8702_s14 + $0x121] sm:$0xff] }
  0x45   : > { %v8918_v25 = vld [vmem:[%s8702_s14 + $0x168] sm:$0xff] }
  0x46   : > { %409 = vst.msk [vmem:[#allocation2 + $0x2d0] sm:$0xff] %vm378_vm0, %v8918_v25 }
  0x48   : > { %529 = vrot.lane.b32.xlu1 %v438_v27, %s8569_s11  ;;  %527 = vrot.lane.b32.xlu0 %v437_v28, %s8569_s11  ;;  %v630_v27 = vld [vmem:[%s8702_s14 + $0x139] sm:$0xff] }
  0x4c   : > { %533 = vrot.lane.b32.xlu1 %v440_v31, %s8569_s11  ;;  %531 = vrot.lane.b32.xlu0 %v439_v32, %s8569_s11  ;;  %v633_v31 = vld [vmem:[%s8702_s14 + $0x159] sm:$0xff]  ;;  %v632_v32 = vld [vmem:[%s8702_s14 + $0x151] sm:$0xff] }
  0x50   : > { %537 = vrot.lane.b32.xlu1 %v442_v35, %s8569_s11  ;;  %535 = vrot.lane.b32.xlu0 %v441_v36, %s8569_s11 }
  0x54   : > { %670 = vrot.lane.b32.xlu1 %v605_v39, %s8569_s11  ;;  %668 = vrot.lane.b32.xlu0 %v604_v40, %s8569_s11  ;;  %v635_v39 = vld [vmem:[%s8702_s14 + $0x171] sm:$0xff]  ;;  %v634_v40 = vld [vmem:[%s8702_s14 + $0x169] sm:$0xff] }
  0x58   : > { %674 = vrot.lane.b32.xlu1 %v607_v43, %s8569_s11  ;;  %672 = vrot.lane.b32.xlu0 %v606_v44, %s8569_s11 }
  0x5c   : > { %678 = vrot.lane.b32.xlu1 %v609_v47, %s8569_s11  ;;  %676 = vrot.lane.b32.xlu0 %v608_v48, %s8569_s11  ;;  %v798_v47 = vld [vmem:[%s8645_s10 + $0x9] sm:$0xff]  ;;  %v797_v48 = vld [vmem:[%s8645_s10 + $0x1] sm:$0xff] }
  0x60   : > { %682 = vrot.lane.b32.xlu1 %v611_v51, %s8569_s11  ;;  %680 = vrot.lane.b32.xlu0 %v610_v52, %s8569_s11 }
  0x64   : > { %686 = vrot.lane.b32.xlu1 %v613_v55, %s8569_s11  ;;  %684 = vrot.lane.b32.xlu0 %v612_v56, %s8569_s11  ;;  %v800_v55 = vld [vmem:[%s8645_s10 + $0x21] sm:$0xff]  ;;  %v799_v56 = vld [vmem:[%s8645_s10 + $0x19] sm:$0xff] }
  0x68   : > { %690 = vrot.lane.b32.xlu1 %v615_v59, %s8569_s11  ;;  %688 = vrot.lane.b32.xlu0 %v614_v60, %s8569_s11 }
  0x6c   : > { %694 = vrot.lane.b32.xlu1 %v617_v63, %s8569_s11  ;;  %692 = vrot.lane.b32.xlu0 %v616_v0, %s8569_s11  ;;  %v802_v63 = vld [vmem:[%s8645_s10 + $0x39] sm:$0xff]  ;;  %v801_v0 = vld [vmem:[%s8645_s10 + $0x31] sm:$0xff] }
  0x70   : > { %698 = vrot.lane.b32.xlu1 %v619_v3, %s8569_s11  ;;  %696 = vrot.lane.b32.xlu0 %v618_v4, %s8569_s11 }
  0x74   : > { %702 = vrot.lane.b32.xlu1 %v621_v7, %s8569_s11  ;;  %700 = vrot.lane.b32.xlu0 %v620_v8, %s8569_s11  ;;  %v804_v7 = vld [vmem:[%s8645_s10 + $0x51] sm:$0xff]  ;;  %v803_v8 = vld [vmem:[%s8645_s10 + $0x49] sm:$0xff] }
  0x78   : > { %706 = vrot.lane.b32.xlu1 %v623_v11, %s8569_s11  ;;  %704 = vrot.lane.b32.xlu0 %v622_v12, %s8569_s11 }
  0x7c   : > { %710 = vrot.lane.b32.xlu1 %v625_v15, %s8569_s11  ;;  %708 = vrot.lane.b32.xlu0 %v624_v16, %s8569_s11  ;;  %v806_v15 = vld [vmem:[%s8645_s10 + $0x69] sm:$0xff]  ;;  %v805_v16 = vld [vmem:[%s8645_s10 + $0x61] sm:$0xff] }
  0x80   : > { %714 = vrot.lane.b32.xlu1 %v627_v19, %s8569_s11  ;;  %712 = vrot.lane.b32.xlu0 %v626_v20, %s8569_s11 }
  0x84   : > { %718 = vrot.lane.b32.xlu1 %v629_v23, %s8569_s11  ;;  %716 = vrot.lane.b32.xlu0 %v628_v24, %s8569_s11  ;;  %v808_v23 = vld [vmem:[%s8645_s10 + $0x81] sm:$0xff]  ;;  %v807_v24 = vld [vmem:[%s8645_s10 + $0x79] sm:$0xff] }
  0x86   : > { %v480_v28 = vpop.permute.xlu1 %479  ;;  %v476_v29 = vpop.permute.xlu0 %475 }
  0x87   : > { %574 = vst.msk [vmem:[#allocation2 + $0x40] sm:$0xff] %vm571_vm1, %v480_v28  ;;  %572 = vst.msk [vmem:[#allocation2 + $0x10] sm:$0xff] %vm571_vm1, %v476_v29  ;;  %v810_v28 = vld [vmem:[%s8645_s10 + $0x99] sm:$0xff]  ;;  %v809_v29 = vld [vmem:[%s8645_s10 + $0x91] sm:$0xff] }
  0x88   : > { %722 = vrot.lane.b32.xlu1 %v631_v26, %s8569_s11  ;;  %720 = vrot.lane.b32.xlu0 %v630_v27, %s8569_s11 }
  0x8a   : > { %v482_v35 = vpop.permute.xlu1 %481  ;;  %v478_v36 = vpop.permute.xlu0 %477 }
  0x8b   : > { %575 = vst.msk [vmem:[#allocation2 + $0x58] sm:$0xff] %vm571_vm1, %v482_v35  ;;  %573 = vst.msk [vmem:[#allocation2 + $0x28] sm:$0xff] %vm571_vm1, %v478_v36  ;;  %v812_v35 = vld [vmem:[%s8645_s10 + $0xb1] sm:$0xff]  ;;  %v811_v36 = vld [vmem:[%s8645_s10 + $0xa9] sm:$0xff] }
  0x8c   : > { %726 = vrot.lane.b32.xlu1 %v633_v31, %s8569_s11  ;;  %724 = vrot.lane.b32.xlu0 %v632_v32, %s8569_s11 }
  0x8e   : > { %v486_v43 = vpop.permute.xlu1 %485  ;;  %v484_v44 = vpop.permute.xlu0 %483 }
  0x8f   : > { %577 = vst.msk [vmem:[#allocation2 + $0x88] sm:$0xff] %vm571_vm1, %v486_v43  ;;  %576 = vst.msk [vmem:[#allocation2 + $0x70] sm:$0xff] %vm571_vm1, %v484_v44  ;;  %v814_v43 = vld [vmem:[%s8645_s10 + $0xc9] sm:$0xff]  ;;  %v813_v44 = vld [vmem:[%s8645_s10 + $0xc1] sm:$0xff] }
  0x90   : > { %730 = vrot.lane.b32.xlu1 %v635_v39, %s8569_s11  ;;  %728 = vrot.lane.b32.xlu0 %v634_v40, %s8569_s11 }
  0x92   : > { %v490_v51 = vpop.permute.xlu1 %489  ;;  %v488_v52 = vpop.permute.xlu0 %487 }
  0x93   : > { %579 = vst.msk [vmem:[#allocation2 + $0xb8] sm:$0xff] %vm571_vm1, %v490_v51  ;;  %578 = vst.msk [vmem:[#allocation2 + $0xa0] sm:$0xff] %vm571_vm1, %v488_v52  ;;  %v816_v51 = vld [vmem:[%s8645_s10 + $0xe1] sm:$0xff]  ;;  %v815_v52 = vld [vmem:[%s8645_s10 + $0xd9] sm:$0xff] }
  0x94   : > { %863 = vrot.lane.b32.xlu1 %v798_v47, %s8570_s15  ;;  %861 = vrot.lane.b32.xlu0 %v797_v48, %s8570_s15 }
  0x96   : > { %v494_v59 = vpop.permute.xlu1 %493  ;;  %v492_v60 = vpop.permute.xlu0 %491 }
  0x97   : > { %581 = vst.msk [vmem:[#allocation2 + $0xe8] sm:$0xff] %vm571_vm1, %v494_v59  ;;  %580 = vst.msk [vmem:[#allocation2 + $0xd0] sm:$0xff] %vm571_vm1, %v492_v60  ;;  %v818_v59 = vld [vmem:[%s8645_s10 + $0xf9] sm:$0xff]  ;;  %v817_v60 = vld [vmem:[%s8645_s10 + $0xf1] sm:$0xff] }
  0x98   : > { %867 = vrot.lane.b32.xlu1 %v800_v55, %s8570_s15  ;;  %865 = vrot.lane.b32.xlu0 %v799_v56, %s8570_s15 }
  0x9a   : > { %v498_v3 = vpop.permute.xlu1 %497  ;;  %v496_v4 = vpop.permute.xlu0 %495 }
  0x9b   : > { %583 = vst.msk [vmem:[#allocation2 + $0x118] sm:$0xff] %vm571_vm1, %v498_v3  ;;  %582 = vst.msk [vmem:[#allocation2 + $0x100] sm:$0xff] %vm571_vm1, %v496_v4  ;;  %v820_v3 = vld [vmem:[%s8645_s10 + $0x111] sm:$0xff]  ;;  %v819_v4 = vld [vmem:[%s8645_s10 + $0x109] sm:$0xff] }
  0x9c   : > { %871 = vrot.lane.b32.xlu1 %v802_v63, %s8570_s15  ;;  %869 = vrot.lane.b32.xlu0 %v801_v0, %s8570_s15 }
  0x9e   : > { %v502_v11 = vpop.permute.xlu1 %501  ;;  %v500_v12 = vpop.permute.xlu0 %499 }
  0x9f   : > { %585 = vst.msk [vmem:[#allocation2 + $0x148] sm:$0xff] %vm571_vm1, %v502_v11  ;;  %584 = vst.msk [vmem:[#allocation2 + $0x130] sm:$0xff] %vm571_vm1, %v500_v12  ;;  %v822_v11 = vld [vmem:[%s8645_s10 + $0x129] sm:$0xff]  ;;  %v821_v12 = vld [vmem:[%s8645_s10 + $0x121] sm:$0xff] }
  0xa0   : > { %875 = vrot.lane.b32.xlu1 %v804_v7, %s8570_s15  ;;  %873 = vrot.lane.b32.xlu0 %v803_v8, %s8570_s15 }
  0xa2   : > { %v506_v19 = vpop.permute.xlu1 %505  ;;  %v504_v20 = vpop.permute.xlu0 %503 }
  0xa3   : > { %587 = vst.msk [vmem:[#allocation2 + $0x178] sm:$0xff] %vm571_vm1, %v506_v19  ;;  %586 = vst.msk [vmem:[#allocation2 + $0x160] sm:$0xff] %vm571_vm1, %v504_v20  ;;  %v824_v19 = vld [vmem:[%s8645_s10 + $0x141] sm:$0xff]  ;;  %v823_v20 = vld [vmem:[%s8645_s10 + $0x139] sm:$0xff] }
  0xa4   : > { %879 = vrot.lane.b32.xlu1 %v806_v15, %s8570_s15  ;;  %877 = vrot.lane.b32.xlu0 %v805_v16, %s8570_s15 }
  0xa6   : > { %v510_v26 = vpop.permute.xlu1 %509  ;;  %v508_v27 = vpop.permute.xlu0 %507 }
  0xa7   : > { %589 = vst.msk [vmem:[#allocation2 + $0x1a8] sm:$0xff] %vm571_vm1, %v510_v26  ;;  %588 = vst.msk [vmem:[#allocation2 + $0x190] sm:$0xff] %vm571_vm1, %v508_v27  ;;  %v826_v26 = vld [vmem:[%s8645_s10 + $0x159] sm:$0xff]  ;;  %v825_v27 = vld [vmem:[%s8645_s10 + $0x151] sm:$0xff] }
  0xa8   : > { %883 = vrot.lane.b32.xlu1 %v808_v23, %s8570_s15  ;;  %881 = vrot.lane.b32.xlu0 %v807_v24, %s8570_s15 }
  0xaa   : > { %v514_v31 = vpop.permute.xlu1 %513  ;;  %v512_v32 = vpop.permute.xlu0 %511 }
  0xab   : > { %591 = vst.msk [vmem:[#allocation2 + $0x1d8] sm:$0xff] %vm571_vm1, %v514_v31  ;;  %590 = vst.msk [vmem:[#allocation2 + $0x1c0] sm:$0xff] %vm571_vm1, %v512_v32  ;;  %v828_v31 = vld [vmem:[%s8645_s10 + $0x171] sm:$0xff]  ;;  %v827_v32 = vld [vmem:[%s8645_s10 + $0x169] sm:$0xff] }
  0xac   : > { %887 = vrot.lane.b32.xlu1 %v810_v28, %s8570_s15  ;;  %885 = vrot.lane.b32.xlu0 %v809_v29, %s8570_s15 }
  0xae   : > { %v518_v39 = vpop.permute.xlu1 %517  ;;  %v516_v40 = vpop.permute.xlu0 %515 }
  0xaf   : > { %593 = vst.msk [vmem:[#allocation2 + $0x208] sm:$0xff] %vm571_vm1, %v518_v39  ;;  %592 = vst.msk [vmem:[#allocation2 + $0x1f0] sm:$0xff] %vm571_vm1, %v516_v40  ;;  %v991_v39 = vld [vmem:[%s8702_s14 + $0xa] sm:$0xff]  ;;  %v990_v40 = vld [vmem:[%s8702_s14 + $0x2] sm:$0xff] }
  0xb0   : > { %891 = vrot.lane.b32.xlu1 %v812_v35, %s8570_s15  ;;  %889 = vrot.lane.b32.xlu0 %v811_v36, %s8570_s15 }
  0xb2   : > { %v522_v47 = vpop.permute.xlu1 %521  ;;  %v520_v48 = vpop.permute.xlu0 %519 }
  0xb3   : > { %595 = vst.msk [vmem:[#allocation2 + $0x238] sm:$0xff] %vm571_vm1, %v522_v47  ;;  %594 = vst.msk [vmem:[#allocation2 + $0x220] sm:$0xff] %vm571_vm1, %v520_v48  ;;  %v993_v47 = vld [vmem:[%s8702_s14 + $0x22] sm:$0xff]  ;;  %v992_v48 = vld [vmem:[%s8702_s14 + $0x1a] sm:$0xff] }
  0xb4   : > { %895 = vrot.lane.b32.xlu1 %v814_v43, %s8570_s15  ;;  %893 = vrot.lane.b32.xlu0 %v813_v44, %s8570_s15 }
  0xb6   : > { %v526_v55 = vpop.permute.xlu1 %525  ;;  %v524_v56 = vpop.permute.xlu0 %523 }
  0xb7   : > { %597 = vst.msk [vmem:[#allocation2 + $0x268] sm:$0xff] %vm571_vm1, %v526_v55  ;;  %596 = vst.msk [vmem:[#allocation2 + $0x250] sm:$0xff] %vm571_vm1, %v524_v56  ;;  %v995_v55 = vld [vmem:[%s8702_s14 + $0x3a] sm:$0xff]  ;;  %v994_v56 = vld [vmem:[%s8702_s14 + $0x32] sm:$0xff] }
  0xb8   : > { %899 = vrot.lane.b32.xlu1 %v816_v51, %s8570_s15  ;;  %897 = vrot.lane.b32.xlu0 %v815_v52, %s8570_s15 }
  0xba   : > { %v530_v63 = vpop.permute.xlu1 %529  ;;  %v528_v0 = vpop.permute.xlu0 %527 }
  0xbb   : > { %599 = vst.msk [vmem:[#allocation2 + $0x298] sm:$0xff] %vm571_vm1, %v530_v63  ;;  %598 = vst.msk [vmem:[#allocation2 + $0x280] sm:$0xff] %vm571_vm1, %v528_v0  ;;  %v997_v63 = vld [vmem:[%s8702_s14 + $0x52] sm:$0xff]  ;;  %v996_v0 = vld [vmem:[%s8702_s14 + $0x4a] sm:$0xff] }
  0xbc   : > { %903 = vrot.lane.b32.xlu1 %v818_v59, %s8570_s15  ;;  %901 = vrot.lane.b32.xlu0 %v817_v60, %s8570_s15 }
  0xbe   : > { %v534_v7 = vpop.permute.xlu1 %533  ;;  %v532_v8 = vpop.permute.xlu0 %531 }
  0xbf   : > { %601 = vst.msk [vmem:[#allocation2 + $0x2c8] sm:$0xff] %vm571_vm1, %v534_v7  ;;  %600 = vst.msk [vmem:[#allocation2 + $0x2b0] sm:$0xff] %vm571_vm1, %v532_v8  ;;  %v999_v7 = vld [vmem:[%s8702_s14 + $0x6a] sm:$0xff]  ;;  %v998_v8 = vld [vmem:[%s8702_s14 + $0x62] sm:$0xff] }
  0xc0   : > { %907 = vrot.lane.b32.xlu1 %v820_v3, %s8570_s15  ;;  %905 = vrot.lane.b32.xlu0 %v819_v4, %s8570_s15 }
  0xc2   : > { %v538_v15 = vpop.permute.xlu1 %537  ;;  %v536_v16 = vpop.permute.xlu0 %535 }
  0xc3   : > { %603 = vst.msk [vmem:[#allocation2 + $0x2f8] sm:$0xff] %vm571_vm1, %v538_v15  ;;  %602 = vst.msk [vmem:[#allocation2 + $0x2e0] sm:$0xff] %vm571_vm1, %v536_v16  ;;  %v1001_v15 = vld [vmem:[%s8702_s14 + $0x82] sm:$0xff]  ;;  %v1000_v16 = vld [vmem:[%s8702_s14 + $0x7a] sm:$0xff]  ;;  %vm4314_vm1 = vcmask 254976  }
  0xc4   : > { %911 = vrot.lane.b32.xlu1 %v822_v11, %s8570_s15  ;;  %909 = vrot.lane.b32.xlu0 %v821_v12, %s8570_s15 }
  0xc6   : > { %v671_v23 = vpop.permute.xlu1 %670  ;;  %v669_v24 = vpop.permute.xlu0 %668 }
  0xc7   : > { %766 = vst.msk [vmem:[#allocation2 + $0x18] sm:$0xff] %vm764_vm2, %v671_v23  ;;  %765 = vst.msk [vmem:[#allocation2] sm:$0xff] %vm764_vm2, %v669_v24  ;;  %v1003_v23 = vld [vmem:[%s8702_s14 + $0x9a] sm:$0xff]  ;;  %v1002_v24 = vld [vmem:[%s8702_s14 + $0x92] sm:$0xff] }
  0xc8   : > { %915 = vrot.lane.b32.xlu1 %v824_v19, %s8570_s15  ;;  %913 = vrot.lane.b32.xlu0 %v823_v20, %s8570_s15 }
  0xca   : > { %v675_v28 = vpop.permute.xlu1 %674  ;;  %v673_v29 = vpop.permute.xlu0 %672 }
  0xcb   : > { %768 = vst.msk [vmem:[#allocation2 + $0x48] sm:$0xff] %vm764_vm2, %v675_v28  ;;  %767 = vst.msk [vmem:[#allocation2 + $0x30] sm:$0xff] %vm764_vm2, %v673_v29  ;;  %v1005_v28 = vld [vmem:[%s8702_s14 + $0xb2] sm:$0xff]  ;;  %v1004_v29 = vld [vmem:[%s8702_s14 + $0xaa] sm:$0xff] }
  0xcc   : > { %919 = vrot.lane.b32.xlu1 %v826_v26, %s8570_s15  ;;  %917 = vrot.lane.b32.xlu0 %v825_v27, %s8570_s15 }
  0xce   : > { %v679_v35 = vpop.permute.xlu1 %678  ;;  %v677_v36 = vpop.permute.xlu0 %676 }
  0xcf   : > { %770 = vst.msk [vmem:[#allocation2 + $0x78] sm:$0xff] %vm764_vm2, %v679_v35  ;;  %769 = vst.msk [vmem:[#allocation2 + $0x60] sm:$0xff] %vm764_vm2, %v677_v36  ;;  %v1007_v35 = vld [vmem:[%s8702_s14 + $0xca] sm:$0xff]  ;;  %v1006_v36 = vld [vmem:[%s8702_s14 + $0xc2] sm:$0xff] }
  0xd0   : > { %923 = vrot.lane.b32.xlu1 %v828_v31, %s8570_s15  ;;  %921 = vrot.lane.b32.xlu0 %v827_v32, %s8570_s15 }
  0xd2   : > { %v683_v43 = vpop.permute.xlu1 %682  ;;  %v681_v44 = vpop.permute.xlu0 %680 }
  0xd3   : > { %772 = vst.msk [vmem:[#allocation2 + $0xa8] sm:$0xff] %vm764_vm2, %v683_v43  ;;  %771 = vst.msk [vmem:[#allocation2 + $0x90] sm:$0xff] %vm764_vm2, %v681_v44  ;;  %v1009_v43 = vld [vmem:[%s8702_s14 + $0xe2] sm:$0xff]  ;;  %v1008_v44 = vld [vmem:[%s8702_s14 + $0xda] sm:$0xff] }
  0xd4   : > { %1056 = vrot.lane.b32.xlu1 %v991_v39, %s8571_s16  ;;  %1054 = vrot.lane.b32.xlu0 %v990_v40, %s8571_s16 }
  0xd6   : > { %v687_v51 = vpop.permute.xlu1 %686  ;;  %v685_v52 = vpop.permute.xlu0 %684 }
  0xd7   : > { %774 = vst.msk [vmem:[#allocation2 + $0xd8] sm:$0xff] %vm764_vm2, %v687_v51  ;;  %773 = vst.msk [vmem:[#allocation2 + $0xc0] sm:$0xff] %vm764_vm2, %v685_v52  ;;  %v1011_v51 = vld [vmem:[%s8702_s14 + $0xfa] sm:$0xff]  ;;  %v1010_v52 = vld [vmem:[%s8702_s14 + $0xf2] sm:$0xff] }
  0xd8   : > { %1060 = vrot.lane.b32.xlu1 %v993_v47, %s8571_s16  ;;  %1058 = vrot.lane.b32.xlu0 %v992_v48, %s8571_s16 }
  0xda   : > { %v691_v59 = vpop.permute.xlu1 %690  ;;  %v689_v60 = vpop.permute.xlu0 %688 }
  0xdb   : > { %776 = vst.msk [vmem:[#allocation2 + $0x108] sm:$0xff] %vm764_vm2, %v691_v59  ;;  %775 = vst.msk [vmem:[#allocation2 + $0xf0] sm:$0xff] %vm764_vm2, %v689_v60  ;;  %v1013_v59 = vld [vmem:[%s8702_s14 + $0x112] sm:$0xff]  ;;  %v1012_v60 = vld [vmem:[%s8702_s14 + $0x10a] sm:$0xff] }
  0xdc   : > { %1064 = vrot.lane.b32.xlu1 %v995_v55, %s8571_s16  ;;  %1062 = vrot.lane.b32.xlu0 %v994_v56, %s8571_s16 }
  0xde   : > { %v695_v3 = vpop.permute.xlu1 %694  ;;  %v693_v4 = vpop.permute.xlu0 %692 }
  0xdf   : > { %778 = vst.msk [vmem:[#allocation2 + $0x138] sm:$0xff] %vm764_vm2, %v695_v3  ;;  %777 = vst.msk [vmem:[#allocation2 + $0x120] sm:$0xff] %vm764_vm2, %v693_v4  ;;  %v1015_v3 = vld [vmem:[%s8702_s14 + $0x12a] sm:$0xff]  ;;  %v1014_v4 = vld [vmem:[%s8702_s14 + $0x122] sm:$0xff] }
  0xe0   : > { %1068 = vrot.lane.b32.xlu1 %v997_v63, %s8571_s16  ;;  %1066 = vrot.lane.b32.xlu0 %v996_v0, %s8571_s16 }
  0xe2   : > { %v699_v11 = vpop.permute.xlu1 %698  ;;  %v697_v12 = vpop.permute.xlu0 %696 }
  0xe3   : > { %780 = vst.msk [vmem:[#allocation2 + $0x168] sm:$0xff] %vm764_vm2, %v699_v11  ;;  %779 = vst.msk [vmem:[#allocation2 + $0x150] sm:$0xff] %vm764_vm2, %v697_v12  ;;  %v1017_v11 = vld [vmem:[%s8702_s14 + $0x142] sm:$0xff]  ;;  %v1016_v12 = vld [vmem:[%s8702_s14 + $0x13a] sm:$0xff] }
  0xe4   : > { %1072 = vrot.lane.b32.xlu1 %v999_v7, %s8571_s16  ;;  %1070 = vrot.lane.b32.xlu0 %v998_v8, %s8571_s16 }
  0xe6   : > { %v703_v19 = vpop.permute.xlu1 %702  ;;  %v701_v20 = vpop.permute.xlu0 %700 }
  0xe7   : > { %782 = vst.msk [vmem:[#allocation2 + $0x198] sm:$0xff] %vm764_vm2, %v703_v19  ;;  %781 = vst.msk [vmem:[#allocation2 + $0x180] sm:$0xff] %vm764_vm2, %v701_v20  ;;  %v1019_v19 = vld [vmem:[%s8702_s14 + $0x15a] sm:$0xff]  ;;  %v1018_v20 = vld [vmem:[%s8702_s14 + $0x152] sm:$0xff] }
  0xe8   : > { %1076 = vrot.lane.b32.xlu1 %v1001_v15, %s8571_s16  ;;  %1074 = vrot.lane.b32.xlu0 %v1000_v16, %s8571_s16 }
  0xea   : > { %v707_v26 = vpop.permute.xlu1 %706  ;;  %v705_v27 = vpop.permute.xlu0 %704 }
  0xeb   : > { %784 = vst.msk [vmem:[#allocation2 + $0x1c8] sm:$0xff] %vm764_vm2, %v707_v26  ;;  %783 = vst.msk [vmem:[#allocation2 + $0x1b0] sm:$0xff] %vm764_vm2, %v705_v27  ;;  %v1021_v26 = vld [vmem:[%s8702_s14 + $0x172] sm:$0xff]  ;;  %v1020_v27 = vld [vmem:[%s8702_s14 + $0x16a] sm:$0xff] }
  0xec   : > { %1080 = vrot.lane.b32.xlu1 %v1003_v23, %s8571_s16  ;;  %1078 = vrot.lane.b32.xlu0 %v1002_v24, %s8571_s16 }
  0xee   : > { %v711_v31 = vpop.permute.xlu1 %710  ;;  %v709_v32 = vpop.permute.xlu0 %708 }
  0xef   : > { %786 = vst.msk [vmem:[#allocation2 + $0x1f8] sm:$0xff] %vm764_vm2, %v711_v31  ;;  %785 = vst.msk [vmem:[#allocation2 + $0x1e0] sm:$0xff] %vm764_vm2, %v709_v32  ;;  %v1184_v31 = vld [vmem:[%s8645_s10 + $0xa] sm:$0xff]  ;;  %v1183_v32 = vld [vmem:[%s8645_s10 + $0x2] sm:$0xff] }
  0xf0   : > { %1084 = vrot.lane.b32.xlu1 %v1005_v28, %s8571_s16  ;;  %1082 = vrot.lane.b32.xlu0 %v1004_v29, %s8571_s16 }
  0xf2   : > { %v715_v39 = vpop.permute.xlu1 %714  ;;  %v713_v40 = vpop.permute.xlu0 %712 }
  0xf3   : > { %788 = vst.msk [vmem:[#allocation2 + $0x228] sm:$0xff] %vm764_vm2, %v715_v39  ;;  %787 = vst.msk [vmem:[#allocation2 + $0x210] sm:$0xff] %vm764_vm2, %v713_v40  ;;  %v1186_v39 = vld [vmem:[%s8645_s10 + $0x22] sm:$0xff]  ;;  %v1185_v40 = vld [vmem:[%s8645_s10 + $0x1a] sm:$0xff] }
  0xf4   : > { %1088 = vrot.lane.b32.xlu1 %v1007_v35, %s8571_s16  ;;  %1086 = vrot.lane.b32.xlu0 %v1006_v36, %s8571_s16 }
  0xf6   : > { %v719_v47 = vpop.permute.xlu1 %718  ;;  %v717_v48 = vpop.permute.xlu0 %716 }
  0xf7   : > { %790 = vst.msk [vmem:[#allocation2 + $0x258] sm:$0xff] %vm764_vm2, %v719_v47  ;;  %789 = vst.msk [vmem:[#allocation2 + $0x240] sm:$0xff] %vm764_vm2, %v717_v48  ;;  %v1188_v47 = vld [vmem:[%s8645_s10 + $0x3a] sm:$0xff]  ;;  %v1187_v48 = vld [vmem:[%s8645_s10 + $0x32] sm:$0xff] }
  0xf8   : > { %1092 = vrot.lane.b32.xlu1 %v1009_v43, %s8571_s16  ;;  %1090 = vrot.lane.b32.xlu0 %v1008_v44, %s8571_s16 }
  0xfa   : > { %v723_v55 = vpop.permute.xlu1 %722  ;;  %v721_v56 = vpop.permute.xlu0 %720 }
  0xfb   : > { %792 = vst.msk [vmem:[#allocation2 + $0x288] sm:$0xff] %vm764_vm2, %v723_v55  ;;  %791 = vst.msk [vmem:[#allocation2 + $0x270] sm:$0xff] %vm764_vm2, %v721_v56  ;;  %v1190_v55 = vld [vmem:[%s8645_s10 + $0x52] sm:$0xff]  ;;  %v1189_v56 = vld [vmem:[%s8645_s10 + $0x4a] sm:$0xff] }
  0xfc   : > { %1096 = vrot.lane.b32.xlu1 %v1011_v51, %s8571_s16  ;;  %1094 = vrot.lane.b32.xlu0 %v1010_v52, %s8571_s16 }
  0xfe   : > { %v727_v63 = vpop.permute.xlu1 %726  ;;  %v725_v0 = vpop.permute.xlu0 %724 }
  0xff   : > { %794 = vst.msk [vmem:[#allocation2 + $0x2b8] sm:$0xff] %vm764_vm2, %v727_v63  ;;  %793 = vst.msk [vmem:[#allocation2 + $0x2a0] sm:$0xff] %vm764_vm2, %v725_v0  ;;  %v1192_v63 = vld [vmem:[%s8645_s10 + $0x6a] sm:$0xff]  ;;  %v1191_v0 = vld [vmem:[%s8645_s10 + $0x62] sm:$0xff] }
 0x100   : > { %1100 = vrot.lane.b32.xlu1 %v1013_v59, %s8571_s16  ;;  %1098 = vrot.lane.b32.xlu0 %v1012_v60, %s8571_s16 }
 0x102   : > { %v731_v7 = vpop.permute.xlu1 %730  ;;  %v729_v8 = vpop.permute.xlu0 %728 }
 0x103   : > { %796 = vst.msk [vmem:[#allocation2 + $0x2e8] sm:$0xff] %vm764_vm2, %v731_v7  ;;  %795 = vst.msk [vmem:[#allocation2 + $0x2d0] sm:$0xff] %vm764_vm2, %v729_v8  ;;  %v1194_v7 = vld [vmem:[%s8645_s10 + $0x82] sm:$0xff]  ;;  %v1193_v8 = vld [vmem:[%s8645_s10 + $0x7a] sm:$0xff] }
 0x104   : > { %1104 = vrot.lane.b32.xlu1 %v1015_v3, %s8571_s16  ;;  %1102 = vrot.lane.b32.xlu0 %v1014_v4, %s8571_s16 }
 0x106   : > { %v864_v15 = vpop.permute.xlu1 %863  ;;  %v862_v16 = vpop.permute.xlu0 %861 }
 0x107   : > { %959 = vst.msk [vmem:[#allocation2 + $0x28] sm:$0xff] %vm957_vm3, %v864_v15  ;;  %958 = vst.msk [vmem:[#allocation2 + $0x10] sm:$0xff] %vm957_vm3, %v862_v16  ;;  %v1196_v15 = vld [vmem:[%s8645_s10 + $0x9a] sm:$0xff]  ;;  %v1195_v16 = vld [vmem:[%s8645_s10 + $0x92] sm:$0xff] }
 0x108   : > { %1108 = vrot.lane.b32.xlu1 %v1017_v11, %s8571_s16  ;;  %1106 = vrot.lane.b32.xlu0 %v1016_v12, %s8571_s16 }
 0x10a   : > { %v868_v23 = vpop.permute.xlu1 %867  ;;  %v866_v24 = vpop.permute.xlu0 %865 }
 0x10b   : > { %961 = vst.msk [vmem:[#allocation2 + $0x58] sm:$0xff] %vm957_vm3, %v868_v23  ;;  %960 = vst.msk [vmem:[#allocation2 + $0x40] sm:$0xff] %vm957_vm3, %v866_v24  ;;  %v1198_v23 = vld [vmem:[%s8645_s10 + $0xb2] sm:$0xff]  ;;  %v1197_v24 = vld [vmem:[%s8645_s10 + $0xaa] sm:$0xff] }
 0x10c   : > { %1112 = vrot.lane.b32.xlu1 %v1019_v19, %s8571_s16  ;;  %1110 = vrot.lane.b32.xlu0 %v1018_v20, %s8571_s16 }
 0x10e   : > { %v872_v28 = vpop.permute.xlu1 %871  ;;  %v870_v29 = vpop.permute.xlu0 %869 }
 0x10f   : > { %963 = vst.msk [vmem:[#allocation2 + $0x88] sm:$0xff] %vm957_vm3, %v872_v28  ;;  %962 = vst.msk [vmem:[#allocation2 + $0x70] sm:$0xff] %vm957_vm3, %v870_v29  ;;  %v1200_v28 = vld [vmem:[%s8645_s10 + $0xca] sm:$0xff]  ;;  %v1199_v29 = vld [vmem:[%s8645_s10 + $0xc2] sm:$0xff] }
 0x110   : > { %1116 = vrot.lane.b32.xlu1 %v1021_v26, %s8571_s16  ;;  %1114 = vrot.lane.b32.xlu0 %v1020_v27, %s8571_s16 }
 0x112   : > { %v876_v35 = vpop.permute.xlu1 %875  ;;  %v874_v36 = vpop.permute.xlu0 %873 }
 0x113   : > { %965 = vst.msk [vmem:[#allocation2 + $0xb8] sm:$0xff] %vm957_vm3, %v876_v35  ;;  %964 = vst.msk [vmem:[#allocation2 + $0xa0] sm:$0xff] %vm957_vm3, %v874_v36  ;;  %v1202_v35 = vld [vmem:[%s8645_s10 + $0xe2] sm:$0xff]  ;;  %v1201_v36 = vld [vmem:[%s8645_s10 + $0xda] sm:$0xff] }
 0x114   : > { %1249 = vrot.lane.b32.xlu1 %v1184_v31, %s8572_s17  ;;  %1247 = vrot.lane.b32.xlu0 %v1183_v32, %s8572_s17 }
 0x116   : > { %v880_v43 = vpop.permute.xlu1 %879  ;;  %v878_v44 = vpop.permute.xlu0 %877 }
 0x117   : > { %967 = vst.msk [vmem:[#allocation2 + $0xe8] sm:$0xff] %vm957_vm3, %v880_v43  ;;  %966 = vst.msk [vmem:[#allocation2 + $0xd0] sm:$0xff] %vm957_vm3, %v878_v44  ;;  %v1204_v43 = vld [vmem:[%s8645_s10 + $0xfa] sm:$0xff]  ;;  %v1203_v44 = vld [vmem:[%s8645_s10 + $0xf2] sm:$0xff] }
 0x118   : > { %1253 = vrot.lane.b32.xlu1 %v1186_v39, %s8572_s17  ;;  %1251 = vrot.lane.b32.xlu0 %v1185_v40, %s8572_s17 }
 0x11a   : > { %v884_v51 = vpop.permute.xlu1 %883  ;;  %v882_v52 = vpop.permute.xlu0 %881 }
 0x11b   : > { %969 = vst.msk [vmem:[#allocation2 + $0x118] sm:$0xff] %vm957_vm3, %v884_v51  ;;  %968 = vst.msk [vmem:[#allocation2 + $0x100] sm:$0xff] %vm957_vm3, %v882_v52  ;;  %v1206_v51 = vld [vmem:[%s8645_s10 + $0x112] sm:$0xff]  ;;  %v1205_v52 = vld [vmem:[%s8645_s10 + $0x10a] sm:$0xff] }
 0x11c   : > { %1257 = vrot.lane.b32.xlu1 %v1188_v47, %s8572_s17  ;;  %1255 = vrot.lane.b32.xlu0 %v1187_v48, %s8572_s17 }
 0x11e   : > { %v888_v59 = vpop.permute.xlu1 %887  ;;  %v886_v60 = vpop.permute.xlu0 %885 }
 0x11f   : > { %971 = vst.msk [vmem:[#allocation2 + $0x148] sm:$0xff] %vm957_vm3, %v888_v59  ;;  %970 = vst.msk [vmem:[#allocation2 + $0x130] sm:$0xff] %vm957_vm3, %v886_v60  ;;  %v1208_v59 = vld [vmem:[%s8645_s10 + $0x12a] sm:$0xff]  ;;  %v1207_v60 = vld [vmem:[%s8645_s10 + $0x122] sm:$0xff] }
 0x120   : > { %1261 = vrot.lane.b32.xlu1 %v1190_v55, %s8572_s17  ;;  %1259 = vrot.lane.b32.xlu0 %v1189_v56, %s8572_s17 }
 0x122   : > { %v892_v3 = vpop.permute.xlu1 %891  ;;  %v890_v4 = vpop.permute.xlu0 %889 }
 0x123   : > { %973 = vst.msk [vmem:[#allocation2 + $0x178] sm:$0xff] %vm957_vm3, %v892_v3  ;;  %972 = vst.msk [vmem:[#allocation2 + $0x160] sm:$0xff] %vm957_vm3, %v890_v4  ;;  %v1210_v3 = vld [vmem:[%s8645_s10 + $0x142] sm:$0xff]  ;;  %v1209_v4 = vld [vmem:[%s8645_s10 + $0x13a] sm:$0xff] }
 0x124   : > { %1265 = vrot.lane.b32.xlu1 %v1192_v63, %s8572_s17  ;;  %1263 = vrot.lane.b32.xlu0 %v1191_v0, %s8572_s17 }
 0x126   : > { %v896_v11 = vpop.permute.xlu1 %895  ;;  %v894_v12 = vpop.permute.xlu0 %893 }
 0x127   : > { %975 = vst.msk [vmem:[#allocation2 + $0x1a8] sm:$0xff] %vm957_vm3, %v896_v11  ;;  %974 = vst.msk [vmem:[#allocation2 + $0x190] sm:$0xff] %vm957_vm3, %v894_v12  ;;  %v1212_v11 = vld [vmem:[%s8645_s10 + $0x15a] sm:$0xff]  ;;  %v1211_v12 = vld [vmem:[%s8645_s10 + $0x152] sm:$0xff] }
 0x128   : > { %1269 = vrot.lane.b32.xlu1 %v1194_v7, %s8572_s17  ;;  %1267 = vrot.lane.b32.xlu0 %v1193_v8, %s8572_s17 }
 0x12a   : > { %v900_v19 = vpop.permute.xlu1 %899  ;;  %v898_v20 = vpop.permute.xlu0 %897 }
 0x12b   : > { %977 = vst.msk [vmem:[#allocation2 + $0x1d8] sm:$0xff] %vm957_vm3, %v900_v19  ;;  %976 = vst.msk [vmem:[#allocation2 + $0x1c0] sm:$0xff] %vm957_vm3, %v898_v20  ;;  %v1214_v19 = vld [vmem:[%s8645_s10 + $0x172] sm:$0xff]  ;;  %v1213_v20 = vld [vmem:[%s8645_s10 + $0x16a] sm:$0xff] }
 0x12c   : > { %1273 = vrot.lane.b32.xlu1 %v1196_v15, %s8572_s17  ;;  %1271 = vrot.lane.b32.xlu0 %v1195_v16, %s8572_s17 }
 0x12e   : > { %v904_v26 = vpop.permute.xlu1 %903  ;;  %v902_v27 = vpop.permute.xlu0 %901 }
 0x12f   : > { %979 = vst.msk [vmem:[#allocation2 + $0x208] sm:$0xff] %vm957_vm3, %v904_v26  ;;  %978 = vst.msk [vmem:[#allocation2 + $0x1f0] sm:$0xff] %vm957_vm3, %v902_v27 }
 0x130   : > { %1277 = vrot.lane.b32.xlu1 %v1198_v23, %s8572_s17  ;;  %1275 = vrot.lane.b32.xlu0 %v1197_v24, %s8572_s17 }
 0x132   : > { %v908_v31 = vpop.permute.xlu1 %907  ;;  %v906_v32 = vpop.permute.xlu0 %905 }
 0x133   : > { %981 = vst.msk [vmem:[#allocation2 + $0x238] sm:$0xff] %vm957_vm3, %v908_v31  ;;  %980 = vst.msk [vmem:[#allocation2 + $0x220] sm:$0xff] %vm957_vm3, %v906_v32 }
 0x134   : > { %1281 = vrot.lane.b32.xlu1 %v1200_v28, %s8572_s17  ;;  %1279 = vrot.lane.b32.xlu0 %v1199_v29, %s8572_s17 }
 0x136   : > { %v912_v39 = vpop.permute.xlu1 %911  ;;  %v910_v40 = vpop.permute.xlu0 %909 }
 0x137   : > { %983 = vst.msk [vmem:[#allocation2 + $0x268] sm:$0xff] %vm957_vm3, %v912_v39  ;;  %982 = vst.msk [vmem:[#allocation2 + $0x250] sm:$0xff] %vm957_vm3, %v910_v40  ;;  %v7565_v39 = vld [vmem:[%s8645_s10 + $0x38] sm:$0xff]  ;;  %v7564_v40 = vld [vmem:[%s8645_s10 + $0x30] sm:$0xff] }
 0x138   : > { %1285 = vrot.lane.b32.xlu1 %v1202_v35, %s8572_s17  ;;  %1283 = vrot.lane.b32.xlu0 %v1201_v36, %s8572_s17  ;;  %v7562_v36 = vld [vmem:[%s8645_s10 + $0x18] sm:$0xff] }
 0x13a   : > { %v916_v47 = vpop.permute.xlu1 %915  ;;  %v914_v48 = vpop.permute.xlu0 %913 }
 0x13b   : > { %985 = vst.msk [vmem:[#allocation2 + $0x298] sm:$0xff] %vm957_vm3, %v916_v47  ;;  %984 = vst.msk [vmem:[#allocation2 + $0x280] sm:$0xff] %vm957_vm3, %v914_v48  ;;  %v7567_v47 = vld [vmem:[%s8645_s10 + $0x50] sm:$0xff]  ;;  %v7566_v48 = vld [vmem:[%s8645_s10 + $0x48] sm:$0xff] }
 0x13c   : > { %1289 = vrot.lane.b32.xlu1 %v1204_v43, %s8572_s17  ;;  %1287 = vrot.lane.b32.xlu0 %v1203_v44, %s8572_s17 }
 0x13e   : > { %v920_v55 = vpop.permute.xlu1 %919  ;;  %v918_v56 = vpop.permute.xlu0 %917 }
 0x13f   : > { %987 = vst.msk [vmem:[#allocation2 + $0x2c8] sm:$0xff] %vm957_vm3, %v920_v55  ;;  %986 = vst.msk [vmem:[#allocation2 + $0x2b0] sm:$0xff] %vm957_vm3, %v918_v56  ;;  %v7569_v55 = vld [vmem:[%s8645_s10 + $0x68] sm:$0xff]  ;;  %v7568_v56 = vld [vmem:[%s8645_s10 + $0x60] sm:$0xff] }
 0x140   : > { %1293 = vrot.lane.b32.xlu1 %v1206_v51, %s8572_s17  ;;  %1291 = vrot.lane.b32.xlu0 %v1205_v52, %s8572_s17 }
 0x142   : > { %v924_v63 = vpop.permute.xlu1 %923  ;;  %v922_v0 = vpop.permute.xlu0 %921 }
 0x143   : > { %989 = vst.msk [vmem:[#allocation2 + $0x2f8] sm:$0xff] %vm957_vm3, %v924_v63  ;;  %988 = vst.msk [vmem:[#allocation2 + $0x2e0] sm:$0xff] %vm957_vm3, %v922_v0  ;;  %v7571_v63 = vld [vmem:[%s8645_s10 + $0x80] sm:$0xff]  ;;  %v7570_v0 = vld [vmem:[%s8645_s10 + $0x78] sm:$0xff]  ;;  %vm8583_vm3 = vmmov 0  }
 0x144   : > { %1297 = vrot.lane.b32.xlu1 %v1208_v59, %s8572_s17  ;;  %1295 = vrot.lane.b32.xlu0 %v1207_v60, %s8572_s17 }
 0x146   : > { %v1057_v7 = vpop.permute.xlu1 %1056  ;;  %v1055_v8 = vpop.permute.xlu0 %1054 }
 0x147   : > { %1152 = vst.msk [vmem:[#allocation2 + $0x18] sm:$0xff] %vm1150_vm4, %v1057_v7  ;;  %1151 = vst.msk [vmem:[#allocation2] sm:$0xff] %vm1150_vm4, %v1055_v8  ;;  %v7573_v7 = vld [vmem:[%s8645_s10 + $0x98] sm:$0xff]  ;;  %v7572_v8 = vld [vmem:[%s8645_s10 + $0x90] sm:$0xff] }
 0x148   : > { %1301 = vrot.lane.b32.xlu1 %v1210_v3, %s8572_s17  ;;  %1299 = vrot.lane.b32.xlu0 %v1209_v4, %s8572_s17 }
 0x14a   : > { %v1061_v15 = vpop.permute.xlu1 %1060  ;;  %v1059_v16 = vpop.permute.xlu0 %1058 }
 0x14b   : > { %1154 = vst.msk [vmem:[#allocation2 + $0x48] sm:$0xff] %vm1150_vm4, %v1061_v15  ;;  %1153 = vst.msk [vmem:[#allocation2 + $0x30] sm:$0xff] %vm1150_vm4, %v1059_v16  ;;  %v7575_v15 = vld [vmem:[%s8645_s10 + $0xb0] sm:$0xff]  ;;  %v7574_v16 = vld [vmem:[%s8645_s10 + $0xa8] sm:$0xff] }
 0x14c   : > { %1305 = vrot.lane.b32.xlu1 %v1212_v11, %s8572_s17  ;;  %1303 = vrot.lane.b32.xlu0 %v1211_v12, %s8572_s17 }
 0x14e   : > { %v1065_v23 = vpop.permute.xlu1 %1064  ;;  %v1063_v24 = vpop.permute.xlu0 %1062 }
 0x14f   : > { %1156 = vst.msk [vmem:[#allocation2 + $0x78] sm:$0xff] %vm1150_vm4, %v1065_v23  ;;  %1155 = vst.msk [vmem:[#allocation2 + $0x60] sm:$0xff] %vm1150_vm4, %v1063_v24  ;;  %v7577_v23 = vld [vmem:[%s8645_s10 + $0xc8] sm:$0xff]  ;;  %v7576_v24 = vld [vmem:[%s8645_s10 + $0xc0] sm:$0xff] }
 0x150   : > { %1309 = vrot.lane.b32.xlu1 %v1214_v19, %s8572_s17  ;;  %1307 = vrot.lane.b32.xlu0 %v1213_v20, %s8572_s17 }
 0x152   : > { %v1069_v26 = vpop.permute.xlu1 %1068  ;;  %v1067_v27 = vpop.permute.xlu0 %1066 }
 0x153   : > { %1158 = vst.msk [vmem:[#allocation2 + $0xa8] sm:$0xff] %vm1150_vm4, %v1069_v26  ;;  %1157 = vst.msk [vmem:[#allocation2 + $0x90] sm:$0xff] %vm1150_vm4, %v1067_v27 }
 0x154   : > { %1443 = vrot.lane.b32.xlu1 %v8715_v30, %s8573_s18  ;;  %1441 = vrot.lane.b32.xlu0 %v8722_v33, %s8573_s18 }
 0x156   : > { %v1073_v28 = vpop.permute.xlu1 %1072  ;;  %v1071_v29 = vpop.permute.xlu0 %1070 }
 0x157   : > { %1160 = vst.msk [vmem:[#allocation2 + $0xd8] sm:$0xff] %vm1150_vm4, %v1073_v28  ;;  %1159 = vst.msk [vmem:[#allocation2 + $0xc0] sm:$0xff] %vm1150_vm4, %v1071_v29  ;;  %v7579_v28 = vld [vmem:[%s8645_s10 + $0xe0] sm:$0xff]  ;;  %v7578_v29 = vld [vmem:[%s8645_s10 + $0xd8] sm:$0xff] }
 0x158   : > { %1447 = vrot.lane.b32.xlu1 %v8729_v34, %s8573_s18  ;;  %1445 = vrot.lane.b32.xlu0 %v8736_v37, %s8573_s18 }
 0x15a   : > { %v1077_v31 = vpop.permute.xlu1 %1076  ;;  %v1075_v32 = vpop.permute.xlu0 %1074 }
 0x15b   : > { %1162 = vst.msk [vmem:[#allocation2 + $0x108] sm:$0xff] %vm1150_vm4, %v1077_v31  ;;  %1161 = vst.msk [vmem:[#allocation2 + $0xf0] sm:$0xff] %vm1150_vm4, %v1075_v32 }
 0x15c   : > { %1451 = vrot.lane.b32.xlu1 %v8743_v38, %s8573_s18  ;;  %1449 = vrot.lane.b32.xlu0 %v8750_v41, %s8573_s18 }
 0x15e   : > { %v1081_v30 = vpop.permute.xlu1 %1080  ;;  %v1079_v33 = vpop.permute.xlu0 %1078 }
 0x15f   : > { %1164 = vst.msk [vmem:[#allocation2 + $0x138] sm:$0xff] %vm1150_vm4, %v1081_v30  ;;  %1163 = vst.msk [vmem:[#allocation2 + $0x120] sm:$0xff] %vm1150_vm4, %v1079_v33  ;;  %v7581_v30 = vld [vmem:[%s8645_s10 + $0xf8] sm:$0xff]  ;;  %v7580_v33 = vld [vmem:[%s8645_s10 + $0xf0] sm:$0xff] }
 0x160   : > { %1455 = vrot.lane.b32.xlu1 %v8757_v42, %s8573_s18  ;;  %1453 = vrot.lane.b32.xlu0 %v8764_v45, %s8573_s18 }
 0x162   : > { %v1085_v34 = vpop.permute.xlu1 %1084  ;;  %v1083_v37 = vpop.permute.xlu0 %1082 }
 0x163   : > { %1166 = vst.msk [vmem:[#allocation2 + $0x168] sm:$0xff] %vm1150_vm4, %v1085_v34  ;;  %1165 = vst.msk [vmem:[#allocation2 + $0x150] sm:$0xff] %vm1150_vm4, %v1083_v37 }
 0x164   : > { %1459 = vrot.lane.b32.xlu1 %v8771_v46, %s8573_s18  ;;  %1457 = vrot.lane.b32.xlu0 %v8778_v49, %s8573_s18 }
 0x166   : > { %v1089_v38 = vpop.permute.xlu1 %1088  ;;  %v1087_v41 = vpop.permute.xlu0 %1086 }
 0x167   : > { %1168 = vst.msk [vmem:[#allocation2 + $0x198] sm:$0xff] %vm1150_vm4, %v1089_v38  ;;  %1167 = vst.msk [vmem:[#allocation2 + $0x180] sm:$0xff] %vm1150_vm4, %v1087_v41  ;;  %v7583_v38 = vld [vmem:[%s8645_s10 + $0x110] sm:$0xff]  ;;  %v7582_v41 = vld [vmem:[%s8645_s10 + $0x108] sm:$0xff] }
 0x168   : > { %1463 = vrot.lane.b32.xlu1 %v8785_v50, %s8573_s18  ;;  %1461 = vrot.lane.b32.xlu0 %v8792_v53, %s8573_s18 }
 0x16a   : > { %v1093_v42 = vpop.permute.xlu1 %1092  ;;  %v1091_v45 = vpop.permute.xlu0 %1090 }
 0x16b   : > { %1170 = vst.msk [vmem:[#allocation2 + $0x1c8] sm:$0xff] %vm1150_vm4, %v1093_v42  ;;  %1169 = vst.msk [vmem:[#allocation2 + $0x1b0] sm:$0xff] %vm1150_vm4, %v1091_v45 }
 0x16c   : > { %1467 = vrot.lane.b32.xlu1 %v8799_v54, %s8573_s18  ;;  %1465 = vrot.lane.b32.xlu0 %v8806_v57, %s8573_s18 }
 0x16e   : > { %v1097_v46 = vpop.permute.xlu1 %1096  ;;  %v1095_v49 = vpop.permute.xlu0 %1094 }
 0x16f   : > { %1172 = vst.msk [vmem:[#allocation2 + $0x1f8] sm:$0xff] %vm1150_vm4, %v1097_v46  ;;  %1171 = vst.msk [vmem:[#allocation2 + $0x1e0] sm:$0xff] %vm1150_vm4, %v1095_v49  ;;  %v7585_v46 = vld [vmem:[%s8645_s10 + $0x128] sm:$0xff]  ;;  %v7584_v49 = vld [vmem:[%s8645_s10 + $0x120] sm:$0xff] }
 0x170   : > { %1471 = vrot.lane.b32.xlu1 %v8813_v58, %s8573_s18  ;;  %1469 = vrot.lane.b32.xlu0 %v8820_v61, %s8573_s18 }
 0x172   : > { %v1101_v50 = vpop.permute.xlu1 %1100  ;;  %v1099_v53 = vpop.permute.xlu0 %1098 }
 0x173   : > { %1174 = vst.msk [vmem:[#allocation2 + $0x228] sm:$0xff] %vm1150_vm4, %v1101_v50  ;;  %1173 = vst.msk [vmem:[#allocation2 + $0x210] sm:$0xff] %vm1150_vm4, %v1099_v53 }
 0x174   : > { %1475 = vrot.lane.b32.xlu1 %v8827_v62, %s8573_s18  ;;  %1473 = vrot.lane.b32.xlu0 %v8834_v1, %s8573_s18 }
 0x176   : > { %v1105_v54 = vpop.permute.xlu1 %1104  ;;  %v1103_v57 = vpop.permute.xlu0 %1102 }
 0x177   : > { %1176 = vst.msk [vmem:[#allocation2 + $0x258] sm:$0xff] %vm1150_vm4, %v1105_v54  ;;  %1175 = vst.msk [vmem:[#allocation2 + $0x240] sm:$0xff] %vm1150_vm4, %v1103_v57  ;;  %v7587_v54 = vld [vmem:[%s8645_s10 + $0x140] sm:$0xff]  ;;  %v7586_v57 = vld [vmem:[%s8645_s10 + $0x138] sm:$0xff] }
 0x178   : > { %1479 = vrot.lane.b32.xlu1 %v8841_v2, %s8573_s18  ;;  %1477 = vrot.lane.b32.xlu0 %v8848_v5, %s8573_s18 }
 0x17a   : > { %v1109_v58 = vpop.permute.xlu1 %1108  ;;  %v1107_v61 = vpop.permute.xlu0 %1106 }
 0x17b   : > { %1178 = vst.msk [vmem:[#allocation2 + $0x288] sm:$0xff] %vm1150_vm4, %v1109_v58  ;;  %1177 = vst.msk [vmem:[#allocation2 + $0x270] sm:$0xff] %vm1150_vm4, %v1107_v61 }
 0x17c   : > { %1483 = vrot.lane.b32.xlu1 %v8855_v6, %s8573_s18  ;;  %1481 = vrot.lane.b32.xlu0 %v8862_v9, %s8573_s18 }
 0x17e   : > { %v1113_v62 = vpop.permute.xlu1 %1112  ;;  %v1111_v1 = vpop.permute.xlu0 %1110 }
 0x17f   : > { %1180 = vst.msk [vmem:[#allocation2 + $0x2b8] sm:$0xff] %vm1150_vm4, %v1113_v62  ;;  %1179 = vst.msk [vmem:[#allocation2 + $0x2a0] sm:$0xff] %vm1150_vm4, %v1111_v1  ;;  %v7589_v62 = vld [vmem:[%s8645_s10 + $0x158] sm:$0xff]  ;;  %v7588_v1 = vld [vmem:[%s8645_s10 + $0x150] sm:$0xff] }
 0x180   : > { %1487 = vrot.lane.b32.xlu1 %v8869_v10, %s8573_s18  ;;  %1485 = vrot.lane.b32.xlu0 %v8876_v13, %s8573_s18 }
 0x182   : > { %v1117_v2 = vpop.permute.xlu1 %1116  ;;  %v1115_v5 = vpop.permute.xlu0 %1114 }
 0x183   : > { %1182 = vst.msk [vmem:[#allocation2 + $0x2e8] sm:$0xff] %vm1150_vm4, %v1117_v2  ;;  %1181 = vst.msk [vmem:[#allocation2 + $0x2d0] sm:$0xff] %vm1150_vm4, %v1115_v5 }
 0x184   : > { %1491 = vrot.lane.b32.xlu1 %v8883_v14, %s8573_s18  ;;  %1489 = vrot.lane.b32.xlu0 %v8890_v17, %s8573_s18  ;;  %v7561_v14 = vld [vmem:[%s8702_s14 + $0x188] sm:$0xff]  ;;  %v7560_v17 = vld [vmem:[%s8702_s14 + $0x180] sm:$0xff] }
 0x186   : > { %v1250_v6 = vpop.permute.xlu1 %1249  ;;  %v1248_v9 = vpop.permute.xlu0 %1247 }
 0x187   : > { %1345 = vst.msk [vmem:[#allocation2 + $0x28] sm:$0xff] %vm1343_vm5, %v1250_v6  ;;  %1344 = vst.msk [vmem:[#allocation2 + $0x10] sm:$0xff] %vm1343_vm5, %v1248_v9  ;;  %v7591_v6 = vld [vmem:[%s8645_s10 + $0x170] sm:$0xff]  ;;  %v7590_v9 = vld [vmem:[%s8645_s10 + $0x168] sm:$0xff] }
 0x188   : > { %1495 = vrot.lane.b32.xlu1 %v8897_v18, %s8573_s18  ;;  %1493 = vrot.lane.b32.xlu0 %v8904_v21, %s8573_s18  ;;  %v7563_v21 = vld [vmem:[%s8645_s10 + $0x20] sm:$0xff] }
 0x18a   : > { %v1254_v10 = vpop.permute.xlu1 %1253  ;;  %v1252_v13 = vpop.permute.xlu0 %1251 }
 0x18b   : > { %1347 = vst.msk [vmem:[#allocation2 + $0x58] sm:$0xff] %vm1343_vm5, %v1254_v10  ;;  %1346 = vst.msk [vmem:[#allocation2 + $0x40] sm:$0xff] %vm1343_vm5, %v1252_v13 }
 0x18c   : > { %1499 = vrot.lane.b32.xlu1 %v8911_v22, %s8573_s18  ;;  %1497 = vrot.lane.b32.xlu0 %v8918_v25, %s8573_s18 }
 0x18e   : > { %v1258_v18 = vpop.permute.xlu1 %1257  ;;  %v1256_v35 = vpop.permute.xlu0 %1255 }
 0x18f   : > { %1349 = vst.msk [vmem:[#allocation2 + $0x88] sm:$0xff] %vm1343_vm5, %v1258_v18  ;;  %1348 = vst.msk [vmem:[#allocation2 + $0x70] sm:$0xff] %vm1343_vm5, %v1256_v35 }
 0x190   : > { %1503 = vrot.lane.b32.xlu1 %v7561_v14, %s8573_s18  ;;  %1501 = vrot.lane.b32.xlu0 %v7560_v17, %s8573_s18  ;;  %v7593_v14 = vld [vmem:[%s8645_s10 + $0x188] sm:$0xff]  ;;  %v7592_v17 = vld [vmem:[%s8645_s10 + $0x180] sm:$0xff] }
 0x192   : > { %v1262_v22 = vpop.permute.xlu1 %1261  ;;  %v1260_v25 = vpop.permute.xlu0 %1259 }
 0x193   : > { %1351 = vst.msk [vmem:[#allocation2 + $0xb8] sm:$0xff] %vm1343_vm5, %v1262_v22  ;;  %1350 = vst.msk [vmem:[#allocation2 + $0xa0] sm:$0xff] %vm1343_vm5, %v1260_v25 }
 0x194   : > { %1637 = vrot.lane.b32.xlu1 %v7563_v21, %s8574_s19  ;;  %1635 = vrot.lane.b32.xlu0 %v7562_v36, %s8574_s19  ;;  %v7627_v21 = vld [vmem:[%s8645_s10 + $0x21] sm:$0xff]  ;;  %v7626_v36 = vld [vmem:[%s8645_s10 + $0x19] sm:$0xff] }
 0x196   : > { %v1266_v43 = vpop.permute.xlu1 %1265  ;;  %v1264_v44 = vpop.permute.xlu0 %1263 }
 0x197   : > { %1353 = vst.msk [vmem:[#allocation2 + $0xe8] sm:$0xff] %vm1343_vm5, %v1266_v43  ;;  %1352 = vst.msk [vmem:[#allocation2 + $0xd0] sm:$0xff] %vm1343_vm5, %v1264_v44 }
 0x198   : > { %1641 = vrot.lane.b32.xlu1 %v7565_v39, %s8574_s19  ;;  %1639 = vrot.lane.b32.xlu0 %v7564_v40, %s8574_s19  ;;  %v7629_v39 = vld [vmem:[%s8645_s10 + $0x39] sm:$0xff]  ;;  %v7628_v40 = vld [vmem:[%s8645_s10 + $0x31] sm:$0xff] }
 0x19a   : > { %v1270_v51 = vpop.permute.xlu1 %1269  ;;  %v1268_v52 = vpop.permute.xlu0 %1267 }
 0x19b   : > { %1355 = vst.msk [vmem:[#allocation2 + $0x118] sm:$0xff] %vm1343_vm5, %v1270_v51  ;;  %1354 = vst.msk [vmem:[#allocation2 + $0x100] sm:$0xff] %vm1343_vm5, %v1268_v52 }
 0x19c   : > { %1645 = vrot.lane.b32.xlu1 %v7567_v47, %s8574_s19  ;;  %1643 = vrot.lane.b32.xlu0 %v7566_v48, %s8574_s19  ;;  %v7631_v47 = vld [vmem:[%s8645_s10 + $0x51] sm:$0xff]  ;;  %v7630_v48 = vld [vmem:[%s8645_s10 + $0x49] sm:$0xff] }
 0x19e   : > { %v1274_v59 = vpop.permute.xlu1 %1273  ;;  %v1272_v60 = vpop.permute.xlu0 %1271 }
 0x19f   : > { %1357 = vst.msk [vmem:[#allocation2 + $0x148] sm:$0xff] %vm1343_vm5, %v1274_v59  ;;  %1356 = vst.msk [vmem:[#allocation2 + $0x130] sm:$0xff] %vm1343_vm5, %v1272_v60 }
 0x1a0   : > { %1649 = vrot.lane.b32.xlu1 %v7569_v55, %s8574_s19  ;;  %1647 = vrot.lane.b32.xlu0 %v7568_v56, %s8574_s19  ;;  %v7633_v55 = vld [vmem:[%s8645_s10 + $0x69] sm:$0xff]  ;;  %v7632_v56 = vld [vmem:[%s8645_s10 + $0x61] sm:$0xff] }
 0x1a2   : > { %v1278_v3 = vpop.permute.xlu1 %1277  ;;  %v1276_v4 = vpop.permute.xlu0 %1275 }
 0x1a3   : > { %1359 = vst.msk [vmem:[#allocation2 + $0x178] sm:$0xff] %vm1343_vm5, %v1278_v3  ;;  %1358 = vst.msk [vmem:[#allocation2 + $0x160] sm:$0xff] %vm1343_vm5, %v1276_v4 }
 0x1a4   : > { %1653 = vrot.lane.b32.xlu1 %v7571_v63, %s8574_s19  ;;  %1651 = vrot.lane.b32.xlu0 %v7570_v0, %s8574_s19  ;;  %v7635_v63 = vld [vmem:[%s8645_s10 + $0x81] sm:$0xff]  ;;  %v7634_v0 = vld [vmem:[%s8645_s10 + $0x79] sm:$0xff] }
 0x1a6   : > { %v1282_v11 = vpop.permute.xlu1 %1281  ;;  %v1280_v12 = vpop.permute.xlu0 %1279 }
 0x1a7   : > { %1361 = vst.msk [vmem:[#allocation2 + $0x1a8] sm:$0xff] %vm1343_vm5, %v1282_v11  ;;  %1360 = vst.msk [vmem:[#allocation2 + $0x190] sm:$0xff] %vm1343_vm5, %v1280_v12 }
 0x1a8   : > { %1657 = vrot.lane.b32.xlu1 %v7573_v7, %s8574_s19  ;;  %1655 = vrot.lane.b32.xlu0 %v7572_v8, %s8574_s19  ;;  %v7637_v7 = vld [vmem:[%s8645_s10 + $0x99] sm:$0xff]  ;;  %v7636_v8 = vld [vmem:[%s8645_s10 + $0x91] sm:$0xff] }
 0x1aa   : > { %v1286_v19 = vpop.permute.xlu1 %1285  ;;  %v1284_v20 = vpop.permute.xlu0 %1283 }
 0x1ab   : > { %1363 = vst.msk [vmem:[#allocation2 + $0x1d8] sm:$0xff] %vm1343_vm5, %v1286_v19  ;;  %1362 = vst.msk [vmem:[#allocation2 + $0x1c0] sm:$0xff] %vm1343_vm5, %v1284_v20 }
 0x1ac   : > { %1661 = vrot.lane.b32.xlu1 %v7575_v15, %s8574_s19  ;;  %1659 = vrot.lane.b32.xlu0 %v7574_v16, %s8574_s19  ;;  %v7639_v15 = vld [vmem:[%s8645_s10 + $0xb1] sm:$0xff]  ;;  %v7638_v16 = vld [vmem:[%s8645_s10 + $0xa9] sm:$0xff] }
 0x1ae   : > { %v1290_v26 = vpop.permute.xlu1 %1289  ;;  %v1288_v27 = vpop.permute.xlu0 %1287 }
 0x1af   : > { %1365 = vst.msk [vmem:[#allocation2 + $0x208] sm:$0xff] %vm1343_vm5, %v1290_v26  ;;  %1364 = vst.msk [vmem:[#allocation2 + $0x1f0] sm:$0xff] %vm1343_vm5, %v1288_v27 }
 0x1b0   : > { %1665 = vrot.lane.b32.xlu1 %v7577_v23, %s8574_s19  ;;  %1663 = vrot.lane.b32.xlu0 %v7576_v24, %s8574_s19  ;;  %v7641_v23 = vld [vmem:[%s8645_s10 + $0xc9] sm:$0xff]  ;;  %v7640_v24 = vld [vmem:[%s8645_s10 + $0xc1] sm:$0xff] }
 0x1b2   : > { %v1294_v31 = vpop.permute.xlu1 %1293  ;;  %v1292_v32 = vpop.permute.xlu0 %1291 }
 0x1b3   : > { %1367 = vst.msk [vmem:[#allocation2 + $0x238] sm:$0xff] %vm1343_vm5, %v1294_v31  ;;  %1366 = vst.msk [vmem:[#allocation2 + $0x220] sm:$0xff] %vm1343_vm5, %v1292_v32 }
 0x1b4   : > { %1669 = vrot.lane.b32.xlu1 %v7579_v28, %s8574_s19  ;;  %1667 = vrot.lane.b32.xlu0 %v7578_v29, %s8574_s19  ;;  %v7643_v28 = vld [vmem:[%s8645_s10 + $0xe1] sm:$0xff]  ;;  %v7642_v29 = vld [vmem:[%s8645_s10 + $0xd9] sm:$0xff] }
 0x1b6   : > { %v1298_v34 = vpop.permute.xlu1 %1297  ;;  %v1296_v37 = vpop.permute.xlu0 %1295 }
 0x1b7   : > { %1369 = vst.msk [vmem:[#allocation2 + $0x268] sm:$0xff] %vm1343_vm5, %v1298_v34  ;;  %1368 = vst.msk [vmem:[#allocation2 + $0x250] sm:$0xff] %vm1343_vm5, %v1296_v37 }
 0x1b8   : > { %1673 = vrot.lane.b32.xlu1 %v7581_v30, %s8574_s19  ;;  %1671 = vrot.lane.b32.xlu0 %v7580_v33, %s8574_s19  ;;  %v7645_v30 = vld [vmem:[%s8645_s10 + $0xf9] sm:$0xff]  ;;  %v7644_v33 = vld [vmem:[%s8645_s10 + $0xf1] sm:$0xff] }
 0x1ba   : > { %v1302_v42 = vpop.permute.xlu1 %1301  ;;  %v1300_v45 = vpop.permute.xlu0 %1299 }
 0x1bb   : > { %1371 = vst.msk [vmem:[#allocation2 + $0x298] sm:$0xff] %vm1343_vm5, %v1302_v42  ;;  %1370 = vst.msk [vmem:[#allocation2 + $0x280] sm:$0xff] %vm1343_vm5, %v1300_v45 }
 0x1bc   : > { %1677 = vrot.lane.b32.xlu1 %v7583_v38, %s8574_s19  ;;  %1675 = vrot.lane.b32.xlu0 %v7582_v41, %s8574_s19  ;;  %v7647_v38 = vld [vmem:[%s8645_s10 + $0x111] sm:$0xff]  ;;  %v7646_v41 = vld [vmem:[%s8645_s10 + $0x109] sm:$0xff] }
 0x1be   : > { %v1306_v50 = vpop.permute.xlu1 %1305  ;;  %v1304_v53 = vpop.permute.xlu0 %1303 }
 0x1bf   : > { %1373 = vst.msk [vmem:[#allocation2 + $0x2c8] sm:$0xff] %vm1343_vm5, %v1306_v50  ;;  %1372 = vst.msk [vmem:[#allocation2 + $0x2b0] sm:$0xff] %vm1343_vm5, %v1304_v53 }
 0x1c0   : > { %1681 = vrot.lane.b32.xlu1 %v7585_v46, %s8574_s19  ;;  %1679 = vrot.lane.b32.xlu0 %v7584_v49, %s8574_s19  ;;  %v7649_v46 = vld [vmem:[%s8645_s10 + $0x129] sm:$0xff]  ;;  %v7648_v49 = vld [vmem:[%s8645_s10 + $0x121] sm:$0xff] }
 0x1c2   : > { %v1310_v58 = vpop.permute.xlu1 %1309  ;;  %v1308_v61 = vpop.permute.xlu0 %1307 }
 0x1c3   : > { %1375 = vst.msk [vmem:[#allocation2 + $0x2f8] sm:$0xff] %vm1343_vm5, %v1310_v58  ;;  %1374 = vst.msk [vmem:[#allocation2 + $0x2e0] sm:$0xff] %vm1343_vm5, %v1308_v61  ;;  %vm7407_vm5 = vcmask 523264  }
 0x1c4   : > { %1685 = vrot.lane.b32.xlu1 %v7587_v54, %s8574_s19  ;;  %1683 = vrot.lane.b32.xlu0 %v7586_v57, %s8574_s19  ;;  %v7651_v54 = vld [vmem:[%s8645_s10 + $0x141] sm:$0xff]  ;;  %v7650_v57 = vld [vmem:[%s8645_s10 + $0x139] sm:$0xff] }
 0x1c6   : > { %v1444_v2 = vpop.permute.xlu1 %1443  ;;  %v1442_v5 = vpop.permute.xlu0 %1441 }
 0x1c7   : > { %1539 = vst.msk [vmem:[#allocation2 + $0x18] sm:$0xff] %vm1537_vm6, %v1444_v2  ;;  %1538 = vst.msk [vmem:[#allocation2] sm:$0xff] %vm1537_vm6, %v1442_v5  ;;  %v7652_v2 = vld [vmem:[%s8645_s10 + $0x151] sm:$0xff]  ;;  %v7594_v5 = vld [vmem:[%s8702_s14 + $0x19] sm:$0xff] }
 0x1c8   : > { %1689 = vrot.lane.b32.xlu1 %v7589_v62, %s8574_s19  ;;  %1687 = vrot.lane.b32.xlu0 %v7588_v1, %s8574_s19  ;;  %v7595_v62 = vld [vmem:[%s8702_s14 + $0x21] sm:$0xff]  ;;  %v7653_v1 = vld [vmem:[%s8645_s10 + $0x159] sm:$0xff]  ;;  %1796 = vst.msk [vmem:[#allocation2 + $0x8] sm:$0xff] %vm378_vm0, %v7594_v5 }
 0x1c9   : > { %1797 = vst.msk [vmem:[#allocation2 + $0x20] sm:$0xff] %vm378_vm0, %v7595_v62  ;;  %v7675_v5 = vld [vmem:[%s8702_s14 + $0xe2] sm:$0xff] }
 0x1ca   : > { %v1448_v10 = vpop.permute.xlu1 %1447  ;;  %v1446_v13 = vpop.permute.xlu0 %1445 }
 0x1cb   : > { %1541 = vst.msk [vmem:[#allocation2 + $0x48] sm:$0xff] %vm1537_vm6, %v1448_v10  ;;  %1540 = vst.msk [vmem:[#allocation2 + $0x30] sm:$0xff] %vm1537_vm6, %v1446_v13  ;;  %v9511_v10 = vld [vmem:[%s8702_s14 + $0x39] sm:$0xff]  ;;  %v7655_v13 = vld [vmem:[%s8645_s10 + $0x171] sm:$0xff] }
 0x1cc   : > { %1693 = vrot.lane.b32.xlu1 %v7591_v6, %s8574_s19  ;;  %1691 = vrot.lane.b32.xlu0 %v7590_v9, %s8574_s19  ;;  %1799 = vst.msk [vmem:[#allocation2 + $0x50] sm:$0xff] %vm378_vm0, %v9511_v10 }
 0x1ce   : > { %v1452_v18 = vpop.permute.xlu1 %1451  ;;  %v1450_v35 = vpop.permute.xlu0 %1449 }
 0x1cf   : > { %1543 = vst.msk [vmem:[#allocation2 + $0x78] sm:$0xff] %vm1537_vm6, %v1452_v18  ;;  %1542 = vst.msk [vmem:[#allocation2 + $0x60] sm:$0xff] %vm1537_vm6, %v1450_v35 }
 0x1d0   : > { %1697 = vrot.lane.b32.xlu1 %v7593_v14, %s8574_s19  ;;  %1695 = vrot.lane.b32.xlu0 %v7592_v17, %s8574_s19  ;;  %v7654_v14 = vld [vmem:[%s8645_s10 + $0x169] sm:$0xff]  ;;  %v9518_v17 = vld [vmem:[%s8702_s14 + $0x31] sm:$0xff] }
 0x1d1   : > { %1798 = vst.msk [vmem:[#allocation2 + $0x38] sm:$0xff] %vm378_vm0, %v9518_v17 }
 0x1d2   : > { %v1456_v22 = vpop.permute.xlu1 %1455  ;;  %v1454_v25 = vpop.permute.xlu0 %1453 }
 0x1d3   : > { %1545 = vst.msk [vmem:[#allocation2 + $0xa8] sm:$0xff] %vm1537_vm6, %v1456_v22  ;;  %1544 = vst.msk [vmem:[#allocation2 + $0x90] sm:$0xff] %vm1537_vm6, %v1454_v25  ;;  %v7656_v22 = vld [vmem:[%s8645_s10 + $0x181] sm:$0xff]  ;;  %v9534_v25 = vld [vmem:[%s8702_s14 + $0x49] sm:$0xff] }
 0x1d4   : > { %1894 = vrot.lane.b32.xlu1 %v7627_v21, %s8575_s20  ;;  %1892 = vrot.lane.b32.xlu0 %v7626_v36, %s8575_s20  ;;  %v9527_v21 = vld [vmem:[%s8702_s14 + $0x51] sm:$0xff]  ;;  %v7657_v36 = vld [vmem:[%s8645_s10 + $0x189] sm:$0xff]  ;;  %1800 = vst.msk [vmem:[#allocation2 + $0x68] sm:$0xff] %vm378_vm0, %v9534_v25 }
 0x1d5   : > { %1801 = vst.msk [vmem:[#allocation2 + $0x80] sm:$0xff] %vm378_vm0, %v9527_v21 }
 0x1d6   : > { %v1460_v43 = vpop.permute.xlu1 %1459  ;;  %v1458_v44 = vpop.permute.xlu0 %1457 }
 0x1d7   : > { %1547 = vst.msk [vmem:[#allocation2 + $0xd8] sm:$0xff] %vm1537_vm6, %v1460_v43  ;;  %1546 = vst.msk [vmem:[#allocation2 + $0xc0] sm:$0xff] %vm1537_vm6, %v1458_v44  ;;  %v9543_v43 = vld [vmem:[%s8702_s14 + $0x69] sm:$0xff] }
 0x1d8   : > { %1898 = vrot.lane.b32.xlu1 %v7629_v39, %s8575_s20  ;;  %1896 = vrot.lane.b32.xlu0 %v7628_v40, %s8575_s20  ;;  %v7659_v44 = vld [vmem:[%s8702_s14 + $0x22] sm:$0xff]  ;;  %1803 = vst.msk [vmem:[#allocation2 + $0xb0] sm:$0xff] %vm378_vm0, %v9543_v43 }
 0x1da   : > { %v1464_v51 = vpop.permute.xlu1 %1463  ;;  %v1462_v52 = vpop.permute.xlu0 %1461 }
 0x1db   : > { %1549 = vst.msk [vmem:[#allocation2 + $0x108] sm:$0xff] %vm1537_vm6, %v1464_v51  ;;  %1548 = vst.msk [vmem:[#allocation2 + $0xf0] sm:$0xff] %vm1537_vm6, %v1462_v52 }
 0x1dc   : > { %1902 = vrot.lane.b32.xlu1 %v7631_v47, %s8575_s20  ;;  %1900 = vrot.lane.b32.xlu0 %v7630_v48, %s8575_s20  ;;  %v7658_v47 = vld [vmem:[%s8702_s14 + $0x1a] sm:$0xff] }
 0x1dd   : > { %v9550_v48 = vld [vmem:[%s8702_s14 + $0x61] sm:$0xff] }
 0x1de   : > { %v1468_v59 = vpop.permute.xlu1 %1467  ;;  %v1466_v60 = vpop.permute.xlu0 %1465  ;;  %1802 = vst.msk [vmem:[#allocation2 + $0x98] sm:$0xff] %vm378_vm0, %v9550_v48 }
 0x1df   : > { %1551 = vst.msk [vmem:[#allocation2 + $0x138] sm:$0xff] %vm1537_vm6, %v1468_v59  ;;  %1550 = vst.msk [vmem:[#allocation2 + $0x120] sm:$0xff] %vm1537_vm6, %v1466_v60  ;;  %v7660_v59 = vld [vmem:[%s8702_s14 + $0x32] sm:$0xff] }
 0x1e0   : > { %1906 = vrot.lane.b32.xlu1 %v7633_v55, %s8575_s20  ;;  %1904 = vrot.lane.b32.xlu0 %v7632_v56, %s8575_s20  ;;  %v9559_v55 = vld [vmem:[%s8702_s14 + $0x81] sm:$0xff]  ;;  %v9566_v60 = vld [vmem:[%s8702_s14 + $0x79] sm:$0xff] }
 0x1e1   : > { %v7661_v56 = vld [vmem:[%s8702_s14 + $0x3a] sm:$0xff]  ;;  %1805 = vst.msk [vmem:[#allocation2 + $0xe0] sm:$0xff] %vm378_vm0, %v9559_v55  ;;  %1804 = vst.msk [vmem:[#allocation2 + $0xc8] sm:$0xff] %vm378_vm0, %v9566_v60 }
 0x1e2   : > { %v1472_v3 = vpop.permute.xlu1 %1471  ;;  %v1470_v4 = vpop.permute.xlu0 %1469 }
 0x1e3   : > { %1553 = vst.msk [vmem:[#allocation2 + $0x168] sm:$0xff] %vm1537_vm6, %v1472_v3  ;;  %1552 = vst.msk [vmem:[#allocation2 + $0x150] sm:$0xff] %vm1537_vm6, %v1470_v4  ;;  %v9575_v3 = vld [vmem:[%s8702_s14 + $0x99] sm:$0xff] }
 0x1e4   : > { %1910 = vrot.lane.b32.xlu1 %v7635_v63, %s8575_s20  ;;  %1908 = vrot.lane.b32.xlu0 %v7634_v0, %s8575_s20  ;;  %v7663_v4 = vld [vmem:[%s8702_s14 + $0x52] sm:$0xff]  ;;  %1807 = vst.msk [vmem:[#allocation2 + $0x110] sm:$0xff] %vm378_vm0, %v9575_v3 }
 0x1e6   : > { %v1476_v11 = vpop.permute.xlu1 %1475  ;;  %v1474_v12 = vpop.permute.xlu0 %1473 }
 0x1e7   : > { %1555 = vst.msk [vmem:[#allocation2 + $0x198] sm:$0xff] %vm1537_vm6, %v1476_v11  ;;  %1554 = vst.msk [vmem:[#allocation2 + $0x180] sm:$0xff] %vm1537_vm6, %v1474_v12 }
 0x1e8   : > { %1914 = vrot.lane.b32.xlu1 %v7637_v7, %s8575_s20  ;;  %1912 = vrot.lane.b32.xlu0 %v7636_v8, %s8575_s20  ;;  %v7662_v7 = vld [vmem:[%s8702_s14 + $0x4a] sm:$0xff] }
 0x1e9   : > { %v9582_v8 = vld [vmem:[%s8702_s14 + $0x91] sm:$0xff] }
 0x1ea   : > { %v1480_v19 = vpop.permute.xlu1 %1479  ;;  %v1478_v20 = vpop.permute.xlu0 %1477  ;;  %1806 = vst.msk [vmem:[#allocation2 + $0xf8] sm:$0xff] %vm378_vm0, %v9582_v8 }
 0x1eb   : > { %1557 = vst.msk [vmem:[#allocation2 + $0x1c8] sm:$0xff] %vm1537_vm6, %v1480_v19  ;;  %1556 = vst.msk [vmem:[#allocation2 + $0x1b0] sm:$0xff] %vm1537_vm6, %v1478_v20  ;;  %v7664_v19 = vld [vmem:[%s8702_s14 + $0x62] sm:$0xff] }
 0x1ec   : > { %1918 = vrot.lane.b32.xlu1 %v7639_v15, %s8575_s20  ;;  %1916 = vrot.lane.b32.xlu0 %v7638_v16, %s8575_s20  ;;  %v9591_v15 = vld [vmem:[%s8702_s14 + $0xb1] sm:$0xff]  ;;  %v9598_v20 = vld [vmem:[%s8702_s14 + $0xa9] sm:$0xff] }
 0x1ed   : > { %v7665_v16 = vld [vmem:[%s8702_s14 + $0x6a] sm:$0xff]  ;;  %1809 = vst.msk [vmem:[#allocation2 + $0x140] sm:$0xff] %vm378_vm0, %v9591_v15  ;;  %1808 = vst.msk [vmem:[#allocation2 + $0x128] sm:$0xff] %vm378_vm0, %v9598_v20 }
 0x1ee   : > { %v1484_v26 = vpop.permute.xlu1 %1483  ;;  %v1482_v27 = vpop.permute.xlu0 %1481 }
 0x1ef   : > { %1559 = vst.msk [vmem:[#allocation2 + $0x1f8] sm:$0xff] %vm1537_vm6, %v1484_v26  ;;  %1558 = vst.msk [vmem:[#allocation2 + $0x1e0] sm:$0xff] %vm1537_vm6, %v1482_v27  ;;  %v9607_v26 = vld [vmem:[%s8702_s14 + $0xc9] sm:$0xff] }
 0x1f0   : > { %1922 = vrot.lane.b32.xlu1 %v7641_v23, %s8575_s20  ;;  %1920 = vrot.lane.b32.xlu0 %v7640_v24, %s8575_s20  ;;  %v7667_v27 = vld [vmem:[%s8702_s14 + $0x82] sm:$0xff]  ;;  %1811 = vst.msk [vmem:[#allocation2 + $0x170] sm:$0xff] %vm378_vm0, %v9607_v26 }
 0x1f2   : > { %v1488_v31 = vpop.permute.xlu1 %1487  ;;  %v1486_v32 = vpop.permute.xlu0 %1485 }
 0x1f3   : > { %1561 = vst.msk [vmem:[#allocation2 + $0x228] sm:$0xff] %vm1537_vm6, %v1488_v31  ;;  %1560 = vst.msk [vmem:[#allocation2 + $0x210] sm:$0xff] %vm1537_vm6, %v1486_v32 }
 0x1f4   : > { %1926 = vrot.lane.b32.xlu1 %v7643_v28, %s8575_s20  ;;  %1924 = vrot.lane.b32.xlu0 %v7642_v29, %s8575_s20  ;;  %v7666_v28 = vld [vmem:[%s8702_s14 + $0x7a] sm:$0xff] }
 0x1f5   : > { %v9614_v29 = vld [vmem:[%s8702_s14 + $0xc1] sm:$0xff] }
 0x1f6   : > { %v1492_v34 = vpop.permute.xlu1 %1491  ;;  %v1490_v37 = vpop.permute.xlu0 %1489  ;;  %1810 = vst.msk [vmem:[#allocation2 + $0x158] sm:$0xff] %vm378_vm0, %v9614_v29 }
 0x1f7   : > { %1563 = vst.msk [vmem:[#allocation2 + $0x258] sm:$0xff] %vm1537_vm6, %v1492_v34  ;;  %1562 = vst.msk [vmem:[#allocation2 + $0x240] sm:$0xff] %vm1537_vm6, %v1490_v37  ;;  %v7668_v34 = vld [vmem:[%s8702_s14 + $0x92] sm:$0xff] }
 0x1f8   : > { %1930 = vrot.lane.b32.xlu1 %v7645_v30, %s8575_s20  ;;  %1928 = vrot.lane.b32.xlu0 %v7644_v33, %s8575_s20  ;;  %v9623_v30 = vld [vmem:[%s8702_s14 + $0xe1] sm:$0xff]  ;;  %v9630_v37 = vld [vmem:[%s8702_s14 + $0xd9] sm:$0xff] }
 0x1f9   : > { %v7669_v33 = vld [vmem:[%s8702_s14 + $0x9a] sm:$0xff]  ;;  %1813 = vst.msk [vmem:[#allocation2 + $0x1a0] sm:$0xff] %vm378_vm0, %v9623_v30  ;;  %1812 = vst.msk [vmem:[#allocation2 + $0x188] sm:$0xff] %vm378_vm0, %v9630_v37 }
 0x1fa   : > { %v1496_v42 = vpop.permute.xlu1 %1495  ;;  %v1494_v45 = vpop.permute.xlu0 %1493 }
 0x1fb   : > { %1565 = vst.msk [vmem:[#allocation2 + $0x288] sm:$0xff] %vm1537_vm6, %v1496_v42  ;;  %1564 = vst.msk [vmem:[#allocation2 + $0x270] sm:$0xff] %vm1537_vm6, %v1494_v45  ;;  %v7613_v42 = vld [vmem:[%s8702_s14 + $0xf9] sm:$0xff] }
 0x1fc   : > { %1934 = vrot.lane.b32.xlu1 %v7647_v38, %s8575_s20  ;;  %1932 = vrot.lane.b32.xlu0 %v7646_v41, %s8575_s20  ;;  %v7671_v45 = vld [vmem:[%s8702_s14 + $0xb2] sm:$0xff]  ;;  %1815 = vst.msk [vmem:[#allocation2 + $0x1d0] sm:$0xff] %vm378_vm0, %v7613_v42 }
 0x1fe   : > { %v1500_v50 = vpop.permute.xlu1 %1499  ;;  %v1498_v53 = vpop.permute.xlu0 %1497 }
 0x1ff   : > { %1567 = vst.msk [vmem:[#allocation2 + $0x2b8] sm:$0xff] %vm1537_vm6, %v1500_v50  ;;  %1566 = vst.msk [vmem:[#allocation2 + $0x2a0] sm:$0xff] %vm1537_vm6, %v1498_v53 }
 0x200   : > { %1938 = vrot.lane.b32.xlu1 %v7649_v46, %s8575_s20  ;;  %1936 = vrot.lane.b32.xlu0 %v7648_v49, %s8575_s20  ;;  %v7670_v46 = vld [vmem:[%s8702_s14 + $0xaa] sm:$0xff] }
 0x201   : > { %v9643_v49 = vld [vmem:[%s8702_s14 + $0xf1] sm:$0xff] }
 0x202   : > { %v1504_v58 = vpop.permute.xlu1 %1503  ;;  %v1502_v61 = vpop.permute.xlu0 %1501  ;;  %1814 = vst.msk [vmem:[#allocation2 + $0x1b8] sm:$0xff] %vm378_vm0, %v9643_v49 }
 0x203   : > { %1569 = vst.msk [vmem:[#allocation2 + $0x2e8] sm:$0xff] %vm1537_vm6, %v1504_v58  ;;  %1568 = vst.msk [vmem:[#allocation2 + $0x2d0] sm:$0xff] %vm1537_vm6, %v1502_v61  ;;  %v7672_v58 = vld [vmem:[%s8702_s14 + $0xc2] sm:$0xff] }
 0x204   : > { %1942 = vrot.lane.b32.xlu1 %v7651_v54, %s8575_s20  ;;  %1940 = vrot.lane.b32.xlu0 %v7650_v57, %s8575_s20  ;;  %v7615_v54 = vld [vmem:[%s8702_s14 + $0x111] sm:$0xff]  ;;  %v7614_v61 = vld [vmem:[%s8702_s14 + $0x109] sm:$0xff] }
 0x205   : > { %v7673_v57 = vld [vmem:[%s8702_s14 + $0xca] sm:$0xff]  ;;  %1817 = vst.msk [vmem:[#allocation2 + $0x200] sm:$0xff] %vm378_vm0, %v7615_v54  ;;  %1816 = vst.msk [vmem:[#allocation2 + $0x1e8] sm:$0xff] %vm378_vm0, %v7614_v61 }
 0x206   : > { %v1638_v6 = vpop.permute.xlu1 %1637  ;;  %v1636_v9 = vpop.permute.xlu0 %1635 }
 0x207   : > { %1733 = vst.msk [vmem:[#allocation2 + $0x28] sm:$0xff] %vm1731_vm7, %v1638_v6  ;;  %1732 = vst.msk [vmem:[#allocation2 + $0x10] sm:$0xff] %vm1731_vm7, %v1636_v9  ;;  %v7674_v6 = vld [vmem:[%s8702_s14 + $0xda] sm:$0xff] }
 0x208   : > { %1946 = vrot.lane.b32.xlu1 %v7653_v1, %s8575_s20  ;;  %1944 = vrot.lane.b32.xlu0 %v7652_v2, %s8575_s20  ;;  %v7617_v2 = vld [vmem:[%s8702_s14 + $0x129] sm:$0xff]  ;;  %v7616_v9 = vld [vmem:[%s8702_s14 + $0x121] sm:$0xff] }
 0x209   : > { %1819 = vst.msk [vmem:[#allocation2 + $0x230] sm:$0xff] %vm378_vm0, %v7617_v2  ;;  %1818 = vst.msk [vmem:[#allocation2 + $0x218] sm:$0xff] %vm378_vm0, %v7616_v9  ;;  %v9739_v2 = vld [vmem:[%s8645_s10 + $0x32] sm:$0xff] }
 0x20a   : > { %v1642_v18 = vpop.permute.xlu1 %1641  ;;  %v1640_v35 = vpop.permute.xlu0 %1639  ;;  %v9748_v9 = vld [vmem:[%s8645_s10 + $0x52] sm:$0xff] }
 0x20b   : > { %1735 = vst.msk [vmem:[#allocation2 + $0x58] sm:$0xff] %vm1731_vm7, %v1642_v18  ;;  %1734 = vst.msk [vmem:[#allocation2 + $0x40] sm:$0xff] %vm1731_vm7, %v1640_v35  ;;  %v7619_v18 = vld [vmem:[%s8702_s14 + $0x141] sm:$0xff] }
 0x20c   : > { %1950 = vrot.lane.b32.xlu1 %v7655_v13, %s8575_s20  ;;  %1948 = vrot.lane.b32.xlu0 %v7654_v14, %s8575_s20  ;;  %v7677_v35 = vld [vmem:[%s8702_s14 + $0xfa] sm:$0xff]  ;;  %1821 = vst.msk [vmem:[#allocation2 + $0x260] sm:$0xff] %vm378_vm0, %v7619_v18 }
 0x20e   : > { %v1646_v39 = vpop.permute.xlu1 %1645  ;;  %v1644_v40 = vpop.permute.xlu0 %1643 }
 0x20f   : > { %1737 = vst.msk [vmem:[#allocation2 + $0x88] sm:$0xff] %vm1731_vm7, %v1646_v39  ;;  %1736 = vst.msk [vmem:[#allocation2 + $0x70] sm:$0xff] %vm1731_vm7, %v1644_v40 }
 0x210   : > { %1954 = vrot.lane.b32.xlu1 %v7657_v36, %s8575_s20  ;;  %1952 = vrot.lane.b32.xlu0 %v7656_v22, %s8575_s20  ;;  %v7676_v36 = vld [vmem:[%s8702_s14 + $0xf2] sm:$0xff] }
 0x211   : > { %v7618_v22 = vld [vmem:[%s8702_s14 + $0x139] sm:$0xff] }
 0x212   : > { %v1650_v51 = vpop.permute.xlu1 %1649  ;;  %v1648_v52 = vpop.permute.xlu0 %1647  ;;  %1820 = vst.msk [vmem:[#allocation2 + $0x248] sm:$0xff] %vm378_vm0, %v7618_v22 }
 0x213   : > { %1739 = vst.msk [vmem:[#allocation2 + $0xb8] sm:$0xff] %vm1731_vm7, %v1650_v51  ;;  %1738 = vst.msk [vmem:[#allocation2 + $0xa0] sm:$0xff] %vm1731_vm7, %v1648_v52  ;;  %v7678_v51 = vld [vmem:[%s8702_s14 + $0x10a] sm:$0xff] }
 0x214   : > { %2087 = vrot.lane.b32.xlu1 %v7659_v44, %s8569_s11  ;;  %2085 = vrot.lane.b32.xlu0 %v7658_v47, %s8569_s11  ;;  %v7621_v44 = vld [vmem:[%s8702_s14 + $0x159] sm:$0xff]  ;;  %v7620_v52 = vld [vmem:[%s8702_s14 + $0x151] sm:$0xff] }
 0x215   : > { %v7679_v47 = vld [vmem:[%s8702_s14 + $0x112] sm:$0xff]  ;;  %1823 = vst.msk [vmem:[#allocation2 + $0x290] sm:$0xff] %vm378_vm0, %v7621_v44  ;;  %1822 = vst.msk [vmem:[#allocation2 + $0x278] sm:$0xff] %vm378_vm0, %v7620_v52  ;;  %v9775_v44 = vld [vmem:[%s8645_s10 + $0x7a] sm:$0xff] }
 0x216   : > { %v1654_v63 = vpop.permute.xlu1 %1653  ;;  %v1652_v0 = vpop.permute.xlu0 %1651  ;;  %v9784_v52 = vld [vmem:[%s8645_s10 + $0x9a] sm:$0xff] }
 0x217   : > { %1741 = vst.msk [vmem:[#allocation2 + $0xe8] sm:$0xff] %vm1731_vm7, %v1654_v63  ;;  %1740 = vst.msk [vmem:[#allocation2 + $0xd0] sm:$0xff] %vm1731_vm7, %v1652_v0  ;;  %v7623_v63 = vld [vmem:[%s8702_s14 + $0x171] sm:$0xff] }
 0x218   : > { %2091 = vrot.lane.b32.xlu1 %v7661_v56, %s8569_s11  ;;  %2089 = vrot.lane.b32.xlu0 %v7660_v59, %s8569_s11  ;;  %v7681_v0 = vld [vmem:[%s8702_s14 + $0x12a] sm:$0xff]  ;;  %1825 = vst.msk [vmem:[#allocation2 + $0x2c0] sm:$0xff] %vm378_vm0, %v7623_v63 }
 0x21a   : > { %v1658_v11 = vpop.permute.xlu1 %1657  ;;  %v1656_v12 = vpop.permute.xlu0 %1655 }
 0x21b   : > { %1743 = vst.msk [vmem:[#allocation2 + $0x118] sm:$0xff] %vm1731_vm7, %v1658_v11  ;;  %1742 = vst.msk [vmem:[#allocation2 + $0x100] sm:$0xff] %vm1731_vm7, %v1656_v12 }
 0x21c   : > { %2095 = vrot.lane.b32.xlu1 %v7663_v4, %s8569_s11  ;;  %2093 = vrot.lane.b32.xlu0 %v7662_v7, %s8569_s11  ;;  %v7680_v4 = vld [vmem:[%s8702_s14 + $0x122] sm:$0xff] }
 0x21d   : > { %v7622_v7 = vld [vmem:[%s8702_s14 + $0x169] sm:$0xff] }
 0x21e   : > { %v1662_v23 = vpop.permute.xlu1 %1661  ;;  %v1660_v24 = vpop.permute.xlu0 %1659  ;;  %1824 = vst.msk [vmem:[#allocation2 + $0x2a8] sm:$0xff] %vm378_vm0, %v7622_v7 }
 0x21f   : > { %1745 = vst.msk [vmem:[#allocation2 + $0x148] sm:$0xff] %vm1731_vm7, %v1662_v23  ;;  %1744 = vst.msk [vmem:[#allocation2 + $0x130] sm:$0xff] %vm1731_vm7, %v1660_v24  ;;  %v7682_v23 = vld [vmem:[%s8702_s14 + $0x13a] sm:$0xff] }
 0x220   : > { %2099 = vrot.lane.b32.xlu1 %v7665_v16, %s8569_s11  ;;  %2097 = vrot.lane.b32.xlu0 %v7664_v19, %s8569_s11  ;;  %v7625_v16 = vld [vmem:[%s8702_s14 + $0x189] sm:$0xff]  ;;  %v7624_v24 = vld [vmem:[%s8702_s14 + $0x181] sm:$0xff] }
 0x221   : > { %v7683_v19 = vld [vmem:[%s8702_s14 + $0x142] sm:$0xff]  ;;  %1827 = vst.msk [vmem:[#allocation2 + $0x2f0] sm:$0xff] %vm378_vm0, %v7625_v16  ;;  %1826 = vst.msk [vmem:[#allocation2 + $0x2d8] sm:$0xff] %vm378_vm0, %v7624_v24 }
 0x222   : > { %v1666_v31 = vpop.permute.xlu1 %1665  ;;  %v1664_v32 = vpop.permute.xlu0 %1663  ;;  %v7704_v16 = vld [vmem:[%s8645_s10 + $0xc2] sm:$0xff] }
 0x223   : > { %1747 = vst.msk [vmem:[#allocation2 + $0x178] sm:$0xff] %vm1731_vm7, %v1666_v31  ;;  %1746 = vst.msk [vmem:[#allocation2 + $0x160] sm:$0xff] %vm1731_vm7, %v1664_v32  ;;  %v7685_v31 = vld [vmem:[%s8702_s14 + $0x15a] sm:$0xff]  ;;  %v7684_v32 = vld [vmem:[%s8702_s14 + $0x152] sm:$0xff] }
 0x224   : > { %2103 = vrot.lane.b32.xlu1 %v7667_v27, %s8569_s11  ;;  %2101 = vrot.lane.b32.xlu0 %v7666_v28, %s8569_s11  ;;  %v7707_v24 = vld [vmem:[%s8645_s10 + $0xe2] sm:$0xff] }
 0x226   : > { %v1670_v38 = vpop.permute.xlu1 %1669  ;;  %v1668_v41 = vpop.permute.xlu0 %1667 }
 0x227   : > { %1749 = vst.msk [vmem:[#allocation2 + $0x1a8] sm:$0xff] %vm1731_vm7, %v1670_v38  ;;  %1748 = vst.msk [vmem:[#allocation2 + $0x190] sm:$0xff] %vm1731_vm7, %v1668_v41  ;;  %v7687_v38 = vld [vmem:[%s8702_s14 + $0x172] sm:$0xff]  ;;  %v7686_v41 = vld [vmem:[%s8702_s14 + $0x16a] sm:$0xff] }
 0x228   : > { %2107 = vrot.lane.b32.xlu1 %v7669_v33, %s8569_s11  ;;  %2105 = vrot.lane.b32.xlu0 %v7668_v34, %s8569_s11 }
 0x22a   : > { %v1674_v50 = vpop.permute.xlu1 %1673  ;;  %v1672_v53 = vpop.permute.xlu0 %1671 }
 0x22b   : > { %1751 = vst.msk [vmem:[#allocation2 + $0x1d8] sm:$0xff] %vm1731_vm7, %v1674_v50  ;;  %1750 = vst.msk [vmem:[#allocation2 + $0x1c0] sm:$0xff] %vm1731_vm7, %v1672_v53  ;;  %v7688_v50 = vld [vmem:[%s8702_s14 + $0x182] sm:$0xff] }
 0x22c   : > { %2111 = vrot.lane.b32.xlu1 %v7671_v45, %s8569_s11  ;;  %2109 = vrot.lane.b32.xlu0 %v7670_v46, %s8569_s11  ;;  %v7689_v46 = vld [vmem:[%s8702_s14 + $0x18a] sm:$0xff] }
 0x22e   : > { %v1678_v62 = vpop.permute.xlu1 %1677  ;;  %v1676_v1 = vpop.permute.xlu0 %1675 }
 0x22f   : > { %1753 = vst.msk [vmem:[#allocation2 + $0x208] sm:$0xff] %vm1731_vm7, %v1678_v62  ;;  %1752 = vst.msk [vmem:[#allocation2 + $0x1f0] sm:$0xff] %vm1731_vm7, %v1676_v1  ;;  %v9736_v1 = vld [vmem:[%s8645_s10 + $0x3a] sm:$0xff] }
 0x230   : > { %2115 = vrot.lane.b32.xlu1 %v7673_v57, %s8569_s11  ;;  %2113 = vrot.lane.b32.xlu0 %v7672_v58, %s8569_s11  ;;  %v7691_v57 = vld [vmem:[%s8645_s10 + $0x22] sm:$0xff]  ;;  %v7690_v58 = vld [vmem:[%s8645_s10 + $0x1a] sm:$0xff] }
 0x232   : > { %v1682_v13 = vpop.permute.xlu1 %1681  ;;  %v1680_v14 = vpop.permute.xlu0 %1679 }
 0x233   : > { %1755 = vst.msk [vmem:[#allocation2 + $0x238] sm:$0xff] %vm1731_vm7, %v1682_v13  ;;  %1754 = vst.msk [vmem:[#allocation2 + $0x220] sm:$0xff] %vm1731_vm7, %v1680_v14  ;;  %v9751_v13 = vld [vmem:[%s8645_s10 + $0x4a] sm:$0xff] }
 0x234   : > { %2119 = vrot.lane.b32.xlu1 %v7675_v5, %s8569_s11  ;;  %2117 = vrot.lane.b32.xlu0 %v7674_v6, %s8569_s11 }
 0x236   : > { %v1686_v39 = vpop.permute.xlu1 %1685  ;;  %v1684_v40 = vpop.permute.xlu0 %1683 }
 0x237   : > { %1757 = vst.msk [vmem:[#allocation2 + $0x268] sm:$0xff] %vm1731_vm7, %v1686_v39  ;;  %1756 = vst.msk [vmem:[#allocation2 + $0x250] sm:$0xff] %vm1731_vm7, %v1684_v40  ;;  %v9772_v40 = vld [vmem:[%s8645_s10 + $0x82] sm:$0xff] }
 0x238   : > { %2123 = vrot.lane.b32.xlu1 %v7677_v35, %s8569_s11  ;;  %2121 = vrot.lane.b32.xlu0 %v7676_v36, %s8569_s11  ;;  %v9760_v35 = vld [vmem:[%s8645_s10 + $0x6a] sm:$0xff]  ;;  %v9763_v36 = vld [vmem:[%s8645_s10 + $0x62] sm:$0xff] }
 0x23a   : > { %v1690_v56 = vpop.permute.xlu1 %1689  ;;  %v1688_v59 = vpop.permute.xlu0 %1687 }
 0x23b   : > { %1759 = vst.msk [vmem:[#allocation2 + $0x298] sm:$0xff] %vm1731_vm7, %v1690_v56  ;;  %1758 = vst.msk [vmem:[#allocation2 + $0x280] sm:$0xff] %vm1731_vm7, %v1688_v59  ;;  %v9787_v56 = vld [vmem:[%s8645_s10 + $0x92] sm:$0xff] }
 0x23c   : > { %2127 = vrot.lane.b32.xlu1 %v7679_v47, %s8569_s11  ;;  %2125 = vrot.lane.b32.xlu0 %v7678_v51, %s8569_s11 }
 0x23e   : > { %v1694_v11 = vpop.permute.xlu1 %1693  ;;  %v1692_v12 = vpop.permute.xlu0 %1691 }
 0x23f   : > { %1761 = vst.msk [vmem:[#allocation2 + $0x2c8] sm:$0xff] %vm1731_vm7, %v1694_v11  ;;  %1760 = vst.msk [vmem:[#allocation2 + $0x2b0] sm:$0xff] %vm1731_vm7, %v1692_v12  ;;  %v7705_v12 = vld [vmem:[%s8645_s10 + $0xca] sm:$0xff] }
 0x240   : > { %2131 = vrot.lane.b32.xlu1 %v7681_v0, %s8569_s11  ;;  %2129 = vrot.lane.b32.xlu0 %v7680_v4, %s8569_s11  ;;  %v9796_v0 = vld [vmem:[%s8645_s10 + $0xb2] sm:$0xff]  ;;  %v9799_v4 = vld [vmem:[%s8645_s10 + $0xaa] sm:$0xff] }
 0x242   : > { %v1698_v27 = vpop.permute.xlu1 %1697  ;;  %v1696_v28 = vpop.permute.xlu0 %1695 }
 0x243   : > { %1763 = vst.msk [vmem:[#allocation2 + $0x2f8] sm:$0xff] %vm1731_vm7, %v1698_v27  ;;  %1762 = vst.msk [vmem:[#allocation2 + $0x2e0] sm:$0xff] %vm1731_vm7, %v1696_v28  ;;  %v7706_v27 = vld [vmem:[%s8645_s10 + $0xda] sm:$0xff] }
 0x244   : > { %2135 = vrot.lane.b32.xlu1 %v7683_v19, %s8569_s11  ;;  %2133 = vrot.lane.b32.xlu0 %v7682_v23, %s8569_s11 }
 0x246   : > { %v1895_v33 = vpop.permute.xlu1 %1894  ;;  %v1893_v34 = vpop.permute.xlu0 %1892 }
 0x247   : > { %1990 = vst.msk [vmem:[#allocation2 + $0x28] sm:$0xff] %vm1988_vm8, %v1895_v33  ;;  %1989 = vst.msk [vmem:[#allocation2 + $0x10] sm:$0xff] %vm1988_vm8, %v1893_v34  ;;  %v7708_v33 = vld [vmem:[%s8645_s10 + $0xf2] sm:$0xff] }
 0x248   : > { %2139 = vrot.lane.b32.xlu1 %v7685_v31, %s8569_s11  ;;  %2137 = vrot.lane.b32.xlu0 %v7684_v32, %s8569_s11  ;;  %v7709_v32 = vld [vmem:[%s8645_s10 + $0xfa] sm:$0xff] }
 0x24a   : > { %v1899_v42 = vpop.permute.xlu1 %1898  ;;  %v1897_v45 = vpop.permute.xlu0 %1896 }
 0x24b   : > { %1992 = vst.msk [vmem:[#allocation2 + $0x58] sm:$0xff] %vm1988_vm8, %v1899_v42  ;;  %1991 = vst.msk [vmem:[#allocation2 + $0x40] sm:$0xff] %vm1988_vm8, %v1897_v45  ;;  %v7710_v42 = vld [vmem:[%s8645_s10 + $0x10a] sm:$0xff] }
 0x24c   : > { %2143 = vrot.lane.b32.xlu1 %v7687_v38, %s8569_s11  ;;  %2141 = vrot.lane.b32.xlu0 %v7686_v41, %s8569_s11  ;;  %v7711_v41 = vld [vmem:[%s8645_s10 + $0x112] sm:$0xff] }
 0x24e   : > { %v1903_v53 = vpop.permute.xlu1 %1902  ;;  %v1901_v54 = vpop.permute.xlu0 %1900 }
 0x24f   : > { %1994 = vst.msk [vmem:[#allocation2 + $0x88] sm:$0xff] %vm1988_vm8, %v1903_v53  ;;  %1993 = vst.msk [vmem:[#allocation2 + $0x70] sm:$0xff] %vm1988_vm8, %v1901_v54  ;;  %v7712_v53 = vld [vmem:[%s8645_s10 + $0x122] sm:$0xff] }
 0x250   : > { %2147 = vrot.lane.b32.xlu1 %v7689_v46, %s8569_s11  ;;  %2145 = vrot.lane.b32.xlu0 %v7688_v50, %s8569_s11  ;;  %v7713_v50 = vld [vmem:[%s8645_s10 + $0x12a] sm:$0xff] }
 0x252   : > { %v1907_v61 = vpop.permute.xlu1 %1906  ;;  %v1905_v62 = vpop.permute.xlu0 %1904 }
 0x253   : > { %1996 = vst.msk [vmem:[#allocation2 + $0xb8] sm:$0xff] %vm1988_vm8, %v1907_v61  ;;  %1995 = vst.msk [vmem:[#allocation2 + $0xa0] sm:$0xff] %vm1988_vm8, %v1905_v62  ;;  %v7714_v61 = vld [vmem:[%s8645_s10 + $0x13a] sm:$0xff] }
 0x254   : > { %2279 = vrot.lane.b32.xlu1 %v7691_v57, %s8576_s21  ;;  %2277 = vrot.lane.b32.xlu0 %v7690_v58, %s8576_s21  ;;  %v7715_v58 = vld [vmem:[%s8645_s10 + $0x142] sm:$0xff] }
 0x256   : > { %v1911_v5 = vpop.permute.xlu1 %1910  ;;  %v1909_v6 = vpop.permute.xlu0 %1908 }
 0x257   : > { %1998 = vst.msk [vmem:[#allocation2 + $0xe8] sm:$0xff] %vm1988_vm8, %v1911_v5  ;;  %1997 = vst.msk [vmem:[#allocation2 + $0xd0] sm:$0xff] %vm1988_vm8, %v1909_v6  ;;  %v7717_v6 = vld [vmem:[%s8645_s10 + $0x15a] sm:$0xff] }
 0x258   : > { %2283 = vrot.lane.b32.xlu1 %v9736_v1, %s8576_s21  ;;  %2281 = vrot.lane.b32.xlu0 %v9739_v2, %s8576_s21 }
 0x25a   : > { %v1915_v14 = vpop.permute.xlu1 %1914  ;;  %v1913_v18 = vpop.permute.xlu0 %1912 }
 0x25b   : > { %2000 = vst.msk [vmem:[#allocation2 + $0x118] sm:$0xff] %vm1988_vm8, %v1915_v14  ;;  %1999 = vst.msk [vmem:[#allocation2 + $0x100] sm:$0xff] %vm1988_vm8, %v1913_v18  ;;  %v7716_v14 = vld [vmem:[%s8645_s10 + $0x152] sm:$0xff] }
 0x25c   : > { %2287 = vrot.lane.b32.xlu1 %v9748_v9, %s8576_s21  ;;  %2285 = vrot.lane.b32.xlu0 %v9751_v13, %s8576_s21 }
 0x25e   : > { %v1919_v22 = vpop.permute.xlu1 %1918  ;;  %v1917_v39 = vpop.permute.xlu0 %1916 }
 0x25f   : > { %2002 = vst.msk [vmem:[#allocation2 + $0x148] sm:$0xff] %vm1988_vm8, %v1919_v22  ;;  %2001 = vst.msk [vmem:[#allocation2 + $0x130] sm:$0xff] %vm1988_vm8, %v1917_v39  ;;  %v7719_v39 = vld [vmem:[%s8645_s10 + $0x172] sm:$0xff] }
 0x260   : > { %2291 = vrot.lane.b32.xlu1 %v9760_v35, %s8576_s21  ;;  %2289 = vrot.lane.b32.xlu0 %v9763_v36, %s8576_s21 }
 0x262   : > { %v1923_v47 = vpop.permute.xlu1 %1922  ;;  %v1921_v51 = vpop.permute.xlu0 %1920 }
 0x263   : > { %2004 = vst.msk [vmem:[#allocation2 + $0x178] sm:$0xff] %vm1988_vm8, %v1923_v47  ;;  %2003 = vst.msk [vmem:[#allocation2 + $0x160] sm:$0xff] %vm1988_vm8, %v1921_v51  ;;  %v7718_v47 = vld [vmem:[%s8645_s10 + $0x16a] sm:$0xff] }
 0x264   : > { %2295 = vrot.lane.b32.xlu1 %v9772_v40, %s8576_s21  ;;  %2293 = vrot.lane.b32.xlu0 %v9775_v44, %s8576_s21 }
 0x266   : > { %v1927_v59 = vpop.permute.xlu1 %1926  ;;  %v1925_v63 = vpop.permute.xlu0 %1924 }
 0x267   : > { %2006 = vst.msk [vmem:[#allocation2 + $0x1a8] sm:$0xff] %vm1988_vm8, %v1927_v59  ;;  %2005 = vst.msk [vmem:[#allocation2 + $0x190] sm:$0xff] %vm1988_vm8, %v1925_v63  ;;  %v3681_v63 = vld [vmem:[%s13133_s3] sm:$0xff] }
 0x268   : > { %2299 = vrot.lane.b32.xlu1 %v9784_v52, %s8576_s21  ;;  %2297 = vrot.lane.b32.xlu0 %v9787_v56, %s8576_s21 }
 0x26a   : > { %v1931_v7 = vpop.permute.xlu1 %1930  ;;  %v1929_v11 = vpop.permute.xlu0 %1928 }
 0x26b   : > { %2008 = vst.msk [vmem:[#allocation2 + $0x1d8] sm:$0xff] %vm1988_vm8, %v1931_v7  ;;  %2007 = vst.msk [vmem:[#allocation2 + $0x1c0] sm:$0xff] %vm1988_vm8, %v1929_v11  ;;  %v3682_v7 = vld [vmem:[%s13133_s3 + $0x8] sm:$0xff] }
 0x26c   : > { %2303 = vrot.lane.b32.xlu1 %v9796_v0, %s8576_s21  ;;  %2301 = vrot.lane.b32.xlu0 %v9799_v4, %s8576_s21  ;;  %v8205_v11 = vpack.c.bf16 %v3682_v7, %v3681_v63  ;;  %v3691_v7 = vld [vmem:[%s13133_s3 + $0x50] sm:$0xff] }
 0x26e   : > { %v1935_v19 = vpop.permute.xlu1 %1934  ;;  %v1933_v23 = vpop.permute.xlu0 %1932 }
 0x26f   : > { %2010 = vst.msk [vmem:[#allocation2 + $0x208] sm:$0xff] %vm1988_vm8, %v1935_v19  ;;  %2009 = vst.msk [vmem:[#allocation2 + $0x1f0] sm:$0xff] %vm1988_vm8, %v1933_v23  ;;  %v13143_v19 = vmov 0.0|0.0  }
 0x270   : > { %2307 = vrot.lane.b32.xlu1 %v7705_v12, %s8576_s21  ;;  %2305 = vrot.lane.b32.xlu0 %v7704_v16, %s8576_s21  ;;  %v7721_v12 = vld [vmem:[%s8645_s10 + $0x18a] sm:$0xff]  ;;  %v7720_v16 = vld [vmem:[%s8645_s10 + $0x182] sm:$0xff] }
 0x271   : > { %8204 = vmatprep.subr.bf16.mxu0 %v13143_v19 }
 0x272   : > { %v1939_v28 = vpop.permute.xlu1 %1938  ;;  %v1937_v31 = vpop.permute.xlu0 %1936  ;;  %8206 = vmatpush1.bf16.msra.mxu0 %v8205_v11  ;;  %v3692_v11 = vld [vmem:[%s13133_s3 + $0x58] sm:$0xff] }
 0x273   : > { %2012 = vst.msk [vmem:[#allocation2 + $0x238] sm:$0xff] %vm1988_vm8, %v1939_v28  ;;  %2011 = vst.msk [vmem:[#allocation2 + $0x220] sm:$0xff] %vm1988_vm8, %v1937_v31  ;;  %v3684_v28 = vld [vmem:[%s13133_s3 + $0x18] sm:$0xff]  ;;  %8207 = vmatprep.subr.bf16.mxu0 %v13143_v19 }
 0x274   : > { %2311 = vrot.lane.b32.xlu1 %v7707_v24, %s8576_s21  ;;  %2309 = vrot.lane.b32.xlu0 %v7706_v27, %s8576_s21  ;;  %v3683_v27 = vld [vmem:[%s13133_s3 + $0x10] sm:$0xff] }
 0x275   : > { %v8208_v31 = vpack.c.bf16 %v3684_v28, %v3683_v27  ;;  %v3693_v28 = vld [vmem:[%s13133_s3 + $0x60] sm:$0xff] }
 0x276   : > { %v1943_v34 = vpop.permute.xlu1 %1942  ;;  %v1941_v38 = vpop.permute.xlu0 %1940 }
 0x277   : > { %2014 = vst.msk [vmem:[#allocation2 + $0x268] sm:$0xff] %vm1988_vm8, %v1943_v34  ;;  %2013 = vst.msk [vmem:[#allocation2 + $0x250] sm:$0xff] %vm1988_vm8, %v1941_v38  ;;  %8209 = vmatpush1.bf16.msra.mxu0 %v8208_v31  ;;  %v3694_v31 = vld [vmem:[%s13133_s3 + $0x68] sm:$0xff] }
 0x278   : > { %2315 = vrot.lane.b32.xlu1 %v7709_v32, %s8576_s21  ;;  %2313 = vrot.lane.b32.xlu0 %v7708_v33, %s8576_s21  ;;  %v7723_v32 = vld [vmem:[%s8702_s14 + $0x38] sm:$0xff]  ;;  %v7722_v33 = vld [vmem:[%s8702_s14 + $0x30] sm:$0xff] }
 0x279   : > { %8210 = vmatprep.subr.bf16.mxu0 %v13143_v19 }
 0x27a   : > { %v1947_v45 = vpop.permute.xlu1 %1946  ;;  %v1945_v46 = vpop.permute.xlu0 %1944 }
 0x27b   : > { %2016 = vst.msk [vmem:[#allocation2 + $0x298] sm:$0xff] %vm1988_vm8, %v1947_v45  ;;  %2015 = vst.msk [vmem:[#allocation2 + $0x280] sm:$0xff] %vm1988_vm8, %v1945_v46  ;;  %v7725_v46 = vld [vmem:[%s8702_s14 + $0x50] sm:$0xff] }
 0x27c   : > { %2319 = vrot.lane.b32.xlu1 %v7711_v41, %s8576_s21  ;;  %2317 = vrot.lane.b32.xlu0 %v7710_v42, %s8576_s21  ;;  %v3685_v41 = vld [vmem:[%s13133_s3 + $0x20] sm:$0xff]  ;;  %v3686_v42 = vld [vmem:[%s13133_s3 + $0x28] sm:$0xff] }
 0x27d   : > { %v8211_v45 = vpack.c.bf16 %v3686_v42, %v3685_v41  ;;  %v3695_v42 = vld [vmem:[%s13133_s3 + $0x70] sm:$0xff] }
 0x27e   : > { %v1951_v54 = vpop.permute.xlu1 %1950  ;;  %v1949_v57 = vpop.permute.xlu0 %1948 }
 0x27f   : > { %2018 = vst.msk [vmem:[#allocation2 + $0x2c8] sm:$0xff] %vm1988_vm8, %v1951_v54  ;;  %2017 = vst.msk [vmem:[#allocation2 + $0x2b0] sm:$0xff] %vm1988_vm8, %v1949_v57  ;;  %8212 = vmatpush1.bf16.msra.mxu0 %v8211_v45  ;;  %v3687_v57 = vld [vmem:[%s13133_s3 + $0x30] sm:$0xff]  ;;  %v3696_v45 = vld [vmem:[%s13133_s3 + $0x78] sm:$0xff] }
 0x280   : > { %2323 = vrot.lane.b32.xlu1 %v7713_v50, %s8576_s21  ;;  %2321 = vrot.lane.b32.xlu0 %v7712_v53, %s8576_s21  ;;  %v7724_v50 = vld [vmem:[%s8702_s14 + $0x48] sm:$0xff] }
 0x281   : > { %8213 = vmatprep.subr.bf16.mxu0 %v13143_v19 }
 0x282   : > { %v1955_v62 = vpop.permute.xlu1 %1954  ;;  %v1953_v5 = vpop.permute.xlu0 %1952 }
 0x283   : > { %2020 = vst.msk [vmem:[#allocation2 + $0x2f8] sm:$0xff] %vm1988_vm8, %v1955_v62  ;;  %2019 = vst.msk [vmem:[#allocation2 + $0x2e0] sm:$0xff] %vm1988_vm8, %v1953_v5  ;;  %v7727_v62 = vld [vmem:[%s8702_s14 + $0x68] sm:$0xff]  ;;  %v7726_v5 = vld [vmem:[%s8702_s14 + $0x60] sm:$0xff] }
 0x284   : > { %2327 = vrot.lane.b32.xlu1 %v7715_v58, %s8576_s21  ;;  %2325 = vrot.lane.b32.xlu0 %v7714_v61, %s8576_s21  ;;  %v3688_v58 = vld [vmem:[%s13133_s3 + $0x38] sm:$0xff] }
 0x285   : > { %v8214_v61 = vpack.c.bf16 %v3688_v58, %v3687_v57  ;;  %v3697_v58 = vld [vmem:[%s13133_s3 + $0x80] sm:$0xff] }
 0x286   : > { %v2088_v18 = vpop.permute.xlu1 %2087  ;;  %v2086_v22 = vpop.permute.xlu0 %2085 }
 0x287   : > { %2182 = vst.msk [vmem:[#allocation2 + $0x20] sm:$0xff] %vm764_vm2, %v2088_v18  ;;  %2181 = vst.msk [vmem:[#allocation2 + $0x8] sm:$0xff] %vm764_vm2, %v2086_v22  ;;  %8215 = vmatpush1.bf16.msra.mxu0 %v8214_v61  ;;  %v3689_v18 = vld [vmem:[%s13133_s3 + $0x40] sm:$0xff]  ;;  %v3690_v22 = vld [vmem:[%s13133_s3 + $0x48] sm:$0xff] }
 0x288   : > { %2331 = vrot.lane.b32.xlu1 %v7717_v6, %s8576_s21  ;;  %2329 = vrot.lane.b32.xlu0 %v7716_v14, %s8576_s21  ;;  %v3698_v61 = vld [vmem:[%s13133_s3 + $0x88] sm:$0xff] }
 0x289   : > { %8216 = vmatprep.subr.bf16.mxu0 %v13143_v19 }
 0x28a   : > { %v2092_v51 = vpop.permute.xlu1 %2091  ;;  %v2090_v59 = vpop.permute.xlu0 %2089 }
 0x28b   : > { %2184 = vst.msk [vmem:[#allocation2 + $0x50] sm:$0xff] %vm764_vm2, %v2092_v51  ;;  %2183 = vst.msk [vmem:[#allocation2 + $0x38] sm:$0xff] %vm764_vm2, %v2090_v59  ;;  %v7728_v51 = vld [vmem:[%s8702_s14 + $0x78] sm:$0xff] }
 0x28c   : > { %2335 = vrot.lane.b32.xlu1 %v7719_v39, %s8576_s21  ;;  %2333 = vrot.lane.b32.xlu0 %v7718_v47, %s8576_s21  ;;  %v8217_v39 = vpack.c.bf16 %v3690_v22, %v3689_v18  ;;  %v7729_v47 = vld [vmem:[%s8702_s14 + $0x80] sm:$0xff]  ;;  %v3699_v22 = vld [vmem:[%s13133_s3 + $0x90] sm:$0xff] }
 0x28e   : > { %v2096_v23 = vpop.permute.xlu1 %2095  ;;  %v2094_v24 = vpop.permute.xlu0 %2093  ;;  %8218 = vmatpush1.bf16.msra.mxu0 %v8217_v39  ;;  %v3700_v39 = vld [vmem:[%s13133_s3 + $0x98] sm:$0xff] }
 0x28f   : > { %2186 = vst.msk [vmem:[#allocation2 + $0x80] sm:$0xff] %vm764_vm2, %v2096_v23  ;;  %2185 = vst.msk [vmem:[#allocation2 + $0x68] sm:$0xff] %vm764_vm2, %v2094_v24  ;;  %8219 = vmatprep.subr.bf16.mxu0 %v13143_v19  ;;  %v7730_v23 = vld [vmem:[%s8702_s14 + $0x90] sm:$0xff] }
 0x290   : > { %2339 = vrot.lane.b32.xlu1 %v7721_v12, %s8576_s21  ;;  %2337 = vrot.lane.b32.xlu0 %v7720_v16, %s8576_s21  ;;  %v8220_v12 = vpack.c.bf16 %v3692_v11, %v3691_v7  ;;  %v7731_v16 = vld [vmem:[%s8702_s14 + $0x98] sm:$0xff]  ;;  %v3701_v11 = vld [vmem:[%s13133_s3 + $0xa0] sm:$0xff] }
 0x292   : > { %v2100_v34 = vpop.permute.xlu1 %2099  ;;  %v2098_v38 = vpop.permute.xlu0 %2097  ;;  %8221 = vmatpush1.bf16.msra.mxu0 %v8220_v12  ;;  %v3702_v12 = vld [vmem:[%s13133_s3 + $0xa8] sm:$0xff] }
 0x293   : > { %2188 = vst.msk [vmem:[#allocation2 + $0xb0] sm:$0xff] %vm764_vm2, %v2100_v34  ;;  %2187 = vst.msk [vmem:[#allocation2 + $0x98] sm:$0xff] %vm764_vm2, %v2098_v38  ;;  %8222 = vmatprep.subr.bf16.mxu0 %v13143_v19  ;;  %v7732_v34 = vld [vmem:[%s8702_s14 + $0xa8] sm:$0xff] }
 0x294   : > { %2473 = vrot.lane.b32.xlu1 %v7723_v32, %s8571_s16  ;;  %2471 = vrot.lane.b32.xlu0 %v7722_v33, %s8571_s16  ;;  %v8223_v32 = vpack.c.bf16 %v3694_v31, %v3693_v28  ;;  %v7733_v33 = vld [vmem:[%s8702_s14 + $0xb0] sm:$0xff] }
 0x295   : > { %v3703_v31 = vld [vmem:[%s13133_s3 + $0xb0] sm:$0xff] }
 0x296   : > { %v2104_v53 = vpop.permute.xlu1 %2103  ;;  %v2102_v54 = vpop.permute.xlu0 %2101  ;;  %8224 = vmatpush1.bf16.msra.mxu0 %v8223_v32  ;;  %v3704_v32 = vld [vmem:[%s13133_s3 + $0xb8] sm:$0xff] }
 0x297   : > { %2190 = vst.msk [vmem:[#allocation2 + $0xe0] sm:$0xff] %vm764_vm2, %v2104_v53  ;;  %2189 = vst.msk [vmem:[#allocation2 + $0xc8] sm:$0xff] %vm764_vm2, %v2102_v54  ;;  %8225 = vmatprep.subr.bf16.mxu0 %v13143_v19  ;;  %v7734_v53 = vld [vmem:[%s8702_s14 + $0xc0] sm:$0xff] }
 0x298   : > { %2477 = vrot.lane.b32.xlu1 %v7725_v46, %s8571_s16  ;;  %2475 = vrot.lane.b32.xlu0 %v7724_v50, %s8571_s16  ;;  %v8226_v46 = vpack.c.bf16 %v3696_v45, %v3695_v42  ;;  %v7735_v50 = vld [vmem:[%s8702_s14 + $0xc8] sm:$0xff]  ;;  %v3705_v45 = vld [vmem:[%s13133_s3 + $0xc0] sm:$0xff] }
 0x29a   : > { %v2108_v6 = vpop.permute.xlu1 %2107  ;;  %v2106_v14 = vpop.permute.xlu0 %2105  ;;  %8227 = vmatpush1.bf16.msra.mxu0 %v8226_v46  ;;  %v3706_v46 = vld [vmem:[%s13133_s3 + $0xc8] sm:$0xff] }
 0x29b   : > { %2192 = vst.msk [vmem:[#allocation2 + $0x110] sm:$0xff] %vm764_vm2, %v2108_v6  ;;  %2191 = vst.msk [vmem:[#allocation2 + $0xf8] sm:$0xff] %vm764_vm2, %v2106_v14  ;;  %8228 = vmatprep.subr.bf16.mxu0 %v13143_v19  ;;  %v7736_v6 = vld [vmem:[%s8702_s14 + $0xd8] sm:$0xff] }
 0x29c   : > { %2481 = vrot.lane.b32.xlu1 %v7727_v62, %s8571_s16  ;;  %2479 = vrot.lane.b32.xlu0 %v7726_v5, %s8571_s16  ;;  %v8229_v62 = vpack.c.bf16 %v3698_v61, %v3697_v58  ;;  %v7737_v5 = vld [vmem:[%s8702_s14 + $0xe0] sm:$0xff]  ;;  %v3707_v61 = vld [vmem:[%s13133_s3 + $0xd0] sm:$0xff] }
 0x29e   : > { %v2112_v59 = vpop.permute.xlu1 %2111  ;;  %v2110_v63 = vpop.permute.xlu0 %2109  ;;  %8230 = vmatpush1.bf16.msra.mxu0 %v8229_v62  ;;  %v3708_v62 = vld [vmem:[%s13133_s3 + $0xd8] sm:$0xff] }
 0x29f   : > { %2194 = vst.msk [vmem:[#allocation2 + $0x140] sm:$0xff] %vm764_vm2, %v2112_v59  ;;  %2193 = vst.msk [vmem:[#allocation2 + $0x128] sm:$0xff] %vm764_vm2, %v2110_v63  ;;  %8231 = vmatprep.subr.bf16.mxu0 %v13143_v19  ;;  %v7738_v59 = vld [vmem:[%s8702_s14 + $0xf0] sm:$0xff] }
 0x2a0   : > { %2485 = vrot.lane.b32.xlu1 %v7729_v47, %s8571_s16  ;;  %2483 = vrot.lane.b32.xlu0 %v7728_v51, %s8571_s16  ;;  %v8232_v47 = vpack.c.bf16 %v3700_v39, %v3699_v22  ;;  %v7739_v51 = vld [vmem:[%s8702_s14 + $0xf8] sm:$0xff]  ;;  %v3709_v39 = vld [vmem:[%s13133_s3 + $0xe0] sm:$0xff] }
 0x2a2   : > { %v2116_v24 = vpop.permute.xlu1 %2115  ;;  %v2114_v27 = vpop.permute.xlu0 %2113  ;;  %8233 = vmatpush1.bf16.msra.mxu0 %v8232_v47  ;;  %v3710_v47 = vld [vmem:[%s13133_s3 + $0xe8] sm:$0xff] }
 0x2a3   : > { %2196 = vst.msk [vmem:[#allocation2 + $0x170] sm:$0xff] %vm764_vm2, %v2116_v24  ;;  %2195 = vst.msk [vmem:[#allocation2 + $0x158] sm:$0xff] %vm764_vm2, %v2114_v27  ;;  %8234 = vmatprep.subr.bf16.mxu0 %v13143_v19  ;;  %v7740_v24 = vld [vmem:[%s8702_s14 + $0x108] sm:$0xff] }
 0x2a4   : > { %2489 = vrot.lane.b32.xlu1 %v7731_v16, %s8571_s16  ;;  %2487 = vrot.lane.b32.xlu0 %v7730_v23, %s8571_s16  ;;  %v8235_v16 = vpack.c.bf16 %v3702_v12, %v3701_v11  ;;  %v7741_v23 = vld [vmem:[%s8702_s14 + $0x110] sm:$0xff] }
 0x2a5   : > { %v3711_v12 = vld [vmem:[%s13133_s3 + $0xf0] sm:$0xff] }
 0x2a6   : > { %v2120_v38 = vpop.permute.xlu1 %2119  ;;  %v2118_v41 = vpop.permute.xlu0 %2117  ;;  %8236 = vmatpush1.bf16.msra.mxu0 %v8235_v16  ;;  %v3712_v16 = vld [vmem:[%s13133_s3 + $0xf8] sm:$0xff] }
 0x2a7   : > { %2198 = vst.msk [vmem:[#allocation2 + $0x1a0] sm:$0xff] %vm764_vm2, %v2120_v38  ;;  %2197 = vst.msk [vmem:[#allocation2 + $0x188] sm:$0xff] %vm764_vm2, %v2118_v41  ;;  %8237 = vmatprep.subr.bf16.mxu0 %v13143_v19  ;;  %v7742_v38 = vld [vmem:[%s8702_s14 + $0x120] sm:$0xff] }
 0x2a8   : > { %2493 = vrot.lane.b32.xlu1 %v7733_v33, %s8571_s16  ;;  %2491 = vrot.lane.b32.xlu0 %v7732_v34, %s8571_s16  ;;  %v8238_v33 = vpack.c.bf16 %v3704_v32, %v3703_v31  ;;  %v7743_v34 = vld [vmem:[%s8702_s14 + $0x128] sm:$0xff]  ;;  %v7750_v32 = vld [vmem:[%s8702_s14 + $0x180] sm:$0xff] }
 0x2a9   : > { %v7751_v31 = vld [vmem:[%s8702_s14 + $0x188] sm:$0xff] }
 0x2aa   : > { %v2124_v54 = vpop.permute.xlu1 %2123  ;;  %v2122_v57 = vpop.permute.xlu0 %2121  ;;  %8239 = vmatpush1.bf16.msra.mxu0 %v8238_v33 }
 0x2ab   : > { %2200 = vst.msk [vmem:[#allocation2 + $0x1d0] sm:$0xff] %vm764_vm2, %v2124_v54  ;;  %2199 = vst.msk [vmem:[#allocation2 + $0x1b8] sm:$0xff] %vm764_vm2, %v2122_v57  ;;  %8240 = vmatprep.subr.bf16.mxu0 %v13143_v19  ;;  %v7744_v54 = vld [vmem:[%s8702_s14 + $0x138] sm:$0xff] }
 0x2ac   : > { %2497 = vrot.lane.b32.xlu1 %v7735_v50, %s8571_s16  ;;  %2495 = vrot.lane.b32.xlu0 %v7734_v53, %s8571_s16  ;;  %v8241_v50 = vpack.c.bf16 %v3706_v46, %v3705_v45  ;;  %v7745_v53 = vld [vmem:[%s8702_s14 + $0x140] sm:$0xff]  ;;  %v7754_v45 = vld [vmem:[%s8645_s10 + $0x30] sm:$0xff] }
 0x2ae   : > { %v2128_v14 = vpop.permute.xlu1 %2127  ;;  %v2126_v18 = vpop.permute.xlu0 %2125  ;;  %8242 = vmatpush1.bf16.msra.mxu0 %v8241_v50 }
 0x2af   : > { %2202 = vst.msk [vmem:[#allocation2 + $0x200] sm:$0xff] %vm764_vm2, %v2128_v14  ;;  %2201 = vst.msk [vmem:[#allocation2 + $0x1e8] sm:$0xff] %vm764_vm2, %v2126_v18  ;;  %8243 = vmatprep.subr.bf16.mxu0 %v13143_v19  ;;  %v7746_v14 = vld [vmem:[%s8702_s14 + $0x150] sm:$0xff] }
 0x2b0   : > { %2501 = vrot.lane.b32.xlu1 %v7737_v5, %s8571_s16  ;;  %2499 = vrot.lane.b32.xlu0 %v7736_v6, %s8571_s16  ;;  %v8244_v5 = vpack.c.bf16 %v3708_v62, %v3707_v61  ;;  %v7747_v6 = vld [vmem:[%s8702_s14 + $0x158] sm:$0xff] }
 0x2b1   : > { %v7755_v61 = vld [vmem:[%s8645_s10 + $0x38] sm:$0xff] }
 0x2b2   : > { %v2132_v63 = vpop.permute.xlu1 %2131  ;;  %v2130_v7 = vpop.permute.xlu0 %2129  ;;  %8245 = vmatpush1.bf16.msra.mxu0 %v8244_v5 }
 0x2b3   : > { %2204 = vst.msk [vmem:[#allocation2 + $0x230] sm:$0xff] %vm764_vm2, %v2132_v63  ;;  %2203 = vst.msk [vmem:[#allocation2 + $0x218] sm:$0xff] %vm764_vm2, %v2130_v7  ;;  %8246 = vmatprep.subr.bf16.mxu0 %v13143_v19  ;;  %v7748_v63 = vld [vmem:[%s8702_s14 + $0x168] sm:$0xff] }
 0x2b4   : > { %2505 = vrot.lane.b32.xlu1 %v7739_v51, %s8571_s16  ;;  %2503 = vrot.lane.b32.xlu0 %v7738_v59, %s8571_s16  ;;  %v8247_v51 = vpack.c.bf16 %v3710_v47, %v3709_v39  ;;  %v7749_v59 = vld [vmem:[%s8702_s14 + $0x170] sm:$0xff]  ;;  %v3721_v47 = vld [vmem:[%s13133_s3 + $0x140] sm:$0xf] }
 0x2b6   : > { %v2136_v27 = vpop.permute.xlu1 %2135  ;;  %v2134_v28 = vpop.permute.xlu0 %2133  ;;  %8248 = vmatpush1.bf16.msra.mxu0 %v8247_v51  ;;  %v7756_v51 = vld [vmem:[%s8645_s10 + $0x48] sm:$0xff] }
 0x2b7   : > { %2206 = vst.msk [vmem:[#allocation2 + $0x260] sm:$0xff] %vm764_vm2, %v2136_v27  ;;  %2205 = vst.msk [vmem:[#allocation2 + $0x248] sm:$0xff] %vm764_vm2, %v2134_v28  ;;  %8249 = vmatprep.subr.bf16.mxu0 %v13143_v19  ;;  %v3714_v27 = vld [vmem:[%s13133_s3 + $0x108] sm:$0xff] }
 0x2b8   : > { %2509 = vrot.lane.b32.xlu1 %v7741_v23, %s8571_s16  ;;  %2507 = vrot.lane.b32.xlu0 %v7740_v24, %s8571_s16  ;;  %v3713_v23 = vld [vmem:[%s13133_s3 + $0x100] sm:$0xff]  ;;  %v8250_v24 = vpack.c.bf16 %v3712_v16, %v3711_v12  ;;  %v7820_v12 = vld [vmem:[%s8645_s10 + $0x49] sm:$0xff] }
 0x2b9   : > { %v8252_v28 = vpack.c.bf16 %v3714_v27, %v3713_v23 }
 0x2ba   : > { %v2140_v41 = vpop.permute.xlu1 %2139  ;;  %v2138_v42 = vpop.permute.xlu0 %2137  ;;  %8251 = vmatpush1.bf16.msra.mxu0 %v8250_v24 }
 0x2bb   : > { %2208 = vst.msk [vmem:[#allocation2 + $0x290] sm:$0xff] %vm764_vm2, %v2140_v41  ;;  %2207 = vst.msk [vmem:[#allocation2 + $0x278] sm:$0xff] %vm764_vm2, %v2138_v42  ;;  %8253 = vmatprep.subr.bf16.mxu1 %v8252_v28  ;;  %v3716_v41 = vld [vmem:[%s13133_s3 + $0x118] sm:$0xff] }
 0x2bc   : > { %2513 = vrot.lane.b32.xlu1 %v7743_v34, %s8571_s16  ;;  %2511 = vrot.lane.b32.xlu0 %v7742_v38, %s8571_s16  ;;  %v3715_v38 = vld [vmem:[%s13133_s3 + $0x110] sm:$0xff] }
 0x2bd   : > { %8255 = vmatpush3.bf16.msra.mxu1 %v8252_v28  ;;  %v8256_v42 = vpack.c.bf16 %v3716_v41, %v3715_v38 }
 0x2be   : > { %v2144_v57 = vpop.permute.xlu1 %2143  ;;  %v2142_v58 = vpop.permute.xlu0 %2141 }
 0x2bf   : > { %2210 = vst.msk [vmem:[#allocation2 + $0x2c0] sm:$0xff] %vm764_vm2, %v2144_v57  ;;  %2209 = vst.msk [vmem:[#allocation2 + $0x2a8] sm:$0xff] %vm764_vm2, %v2142_v58  ;;  %8257 = vmatprep.subr.bf16.mxu1 %v8256_v42  ;;  %v7818_v58 = vld [vmem:[%s8645_s10 + $0x31] sm:$0xff] }
 0x2c0   : > { %2517 = vrot.lane.b32.xlu1 %v7745_v53, %s8571_s16  ;;  %2515 = vrot.lane.b32.xlu0 %v7744_v54, %s8571_s16  ;;  %v3717_v53 = vld [vmem:[%s13133_s3 + $0x120] sm:$0xff]  ;;  %v3718_v54 = vld [vmem:[%s13133_s3 + $0x128] sm:$0xff] }
 0x2c1   : > { %8259 = vmatpush3.bf16.msra.mxu1 %v8256_v42  ;;  %v8260_v57 = vpack.c.bf16 %v3718_v54, %v3717_v53  ;;  %v7824_v53 = vld [vmem:[%s8645_s10 + $0x79] sm:$0xff] }
 0x2c2   : > { %v2148_v18 = vpop.permute.xlu1 %2147  ;;  %v2146_v22 = vpop.permute.xlu0 %2145 }
 0x2c3   : > { %2212 = vst.msk [vmem:[#allocation2 + $0x2f0] sm:$0xff] %vm764_vm2, %v2148_v18  ;;  %2211 = vst.msk [vmem:[#allocation2 + $0x2d8] sm:$0xff] %vm764_vm2, %v2146_v22  ;;  %8261 = vmatprep.subr.bf16.mxu1 %v8260_v57  ;;  %v7819_v18 = vld [vmem:[%s8645_s10 + $0x39] sm:$0xff] }
 0x2c4   : > { %2521 = vrot.lane.b32.xlu1 %v7747_v6, %s8571_s16  ;;  %2519 = vrot.lane.b32.xlu0 %v7746_v14, %s8571_s16  ;;  %v3719_v6 = vld [vmem:[%s13133_s3 + $0x130] sm:$0xff] }
 0x2c5   : > { %8263 = vmatpush3.bf16.msra.mxu1 %v8260_v57 }
 0x2c6   : > { %v2280_v7 = vpop.permute.xlu1 %2279  ;;  %v2278_v11 = vpop.permute.xlu0 %2277 }
 0x2c7   : > { %2375 = vst.msk [vmem:[#allocation2 + $0x28] sm:$0xff] %vm2373_vm9, %v2280_v7  ;;  %2374 = vst.msk [vmem:[#allocation2 + $0x10] sm:$0xff] %vm2373_vm9, %v2278_v11 }
 0x2c8   : > { %2525 = vrot.lane.b32.xlu1 %v7749_v59, %s8571_s16  ;;  %2523 = vrot.lane.b32.xlu0 %v7748_v63, %s8571_s16 }
 0x2ca   : > { %v2284_v33 = vpop.permute.xlu1 %2283  ;;  %v2282_v34 = vpop.permute.xlu0 %2281 }
 0x2cb   : > { %2377 = vst.msk [vmem:[#allocation2 + $0x58] sm:$0xff] %vm2373_vm9, %v2284_v33  ;;  %2376 = vst.msk [vmem:[#allocation2 + $0x40] sm:$0xff] %vm2373_vm9, %v2282_v34  ;;  %v7822_v33 = vld [vmem:[%s8645_s10 + $0x61] sm:$0xff] }
 0x2cc   : > { %2529 = vrot.lane.b32.xlu1 %v7751_v31, %s8571_s16  ;;  %2527 = vrot.lane.b32.xlu0 %v7750_v32, %s8571_s16  ;;  %v7758_v31 = vld [vmem:[%s8645_s10 + $0x60] sm:$0xff] }
 0x2ce   : > { %v2288_v46 = vpop.permute.xlu1 %2287  ;;  %v2286_v50 = vpop.permute.xlu0 %2285 }
 0x2cf   : > { %2379 = vst.msk [vmem:[#allocation2 + $0x88] sm:$0xff] %vm2373_vm9, %v2288_v46  ;;  %2378 = vst.msk [vmem:[#allocation2 + $0x70] sm:$0xff] %vm2373_vm9, %v2286_v50  ;;  %v7760_v46 = vld [vmem:[%s8645_s10 + $0x78] sm:$0xff] }
 0x2d0   : > { %2664 = vrot.lane.b32.xlu1 %v7754_v45, %s8578_s23  ;;  %2857 = vrot.lane.b32.xlu0 %v9518_v17, %s8573_s18  ;;  %v3720_v17 = vld [vmem:[%s13133_s3 + $0x138] sm:$0xff] }
 0x2d1   : > { %v8264_v14 = vpack.c.bf16 %v3720_v17, %v3719_v6  ;;  %v7826_v17 = vld [vmem:[%s8645_s10 + $0x91] sm:$0xff] }
 0x2d2   : > { %v2292_v62 = vpop.permute.xlu1 %2291  ;;  %v2290_v5 = vpop.permute.xlu0 %2289 }
 0x2d3   : > { %2381 = vst.msk [vmem:[#allocation2 + $0xb8] sm:$0xff] %vm2373_vm9, %v2292_v62  ;;  %2380 = vst.msk [vmem:[#allocation2 + $0xa0] sm:$0xff] %vm2373_vm9, %v2290_v5  ;;  %8265 = vmatprep.subr.bf16.mxu1 %v8264_v14  ;;  %v7762_v5 = vld [vmem:[%s8645_s10 + $0x90] sm:$0xff] }
 0x2d4   : > { %3049 = vrot.lane.b32.xlu1 %v7818_v58, %s8579_s30  ;;  %2666 = vrot.lane.b32.xlu0 %v7755_v61, %s8578_s23 }
 0x2d5   : > { %8267 = vmatpush3.bf16.msra.mxu1 %v8264_v14 }
 0x2d6   : > { %v2296_v22 = vpop.permute.xlu1 %2295  ;;  %v2294_v39 = vpop.permute.xlu0 %2293  ;;  %8085 = vmatprep.subr.msk.mxu1 %vm3826_vm10, %v3721_v47 }
 0x2d7   : > { %2383 = vst.msk [vmem:[#allocation2 + $0xe8] sm:$0xff] %vm2373_vm9, %v2296_v22  ;;  %2382 = vst.msk [vmem:[#allocation2 + $0xd0] sm:$0xff] %vm2373_vm9, %v2294_v39 }
 0x2d8   : > { %3051 = vrot.lane.b32.xlu1 %v7819_v18, %s8579_s30  ;;  %2859 = vrot.lane.b32.xlu0 %v9511_v10, %s8573_s18  ;;  %v7757_v10 = vld [vmem:[%s8645_s10 + $0x50] sm:$0xff] }
 0x2d9   : > { %8086 = vmatpush3.msk.msra.mxu1 %vm3826_vm10, %v3721_v47 }
 0x2da   : > { %v2300_v59 = vpop.permute.xlu1 %2299  ;;  %v2298_v63 = vpop.permute.xlu0 %2297  ;;  %8268 = vmatprep.subr.bf16.mxu1 %v13143_v19 }
 0x2db   : > { %2385 = vst.msk [vmem:[#allocation2 + $0x118] sm:$0xff] %vm2373_vm9, %v2300_v59  ;;  %2384 = vst.msk [vmem:[#allocation2 + $0x100] sm:$0xff] %vm2373_vm9, %v2298_v63  ;;  %v7828_v63 = vld [vmem:[%s8645_s10 + $0xa9] sm:$0xff] }
 0x2dc   : > { %2668 = vrot.lane.b32.xlu1 %v7756_v51, %s8578_s23  ;;  %3306 = vrot.lane.b32.xlu0 %v9739_v2, %s8571_s16  ;;  %v7821_v2 = vld [vmem:[%s8645_s10 + $0x51] sm:$0xff]  ;;  %v7764_v51 = vld [vmem:[%s8645_s10 + $0xa8] sm:$0xff] }
 0x2de   : > { %v2304_v7 = vpop.permute.xlu1 %2303  ;;  %v2302_v11 = vpop.permute.xlu0 %2301 }
 0x2df   : > { %2387 = vst.msk [vmem:[#allocation2 + $0x148] sm:$0xff] %vm2373_vm9, %v2304_v7  ;;  %2386 = vst.msk [vmem:[#allocation2 + $0x130] sm:$0xff] %vm2373_vm9, %v2302_v11 }
 0x2e0   : > { %2670 = vrot.lane.b32.xlu1 %v7757_v10, %s8578_s23  ;;  %3308 = vrot.lane.b32.xlu0 %v9736_v1, %s8571_s16 }
 0x2e2   : > { %v2308_v16 = vpop.permute.xlu1 %2307  ;;  %v2306_v23 = vpop.permute.xlu0 %2305 }
 0x2e3   : > { %2389 = vst.msk [vmem:[#allocation2 + $0x178] sm:$0xff] %vm2373_vm9, %v2308_v16  ;;  %2388 = vst.msk [vmem:[#allocation2 + $0x160] sm:$0xff] %vm2373_vm9, %v2306_v23  ;;  %v7766_v23 = vld [vmem:[%s8645_s10 + $0xc0] sm:$0xff] }
 0x2e4   : > { %2861 = vrot.lane.b32.xlu1 %v9534_v25, %s8573_s18  ;;  %3053 = vrot.lane.b32.xlu0 %v7820_v12, %s8579_s30  ;;  %v7759_v25 = vld [vmem:[%s8645_s10 + $0x68] sm:$0xff] }
 0x2e6   : > { %v2312_v24 = vpop.permute.xlu1 %2311  ;;  %v2310_v27 = vpop.permute.xlu0 %2309 }
 0x2e7   : > { %2391 = vst.msk [vmem:[#allocation2 + $0x1a8] sm:$0xff] %vm2373_vm9, %v2312_v24  ;;  %2390 = vst.msk [vmem:[#allocation2 + $0x190] sm:$0xff] %vm2373_vm9, %v2310_v27  ;;  %v7830_v24 = vld [vmem:[%s8645_s10 + $0xc1] sm:$0xff] }
 0x2e8   : > { %3310 = vrot.lane.b32.xlu1 %v9751_v13, %s8571_s16  ;;  %3055 = vrot.lane.b32.xlu0 %v7821_v2, %s8579_s30 }
 0x2ea   : > { %v2316_v1 = vpop.permute.xlu1 %2315  ;;  %v2314_v28 = vpop.permute.xlu0 %2313 }
 0x2eb   : > { %2393 = vst.msk [vmem:[#allocation2 + $0x1d8] sm:$0xff] %vm2373_vm9, %v2316_v1  ;;  %2392 = vst.msk [vmem:[#allocation2 + $0x1c0] sm:$0xff] %vm2373_vm9, %v2314_v28  ;;  %v7831_v1 = vld [vmem:[%s8645_s10 + $0xc9] sm:$0xff] }
 0x2ec   : > { %2863 = vrot.lane.b32.xlu1 %v9527_v21, %s8573_s18  ;;  %3312 = vrot.lane.b32.xlu0 %v9748_v9, %s8571_s16  ;;  %v7823_v21 = vld [vmem:[%s8645_s10 + $0x69] sm:$0xff] }
 0x2ee   : > { %v2320_v32 = vpop.permute.xlu1 %2319  ;;  %v2318_v13 = vpop.permute.xlu0 %2317 }
 0x2ef   : > { %2395 = vst.msk [vmem:[#allocation2 + $0x208] sm:$0xff] %vm2373_vm9, %v2320_v32  ;;  %2394 = vst.msk [vmem:[#allocation2 + $0x1f0] sm:$0xff] %vm2373_vm9, %v2318_v13  ;;  %v7769_v13 = vld [vmem:[%s8645_s10 + $0xe0] sm:$0xff] }
 0x2f0   : > { %2674 = vrot.lane.b32.xlu1 %v7759_v25, %s8578_s23  ;;  %2672 = vrot.lane.b32.xlu0 %v7758_v31, %s8578_s23  ;;  %v7895_v31 = vld [vmem:[%s8645_s10 + $0xca] sm:$0xff] }
 0x2f2   : > { %v2324_v34 = vpop.permute.xlu1 %2323  ;;  %v2322_v38 = vpop.permute.xlu0 %2321 }
 0x2f3   : > { %2397 = vst.msk [vmem:[#allocation2 + $0x238] sm:$0xff] %vm2373_vm9, %v2324_v34  ;;  %2396 = vst.msk [vmem:[#allocation2 + $0x220] sm:$0xff] %vm2373_vm9, %v2322_v38 }
 0x2f4   : > { %2865 = vrot.lane.b32.xlu1 %v9550_v48, %s8573_s18  ;;  %3057 = vrot.lane.b32.xlu0 %v7822_v33, %s8579_s30  ;;  %v7761_v48 = vld [vmem:[%s8645_s10 + $0x80] sm:$0xff]  ;;  %v7768_v33 = vld [vmem:[%s8645_s10 + $0xd8] sm:$0xff] }
 0x2f6   : > { %v2328_v9 = vpop.permute.xlu1 %2327  ;;  %v2326_v41 = vpop.permute.xlu0 %2325 }
 0x2f7   : > { %2399 = vst.msk [vmem:[#allocation2 + $0x268] sm:$0xff] %vm2373_vm9, %v2328_v9  ;;  %2398 = vst.msk [vmem:[#allocation2 + $0x250] sm:$0xff] %vm2373_vm9, %v2326_v41  ;;  %v7896_v41 = vld [vmem:[%s8645_s10 + $0xda] sm:$0xff] }
 0x2f8   : > { %3314 = vrot.lane.b32.xlu1 %v9763_v36, %s8571_s16  ;;  %3059 = vrot.lane.b32.xlu0 %v7823_v21, %s8579_s30  ;;  %v7832_v21 = vld [vmem:[%s8645_s10 + $0xd9] sm:$0xff] }
 0x2fa   : > { %v2332_v42 = vpop.permute.xlu1 %2331  ;;  %v2330_v45 = vpop.permute.xlu0 %2329 }
 0x2fb   : > { %2401 = vst.msk [vmem:[#allocation2 + $0x298] sm:$0xff] %vm2373_vm9, %v2332_v42  ;;  %2400 = vst.msk [vmem:[#allocation2 + $0x280] sm:$0xff] %vm2373_vm9, %v2330_v45  ;;  %v7833_v42 = vld [vmem:[%s8645_s10 + $0xe1] sm:$0xff]  ;;  %v7850_v45 = vld [vmem:[%s8702_s14 + $0x32] sm:$0xff] }
 0x2fc   : > { %2867 = vrot.lane.b32.xlu1 %v9543_v43, %s8573_s18  ;;  %3316 = vrot.lane.b32.xlu0 %v9760_v35, %s8571_s16  ;;  %v7825_v43 = vld [vmem:[%s8645_s10 + $0x81] sm:$0xff] }
 0x2fe   : > { %v2336_v50 = vpop.permute.xlu1 %2335  ;;  %v2334_v36 = vpop.permute.xlu0 %2333 }
 0x2ff   : > { %2403 = vst.msk [vmem:[#allocation2 + $0x2c8] sm:$0xff] %vm2373_vm9, %v2336_v50  ;;  %2402 = vst.msk [vmem:[#allocation2 + $0x2b0] sm:$0xff] %vm2373_vm9, %v2334_v36  ;;  %v7851_v50 = vld [vmem:[%s8702_s14 + $0x3a] sm:$0xff] }
 0x300   : > { %2678 = vrot.lane.b32.xlu1 %v7761_v48, %s8578_s23  ;;  %2676 = vrot.lane.b32.xlu0 %v7760_v46, %s8578_s23 }
 0x302   : > { %v2340_v54 = vpop.permute.xlu1 %2339  ;;  %v2338_v57 = vpop.permute.xlu0 %2337 }
 0x303   : > { %2405 = vst.msk [vmem:[#allocation2 + $0x2f8] sm:$0xff] %vm2373_vm9, %v2340_v54  ;;  %2404 = vst.msk [vmem:[#allocation2 + $0x2e0] sm:$0xff] %vm2373_vm9, %v2338_v57  ;;  %v3649_v57 = vld [vmem:[#allocation2] sm:$0xff] }
 0x304   : > { %2869 = vrot.lane.b32.xlu1 %v9566_v60, %s8573_s18  ;;  %3061 = vrot.lane.b32.xlu0 %v7824_v53, %s8579_s30  ;;  %v7763_v60 = vld [vmem:[%s8645_s10 + $0x98] sm:$0xff] }
 0x306   : > { %v2474_v35 = vpop.permute.xlu1 %2473  ;;  %v2472_v58 = vpop.permute.xlu0 %2471 }
 0x307   : > { %2568 = vst.msk [vmem:[#allocation2 + $0x20] sm:$0xff] %vm1150_vm4, %v2474_v35  ;;  %2567 = vst.msk [vmem:[#allocation2 + $0x8] sm:$0xff] %vm1150_vm4, %v2472_v58  ;;  %v7770_v35 = vld [vmem:[%s8645_s10 + $0xf0] sm:$0xff] }
 0x308   : > { %3318 = vrot.lane.b32.xlu1 %v9775_v44, %s8571_s16  ;;  %3063 = vrot.lane.b32.xlu0 %v7825_v43, %s8579_s30  ;;  %v7771_v43 = vld [vmem:[%s8645_s10 + $0xf8] sm:$0xff] }
 0x30a   : > { %v2478_v61 = vpop.permute.xlu1 %2477  ;;  %v2476_v62 = vpop.permute.xlu0 %2475 }
 0x30b   : > { %2570 = vst.msk [vmem:[#allocation2 + $0x50] sm:$0xff] %vm1150_vm4, %v2478_v61  ;;  %2569 = vst.msk [vmem:[#allocation2 + $0x38] sm:$0xff] %vm1150_vm4, %v2476_v62 }
 0x30c   : > { %2871 = vrot.lane.b32.xlu1 %v9559_v55, %s8573_s18  ;;  %3320 = vrot.lane.b32.xlu0 %v9772_v40, %s8571_s16  ;;  %v7827_v55 = vld [vmem:[%s8645_s10 + $0x99] sm:$0xff] }
 0x30e   : > { %v2482_v6 = vpop.permute.xlu1 %2481  ;;  %v2480_v44 = vpop.permute.xlu0 %2479 }
 0x30f   : > { %2572 = vst.msk [vmem:[#allocation2 + $0x80] sm:$0xff] %vm1150_vm4, %v2482_v6  ;;  %2571 = vst.msk [vmem:[#allocation2 + $0x68] sm:$0xff] %vm1150_vm4, %v2480_v44  ;;  %v3650_v6 = vld [vmem:[#allocation2 + $0x18] sm:$0xff] }
 0x310   : > { %2682 = vrot.lane.b32.xlu1 %v7763_v60, %s8578_s23  ;;  %2680 = vrot.lane.b32.xlu0 %v7762_v5, %s8578_s23  ;;  %v7898_v44 = vld [vmem:[%s8645_s10 + $0xf2] sm:$0xff] }
 0x312   : > { %v2486_v14 = vpop.permute.xlu1 %2485  ;;  %v2484_v18 = vpop.permute.xlu0 %2483 }
 0x313   : > { %2574 = vst.msk [vmem:[#allocation2 + $0xb0] sm:$0xff] %vm1150_vm4, %v2486_v14  ;;  %2573 = vst.msk [vmem:[#allocation2 + $0x98] sm:$0xff] %vm1150_vm4, %v2484_v18  ;;  %v7852_v14 = vld [vmem:[%s8702_s14 + $0x4a] sm:$0xff] }
 0x314   : > { %2873 = vrot.lane.b32.xlu1 %v9582_v8, %s8573_s18  ;;  %3065 = vrot.lane.b32.xlu0 %v7826_v17, %s8579_s30  ;;  %v7765_v8 = vld [vmem:[%s8645_s10 + $0xb0] sm:$0xff]  ;;  %v7835_v17 = vld [vmem:[%s8645_s10 + $0xf9] sm:$0xff] }
 0x316   : > { %v2490_v40 = vpop.permute.xlu1 %2489  ;;  %v2488_v22 = vpop.permute.xlu0 %2487 }
 0x317   : > { %2576 = vst.msk [vmem:[#allocation2 + $0xe0] sm:$0xff] %vm1150_vm4, %v2490_v40  ;;  %2575 = vst.msk [vmem:[#allocation2 + $0xc8] sm:$0xff] %vm1150_vm4, %v2488_v22  ;;  %v7899_v22 = vld [vmem:[%s8645_s10 + $0xfa] sm:$0xff] }
 0x318   : > { %3322 = vrot.lane.b32.xlu1 %v9787_v56, %s8571_s16  ;;  %3067 = vrot.lane.b32.xlu0 %v7827_v55, %s8579_s30 }
 0x31a   : > { %v2494_v39 = vpop.permute.xlu1 %2493  ;;  %v2492_v47 = vpop.permute.xlu0 %2491 }
 0x31b   : > { %2578 = vst.msk [vmem:[#allocation2 + $0x110] sm:$0xff] %vm1150_vm4, %v2494_v39  ;;  %2577 = vst.msk [vmem:[#allocation2 + $0xf8] sm:$0xff] %vm1150_vm4, %v2492_v47  ;;  %v7853_v39 = vld [vmem:[%s8702_s14 + $0x52] sm:$0xff] }
 0x31c   : > { %2875 = vrot.lane.b32.xlu1 %v9575_v3, %s8573_s18  ;;  %3324 = vrot.lane.b32.xlu0 %v9784_v52, %s8571_s16  ;;  %v7829_v3 = vld [vmem:[%s8645_s10 + $0xb1] sm:$0xff] }
 0x31e   : > { %v2498_v59 = vpop.permute.xlu1 %2497  ;;  %v2496_v56 = vpop.permute.xlu0 %2495 }
 0x31f   : > { %2580 = vst.msk [vmem:[#allocation2 + $0x140] sm:$0xff] %vm1150_vm4, %v2498_v59  ;;  %2579 = vst.msk [vmem:[#allocation2 + $0x128] sm:$0xff] %vm1150_vm4, %v2496_v56  ;;  %v7773_v59 = vld [vmem:[%s8645_s10 + $0x110] sm:$0xff]  ;;  %v7772_v56 = vld [vmem:[%s8645_s10 + $0x108] sm:$0xff] }
 0x320   : > { %2686 = vrot.lane.b32.xlu1 %v7765_v8, %s8578_s23  ;;  %2684 = vrot.lane.b32.xlu0 %v7764_v51, %s8578_s23 }
 0x322   : > { %v2502_v10 = vpop.permute.xlu1 %2501  ;;  %v2500_v7 = vpop.permute.xlu0 %2499 }
 0x323   : > { %2582 = vst.msk [vmem:[#allocation2 + $0x170] sm:$0xff] %vm1150_vm4, %v2502_v10  ;;  %2581 = vst.msk [vmem:[#allocation2 + $0x158] sm:$0xff] %vm1150_vm4, %v2500_v7 }
 0x324   : > { %2877 = vrot.lane.b32.xlu1 %v9598_v20, %s8573_s18  ;;  %3069 = vrot.lane.b32.xlu0 %v7828_v63, %s8579_s30  ;;  %v7767_v20 = vld [vmem:[%s8645_s10 + $0xc8] sm:$0xff] }
 0x326   : > { %v2506_v52 = vpop.permute.xlu1 %2505  ;;  %v2504_v11 = vpop.permute.xlu0 %2503 }
 0x327   : > { %2584 = vst.msk [vmem:[#allocation2 + $0x1a0] sm:$0xff] %vm1150_vm4, %v2506_v52  ;;  %2583 = vst.msk [vmem:[#allocation2 + $0x188] sm:$0xff] %vm1150_vm4, %v2504_v11  ;;  %v7804_v52 = vld [vmem:[%s8702_s14 + $0x109] sm:$0xff] }
 0x328   : > { %3326 = vrot.lane.b32.xlu1 %v9799_v4, %s8571_s16  ;;  %3071 = vrot.lane.b32.xlu0 %v7829_v3, %s8579_s30  ;;  %v3651_v3 = vld [vmem:[#allocation2 + $0x30] sm:$0xff] }
 0x329   : > { %v7836_v11 = vld [vmem:[%s8645_s10 + $0x109] sm:$0xff] }
 0x32a   : > { %v2510_v12 = vpop.permute.xlu1 %2509  ;;  %v2508_v16 = vpop.permute.xlu0 %2507 }
 0x32b   : > { %2586 = vst.msk [vmem:[#allocation2 + $0x1d0] sm:$0xff] %vm1150_vm4, %v2510_v12  ;;  %2585 = vst.msk [vmem:[#allocation2 + $0x1b8] sm:$0xff] %vm1150_vm4, %v2508_v16 }
 0x32c   : > { %2879 = vrot.lane.b32.xlu1 %v9591_v15, %s8573_s18  ;;  %3328 = vrot.lane.b32.xlu0 %v9796_v0, %s8571_s16  ;;  %v7894_v0 = vld [vmem:[%s8645_s10 + $0xc2] sm:$0xff] }
 0x32e   : > { %v2514_v4 = vpop.permute.xlu1 %2513  ;;  %v2512_v2 = vpop.permute.xlu0 %2511 }
 0x32f   : > { %2588 = vst.msk [vmem:[#allocation2 + $0x200] sm:$0xff] %vm1150_vm4, %v2514_v4  ;;  %2587 = vst.msk [vmem:[#allocation2 + $0x1e8] sm:$0xff] %vm1150_vm4, %v2512_v2  ;;  %v7837_v4 = vld [vmem:[%s8645_s10 + $0x111] sm:$0xff]  ;;  %v7854_v2 = vld [vmem:[%s8702_s14 + $0x62] sm:$0xff] }
 0x330   : > { %2690 = vrot.lane.b32.xlu1 %v7767_v20, %s8578_s23  ;;  %2688 = vrot.lane.b32.xlu0 %v7766_v23, %s8578_s23  ;;  %v7900_v23 = vld [vmem:[%s8645_s10 + $0x10a] sm:$0xff] }
 0x332   : > { %v2518_v15 = vpop.permute.xlu1 %2517  ;;  %v2516_v27 = vpop.permute.xlu0 %2515 }
 0x333   : > { %2590 = vst.msk [vmem:[#allocation2 + $0x230] sm:$0xff] %vm1150_vm4, %v2518_v15  ;;  %2589 = vst.msk [vmem:[#allocation2 + $0x218] sm:$0xff] %vm1150_vm4, %v2516_v27 }
 0x334   : > { %2881 = vrot.lane.b32.xlu1 %v9614_v29, %s8573_s18  ;;  %3073 = vrot.lane.b32.xlu0 %v7830_v24, %s8579_s30 }
 0x336   : > { %v2522_v28 = vpop.permute.xlu1 %2521  ;;  %v2520_v25 = vpop.permute.xlu0 %2519 }
 0x337   : > { %2592 = vst.msk [vmem:[#allocation2 + $0x260] sm:$0xff] %vm1150_vm4, %v2522_v28  ;;  %2591 = vst.msk [vmem:[#allocation2 + $0x248] sm:$0xff] %vm1150_vm4, %v2520_v25  ;;  %v7805_v28 = vld [vmem:[%s8702_s14 + $0x111] sm:$0xff] }
 0x338   : > { %3330 = vrot.lane.b32.xlu1 %v7894_v0, %s8571_s16  ;;  %3075 = vrot.lane.b32.xlu0 %v7831_v1, %s8579_s30  ;;  %v3652_v1 = vld [vmem:[#allocation2 + $0x48] sm:$0xff]  ;;  %v7901_v25 = vld [vmem:[%s8645_s10 + $0x112] sm:$0xff] }
 0x33a   : > { %v2526_v32 = vpop.permute.xlu1 %2525  ;;  %v2524_v29 = vpop.permute.xlu0 %2523 }
 0x33b   : > { %2594 = vst.msk [vmem:[#allocation2 + $0x290] sm:$0xff] %vm1150_vm4, %v2526_v32  ;;  %2593 = vst.msk [vmem:[#allocation2 + $0x278] sm:$0xff] %vm1150_vm4, %v2524_v29 }
 0x33c   : > { %2883 = vrot.lane.b32.xlu1 %v9607_v26, %s8573_s18  ;;  %3332 = vrot.lane.b32.xlu0 %v7895_v31, %s8571_s16  ;;  %v7855_v31 = vld [vmem:[%s8702_s14 + $0x6a] sm:$0xff] }
 0x33e   : > { %v2530_v34 = vpop.permute.xlu1 %2529  ;;  %v2528_v38 = vpop.permute.xlu0 %2527 }
 0x33f   : > { %2596 = vst.msk [vmem:[#allocation2 + $0x2c0] sm:$0xff] %vm1150_vm4, %v2530_v34  ;;  %2595 = vst.msk [vmem:[#allocation2 + $0x2a8] sm:$0xff] %vm1150_vm4, %v2528_v38 }
 0x340   : > { %2694 = vrot.lane.b32.xlu1 %v7769_v13, %s8578_s23  ;;  %2692 = vrot.lane.b32.xlu0 %v7768_v33, %s8578_s23  ;;  %v7775_v13 = vld [vmem:[%s8645_s10 + $0x128] sm:$0xff]  ;;  %v7774_v33 = vld [vmem:[%s8645_s10 + $0x120] sm:$0xff] }
 0x342   : > { %v2665_v26 = vpop.permute.xlu1 %2664  ;;  %v2858_v9 = vpop.permute.xlu0 %2857 }
 0x343   : > { %2761 = vst.msk [vmem:[#allocation2 + $0x10] sm:$0xff] %vm2760_vm11, %v2665_v26  ;;  %v3653_v26 = vld [vmem:[#allocation2 + $0x60] sm:$0xff] }
 0x344   : > { %2953 = vst.msk [vmem:[#allocation2 + $0x8] sm:$0xff] %vm1537_vm6, %v2858_v9  ;;  %2885 = vrot.lane.b32.xlu1 %v9630_v37, %s8573_s18  ;;  %3077 = vrot.lane.b32.xlu0 %v7832_v21, %s8579_s30  ;;  %v7897_v37 = vld [vmem:[%s8645_s10 + $0xe2] sm:$0xff] }
 0x345   : > { %v7806_v9 = vld [vmem:[%s8702_s14 + $0x121] sm:$0xff] }
 0x346   : > { %v3050_v48 = vpop.permute.xlu1 %3049  ;;  %v2667_v46 = vpop.permute.xlu0 %2666 }
 0x347   : > { %3146 = vst.msk [vmem:[#allocation2 + $0x10] sm:$0xff] %vm3145_vm12, %v3050_v48 }
 0x348   : > { %2762 = vst.msk [vmem:[#allocation2 + $0x28] sm:$0xff] %vm2760_vm11, %v2667_v46  ;;  %3334 = vrot.lane.b32.xlu1 %v7896_v41, %s8571_s16  ;;  %3079 = vrot.lane.b32.xlu0 %v7833_v42, %s8579_s30  ;;  %v7838_v41 = vld [vmem:[%s8645_s10 + $0x121] sm:$0xff] }
 0x349   : > { %3210 = vst.msk [vmem:[#allocation2 + $0x10] sm:$0xff] %vm378_vm0, %v7850_v45  ;;  %v7902_v46 = vld [vmem:[%s8645_s10 + $0x122] sm:$0xff] }
 0x34a   : > { %v3052_v36 = vpop.permute.xlu1 %3051  ;;  %v2860_v53 = vpop.permute.xlu0 %2859 }
 0x34b   : > { %v3435_v54 = vld [vmem:[#allocation2 + $0x8] sm:$0xff]  ;;  %3147 = vst.msk [vmem:[#allocation2 + $0x28] sm:$0xff] %vm3145_vm12, %v3052_v36 }
 0x34c   : > { %2954 = vst.msk [vmem:[#allocation2 + $0x20] sm:$0xff] %vm1537_vm6, %v2860_v53  ;;  %3894 = vmatprep.mubr.f32.mxu0 %v3435_v54  ;;  %2887 = vrot.lane.b32.xlu1 %v9623_v30, %s8573_s18  ;;  %v7834_v30 = vld [vmem:[%s8645_s10 + $0xf1] sm:$0xff] }
 0x34d   : > { %3336 = vrot.lane.b32.xlu0 %v7897_v37, %s8571_s16  ;;  %3211 = vst.msk [vmem:[#allocation2 + $0x28] sm:$0xff] %vm378_vm0, %v7851_v50  ;;  %3895 = vmatmul.mubr.f32.vlgmr.msra.gmra.mrb[0].mxu0 %v3649_v57  ;;  %v7839_v37 = vld [vmem:[%s8645_s10 + $0x129] sm:$0xff]  ;;  %v7856_v50 = vld [vmem:[%s8702_s14 + $0x7a] sm:$0xff] }
 0x34e   : > { %v2669_v58 = vpop.permute.xlu1 %2668  ;;  %v3307_v61 = vpop.permute.xlu0 %3306 }
 0x34f   : > { %2763 = vst.msk [vmem:[#allocation2 + $0x40] sm:$0xff] %vm2760_vm11, %v2669_v58  ;;  %v7903_v58 = vld [vmem:[%s8645_s10 + $0x12a] sm:$0xff] }
 0x350   : > { %3403 = vst.msk [vmem:[#allocation2 + $0x10] sm:$0xff] %vm3402_vm13, %v3307_v61  ;;  %2698 = vrot.lane.b32.xlu1 %v7771_v43, %s8578_s23  ;;  %v3654_v43 = vld [vmem:[#allocation2 + $0x78] sm:$0xff]  ;;  %v7857_v61 = vld [vmem:[%s8702_s14 + $0x82] sm:$0xff] }
 0x351   : > { %2696 = vrot.lane.b32.xlu0 %v7770_v35, %s8578_s23  ;;  %v7807_v35 = vld [vmem:[%s8702_s14 + $0x129] sm:$0xff] }
 0x352   : > { %v2671_v62 = vpop.permute.xlu1 %2670  ;;  %v3309_v60 = vpop.permute.xlu0 %3308 }
 0x353   : > { %v3436_v5 = vld [vmem:[#allocation2 + $0x20] sm:$0xff]  ;;  %2764 = vst.msk [vmem:[#allocation2 + $0x58] sm:$0xff] %vm2760_vm11, %v2671_v62 }
 0x354   : > { %3404 = vst.msk [vmem:[#allocation2 + $0x28] sm:$0xff] %vm3402_vm13, %v3309_v60  ;;  %3899 = vmatprep.mubr.f32.mxu0 %v3436_v5  ;;  %2889 = vrot.lane.b32.xlu1 %v9643_v49, %s8573_s18  ;;  %v7803_v49 = vld [vmem:[%s8702_s14 + $0xf9] sm:$0xff] }
 0x355   : > { %3081 = vrot.lane.b32.xlu0 %v7834_v30, %s8579_s30  ;;  %3900 = vmatmul.mubr.f32.gmra.mrb[2].mxu0 %v3650_v6  ;;  %v7777_v60 = vld [vmem:[%s8645_s10 + $0x140] sm:$0xff]  ;;  %v7776_v5 = vld [vmem:[%s8645_s10 + $0x138] sm:$0xff] }
 0x356   : > { %v2862_v18 = vpop.permute.xlu1 %2861  ;;  %v3054_v55 = vpop.permute.xlu0 %3053 }
 0x357   : > { %v3537_v40 = vld [vmem:[#allocation2 + $0x10] sm:$0xff]  ;;  %2955 = vst.msk [vmem:[#allocation2 + $0x38] sm:$0xff] %vm1537_vm6, %v2862_v18  ;;  %v7808_v18 = vld [vmem:[%s8702_s14 + $0x139] sm:$0xff] }
 0x358   : > { %3148 = vst.msk [vmem:[#allocation2 + $0x40] sm:$0xff] %vm3145_vm12, %v3054_v55  ;;  %8087 = vmatprep.mubr.msk.f32.mxu1 %vm3729_vm14, %v3537_v40  ;;  %3338 = vrot.lane.b32.xlu1 %v7898_v44, %s8571_s16  ;;  %v7840_v55 = vld [vmem:[%s8645_s10 + $0x139] sm:$0xff] }
 0x359   : > { %3083 = vrot.lane.b32.xlu0 %v7835_v17, %s8579_s30  ;;  %3212 = vst.msk [vmem:[#allocation2 + $0x40] sm:$0xff] %vm378_vm0, %v7852_v14  ;;  %v3655_v14 = vld [vmem:[#allocation2 + $0x90] sm:$0xff] }
 0x35a   : > { %v3311_v47 = vpop.permute.xlu1 %3310  ;;  %v3056_v8 = vpop.permute.xlu0 %3055 }
 0x35b   : > { %v3538_v51 = vld [vmem:[#allocation2 + $0x28] sm:$0xff]  ;;  %3405 = vst.msk [vmem:[#allocation2 + $0x40] sm:$0xff] %vm3402_vm13, %v3311_v47 }
 0x35c   : > { %3149 = vst.msk [vmem:[#allocation2 + $0x58] sm:$0xff] %vm3145_vm12, %v3056_v8  ;;  %8088 = vmatmul.mubr.msk.f32.vlgmr.msra.gmra.mrb[0].mxu1 %vm3729_vm14, %v3538_v51  ;;  %2891 = vrot.lane.b32.xlu1 %v7803_v49, %s8573_s18  ;;  %v7841_v47 = vld [vmem:[%s8645_s10 + $0x141] sm:$0xff]  ;;  %v7858_v8 = vld [vmem:[%s8702_s14 + $0x92] sm:$0xff] }
 0x35d   : > { %3340 = vrot.lane.b32.xlu0 %v7899_v22, %s8571_s16  ;;  %3213 = vst.msk [vmem:[#allocation2 + $0x58] sm:$0xff] %vm378_vm0, %v7853_v39  ;;  %v7904_v39 = vld [vmem:[%s8645_s10 + $0x13a] sm:$0xff] }
 0x35e   : > { %v2864_v63 = vpop.permute.xlu1 %2863  ;;  %v3313_v10 = vpop.permute.xlu0 %3312  ;;  %v3437_v7 = vld [vmem:[#allocation2 + $0x38] sm:$0xff] }
 0x35f   : > { %2956 = vst.msk [vmem:[#allocation2 + $0x50] sm:$0xff] %vm1537_vm6, %v2864_v63  ;;  %3904 = vmatprep.mubr.f32.mxu0 %v3437_v7  ;;  %v7809_v7 = vld [vmem:[%s8702_s14 + $0x141] sm:$0xff] }
 0x360   : > { %3406 = vst.msk [vmem:[#allocation2 + $0x58] sm:$0xff] %vm3402_vm13, %v3313_v10  ;;  %2702 = vrot.lane.b32.xlu1 %v7773_v59, %s8578_s23  ;;  %3905 = vmatmul.mubr.f32.gmra.mrb[4].mxu0 %v3651_v3  ;;  %v3656_v10 = vld [vmem:[#allocation2 + $0xa8] sm:$0xff] }
 0x361   : > { %2700 = vrot.lane.b32.xlu0 %v7772_v56, %s8578_s23  ;;  %v7905_v3 = vld [vmem:[%s8645_s10 + $0x142] sm:$0xff] }
 0x362   : > { %v2675_v12 = vpop.permute.xlu1 %2674  ;;  %v2673_v16 = vpop.permute.xlu0 %2672  ;;  %v10327_v20 = vld [vmem:[#allocation2 + $0x40] sm:$0xff] }
 0x363   : > { %2766 = vst.msk [vmem:[#allocation2 + $0x88] sm:$0xff] %vm2760_vm11, %v2675_v12  ;;  %2765 = vst.msk [vmem:[#allocation2 + $0x70] sm:$0xff] %vm2760_vm11, %v2673_v16  ;;  %8090 = vmatprep.mubr.msk.f32.mxu1 %vm3729_vm14, %v10327_v20  ;;  %v7779_v16 = vld [vmem:[%s8645_s10 + $0x158] sm:$0xff] }
 0x364   : > { %2893 = vrot.lane.b32.xlu1 %v7804_v52, %s8573_s18  ;;  %v7859_v52 = vld [vmem:[%s8702_s14 + $0x9a] sm:$0xff] }
 0x365   : > { %3085 = vrot.lane.b32.xlu0 %v7836_v11, %s8579_s30 }
 0x366   : > { %v2866_v24 = vpop.permute.xlu1 %2865  ;;  %v3058_v15 = vpop.permute.xlu0 %3057  ;;  %v3438_v27 = vld [vmem:[#allocation2 + $0x50] sm:$0xff] }
 0x367   : > { %v10338_v0 = vld [vmem:[#allocation2 + $0x58] sm:$0xff]  ;;  %2957 = vst.msk [vmem:[#allocation2 + $0x68] sm:$0xff] %vm1537_vm6, %v2866_v24  ;;  %3909 = vmatprep.mubr.f32.mxu0 %v3438_v27 }
 0x368   : > { %3150 = vst.msk [vmem:[#allocation2 + $0x70] sm:$0xff] %vm3145_vm12, %v3058_v15  ;;  %8091 = vmatmul.mubr.msk.f32.gmra.mrb[2].mxu1 %vm3729_vm14, %v10338_v0  ;;  %3342 = vrot.lane.b32.xlu1 %v7900_v23, %s8571_s16  ;;  %v7778_v23 = vld [vmem:[%s8645_s10 + $0x150] sm:$0xff]  ;;  %v3657_v15 = vld [vmem:[#allocation2 + $0xc0] sm:$0xff] }
 0x369   : > { %3087 = vrot.lane.b32.xlu0 %v7837_v4, %s8579_s30  ;;  %3214 = vst.msk [vmem:[#allocation2 + $0x70] sm:$0xff] %vm378_vm0, %v7854_v2  ;;  %3910 = vmatmul.mubr.f32.gmra.mrb[6].mxu0 %v3652_v1  ;;  %v7810_v27 = vld [vmem:[%s8702_s14 + $0x151] sm:$0xff] }
 0x36a   : > { %v3315_v32 = vpop.permute.xlu1 %3314  ;;  %v3060_v29 = vpop.permute.xlu0 %3059  ;;  %v7842_v1 = vld [vmem:[%s8645_s10 + $0x151] sm:$0xff] }
 0x36b   : > { %3407 = vst.msk [vmem:[#allocation2 + $0x70] sm:$0xff] %vm3402_vm13, %v3315_v32  ;;  %v7906_v32 = vld [vmem:[%s8645_s10 + $0x152] sm:$0xff] }
 0x36c   : > { %3151 = vst.msk [vmem:[#allocation2 + $0x88] sm:$0xff] %vm3145_vm12, %v3060_v29  ;;  %2895 = vrot.lane.b32.xlu1 %v7805_v28, %s8573_s18  ;;  %v7843_v29 = vld [vmem:[%s8645_s10 + $0x159] sm:$0xff] }
 0x36d   : > { %3344 = vrot.lane.b32.xlu0 %v7901_v25, %s8571_s16  ;;  %3215 = vst.msk [vmem:[#allocation2 + $0x88] sm:$0xff] %vm378_vm0, %v7855_v31 }
 0x36e   : > { %v2868_v34 = vpop.permute.xlu1 %2867  ;;  %v3317_v38 = vpop.permute.xlu0 %3316  ;;  %v10357_v21 = vld [vmem:[#allocation2 + $0x68] sm:$0xff] }
 0x36f   : > { %2958 = vst.msk [vmem:[#allocation2 + $0x80] sm:$0xff] %vm1537_vm6, %v2868_v34  ;;  %3914 = vmatprep.mubr.f32.mxu0 %v10357_v21 }
 0x370   : > { %3408 = vst.msk [vmem:[#allocation2 + $0x88] sm:$0xff] %vm3402_vm13, %v3317_v38  ;;  %2706 = vrot.lane.b32.xlu1 %v7775_v13, %s8578_s23  ;;  %3915 = vmatmul.mubr.f32.gmra.mrb[8].mxu0 %v3653_v26  ;;  %v7860_v13 = vld [vmem:[%s8702_s14 + $0xaa] sm:$0xff] }
 0x371   : > { %2704 = vrot.lane.b32.xlu0 %v7774_v33, %s8578_s23 }
 0x372   : > { %v2679_v42 = vpop.permute.xlu1 %2678  ;;  %v2677_v45 = vpop.permute.xlu0 %2676  ;;  %v10366_v48 = vld [vmem:[#allocation2 + $0x70] sm:$0xff] }
 0x373   : > { %2768 = vst.msk [vmem:[#allocation2 + $0xb8] sm:$0xff] %vm2760_vm11, %v2679_v42  ;;  %2767 = vst.msk [vmem:[#allocation2 + $0xa0] sm:$0xff] %vm2760_vm11, %v2677_v45  ;;  %8093 = vmatprep.mubr.msk.f32.mxu1 %vm3729_vm14, %v10366_v48  ;;  %v7907_v42 = vld [vmem:[%s8645_s10 + $0x15a] sm:$0xff]  ;;  %v7861_v45 = vld [vmem:[%s8702_s14 + $0xb2] sm:$0xff] }
 0x374   : > { %2897 = vrot.lane.b32.xlu1 %v7806_v9, %s8573_s18  ;;  %v3658_v9 = vld [vmem:[#allocation2 + $0xd8] sm:$0xff] }
 0x375   : > { %3089 = vrot.lane.b32.xlu0 %v7838_v41, %s8579_s30  ;;  %v7811_v41 = vld [vmem:[%s8702_s14 + $0x159] sm:$0xff] }
 0x376   : > { %v2870_v36 = vpop.permute.xlu1 %2869  ;;  %v3062_v53 = vpop.permute.xlu0 %3061  ;;  %v10377_v54 = vld [vmem:[#allocation2 + $0x80] sm:$0xff] }
 0x377   : > { %v10379_v57 = vld [vmem:[#allocation2 + $0x88] sm:$0xff]  ;;  %2959 = vst.msk [vmem:[#allocation2 + $0x98] sm:$0xff] %vm1537_vm6, %v2870_v36  ;;  %3919 = vmatprep.mubr.f32.mxu0 %v10377_v54 }
 0x378   : > { %3152 = vst.msk [vmem:[#allocation2 + $0xa0] sm:$0xff] %vm3145_vm12, %v3062_v53  ;;  %8094 = vmatmul.mubr.msk.f32.gmra.mrb[4].mxu1 %vm3729_vm14, %v10379_v57  ;;  %3346 = vrot.lane.b32.xlu1 %v7902_v46, %s8571_s16 }
 0x379   : > { %3091 = vrot.lane.b32.xlu0 %v7839_v37, %s8579_s30  ;;  %3216 = vst.msk [vmem:[#allocation2 + $0xa0] sm:$0xff] %vm378_vm0, %v7856_v50  ;;  %3920 = vmatmul.mubr.f32.gmra.mrb[10].mxu0 %v3654_v43  ;;  %v7781_v50 = vld [vmem:[%s8645_s10 + $0x170] sm:$0xff] }
 0x37a   : > { %v3319_v30 = vpop.permute.xlu1 %3318  ;;  %v3064_v62 = vpop.permute.xlu0 %3063 }
 0x37b   : > { %3409 = vst.msk [vmem:[#allocation2 + $0xa0] sm:$0xff] %vm3402_vm13, %v3319_v30 }
 0x37c   : > { %3153 = vst.msk [vmem:[#allocation2 + $0xb8] sm:$0xff] %vm3145_vm12, %v3064_v62  ;;  %2899 = vrot.lane.b32.xlu1 %v7807_v35, %s8573_s18  ;;  %v7780_v35 = vld [vmem:[%s8645_s10 + $0x168] sm:$0xff] }
 0x37d   : > { %3348 = vrot.lane.b32.xlu0 %v7903_v58, %s8571_s16  ;;  %3217 = vst.msk [vmem:[#allocation2 + $0xb8] sm:$0xff] %vm378_vm0, %v7857_v61  ;;  %v3659_v58 = vld [vmem:[#allocation2 + $0xf0] sm:$0xff] }
 0x37e   : > { %v2872_v6 = vpop.permute.xlu1 %2871  ;;  %v3321_v44 = vpop.permute.xlu0 %3320  ;;  %v10399_v17 = vld [vmem:[#allocation2 + $0x98] sm:$0xff]  ;;  %v7812_v61 = vld [vmem:[%s8702_s14 + $0x169] sm:$0xff] }
 0x37f   : > { %2960 = vst.msk [vmem:[#allocation2 + $0xb0] sm:$0xff] %vm1537_vm6, %v2872_v6  ;;  %3924 = vmatprep.mubr.f32.mxu0 %v10399_v17  ;;  %v7908_v6 = vld [vmem:[%s8645_s10 + $0x16a] sm:$0xff] }
 0x380   : > { %3410 = vst.msk [vmem:[#allocation2 + $0xb8] sm:$0xff] %vm3402_vm13, %v3321_v44  ;;  %2710 = vrot.lane.b32.xlu1 %v7777_v60, %s8578_s23  ;;  %3925 = vmatmul.mubr.f32.gmra.mrb[12].mxu0 %v3655_v14  ;;  %v7844_v60 = vld [vmem:[%s8645_s10 + $0x169] sm:$0xff] }
 0x381   : > { %2708 = vrot.lane.b32.xlu0 %v7776_v5, %s8578_s23  ;;  %v7862_v44 = vld [vmem:[%s8702_s14 + $0xc2] sm:$0xff] }
 0x382   : > { %v2683_v40 = vpop.permute.xlu1 %2682  ;;  %v2681_v49 = vpop.permute.xlu0 %2680  ;;  %v10408_v22 = vld [vmem:[#allocation2 + $0xa0] sm:$0xff] }
 0x383   : > { %2770 = vst.msk [vmem:[#allocation2 + $0xe8] sm:$0xff] %vm2760_vm11, %v2683_v40  ;;  %2769 = vst.msk [vmem:[#allocation2 + $0xd0] sm:$0xff] %vm2760_vm11, %v2681_v49  ;;  %8096 = vmatprep.mubr.msk.f32.mxu1 %vm3729_vm14, %v10408_v22  ;;  %v7845_v49 = vld [vmem:[%s8645_s10 + $0x171] sm:$0xff] }
 0x384   : > { %2901 = vrot.lane.b32.xlu1 %v7808_v18, %s8573_s18 }
 0x385   : > { %3093 = vrot.lane.b32.xlu0 %v7840_v55, %s8579_s30 }
 0x386   : > { %v2874_v51 = vpop.permute.xlu1 %2873  ;;  %v3066_v59 = vpop.permute.xlu0 %3065  ;;  %v10419_v56 = vld [vmem:[#allocation2 + $0xb0] sm:$0xff] }
 0x387   : > { %v10421_v63 = vld [vmem:[#allocation2 + $0xb8] sm:$0xff]  ;;  %2961 = vst.msk [vmem:[#allocation2 + $0xc8] sm:$0xff] %vm1537_vm6, %v2874_v51  ;;  %3929 = vmatprep.mubr.f32.mxu0 %v10419_v56 }
 0x388   : > { %3154 = vst.msk [vmem:[#allocation2 + $0xd0] sm:$0xff] %vm3145_vm12, %v3066_v59  ;;  %8097 = vmatmul.mubr.msk.f32.gmra.mrb[6].mxu1 %vm3729_vm14, %v10421_v63  ;;  %3350 = vrot.lane.b32.xlu1 %v7904_v39, %s8571_s16  ;;  %v3660_v39 = vld [vmem:[#allocation2 + $0x108] sm:$0xff] }
 0x389   : > { %3095 = vrot.lane.b32.xlu0 %v7841_v47, %s8579_s30  ;;  %3218 = vst.msk [vmem:[#allocation2 + $0xd0] sm:$0xff] %vm378_vm0, %v7858_v8  ;;  %3930 = vmatmul.mubr.f32.gmra.mrb[14].mxu0 %v3656_v10  ;;  %v7813_v47 = vld [vmem:[%s8702_s14 + $0x171] sm:$0xff] }
 0x38a   : > { %v3323_v11 = vpop.permute.xlu1 %3322  ;;  %v3068_v12 = vpop.permute.xlu0 %3067  ;;  %v7863_v8 = vld [vmem:[%s8702_s14 + $0xca] sm:$0xff]  ;;  %v7909_v10 = vld [vmem:[%s8645_s10 + $0x172] sm:$0xff] }
 0x38b   : > { %3411 = vst.msk [vmem:[#allocation2 + $0xd0] sm:$0xff] %vm3402_vm13, %v3323_v11 }
 0x38c   : > { %3155 = vst.msk [vmem:[#allocation2 + $0xe8] sm:$0xff] %vm3145_vm12, %v3068_v12  ;;  %2903 = vrot.lane.b32.xlu1 %v7809_v7, %s8573_s18  ;;  %v7783_v7 = vld [vmem:[%s8645_s10 + $0x188] sm:$0xff]  ;;  %v7782_v12 = vld [vmem:[%s8645_s10 + $0x180] sm:$0xff] }
 0x38d   : > { %3352 = vrot.lane.b32.xlu0 %v7905_v3, %s8571_s16  ;;  %3219 = vst.msk [vmem:[#allocation2 + $0xe8] sm:$0xff] %vm378_vm0, %v7859_v52 }
 0x38e   : > { %v2876_v4 = vpop.permute.xlu1 %2875  ;;  %v3325_v2 = vpop.permute.xlu0 %3324  ;;  %v10441_v24 = vld [vmem:[#allocation2 + $0xc8] sm:$0xff] }
 0x38f   : > { %2962 = vst.msk [vmem:[#allocation2 + $0xe0] sm:$0xff] %vm1537_vm6, %v2876_v4  ;;  %3934 = vmatprep.mubr.f32.mxu0 %v10441_v24 }
 0x390   : > { %3412 = vst.msk [vmem:[#allocation2 + $0xe8] sm:$0xff] %vm3402_vm13, %v3325_v2  ;;  %2714 = vrot.lane.b32.xlu1 %v7779_v16, %s8578_s23  ;;  %3935 = vmatmul.mubr.f32.gmra.mrb[16].mxu0 %v3657_v15  ;;  %v3661_v16 = vld [vmem:[#allocation2 + $0x120] sm:$0xff] }
 0x391   : > { %2712 = vrot.lane.b32.xlu0 %v7778_v23, %s8578_s23  ;;  %v7814_v23 = vld [vmem:[%s8702_s14 + $0x181] sm:$0xff] }
 0x392   : > { %v2687_v28 = vpop.permute.xlu1 %2686  ;;  %v2685_v25 = vpop.permute.xlu0 %2684  ;;  %v10450_v31 = vld [vmem:[#allocation2 + $0xd0] sm:$0xff]  ;;  %v7846_v15 = vld [vmem:[%s8645_s10 + $0x181] sm:$0xff] }
 0x393   : > { %2772 = vst.msk [vmem:[#allocation2 + $0x118] sm:$0xff] %vm2760_vm11, %v2687_v28  ;;  %2771 = vst.msk [vmem:[#allocation2 + $0x100] sm:$0xff] %vm2760_vm11, %v2685_v25  ;;  %8099 = vmatprep.mubr.msk.f32.mxu1 %vm3729_vm14, %v10450_v31  ;;  %v7864_v28 = vld [vmem:[%s8702_s14 + $0xda] sm:$0xff] }
 0x394   : > { %2905 = vrot.lane.b32.xlu1 %v7810_v27, %s8573_s18 }
 0x395   : > { %3097 = vrot.lane.b32.xlu0 %v7842_v1, %s8579_s30  ;;  %v7910_v1 = vld [vmem:[%s8645_s10 + $0x182] sm:$0xff] }
 0x396   : > { %v2878_v33 = vpop.permute.xlu1 %2877  ;;  %v3070_v34 = vpop.permute.xlu0 %3069  ;;  %v10461_v38 = vld [vmem:[#allocation2 + $0xe0] sm:$0xff] }
 0x397   : > { %v10463_v26 = vld [vmem:[#allocation2 + $0xe8] sm:$0xff]  ;;  %2963 = vst.msk [vmem:[#allocation2 + $0xf8] sm:$0xff] %vm1537_vm6, %v2878_v33  ;;  %3939 = vmatprep.mubr.f32.mxu0 %v10461_v38 }
 0x398   : > { %3156 = vst.msk [vmem:[#allocation2 + $0x100] sm:$0xff] %vm3145_vm12, %v3070_v34  ;;  %8100 = vmatmul.mubr.msk.f32.gmra.mrb[8].mxu1 %vm3729_vm14, %v10463_v26  ;;  %3354 = vrot.lane.b32.xlu1 %v7906_v32, %s8571_s16  ;;  %v7847_v33 = vld [vmem:[%s8645_s10 + $0x189] sm:$0xff]  ;;  %v3662_v34 = vld [vmem:[#allocation2 + $0x138] sm:$0xff] }
 0x399   : > { %3099 = vrot.lane.b32.xlu0 %v7843_v29, %s8579_s30  ;;  %3220 = vst.msk [vmem:[#allocation2 + $0x100] sm:$0xff] %vm378_vm0, %v7860_v13  ;;  %3940 = vmatmul.mubr.f32.gmra.mrb[18].mxu0 %v3658_v9  ;;  %v7815_v9 = vld [vmem:[%s8702_s14 + $0x189] sm:$0xff] }
 0x39a   : > { %v3327_v46 = vpop.permute.xlu1 %3326  ;;  %v3072_v37 = vpop.permute.xlu0 %3071 }
 0x39b   : > { %3413 = vst.msk [vmem:[#allocation2 + $0x100] sm:$0xff] %vm3402_vm13, %v3327_v46  ;;  %v7911_v46 = vld [vmem:[%s8645_s10 + $0x18a] sm:$0xff] }
 0x39c   : > { %3157 = vst.msk [vmem:[#allocation2 + $0x118] sm:$0xff] %vm3145_vm12, %v3072_v37  ;;  %2907 = vrot.lane.b32.xlu1 %v7811_v41, %s8573_s18  ;;  %v7865_v41 = vld [vmem:[%s8702_s14 + $0xe2] sm:$0xff]  ;;  %v7752_v37 = vld [vmem:[%s8702_s14 + $0x198] sm:$0xff] }
 0x39d   : > { %3356 = vrot.lane.b32.xlu0 %v7907_v42, %s8571_s16  ;;  %3221 = vst.msk [vmem:[#allocation2 + $0x118] sm:$0xff] %vm378_vm0, %v7861_v45 }
 0x39e   : > { %v2880_v36 = vpop.permute.xlu1 %2879  ;;  %v3329_v53 = vpop.permute.xlu0 %3328  ;;  %v10482_v43 = vld [vmem:[#allocation2 + $0xf8] sm:$0xff] }
 0x39f   : > { %2964 = vst.msk [vmem:[#allocation2 + $0x110] sm:$0xff] %vm1537_vm6, %v2880_v36  ;;  %3944 = vmatprep.mubr.f32.mxu0 %v10482_v43 }
 0x3a0   : > { %3414 = vst.msk [vmem:[#allocation2 + $0x118] sm:$0xff] %vm3402_vm13, %v3329_v53  ;;  %2718 = vrot.lane.b32.xlu1 %v7781_v50, %s8578_s23  ;;  %3945 = vmatmul.mubr.f32.gmra.mrb[20].mxu0 %v3659_v58  ;;  %v13139_v50 = vmov 0.0   ;;  %v7784_v58 = vld [vmem:[%s8645_s10 + $0x198] sm:$0xff] }
 0x3a1   : > { %2716 = vrot.lane.b32.xlu0 %v7780_v35, %s8578_s23  ;;  %4317 = vst.msk [vmem:[#allocation3 + $0x198] sm:$0xff] %vm378_vm0, %v13139_v50  ;;  %4318 = vst.msk [vmem:[#allocation3 + $0x1a0] sm:$0xff] %vm378_vm0, %v13139_v50 }
 0x3a2   : > { %v2691_v30 = vpop.permute.xlu1 %2690  ;;  %v2689_v62 = vpop.permute.xlu0 %2688  ;;  %v10492_v5 = vld [vmem:[#allocation2 + $0x100] sm:$0xff]  ;;  %4312 = vst.msk [vmem:[#allocation3] sm:$0xff] %vm378_vm0, %v13139_v50  ;;  %4313 = vst.msk [vmem:[#allocation3 + $0x8] sm:$0xff] %vm378_vm0, %v13139_v50 }
 0x3a3   : > { %2774 = vst.msk [vmem:[#allocation2 + $0x148] sm:$0xff] %vm2760_vm11, %v2691_v30  ;;  %2773 = vst.msk [vmem:[#allocation2 + $0x130] sm:$0xff] %vm2760_vm11, %v2689_v62  ;;  %8102 = vmatprep.mubr.msk.f32.mxu1 %vm3729_vm14, %v10492_v5  ;;  %v7848_v30 = vld [vmem:[%s8645_s10 + $0x199] sm:$0xff] }
 0x3a4   : > { %2909 = vrot.lane.b32.xlu1 %v7812_v61, %s8573_s18  ;;  %4322 = vst.msk [vmem:[#allocation3 + $0x18] sm:$0x1] %vm4320_vm15, %v13139_v50  ;;  %4323 = vst.msk [vmem:[#allocation3 + $0x30] sm:$0x1] %vm4320_vm15, %v13139_v50  ;;  %v3663_v61 = vld [vmem:[#allocation2 + $0x150] sm:$0xff] }
 0x3a5   : > { %3101 = vrot.lane.b32.xlu0 %v7844_v60, %s8579_s30  ;;  %4324 = vst.msk [vmem:[#allocation3 + $0x48] sm:$0x1] %vm4320_vm15, %v13139_v50  ;;  %4325 = vst.msk [vmem:[#allocation3 + $0x60] sm:$0x1] %vm4320_vm15, %v13139_v50 }
 0x3a6   : > { %v2882_v14 = vpop.permute.xlu1 %2881  ;;  %v3074_v18 = vpop.permute.xlu0 %3073  ;;  %v10502_v55 = vld [vmem:[#allocation2 + $0x110] sm:$0xff]  ;;  %4326 = vst.msk [vmem:[#allocation3 + $0x78] sm:$0x1] %vm4320_vm15, %v13139_v50  ;;  %4327 = vst.msk [vmem:[#allocation3 + $0x90] sm:$0x1] %vm4320_vm15, %v13139_v50 }
 0x3a7   : > { %v10504_v40 = vld [vmem:[#allocation2 + $0x118] sm:$0xff]  ;;  %2965 = vst.msk [vmem:[#allocation2 + $0x128] sm:$0xff] %vm1537_vm6, %v2882_v14  ;;  %3949 = vmatprep.mubr.f32.mxu0 %v10502_v55  ;;  %v7849_v14 = vld [vmem:[%s8645_s10 + $0x1a1] sm:$0xff] }
 0x3a8   : > { %3158 = vst.msk [vmem:[#allocation2 + $0x130] sm:$0xff] %vm3145_vm12, %v3074_v18  ;;  %8103 = vmatmul.mubr.msk.f32.gmra.mrb[10].mxu1 %vm3729_vm14, %v10504_v40  ;;  %3358 = vrot.lane.b32.xlu1 %v7908_v6, %s8571_s16  ;;  %v7785_v6 = vld [vmem:[%s8645_s10 + $0x1a0] sm:$0xff]  ;;  %v7866_v18 = vld [vmem:[%s8702_s14 + $0xf2] sm:$0xff] }
 0x3a9   : > { %3950 = vmatmul.mubr.f32.gmra.mrb[22].mxu0 %v3660_v39  ;;  %3222 = vst.msk [vmem:[#allocation2 + $0x130] sm:$0xff] %vm378_vm0, %v7862_v44  ;;  %3103 = vrot.lane.b32.xlu0 %v7845_v49, %s8579_s30 }
 0x3aa   : > { %v3331_v51 = vpop.permute.xlu1 %3330  ;;  %v3076_v59 = vpop.permute.xlu0 %3075  ;;  %4328 = vst.msk [vmem:[#allocation3 + $0xa8] sm:$0x1] %vm4320_vm15, %v13139_v50  ;;  %4329 = vst.msk [vmem:[#allocation3 + $0xc0] sm:$0x1] %vm4320_vm15, %v13139_v50 }
 0x3ab   : > { %3415 = vst.msk [vmem:[#allocation2 + $0x130] sm:$0xff] %vm3402_vm13, %v3331_v51  ;;  %v7816_v51 = vld [vmem:[%s8702_s14 + $0x199] sm:$0xff] }
 0x3ac   : > { %3159 = vst.msk [vmem:[#allocation2 + $0x148] sm:$0xff] %vm3145_vm12, %v3076_v59  ;;  %2911 = vrot.lane.b32.xlu1 %v7813_v47, %s8573_s18  ;;  %v3664_v59 = vld [vmem:[#allocation2 + $0x168] sm:$0xff] }
 0x3ad   : > { %3223 = vst.msk [vmem:[#allocation2 + $0x148] sm:$0xff] %vm378_vm0, %v7863_v8  ;;  %3360 = vrot.lane.b32.xlu0 %v7909_v10, %s8571_s16  ;;  %v7913_v10 = vld [vmem:[%s8645_s10 + $0x1a2] sm:$0xff] }
 0x3ae   : > { %v2884_v3 = vpop.permute.xlu1 %2883  ;;  %v3333_v52 = vpop.permute.xlu0 %3332  ;;  %v10524_v11 = vld [vmem:[#allocation2 + $0x128] sm:$0xff]  ;;  %4330 = vst.msk [vmem:[#allocation3 + $0xd8] sm:$0x1] %vm4320_vm15, %v13139_v50  ;;  %4331 = vst.msk [vmem:[#allocation3 + $0xf0] sm:$0x1] %vm4320_vm15, %v13139_v50 }
 0x3af   : > { %2966 = vst.msk [vmem:[#allocation2 + $0x140] sm:$0xff] %vm1537_vm6, %v2884_v3  ;;  %3954 = vmatprep.mubr.f32.mxu0 %v10524_v11 }
 0x3b0   : > { %3416 = vst.msk [vmem:[#allocation2 + $0x148] sm:$0xff] %vm3402_vm13, %v3333_v52  ;;  %2722 = vrot.lane.b32.xlu1 %v7783_v7, %s8578_s23  ;;  %3955 = vmatmul.mubr.f32.gmra.mrb[24].mxu0 %v3661_v16  ;;  %v7867_v7 = vld [vmem:[%s8702_s14 + $0xfa] sm:$0xff] }
 0x3b1   : > { %2720 = vrot.lane.b32.xlu0 %v7782_v12, %s8578_s23  ;;  %4332 = vst.msk [vmem:[#allocation3 + $0x108] sm:$0x1] %vm4320_vm15, %v13139_v50  ;;  %4333 = vst.msk [vmem:[#allocation3 + $0x120] sm:$0x1] %vm4320_vm15, %v13139_v50  ;;  %v7912_v12 = vld [vmem:[%s8645_s10 + $0x19a] sm:$0xff] }
 0x3b2   : > { %v2695_v4 = vpop.permute.xlu1 %2694  ;;  %v2693_v2 = vpop.permute.xlu0 %2692  ;;  %v10534_v27 = vld [vmem:[#allocation2 + $0x130] sm:$0xff]  ;;  %4334 = vst.msk [vmem:[#allocation3 + $0x138] sm:$0x1] %vm4320_vm15, %v13139_v50  ;;  %4335 = vst.msk [vmem:[#allocation3 + $0x150] sm:$0x1] %vm4320_vm15, %v13139_v50  ;;  %v7817_v16 = vld [vmem:[%s8702_s14 + $0x1a1] sm:$0xff] }
 0x3b3   : > { %2776 = vst.msk [vmem:[#allocation2 + $0x178] sm:$0xff] %vm2760_vm11, %v2695_v4  ;;  %2775 = vst.msk [vmem:[#allocation2 + $0x160] sm:$0xff] %vm2760_vm11, %v2693_v2  ;;  %8105 = vmatprep.mubr.msk.f32.mxu1 %vm3729_vm14, %v10534_v27 }
 0x3b4   : > { %2913 = vrot.lane.b32.xlu1 %v7814_v23, %s8573_s18  ;;  %4336 = vst.msk [vmem:[#allocation3 + $0x168] sm:$0x1] %vm4320_vm15, %v13139_v50  ;;  %4337 = vst.msk [vmem:[#allocation3 + $0x180] sm:$0x1] %vm4320_vm15, %v13139_v50 }
 0x3b5   : > { %3105 = vrot.lane.b32.xlu0 %v7846_v15, %s8579_s30  ;;  %4340 = vst.msk [vmem:[#allocation3 + $0x29] sm:$0x1] %vm4320_vm15, %v13139_v50  ;;  %4341 = vst.msk [vmem:[#allocation3 + $0x41] sm:$0x1] %vm4320_vm15, %v13139_v50  ;;  %v7753_v15 = vld [vmem:[%s8702_s14 + $0x1a0] sm:$0xff] }
 0x3b6   : > { %v2886_v25 = vpop.permute.xlu1 %2885  ;;  %v3078_v32 = vpop.permute.xlu0 %3077  ;;  %v10544_v29 = vld [vmem:[#allocation2 + $0x140] sm:$0xff]  ;;  %4342 = vst.msk [vmem:[#allocation3 + $0x59] sm:$0x1] %vm4320_vm15, %v13139_v50  ;;  %4343 = vst.msk [vmem:[#allocation3 + $0x71] sm:$0x1] %vm4320_vm15, %v13139_v50 }
 0x3b7   : > { %v10546_v13 = vld [vmem:[#allocation2 + $0x148] sm:$0xff]  ;;  %2967 = vst.msk [vmem:[#allocation2 + $0x158] sm:$0xff] %vm1537_vm6, %v2886_v25  ;;  %3959 = vmatprep.mubr.f32.mxu0 %v10544_v29 }
 0x3b8   : > { %3160 = vst.msk [vmem:[#allocation2 + $0x160] sm:$0xff] %vm3145_vm12, %v3078_v32  ;;  %8106 = vmatmul.mubr.msk.f32.gmra.mrb[12].mxu1 %vm3729_vm14, %v10546_v13  ;;  %3362 = vrot.lane.b32.xlu1 %v7910_v1, %s8571_s16  ;;  %v3665_v1 = vld [vmem:[#allocation2 + $0x180] sm:$0xff] }
 0x3b9   : > { %3960 = vmatmul.mubr.f32.gmra.mrb[26].mxu0 %v3662_v34  ;;  %3224 = vst.msk [vmem:[#allocation2 + $0x160] sm:$0xff] %vm378_vm0, %v7864_v28  ;;  %3107 = vrot.lane.b32.xlu0 %v7847_v33, %s8579_s30  ;;  %v5863_v33 = vld [vmem:[%s13135_s5 + $0x100] sm:$0xff]  ;;  %v5864_v34 = vld [vmem:[%s13135_s5 + $0x108] sm:$0xff] }
 0x3ba   : > { %v3335_v42 = vpop.permute.xlu1 %3334  ;;  %v3080_v45 = vpop.permute.xlu0 %3079  ;;  %4344 = vst.msk [vmem:[#allocation3 + $0x89] sm:$0x1] %vm4320_vm15, %v13139_v50  ;;  %4345 = vst.msk [vmem:[#allocation3 + $0xa1] sm:$0x1] %vm4320_vm15, %v13139_v50 }
 0x3bb   : > { %3417 = vst.msk [vmem:[#allocation2 + $0x160] sm:$0xff] %vm3402_vm13, %v3335_v42 }
 0x3bc   : > { %3161 = vst.msk [vmem:[#allocation2 + $0x178] sm:$0xff] %vm3145_vm12, %v3080_v45  ;;  %2915 = vrot.lane.b32.xlu1 %v7815_v9, %s8573_s18  ;;  %v10710_v9 = vpack.c.bf16 %v5864_v34, %v5863_v33  ;;  %v3669_v33 = vld [vmem:[#allocation2 + $0x1e0] sm:$0xff] }
 0x3bd   : > { %3225 = vst.msk [vmem:[#allocation2 + $0x178] sm:$0xff] %vm378_vm0, %v7865_v41  ;;  %3364 = vrot.lane.b32.xlu0 %v7911_v46, %s8571_s16  ;;  %v7868_v41 = vld [vmem:[%s8702_s14 + $0x10a] sm:$0xff] }
 0x3be   : > { %4346 = vst.msk [vmem:[#allocation3 + $0xb9] sm:$0x1] %vm4320_vm15, %v13139_v50  ;;  %4347 = vst.msk [vmem:[#allocation3 + $0xd1] sm:$0x1] %vm4320_vm15, %v13139_v50  ;;  %v2888_v36 = vpop.permute.xlu1 %2887  ;;  %v10638_v35 = vld [vmem:[#allocation2 + $0x158] sm:$0xff]  ;;  %8317 = vmatprep.subr.bf16.mxu0 %v10710_v9 }
 0x3bf   : > { %4348 = vst.msk [vmem:[#allocation3 + $0xe9] sm:$0x1] %vm4320_vm15, %v13139_v50  ;;  %4349 = vst.msk [vmem:[#allocation3 + $0x101] sm:$0x1] %vm4320_vm15, %v13139_v50  ;;  %v3337_v53 = vpop.permute.xlu0 %3336  ;;  %3964 = vmatprep.mubr.f32.mxu0 %v10638_v35  ;;  %8319 = vmatpush3.bf16.msra.mxu0 %v10710_v9 }
 0x3c0   : > { %4350 = vst.msk [vmem:[#allocation3 + $0x119] sm:$0x1] %vm4320_vm15, %v13139_v50  ;;  %4351 = vst.msk [vmem:[#allocation3 + $0x131] sm:$0x1] %vm4320_vm15, %v13139_v50  ;;  %3965 = vmatmul.mubr.f32.gmra.mrb[28].mxu0 %v3663_v61  ;;  %2531 = vrot.lane.b32.xlu1 %v7752_v37, %s8571_s16 }
 0x3c1   : > { %4352 = vst.msk [vmem:[#allocation3 + $0x149] sm:$0x1] %vm4320_vm15, %v13139_v50  ;;  %4353 = vst.msk [vmem:[#allocation3 + $0x161] sm:$0x1] %vm4320_vm15, %v13139_v50  ;;  %2724 = vrot.lane.b32.xlu0 %v7784_v58, %s8578_s23  ;;  %v5866_v58 = vld [vmem:[%s13135_s5 + $0x118] sm:$0xff] }
 0x3c2   : > { %4354 = vst.msk [vmem:[#allocation3 + $0x179] sm:$0x1] %vm4320_vm15, %v13139_v50  ;;  %4355 = vst.msk [vmem:[#allocation3 + $0x191] sm:$0x1] %vm4320_vm15, %v13139_v50  ;;  %v2699_v62 = vpop.permute.xlu1 %2698  ;;  %v10652_v44 = vld [vmem:[#allocation2 + $0x160] sm:$0xff] }
 0x3c3   : > { %4321 = vst.msk [vmem:[#allocation3] sm:$0x1] %vm4320_vm15, %v13139_v50  ;;  %4338 = vst.msk [vmem:[#allocation3 + $0x198] sm:$0x1] %vm4320_vm15, %v13139_v50  ;;  %v2697_v60 = vpop.permute.xlu0 %2696  ;;  %8108 = vmatprep.mubr.msk.f32.mxu1 %vm3729_vm14, %v10652_v44 }
 0x3c4   : > { %2968 = vst.msk [vmem:[#allocation2 + $0x170] sm:$0xff] %vm1537_vm6, %v2888_v36  ;;  %3109 = vrot.lane.b32.xlu1 %v7848_v30, %s8579_s30  ;;  %v5865_v36 = vld [vmem:[%s13135_s5 + $0x110] sm:$0xff] }
 0x3c5   : > { %3418 = vst.msk [vmem:[#allocation2 + $0x178] sm:$0xff] %vm3402_vm13, %v3337_v53  ;;  %2726 = vrot.lane.b32.xlu0 %v7785_v6, %s8578_s23  ;;  %v3666_v53 = vld [vmem:[#allocation2 + $0x198] sm:$0xff]  ;;  %v10731_v61 = vpack.c.bf16 %v5866_v58, %v5865_v36 }
 0x3c6   : > { %2778 = vst.msk [vmem:[#allocation2 + $0x1a8] sm:$0xff] %vm2760_vm11, %v2699_v62  ;;  %2777 = vst.msk [vmem:[#allocation2 + $0x190] sm:$0xff] %vm2760_vm11, %v2697_v60  ;;  %v2890_v49 = vpop.permute.xlu1 %2889  ;;  %v7869_v30 = vld [vmem:[%s8702_s14 + $0x112] sm:$0xff] }
 0x3c7   : > { %v3082_v39 = vpop.permute.xlu0 %3081  ;;  %2969 = vst.msk [vmem:[#allocation2 + $0x188] sm:$0xff] %vm1537_vm6, %v2890_v49  ;;  %8321 = vmatprep.subr.bf16.mxu0 %v10731_v61  ;;  %v3667_v49 = vld [vmem:[#allocation2 + $0x1b0] sm:$0xff] }
 0x3c8   : > { %3162 = vst.msk [vmem:[#allocation2 + $0x190] sm:$0xff] %vm3145_vm12, %v3082_v39  ;;  %3111 = vrot.lane.b32.xlu1 %v7849_v14, %s8579_s30  ;;  %8323 = vmatpush3.bf16.msra.mxu0 %v10731_v61 }
 0x3c9   : > { %3226 = vst.msk [vmem:[#allocation2 + $0x190] sm:$0xff] %vm378_vm0, %v7866_v18  ;;  %2917 = vrot.lane.b32.xlu0 %v7816_v51, %s8573_s18 }
 0x3ca   : > { %v3339_v3 = vpop.permute.xlu1 %3338  ;;  %4319 = vst.msk [vmem:[#allocation3 + $0x1a8] sm:$0x3] %vm4314_vm1, %v13139_v50  ;;  %4315 = vst.msk [vmem:[#allocation3 + $0x10] sm:$0x3] %vm4314_vm1, %v13139_v50 }
 0x3cb   : > { %v10662_v47 = vld [vmem:[#allocation2 + $0x170] sm:$0xff]  ;;  %v3084_v52 = vpop.permute.xlu0 %3083  ;;  %3419 = vst.msk [vmem:[#allocation2 + $0x190] sm:$0xff] %vm3402_vm13, %v3339_v3 }
 0x3cc   : > { %v10664_v8 = vld [vmem:[#allocation2 + $0x178] sm:$0xff]  ;;  %3969 = vmatprep.mubr.f32.mxu0 %v10662_v47  ;;  %3163 = vst.msk [vmem:[#allocation2 + $0x1a8] sm:$0xff] %vm3145_vm12, %v3084_v52  ;;  %3368 = vrot.lane.b32.xlu1 %v7913_v10, %s8571_s16  ;;  %v7870_v10 = vld [vmem:[%s8702_s14 + $0x122] sm:$0xff] }
 0x3cd   : > { %8109 = vmatmul.mubr.msk.f32.gmra.mrb[14].mxu1 %vm3729_vm14, %v10664_v8  ;;  %3970 = vmatmul.mubr.f32.gmra.mrb[30].mxu0 %v3664_v59  ;;  %3227 = vst.msk [vmem:[#allocation2 + $0x1a8] sm:$0xff] %vm378_vm0, %v7867_v7 }
 0x3ce   : > { %3366 = vrot.lane.b32.xlu0 %v7912_v12, %s8571_s16  ;;  %v2892_v23 = vpop.permute.xlu1 %2891  ;;  %v10684_v2 = vld [vmem:[#allocation2 + $0x188] sm:$0xff]  ;;  %4356 = vst.msk [vmem:[#allocation3 + $0x1a9] sm:$0x1] %vm4320_vm15, %v13139_v50  ;;  %4339 = vst.msk [vmem:[#allocation3 + $0x11] sm:$0x1] %vm4320_vm15, %v13139_v50  ;;  %v5834_v50 = vld [vmem:[%s13135_s5 + $0x18] sm:$0xff] }
 0x3cf   : > { %v3341_v4 = vpop.permute.xlu0 %3340  ;;  %2970 = vst.msk [vmem:[#allocation2 + $0x1a0] sm:$0xff] %vm1537_vm6, %v2892_v23  ;;  %3974 = vmatprep.mubr.f32.mxu0 %v10684_v2  ;;  %v7871_v23 = vld [vmem:[%s8702_s14 + $0x12a] sm:$0xff] }
 0x3d0   : > { %3420 = vst.msk [vmem:[#allocation2 + $0x1a8] sm:$0xff] %vm3402_vm13, %v3341_v4  ;;  %2919 = vrot.lane.b32.xlu1 %v7817_v16, %s8573_s18  ;;  %v3668_v16 = vld [vmem:[#allocation2 + $0x1c8] sm:$0xff] }
 0x3d1   : > { %3975 = vmatmul.mubr.f32.gmra.mrb[32].mxu0 %v3665_v1 }
 0x3d2   : > { %2533 = vrot.lane.b32.xlu0 %v7753_v15, %s8571_s16  ;;  %v2703_v28 = vpop.permute.xlu1 %2702  ;;  %v10692_v32 = vld [vmem:[#allocation2 + $0x190] sm:$0xff] }
 0x3d3   : > { %v2701_v25 = vpop.permute.xlu0 %2700  ;;  %2780 = vst.msk [vmem:[#allocation2 + $0x1d8] sm:$0xff] %vm2760_vm11, %v2703_v28  ;;  %8111 = vmatprep.mubr.msk.f32.mxu1 %vm3729_vm14, %v10692_v32 }
 0x3d4   : > { %2779 = vst.msk [vmem:[#allocation2 + $0x1c0] sm:$0xff] %vm2760_vm11, %v2701_v25 }
 0x3d6   : > { %v2894_v42 = vpop.permute.xlu1 %2893  ;;  %v10714_v46 = vld [vmem:[#allocation2 + $0x1a0] sm:$0xff] }
 0x3d7   : > { %v3086_v45 = vpop.permute.xlu0 %3085  ;;  %v10716_v37 = vld [vmem:[#allocation2 + $0x1a8] sm:$0xff]  ;;  %2971 = vst.msk [vmem:[#allocation2 + $0x1b8] sm:$0xff] %vm1537_vm6, %v2894_v42  ;;  %3979 = vmatprep.mubr.f32.mxu0 %v10714_v46 }
 0x3d8   : > { %3164 = vst.msk [vmem:[#allocation2 + $0x1c0] sm:$0xff] %vm3145_vm12, %v3086_v45  ;;  %8112 = vmatmul.mubr.msk.f32.gmra.mrb[16].mxu1 %vm3729_vm14, %v10716_v37  ;;  %3980 = vmatmul.mubr.f32.gmra.mrb[34].mxu0 %v3666_v53  ;;  %v7872_v45 = vld [vmem:[%s8702_s14 + $0x13a] sm:$0xff] }
 0x3d9   : > { %3228 = vst.msk [vmem:[#allocation2 + $0x1c0] sm:$0xff] %vm378_vm0, %v7868_v41 }
 0x3da   : > { %v3343_v62 = vpop.permute.xlu1 %3342 }
 0x3db   : > { %v3088_v60 = vpop.permute.xlu0 %3087  ;;  %3421 = vst.msk [vmem:[#allocation2 + $0x1c0] sm:$0xff] %vm3402_vm13, %v3343_v62  ;;  %v3670_v62 = vld [vmem:[#allocation2 + $0x1f8] sm:$0xff] }
 0x3dc   : > { %3165 = vst.msk [vmem:[#allocation2 + $0x1d8] sm:$0xff] %vm3145_vm12, %v3088_v60  ;;  %v7873_v60 = vld [vmem:[%s8702_s14 + $0x142] sm:$0xff] }
 0x3dd   : > { %3229 = vst.msk [vmem:[#allocation2 + $0x1d8] sm:$0xff] %vm378_vm0, %v7869_v30 }
 0x3de   : > { %v2896_v6 = vpop.permute.xlu1 %2895  ;;  %v10739_v18 = vld [vmem:[#allocation2 + $0x1b8] sm:$0xff] }
 0x3df   : > { %v3345_v14 = vpop.permute.xlu0 %3344  ;;  %2972 = vst.msk [vmem:[#allocation2 + $0x1d0] sm:$0xff] %vm1537_vm6, %v2896_v6  ;;  %3984 = vmatprep.mubr.f32.mxu0 %v10739_v18 }
 0x3e0   : > { %3422 = vst.msk [vmem:[#allocation2 + $0x1d8] sm:$0xff] %vm3402_vm13, %v3345_v14  ;;  %3985 = vmatmul.mubr.f32.gmra.mrb[36].mxu0 %v3667_v49 }
 0x3e2   : > { %v2707_v39 = vpop.permute.xlu1 %2706  ;;  %v10744_v59 = vld [vmem:[#allocation2 + $0x1c0] sm:$0xff] }
 0x3e3   : > { %v2705_v51 = vpop.permute.xlu0 %2704  ;;  %2782 = vst.msk [vmem:[#allocation2 + $0x208] sm:$0xff] %vm2760_vm11, %v2707_v39  ;;  %8114 = vmatprep.mubr.msk.f32.mxu1 %vm3729_vm14, %v10744_v59 }
 0x3e4   : > { %2781 = vst.msk [vmem:[#allocation2 + $0x1f0] sm:$0xff] %vm2760_vm11, %v2705_v51 }
 0x3e6   : > { %v2898_v7 = vpop.permute.xlu1 %2897  ;;  %v10751_v52 = vld [vmem:[#allocation2 + $0x1d0] sm:$0xff] }
 0x3e7   : > { %v3090_v3 = vpop.permute.xlu0 %3089  ;;  %v10753_v12 = vld [vmem:[#allocation2 + $0x1d8] sm:$0xff]  ;;  %2973 = vst.msk [vmem:[#allocation2 + $0x1e8] sm:$0xff] %vm1537_vm6, %v2898_v7  ;;  %3989 = vmatprep.mubr.f32.mxu0 %v10751_v52 }
 0x3e8   : > { %3166 = vst.msk [vmem:[#allocation2 + $0x1f0] sm:$0xff] %vm3145_vm12, %v3090_v3  ;;  %8115 = vmatmul.mubr.msk.f32.gmra.mrb[18].mxu1 %vm3729_vm14, %v10753_v12  ;;  %3990 = vmatmul.mubr.f32.gmra.mrb[38].mxu0 %v3668_v16 }
 0x3e9   : > { %3230 = vst.msk [vmem:[#allocation2 + $0x1f0] sm:$0xff] %vm378_vm0, %v7870_v10  ;;  %v3671_v10 = vld [vmem:[#allocation2 + $0x210] sm:$0xff] }
 0x3ea   : > { %v3347_v4 = vpop.permute.xlu1 %3346 }
 0x3eb   : > { %v3092_v15 = vpop.permute.xlu0 %3091  ;;  %3423 = vst.msk [vmem:[#allocation2 + $0x1f0] sm:$0xff] %vm3402_vm13, %v3347_v4 }
 0x3ec   : > { %3167 = vst.msk [vmem:[#allocation2 + $0x208] sm:$0xff] %vm3145_vm12, %v3092_v15 }
 0x3ed   : > { %3231 = vst.msk [vmem:[#allocation2 + $0x208] sm:$0xff] %vm378_vm0, %v7871_v23  ;;  %v7874_v23 = vld [vmem:[%s8702_s14 + $0x152] sm:$0xff] }
 0x3ee   : > { %v2900_v1 = vpop.permute.xlu1 %2899  ;;  %v10765_v25 = vld [vmem:[#allocation2 + $0x1e8] sm:$0xff] }
 0x3ef   : > { %v3349_v28 = vpop.permute.xlu0 %3348  ;;  %2974 = vst.msk [vmem:[#allocation2 + $0x200] sm:$0xff] %vm1537_vm6, %v2900_v1  ;;  %3994 = vmatprep.mubr.f32.mxu0 %v10765_v25 }
 0x3f0   : > { %3424 = vst.msk [vmem:[#allocation2 + $0x208] sm:$0xff] %vm3402_vm13, %v3349_v28  ;;  %3995 = vmatmul.mubr.f32.gmra.mrb[40].mxu0 %v3669_v33  ;;  %v3672_v33 = vld [vmem:[#allocation2 + $0x228] sm:$0xff] }
 0x3f2   : > { %v2711_v34 = vpop.permute.xlu1 %2710  ;;  %v10770_v42 = vld [vmem:[#allocation2 + $0x1f0] sm:$0xff] }
 0x3f3   : > { %v2709_v41 = vpop.permute.xlu0 %2708  ;;  %2784 = vst.msk [vmem:[#allocation2 + $0x238] sm:$0xff] %vm2760_vm11, %v2711_v34  ;;  %8117 = vmatprep.mubr.msk.f32.mxu1 %vm3729_vm14, %v10770_v42  ;;  %v7875_v34 = vld [vmem:[%s8702_s14 + $0x15a] sm:$0xff] }
 0x3f4   : > { %2783 = vst.msk [vmem:[#allocation2 + $0x220] sm:$0xff] %vm2760_vm11, %v2709_v41 }
 0x3f6   : > { %v2902_v36 = vpop.permute.xlu1 %2901  ;;  %v10777_v58 = vld [vmem:[#allocation2 + $0x200] sm:$0xff] }
 0x3f7   : > { %v3094_v53 = vpop.permute.xlu0 %3093  ;;  %v10779_v30 = vld [vmem:[#allocation2 + $0x208] sm:$0xff]  ;;  %2975 = vst.msk [vmem:[#allocation2 + $0x218] sm:$0xff] %vm1537_vm6, %v2902_v36  ;;  %3999 = vmatprep.mubr.f32.mxu0 %v10777_v58 }
 0x3f8   : > { %3168 = vst.msk [vmem:[#allocation2 + $0x220] sm:$0xff] %vm3145_vm12, %v3094_v53  ;;  %8118 = vmatmul.mubr.msk.f32.gmra.mrb[20].mxu1 %vm3729_vm14, %v10779_v30  ;;  %4000 = vmatmul.mubr.f32.gmra.mrb[42].mxu0 %v3670_v62  ;;  %v8554_v36 = vld [vmem:[#allocation2 + $0x28] sm:$0xff]  ;;  %v8555_v62 = vld [vmem:[#allocation2 + $0x10] sm:$0xff] }
 0x3f9   : > { %3232 = vst.msk [vmem:[#allocation2 + $0x220] sm:$0xff] %vm378_vm0, %v7872_v45  ;;  %v3570_v53 = vsel %vm1988_vm8, %v8554_v36, 0.0  ;;  %v3576_v36 = vsel %vm1988_vm8, %v10366_v48, 0.0  ;;  %v3474_v48 = vsel %vm378_vm0, %v10357_v21, 0.0  ;;  %v3674_v21 = vld [vmem:[#allocation2 + $0x258] sm:$0xff] }
 0x3fa   : > { %v3351_v6 = vpop.permute.xlu1 %3350 }
 0x3fb   : > { %v3096_v14 = vpop.permute.xlu0 %3095  ;;  %3425 = vst.msk [vmem:[#allocation2 + $0x220] sm:$0xff] %vm3402_vm13, %v3351_v6  ;;  %v3572_v6 = vsel %vm1988_vm8, %v10327_v20, 0.0  ;;  %v8557_v20 = vld [vmem:[#allocation2 + $0x8] sm:$0xff] }
 0x3fc   : > { %3169 = vst.msk [vmem:[#allocation2 + $0x238] sm:$0xff] %vm3145_vm12, %v3096_v14 }
 0x3fd   : > { %3233 = vst.msk [vmem:[#allocation2 + $0x238] sm:$0xff] %vm378_vm0, %v7873_v60  ;;  %v3569_v60 = vsel %vm1988_vm8, %v8555_v62, 0.0 }
 0x3fe   : > { %v2904_v49 = vpop.permute.xlu1 %2903  ;;  %v10791_v51 = vld [vmem:[#allocation2 + $0x218] sm:$0xff] }
 0x3ff   : > { %v3353_v39 = vpop.permute.xlu0 %3352  ;;  %2976 = vst.msk [vmem:[#allocation2 + $0x230] sm:$0xff] %vm1537_vm6, %v2904_v49  ;;  %4004 = vmatprep.mubr.f32.mxu0 %v10791_v51 }
 0x400   : > { %3426 = vst.msk [vmem:[#allocation2 + $0x238] sm:$0xff] %vm3402_vm13, %v3353_v39  ;;  %4005 = vmatmul.mubr.f32.gmra.mrb[44].mxu0 %v3671_v10  ;;  %v8556_v10 = vld [vmem:[#allocation2 + $0x20] sm:$0xff] }
 0x402   : > { %v2715_v7 = vpop.permute.xlu1 %2714  ;;  %v10796_v16 = vld [vmem:[#allocation2 + $0x220] sm:$0xff] }
 0x403   : > { %v2713_v3 = vpop.permute.xlu0 %2712  ;;  %2786 = vst.msk [vmem:[#allocation2 + $0x268] sm:$0xff] %vm2760_vm11, %v2715_v7  ;;  %8120 = vmatprep.mubr.msk.f32.mxu1 %vm3729_vm14, %v10796_v16  ;;  %v3468_v7 = vsel %vm378_vm0, %v8556_v10, 0.0 }
 0x404   : > { %2785 = vst.msk [vmem:[#allocation2 + $0x250] sm:$0xff] %vm2760_vm11, %v2713_v3  ;;  %v3571_v3 = vadd.f32 %v3570_v53, %v3569_v60  ;;  %v8559_v60 = vld [vmem:[#allocation2 + $0x50] sm:$0xff] }
 0x406   : > { %v2906_v4 = vpop.permute.xlu1 %2905  ;;  %v10803_v1 = vld [vmem:[#allocation2 + $0x230] sm:$0xff] }
 0x407   : > { %v3098_v15 = vpop.permute.xlu0 %3097  ;;  %v10805_v28 = vld [vmem:[#allocation2 + $0x238] sm:$0xff]  ;;  %2977 = vst.msk [vmem:[#allocation2 + $0x248] sm:$0xff] %vm1537_vm6, %v2906_v4  ;;  %4009 = vmatprep.mubr.f32.mxu0 %v10803_v1  ;;  %v3574_v4 = vsel %vm1988_vm8, %v10338_v0, 0.0 }
 0x408   : > { %3170 = vst.msk [vmem:[#allocation2 + $0x250] sm:$0xff] %vm3145_vm12, %v3098_v15  ;;  %8121 = vmatmul.mubr.msk.f32.gmra.mrb[22].mxu1 %vm3729_vm14, %v10805_v28  ;;  %4010 = vmatmul.mubr.f32.gmra.mrb[46].mxu0 %v3672_v33  ;;  %v3467_v15 = vsel %vm378_vm0, %v8557_v20, 0.0  ;;  %v8558_v33 = vld [vmem:[#allocation2 + $0x38] sm:$0xff] }
 0x409   : > { %3234 = vst.msk [vmem:[#allocation2 + $0x250] sm:$0xff] %vm378_vm0, %v7874_v23  ;;  %v3673_v23 = vld [vmem:[#allocation2 + $0x240] sm:$0xff] }
 0x40a   : > { %v3355_v41 = vpop.permute.xlu1 %3354 }
 0x40b   : > { %v3100_v45 = vpop.permute.xlu0 %3099  ;;  %3427 = vst.msk [vmem:[#allocation2 + $0x250] sm:$0xff] %vm3402_vm13, %v3355_v41  ;;  %v3573_v41 = vadd.f32 %v3572_v6, %v3571_v3  ;;  %v3578_v6 = vsel %vm1988_vm8, %v10379_v57, 0.0 }
 0x40c   : > { %3171 = vst.msk [vmem:[#allocation2 + $0x268] sm:$0xff] %vm3145_vm12, %v3100_v45  ;;  %v3469_v45 = vadd.f32 %v3468_v7, %v3467_v15 }
 0x40d   : > { %3235 = vst.msk [vmem:[#allocation2 + $0x268] sm:$0xff] %vm378_vm0, %v7875_v34  ;;  %v3470_v34 = vsel %vm378_vm0, %v8558_v33, 0.0  ;;  %v3575_v0 = vadd.f32 %v3574_v4, %v3573_v41  ;;  %v7876_v33 = vld [vmem:[%s8702_s14 + $0x16a] sm:$0xff] }
 0x40e   : > { %v2908_v14 = vpop.permute.xlu1 %2907  ;;  %v10821_v39 = vld [vmem:[#allocation2 + $0x248] sm:$0xff]  ;;  %v3471_v10 = vadd.f32 %v3470_v34, %v3469_v45  ;;  %v3476_v34 = vsel %vm378_vm0, %v10377_v54, 0.0  ;;  %v3582_v45 = vsel %vm1988_vm8, %v10421_v63, 0.0  ;;  %v3478_v54 = vsel %vm378_vm0, %v10399_v17, 0.0 }
 0x40f   : > { %v3357_v49 = vpop.permute.xlu0 %3356  ;;  %2978 = vst.msk [vmem:[#allocation2 + $0x260] sm:$0xff] %vm1537_vm6, %v2908_v14  ;;  %4014 = vmatprep.mubr.f32.mxu0 %v10821_v39  ;;  %v3472_v14 = vsel %vm378_vm0, %v8559_v60, 0.0  ;;  %v3577_v7 = vadd.f32 %v3576_v36, %v3575_v0  ;;  %v3584_v60 = vsel %vm1988_vm8, %v10450_v31, 0.0  ;;  %v7877_v0 = vld [vmem:[%s8702_s14 + $0x172] sm:$0xff]  ;;  %v3586_v17 = vsel %vm1988_vm8, %v10463_v26, 0.0 }
 0x410   : > { %3428 = vst.msk [vmem:[#allocation2 + $0x268] sm:$0xff] %vm3402_vm13, %v3357_v49  ;;  %4015 = vmatmul.mubr.f32.gmra.mrb[48].mxu0 %v3673_v23  ;;  %v3473_v3 = vadd.f32 %v3472_v14, %v3471_v10  ;;  %v3580_v23 = vsel %vm1988_vm8, %v10408_v22, 0.0 }
 0x411   : > { %v3579_v57 = vadd.f32 %v3578_v6, %v3577_v7 }
 0x412   : > { %v2719_v53 = vpop.permute.xlu1 %2718  ;;  %v10833_v62 = vld [vmem:[#allocation2 + $0x250] sm:$0xff]  ;;  %v3475_v22 = vadd.f32 %v3474_v48, %v3473_v3  ;;  %v3482_v48 = vsel %vm378_vm0, %v10441_v24, 0.0 }
 0x413   : > { %2788 = vst.msk [vmem:[#allocation2 + $0x298] sm:$0xff] %vm2760_vm11, %v2719_v53  ;;  %v2717_v49 = vpop.permute.xlu0 %2716  ;;  %8123 = vmatprep.mubr.msk.f32.mxu1 %vm3729_vm14, %v10833_v62  ;;  %v3581_v36 = vadd.f32 %v3580_v23, %v3579_v57  ;;  %v3675_v24 = vld [vmem:[#allocation2 + $0x270] sm:$0xff]  ;;  %v3590_v57 = vsel %vm1988_vm8, %v10504_v40, 0.0  ;;  %v3488_v40 = vsel %vm378_vm0, %v10502_v55, 0.0  ;;  %v3596_v55 = vsel %vm1988_vm8, %v10652_v44, 0.0 }
 0x414   : > { %2787 = vst.msk [vmem:[#allocation2 + $0x280] sm:$0xff] %vm2760_vm11, %v2717_v49  ;;  %v3477_v53 = vadd.f32 %v3476_v34, %v3475_v22  ;;  %v3480_v49 = vsel %vm378_vm0, %v10419_v56, 0.0  ;;  %v3588_v56 = vsel %vm1988_vm8, %v10492_v5, 0.0  ;;  %v3598_v44 = vsel %vm1988_vm8, %v10664_v8, 0.0  ;;  %v7879_v8 = vld [vmem:[%s8702_s14 + $0x18a] sm:$0xff] }
 0x415   : > { %v3583_v10 = vadd.f32 %v3582_v45, %v3581_v36  ;;  %v3592_v45 = vsel %vm1988_vm8, %v10534_v27, 0.0  ;;  %v3490_v27 = vsel %vm378_vm0, %v10524_v11, 0.0 }
 0x416   : > { %v2910_v4 = vpop.permute.xlu1 %2909  ;;  %v10846_v20 = vld [vmem:[#allocation2 + $0x260] sm:$0xff]  ;;  %v3479_v6 = vadd.f32 %v3478_v54, %v3477_v53 }
 0x417   : > { %v10848_v15 = vld [vmem:[#allocation2 + $0x268] sm:$0xff]  ;;  %2979 = vst.msk [vmem:[#allocation2 + $0x278] sm:$0xff] %vm1537_vm6, %v2910_v4  ;;  %v3102_v41 = vpop.permute.xlu0 %3101  ;;  %4019 = vmatprep.mubr.f32.mxu0 %v10846_v20  ;;  %v3585_v7 = vadd.f32 %v3584_v60, %v3583_v10  ;;  %v3484_v4 = vsel %vm378_vm0, %v10461_v38, 0.0 }
 0x418   : > { %8124 = vmatmul.mubr.msk.f32.gmra.mrb[24].mxu1 %vm3729_vm14, %v10848_v15  ;;  %3172 = vst.msk [vmem:[#allocation2 + $0x280] sm:$0xff] %vm3145_vm12, %v3102_v41  ;;  %4020 = vmatmul.mubr.f32.gmra.mrb[50].mxu0 %v3674_v21  ;;  %v3481_v31 = vadd.f32 %v3480_v49, %v3479_v6  ;;  %v3486_v41 = vsel %vm378_vm0, %v10482_v43, 0.0  ;;  %v7878_v6 = vld [vmem:[%s8702_s14 + $0x182] sm:$0xff] }
 0x419   : > { %3236 = vst.msk [vmem:[#allocation2 + $0x280] sm:$0xff] %vm378_vm0, %v7876_v33  ;;  %v3587_v33 = vadd.f32 %v3586_v17, %v3585_v7  ;;  %v3492_v17 = vsel %vm378_vm0, %v10544_v29, 0.0  ;;  %v3676_v7 = vld [vmem:[#allocation2 + $0x288] sm:$0xff]  ;;  %v3494_v29 = vsel %vm378_vm0, %v10638_v35, 0.0 }
 0x41a   : > { %v3359_v14 = vpop.permute.xlu1 %3358  ;;  %v3483_v34 = vadd.f32 %v3482_v48, %v3481_v31 }
 0x41b   : > { %3429 = vst.msk [vmem:[#allocation2 + $0x280] sm:$0xff] %vm3402_vm13, %v3359_v14  ;;  %v3104_v63 = vpop.permute.xlu0 %3103  ;;  %v3589_v21 = vadd.f32 %v3588_v56, %v3587_v33  ;;  %v3594_v14 = vsel %vm1988_vm8, %v10546_v13, 0.0 }
 0x41c   : > { %3173 = vst.msk [vmem:[#allocation2 + $0x298] sm:$0xff] %vm3145_vm12, %v3104_v63  ;;  %v3485_v22 = vadd.f32 %v3484_v4, %v3483_v34  ;;  %v3496_v34 = vsel %vm378_vm0, %v10662_v47, 0.0 }
 0x41d   : > { %3237 = vst.msk [vmem:[#allocation2 + $0x298] sm:$0xff] %vm378_vm0, %v7877_v0  ;;  %v3591_v53 = vadd.f32 %v3590_v57, %v3589_v21 }
 0x41e   : > { %v2912_v3 = vpop.permute.xlu1 %2911  ;;  %v10877_v23 = vld [vmem:[#allocation2 + $0x278] sm:$0xff]  ;;  %v3487_v43 = vadd.f32 %v3486_v41, %v3485_v22  ;;  %v10929_v41 = vld [vmem:[%s13134_s4] ss:$0 sm:$0xff] }
 0x41f   : > { %2980 = vst.msk [vmem:[#allocation2 + $0x290] sm:$0xff] %vm1537_vm6, %v2912_v3  ;;  %v3361_v26 = vpop.permute.xlu0 %3360  ;;  %4024 = vmatprep.mubr.f32.mxu0 %v10877_v23  ;;  %v3593_v0 = vadd.f32 %v3592_v45, %v3591_v53 }
 0x420   : > { %3430 = vst.msk [vmem:[#allocation2 + $0x298] sm:$0xff] %vm3402_vm13, %v3361_v26  ;;  %v3896_v5 = vpop.f32.mrb[0].mxu0  ;;  %4025 = vmatmul.mubr.f32.gmra.mrb[52].mxu0 %v3675_v24  ;;  %v3489_v49 = vadd.f32 %v3488_v40, %v3487_v43  ;;  %v3600_v26 = vsel %vm1988_vm8, %v10692_v32, 0.0  ;;  %v3498_v32 = vsel %vm378_vm0, %v10684_v2, 0.0 }
 0x421   : > { %v3898_v38 = vpop.f32.mrb[1].mxu0  ;;  %v3595_v48 = vadd.f32 %v3594_v14, %v3593_v0  ;;  %v3897_v40 = vadd.f32 %v10929_v41, %v3896_v5 }
 0x422   : > { %v2723_v54 = vpop.permute.xlu1 %2722  ;;  %v10890_v36 = vld [vmem:[#allocation2 + $0x280] sm:$0xff]  ;;  %v3491_v31 = vadd.f32 %v3490_v27, %v3489_v49  ;;  %v3602_v38 = vsel %vm1988_vm8, %v10716_v37, 0.0  ;;  %v3500_v37 = vsel %vm378_vm0, %v10714_v46, 0.0  ;;  %v3502_v46 = vsel %vm378_vm0, %v10739_v18, 0.0 }
 0x423   : > { %2790 = vst.msk [vmem:[#allocation2 + $0x2c8] sm:$0xff] %vm2760_vm11, %v2723_v54  ;;  %v2721_v60 = vpop.permute.xlu0 %2720  ;;  %8126 = vmatprep.mubr.msk.f32.mxu1 %vm3729_vm14, %v10890_v36  ;;  %v3597_v3 = vadd.f32 %v3596_v55, %v3595_v48  ;;  %v3604_v54 = vsel %vm1988_vm8, %v10744_v59, 0.0  ;;  %v3677_v49 = vld [vmem:[#allocation2 + $0x2a0] sm:$0xff]  ;;  %v3606_v59 = vsel %vm1988_vm8, %v10753_v12, 0.0  ;;  %v3504_v12 = vsel %vm378_vm0, %v10751_v52, 0.0 }
 0x424   : > { %2789 = vst.msk [vmem:[#allocation2 + $0x2b0] sm:$0xff] %vm2760_vm11, %v2721_v60  ;;  %v3493_v33 = vadd.f32 %v3492_v17, %v3491_v31  ;;  %v3608_v17 = vsel %vm1988_vm8, %v10770_v42, 0.0  ;;  %v7880_v52 = vld [vmem:[%s8702_s14 + $0x19a] sm:$0xff] }
 0x425   : > { %v3599_v57 = vadd.f32 %v3598_v44, %v3597_v3  ;;  %v3610_v44 = vsel %vm1988_vm8, %v10779_v30, 0.0  ;;  %v3508_v30 = vsel %vm378_vm0, %v10777_v58, 0.0  ;;  %v3510_v58 = vsel %vm378_vm0, %v10791_v51, 0.0 }
 0x426   : > { %v2914_v10 = vpop.permute.xlu1 %2913  ;;  %v10904_v63 = vld [vmem:[#allocation2 + $0x290] sm:$0xff]  ;;  %v3495_v21 = vadd.f32 %v3494_v29, %v3493_v33  ;;  %v3612_v33 = vsel %vm1988_vm8, %v10796_v16, 0.0 }
 0x427   : > { %2981 = vst.msk [vmem:[#allocation2 + $0x2a8] sm:$0xff] %vm1537_vm6, %v2914_v10  ;;  %v3106_v13 = vpop.permute.xlu0 %3105  ;;  %4029 = vmatprep.mubr.f32.mxu0 %v10904_v63  ;;  %v10911_v11 = vld [vmem:[#allocation2 + $0x298] sm:$0xff]  ;;  %v3601_v22 = vadd.f32 %v3600_v26, %v3599_v57 }
 0x428   : > { %3174 = vst.msk [vmem:[#allocation2 + $0x2b0] sm:$0xff] %vm3145_vm12, %v3106_v13  ;;  %v3901_v56 = vpop.f32.mrb[2].mxu0  ;;  %8127 = vmatmul.mubr.msk.f32.gmra.mrb[26].mxu1 %vm3729_vm14, %v10911_v11  ;;  %4030 = vmatmul.mubr.f32.gmra.mrb[54].mxu0 %v3676_v7  ;;  %v3497_v45 = vadd.f32 %v3496_v34, %v3495_v21  ;;  %v3678_v57 = vld [vmem:[#allocation2 + $0x2b8] sm:$0xff]  ;;  %v3614_v21 = vsel %vm1988_vm8, %v10805_v28, 0.0 }
 0x429   : > { %v3903_v4 = vpop.f32.mrb[3].mxu0  ;;  %3238 = vst.msk [vmem:[#allocation2 + $0x2b0] sm:$0xff] %vm378_vm0, %v7878_v6  ;;  %v3902_v47 = vadd.f32 %v10929_v41, %v3901_v56  ;;  %v3603_v14 = vadd.f32 %v3602_v38, %v3601_v22  ;;  %v3506_v56 = vsel %vm378_vm0, %v10765_v25, 0.0  ;;  %v7881_v38 = vld [vmem:[%s8702_s14 + $0x1a2] sm:$0xff]  ;;  %v3616_v22 = vsel %vm1988_vm8, %v10833_v62, 0.0  ;;  %s8581_s14 = smov 80  }
 0x42a   : > { %v3363_v24 = vpop.permute.xlu1 %3362  ;;  %v3499_v55 = vadd.f32 %v3498_v32, %v3497_v45  ;;  %v3618_v62 = vsel %vm1988_vm8, %v10848_v15, 0.0 }
 0x42b   : > { %3431 = vst.msk [vmem:[#allocation2 + $0x2b0] sm:$0xff] %vm3402_vm13, %v3363_v24  ;;  %v3108_v35 = vpop.permute.xlu0 %3107  ;;  %v3605_v10 = vadd.f32 %v3604_v54, %v3603_v14 }
 0x42c   : > { %3175 = vst.msk [vmem:[#allocation2 + $0x2c8] sm:$0xff] %vm3145_vm12, %v3108_v35  ;;  %v3501_v6 = vadd.f32 %v3500_v37, %v3499_v55 }
 0x42d   : > { %3239 = vst.msk [vmem:[#allocation2 + $0x2c8] sm:$0xff] %vm378_vm0, %v7879_v8  ;;  %v3607_v7 = vadd.f32 %v3606_v59, %v3605_v10  ;;  %v3620_v59 = vsel %vm1988_vm8, %v10890_v36, 0.0 }
 0x42e   : > { %v2916_v53 = vpop.permute.xlu1 %2915  ;;  %v10942_v43 = vld [vmem:[#allocation2 + $0x2a8] sm:$0xff]  ;;  %v3503_v18 = vadd.f32 %v3502_v46, %v3501_v6  ;;  %v3516_v46 = vsel %vm378_vm0, %v10846_v20, 0.0 }
 0x42f   : > { %v8089_v60 = vpop.f32.mrb[0].mxu1  ;;  %2982 = vst.msk [vmem:[#allocation2 + $0x2c0] sm:$0xff] %vm1537_vm6, %v2916_v53  ;;  %v3365_v27 = vpop.permute.xlu0 %3364  ;;  %4034 = vmatprep.mubr.f32.mxu0 %v10942_v43  ;;  %v3609_v29 = vadd.f32 %v3608_v17, %v3607_v7 }
 0x430   : > { %v4127_v2 = vadd.f32 %v8089_v60, %v3902_v47  ;;  %v4121_v0 = vpop.f32.mrb[1].mxu1  ;;  %3432 = vst.msk [vmem:[#allocation2 + $0x2c8] sm:$0xff] %vm3402_vm13, %v3365_v27  ;;  %4035 = vmatmul.mubr.f32.gmra.mrb[56].mxu0 %v3677_v49  ;;  %v3505_v4 = vadd.f32 %v3504_v12, %v3503_v18  ;;  %v3518_v12 = vsel %vm378_vm0, %v10877_v23, 0.0  ;;  %v3520_v18 = vsel %vm378_vm0, %v10904_v63, 0.0 }
 0x431   : > { %v4122_v5 = vadd.f32 %v4121_v0, %v3897_v40  ;;  %v3611_v8 = vadd.f32 %v3610_v44, %v3609_v29  ;;  %v3512_v40 = vsel %vm378_vm0, %v10803_v1, 0.0  ;;  %v3514_v1 = vsel %vm378_vm0, %v10821_v39, 0.0  ;;  %v3679_v29 = vld [vmem:[#allocation2 + $0x2d0] sm:$0xff] }
 0x432   : > { %8358 = vtanh.f32 %v4127_v2  ;;  %v2532_v48 = vpop.permute.xlu1 %2531  ;;  %v10955_v13 = vld [vmem:[#allocation2 + $0x2b0] sm:$0xff]  ;;  %v3507_v35 = vadd.f32 %v3506_v56, %v3505_v4  ;;  %v5702_v4 = vld [vmem:[#allocation3 + $0x1a2] sm:$0xff] }
 0x433   : > { %8360 = vtanh.f32 %v4122_v5  ;;  %v2725_v31 = vpop.permute.xlu0 %2724  ;;  %2597 = vst.msk [vmem:[#allocation2 + $0x2d8] sm:$0xff] %vm1150_vm4, %v2532_v48  ;;  %8129 = vmatprep.mubr.msk.f32.mxu1 %vm3729_vm14, %v10955_v13  ;;  %v3906_v42 = vpop.f32.mrb[4].mxu0  ;;  %v3613_v16 = vadd.f32 %v3612_v33, %v3611_v8  ;;  %v3622_v48 = vsel %vm1988_vm8, %v10911_v11, 0.0  ;;  %v3624_v20 = vsel %vm1988_vm8, %v10955_v13, 0.0 }
 0x434   : > { %2791 = vst.msk [vmem:[#allocation2 + $0x2e0] sm:$0xff] %vm2760_vm11, %v2725_v31  ;;  %v3908_v3 = vpop.f32.mrb[5].mxu0  ;;  %v3509_v32 = vadd.f32 %v3508_v30, %v3507_v35  ;;  %v3907_v47 = vadd.f32 %v10929_v41, %v3906_v42  ;;  %v3522_v13 = vsel %vm378_vm0, %v10942_v43, 0.0 }
 0x435   : > { %v3615_v53 = vadd.f32 %v3614_v21, %v3613_v16 }
 0x436   : > { %v3110_v26 = vpop.permute.xlu1 %3109  ;;  %v10970_v24 = vld [vmem:[#allocation2 + $0x2c0] sm:$0xff]  ;;  %v3511_v14 = vadd.f32 %v3510_v58, %v3509_v32 }
 0x437   : > { %v2727_v34 = vpop.permute.xlu0 %2726  ;;  %3176 = vst.msk [vmem:[#allocation2 + $0x2e0] sm:$0xff] %vm3145_vm12, %v3110_v26  ;;  %4039 = vmatprep.mubr.f32.mxu0 %v10970_v24  ;;  %v3566_v25 = vld [vmem:[#allocation2 + $0x2c8] sm:$0xff]  ;;  %v3617_v0 = vadd.f32 %v3616_v22, %v3615_v53  ;;  %v3524_v43 = vsel %vm378_vm0, %v10970_v24, 0.0 }
 0x438   : > { %2792 = vst.msk [vmem:[#allocation2 + $0x2f8] sm:$0xff] %vm2760_vm11, %v2727_v34  ;;  %8130 = vmatmul.mubr.msk.f32.gmra.mrb[28].mxu1 %vm3729_vm14, %v3566_v25  ;;  %4040 = vmatmul.mubr.f32.gmra.mrb[58].mxu0 %v3678_v57  ;;  %v3513_v15 = vadd.f32 %v3512_v40, %v3511_v14  ;;  %v3626_v3 = vsel %vm1988_vm8, %v3566_v25, 0.0 }
 0x439   : > { %3240 = vst.msk [vmem:[#allocation2 + $0x2e0] sm:$0xff] %vm378_vm0, %v7880_v52  ;;  %v3619_v10 = vadd.f32 %v3618_v62, %v3617_v0  ;;  %v5701_v52 = vld [vmem:[#allocation3 + $0x19a] sm:$0xff] }
 0x43a   : > { %v3112_v28 = vpop.permute.xlu1 %3111  ;;  %v3515_v39 = vadd.f32 %v3514_v1, %v3513_v15 }
 0x43b   : > { %v8092_v45 = vpop.f32.mrb[2].mxu1  ;;  %v2918_v60 = vpop.permute.xlu0 %2917  ;;  %3177 = vst.msk [vmem:[#allocation2 + $0x2f8] sm:$0xff] %vm3145_vm12, %v3112_v28  ;;  %v3621_v36 = vadd.f32 %v3620_v59, %v3619_v10 }
 0x43c   : > { %v10987_v54 = vpop.eup %8358  ;;  %v4131_v51 = vpop.f32.mrb[3].mxu1  ;;  %2983 = vst.msk [vmem:[#allocation2 + $0x2d8] sm:$0xff] %vm1537_vm6, %v2918_v60  ;;  %v3517_v7 = vadd.f32 %v3516_v46, %v3515_v39 }
 0x43d   : > { %13205 = vst [vmem:[#allocation4_spill] sm:$0xff] %v10987_v54  ;;  %v10992_v37 = vpop.eup %8360  ;;  %4359 = vst.msk [vmem:[#allocation3 + $0x21] sm:$0xff] %vm378_vm0, %v10987_v54  ;;  %v3911_v2 = vpop.f32.mrb[6].mxu0  ;;  %v4132_v27 = vadd.f32 %v4131_v51, %v3907_v47  ;;  %v3623_v44 = vadd.f32 %v3622_v48, %v3621_v36 }
 0x43e   : > { %13206 = vst [vmem:[#allocation5_spill] sm:$0xff] %v10992_v37  ;;  %3241 = vst.msk [vmem:[#allocation2 + $0x2f8] sm:$0xff] %vm378_vm0, %v7881_v38  ;;  %v3912_v49 = vadd.f32 %v10929_v41, %v3911_v2  ;;  %v3913_v55 = vpop.f32.mrb[7].mxu0  ;;  %v3369_v5 = vpop.permute.xlu1 %3368  ;;  %v3519_v11 = vadd.f32 %v3518_v12, %v3517_v7 }
 0x43f   : > { %4358 = vst.msk [vmem:[#allocation3 + $0x19] sm:$0xff] %vm378_vm0, %v10992_v37  ;;  %8362 = vtanh.f32 %v4132_v27  ;;  %v3625_v26 = vadd.f32 %v3624_v20, %v3623_v44  ;;  %v3680_v55 = vld [vmem:[#allocation2 + $0x2e8] sm:$0xff] }
 0x440   : > { %v4137_v6 = vadd.f32 %v8092_v45, %v3912_v49  ;;  %v3367_v17 = vpop.permute.xlu0 %3366  ;;  %3434 = vst.msk [vmem:[#allocation2 + $0x2f8] sm:$0xff] %vm3402_vm13, %v3369_v5  ;;  %v3521_v25 = vadd.f32 %v3520_v18, %v3519_v11 }
 0x441   : > { %3433 = vst.msk [vmem:[#allocation2 + $0x2e0] sm:$0xff] %vm3402_vm13, %v3367_v17  ;;  %v3627_v35 = vadd.f32 %v3626_v3, %v3625_v26 }
 0x442   : > { %8364 = vtanh.f32 %v4137_v6  ;;  %v2920_v31 = vpop.permute.xlu1 %2919  ;;  %v3523_v16 = vadd.f32 %v3522_v13, %v3521_v25  ;;  %v4390_v25 = vld [vmem:[#allocation3] sm:$0xff] }
 0x443   : > { %v3465_v56 = vld [vmem:[#allocation2 + $0x2d8] sm:$0xff]  ;;  %v3916_v23 = vpop.f32.mrb[8].mxu0  ;;  %4422 = vst.msk [vmem:[#allocation2] sm:$0xff] %vm378_vm0, %v4390_v25 }
 0x444   : > { %v2534_v42 = vpop.permute.xlu0 %2533  ;;  %4044 = vmatprep.mubr.f32.mxu0 %v3465_v56  ;;  %v3918_v63 = vpop.f32.mrb[9].mxu0  ;;  %v5031_v34 = vld [vmem:[#allocation3 + $0x21] sm:$0xff]  ;;  %v3526_v24 = vsel %vm378_vm0, %v3465_v56, 0.0  ;;  %v3525_v47 = vadd.f32 %v3524_v43, %v3523_v16  ;;  %v3917_v45 = vadd.f32 %v10929_v41, %v3916_v23 }
 0x445   : > { %2598 = vst.msk [vmem:[#allocation2 + $0x2f0] sm:$0xff] %vm1150_vm4, %v2534_v42  ;;  %4045 = vmatmul.mubr.f32.gmra.mrb[60].mxu0 %v3679_v29  ;;  %v4391_v16 = vld [vmem:[#allocation3 + $0x8] sm:$0xff] }
 0x446   : > { %v11021_v33 = vld [vmem:[#allocation3 + $0x18] sm:$0xff]  ;;  %2984 = vst.msk [vmem:[#allocation2 + $0x2f0] sm:$0xff] %vm1537_vm6, %v2920_v31  ;;  %v11028_v30 = vld [vmem:[#allocation3 + $0x20] sm:$0xff]  ;;  %v3527_v51 = vadd.f32 %v3526_v24, %v3525_v47 }
 0x447   : > { %4424 = vst.msk [vmem:[#allocation2 + $0x30] sm:$0xff] %vm378_vm0, %v11021_v33  ;;  %v5030_v8 = vld [vmem:[#allocation3 + $0x19] sm:$0xff]  ;;  %4425 = vst.msk [vmem:[#allocation2 + $0x48] sm:$0xff] %vm378_vm0, %v11028_v30 }
 0x448   : > { %v3568_v57 = vld [vmem:[#allocation2 + $0x2f8] sm:$0xff]  ;;  %5062 = vst.msk [vmem:[#allocation2 + $0x8] sm:$0xff] %vm378_vm0, %v5030_v8  ;;  %5063 = vst.msk [vmem:[#allocation2 + $0x20] sm:$0xff] %vm378_vm0, %v5031_v34  ;;  %v3567_v21 = vld [vmem:[#allocation2 + $0x2e0] sm:$0xff] }
 0x449   : > { %5734 = vst.msk [vmem:[#allocation2 + $0x2f8] sm:$0xff] %vm378_vm0, %v5702_v4  ;;  %v11037_v58 = vpop.eup %8362  ;;  %v3628_v38 = vsel %vm1988_vm8, %v3567_v21, 0.0  ;;  %8132 = vmatprep.mubr.msk.f32.mxu1 %vm3729_vm14, %v3567_v21  ;;  %5733 = vst.msk [vmem:[#allocation2 + $0x2e0] sm:$0xff] %vm378_vm0, %v5701_v52  ;;  %v3630_v32 = vsel %vm1988_vm8, %v3568_v57, 0.0  ;;  %v4454_v21 = vld [vmem:[#allocation3 + $0x1] sm:$0xff] }
 0x44a   : > { %13207 = vst [vmem:[#allocation6_spill] sm:$0xff] %v11037_v58  ;;  %4360 = vst.msk [vmem:[#allocation3 + $0x31] sm:$0xff] %vm378_vm0, %v11037_v58  ;;  %v3629_v22 = vadd.f32 %v3628_v38, %v3627_v35  ;;  %8133 = vmatmul.mubr.msk.f32.gmra.mrb[30].mxu1 %vm3729_vm14, %v3568_v57 }
 0x44b   : > { %v8095_v28 = vpop.f32.mrb[4].mxu1  ;;  %4423 = vst.msk [vmem:[#allocation2 + $0x18] sm:$0xff] %vm378_vm0, %v4391_v16 }
 0x44c   : > { %v11048_v40 = vpop.eup %8364  ;;  %v3631_v53 = vadd.f32 %v3630_v32, %v3629_v22  ;;  %v4141_v60 = vpop.f32.mrb[5].mxu1  ;;  %v4455_v22 = vld [vmem:[#allocation3 + $0x9] sm:$0xff] }
 0x44d   : > { %13208 = vst [vmem:[#allocation7_spill] sm:$0xff] %v11048_v40  ;;  %4361 = vst.msk [vmem:[#allocation3 + $0x39] sm:$0xff] %vm378_vm0, %v11048_v40  ;;  %v3921_v14 = vpop.f32.mrb[10].mxu0  ;;  %v4142_v62 = vadd.f32 %v4141_v60, %v3917_v45  ;;  %v3466_v2 = vld [vmem:[#allocation2 + $0x2f0] sm:$0xff] }
 0x44e   : > { %v3632_v27 = vrot.slane %v3631_v53, 4  ;;  %v3922_v1 = vadd.f32 %v10929_v41, %v3921_v14  ;;  %v3923_v0 = vpop.f32.mrb[11].mxu0  ;;  %v3528_v49 = vsel %vm378_vm0, %v3466_v2, 0.0  ;;  %4049 = vmatprep.mubr.f32.mxu0 %v3466_v2 }
 0x44f   : > { %8366 = vtanh.f32 %v4142_v62  ;;  %v3529_v15 = vadd.f32 %v3528_v49, %v3527_v51  ;;  %4050 = vmatmul.mubr.f32.gmra.mrb[62].mxu0 %v3680_v55 }
 0x450   : > { %v3633_v59 = vadd.f32 %v3632_v27, %v3631_v53  ;;  %v4147_v5 = vadd.f32 %v8095_v28, %v3922_v1  ;;  %v4456_v28 = vld [vmem:[#allocation3 + $0x19] sm:$0xff]  ;;  %v4457_v27 = vld [vmem:[#allocation3 + $0x21] sm:$0xff] }
 0x451   : > { %v3530_v46 = vrot.slane %v3529_v15, 4  ;;  %v11054_v10 = vld [vmem:[#allocation3 + $0x30] sm:$0xff] }
 0x452   : > { %v5032_v6 = vld [vmem:[#allocation3 + $0x31] sm:$0xff]  ;;  %v3634_v17 = vrot.slane %v3633_v59, 2  ;;  %8368 = vtanh.f32 %v4147_v5  ;;  %4426 = vst.msk [vmem:[#allocation2 + $0x60] sm:$0xff] %vm378_vm0, %v11054_v10 }
 0x453   : > { %5064 = vst.msk [vmem:[#allocation2 + $0x38] sm:$0xff] %vm378_vm0, %v5032_v6  ;;  %v3531_v39 = vadd.f32 %v3530_v46, %v3529_v15  ;;  %v3926_v20 = vpop.f32.mrb[12].mxu0  ;;  %v11108_v1 = vld [vmem:[#allocation3 + $0x31] sm:$0xff] }
 0x454   : > { %v3635_v48 = vadd.f32 %v3634_v17, %v3633_v59  ;;  %v11059_v12 = vld [vmem:[#allocation3 + $0x32] sm:$0xff]  ;;  %v11061_v36 = vld [vmem:[#allocation3 + $0x3a] sm:$0xff]  ;;  %v3928_v44 = vpop.f32.mrb[13].mxu0  ;;  %v3927_v52 = vadd.f32 %v10929_v41, %v3926_v20 }
 0x455   : > { %v3532_v7 = vrot.slane %v3531_v39, 2  ;;  %5703 = vst.msk [vmem:[#allocation2 + $0x10] sm:$0xff] %vm378_vm0, %v11059_v12  ;;  %5704 = vst.msk [vmem:[#allocation2 + $0x28] sm:$0xff] %vm378_vm0, %v11061_v36  ;;  %v11067_v31 = vld [vmem:[#allocation3 + $0x38] sm:$0xff] }
 0x456   : > { %v5033_v18 = vld [vmem:[#allocation3 + $0x39] sm:$0xff]  ;;  %v3636_v42 = vrot.slane %v3635_v48, 1  ;;  %4427 = vst.msk [vmem:[#allocation2 + $0x78] sm:$0xff] %vm378_vm0, %v11067_v31 }
 0x457   : > { %5065 = vst.msk [vmem:[#allocation2 + $0x50] sm:$0xff] %vm378_vm0, %v5033_v18  ;;  %v3533_v56 = vadd.f32 %v3532_v7, %v3531_v39  ;;  %v11116_v49 = vld [vmem:[#allocation3 + $0x39] sm:$0xff] }
 0x458   : > { %v3637_v29 = vadd.f32 %v3636_v42, %v3635_v48 }
 0x459   : > { %v11072_v11 = vpop.eup %8366  ;;  %v3534_v3 = vrot.slane %v3533_v56, 1 }
 0x45a   : > { %13209 = vst [vmem:[#allocation8_spill] sm:$0xff] %v11072_v11  ;;  %4362 = vst.msk [vmem:[#allocation3 + $0x49] sm:$0xff] %vm378_vm0, %v11072_v11  ;;  %v3638_v23 = vmul.f32 0.00390625, %v3637_v29 }
 0x45b   : > { %v8098_v4 = vpop.f32.mrb[6].mxu1  ;;  %v3535_v13 = vadd.f32 %v3534_v3, %v3533_v56 }
 0x45c   : > { %v11077_v26 = vpop.eup %8368  ;;  %3640 = vrot.lane.b32.xlu0 %v3638_v23, %s8581_s14  ;;  %v4151_v63 = vpop.f32.mrb[7].mxu1  ;;  %v5737_v8 = vld [vmem:[#allocation2 + $0x10] sm:$0xff]  ;;  %v5740_v34 = vld [vmem:[#allocation2 + $0x28] sm:$0xff]  ;;  %s7984_s14 = sshll.u32 %s13336_s28, 8 }
 0x45d   : > { %13210 = vst [vmem:[#allocation9_spill] sm:$0xff] %v11077_v26  ;;  %4363 = vst.msk [vmem:[#allocation3 + $0x51] sm:$0xff] %vm378_vm0, %v11077_v26  ;;  %v3931_v57 = vpop.f32.mrb[14].mxu0  ;;  %v4152_v43 = vadd.f32 %v4151_v63, %v3927_v52  ;;  %8143 = vmatprep.mubr.msk.f32.mxu0 %vm378_vm0, %v5737_v8  ;;  %v3536_v35 = vmul.f32 0.00390625, %v3535_v13  ;;  %s12164_s29 = scalar_lea.vmem %s13132_s2, %s7984_s14  ;;  %s12943_s23 = scalar_lea.vmem %s13138_s8, %s7984_s14 }
 0x45e   : > { %v3932_v38 = vadd.f32 %v10929_v41, %v3931_v57  ;;  %v3933_v32 = vpop.f32.mrb[15].mxu0  ;;  %8144 = vmatmul.mubr.msk.f32.vlgmr.msra.gmra.mrb[64].mxu0 %vm378_vm0, %v5740_v34 }
 0x45f   : > { %8370 = vtanh.f32 %v4152_v43  ;;  %3644 = vrot.lane.b32.xlu1 %v3536_v35, %s8582_s25 }
 0x460   : > { %v4157_v24 = vadd.f32 %v8098_v4, %v3932_v38  ;;  %4518 = vrot.lane.b32.xlu0 %v4454_v21, %s8569_s11 }
 0x461   : > { %v11087_v47 = vld [vmem:[#allocation3 + $0x48] sm:$0xff] }
 0x462   : > { %v5034_v45 = vld [vmem:[#allocation3 + $0x49] sm:$0xff]  ;;  %8372 = vtanh.f32 %v4157_v24  ;;  %4428 = vst.msk [vmem:[#allocation2 + $0x90] sm:$0xff] %vm378_vm0, %v11087_v47 }
 0x463   : > { %5066 = vst.msk [vmem:[#allocation2 + $0x68] sm:$0xff] %vm378_vm0, %v5034_v45  ;;  %4520 = vrot.lane.b32.xlu1 %v4455_v22, %s8569_s11  ;;  %v3936_v51 = vpop.f32.mrb[16].mxu0  ;;  %v11121_v59 = vld [vmem:[#allocation3 + $0x49] sm:$0xff] }
 0x464   : > { %4522 = vrot.lane.b32.xlu0 %v4456_v28, %s8569_s11  ;;  %v11094_v53 = vld [vmem:[#allocation3 + $0x4a] sm:$0xff]  ;;  %v11096_v60 = vld [vmem:[#allocation3 + $0x52] sm:$0xff]  ;;  %v3938_v2 = vpop.f32.mrb[17].mxu0  ;;  %v3937_v55 = vadd.f32 %v10929_v41, %v3936_v51 }
 0x465   : > { %5705 = vst.msk [vmem:[#allocation2 + $0x40] sm:$0xff] %vm378_vm0, %v11094_v53  ;;  %5706 = vst.msk [vmem:[#allocation2 + $0x58] sm:$0xff] %vm378_vm0, %v11096_v60  ;;  %v11102_v14 = vld [vmem:[#allocation3 + $0x50] sm:$0xff] }
 0x466   : > { %v5035_v62 = vld [vmem:[#allocation3 + $0x51] sm:$0xff]  ;;  %4429 = vst.msk [vmem:[#allocation2 + $0xa8] sm:$0xff] %vm378_vm0, %v11102_v14 }
 0x467   : > { %5067 = vst.msk [vmem:[#allocation2 + $0x80] sm:$0xff] %vm378_vm0, %v5035_v62  ;;  %4524 = vrot.lane.b32.xlu1 %v4457_v27, %s8569_s11  ;;  %v11132_v18 = vld [vmem:[#allocation3 + $0x51] sm:$0xff] }
 0x468   : > { %4526 = vrot.lane.b32.xlu0 %v11108_v1, %s8569_s11 }
 0x469   : > { %v11112_v0 = vpop.eup %8370 }
 0x46a   : > { %13211 = vst [vmem:[#allocation10_spill] sm:$0xff] %v11112_v0  ;;  %4364 = vst.msk [vmem:[#allocation3 + $0x61] sm:$0xff] %vm378_vm0, %v11112_v0 }
 0x46b   : > { %4528 = vrot.lane.b32.xlu1 %v11116_v49, %s8569_s11  ;;  %v8101_v15 = vpop.f32.mrb[8].mxu1 }
 0x46c   : > { %v11123_v5 = vpop.eup %8372  ;;  %4530 = vrot.lane.b32.xlu0 %v11121_v59, %s8569_s11  ;;  %v4161_v46 = vpop.f32.mrb[9].mxu1  ;;  %v5743_v6 = vld [vmem:[#allocation2 + $0x40] sm:$0xff]  ;;  %v5746_v17 = vld [vmem:[#allocation2 + $0x58] sm:$0xff] }
 0x46d   : > { %13212 = vst [vmem:[#allocation11_spill] sm:$0xff] %v11123_v5  ;;  %4365 = vst.msk [vmem:[#allocation3 + $0x69] sm:$0xff] %vm378_vm0, %v11123_v5  ;;  %v3941_v39 = vpop.f32.mrb[18].mxu0  ;;  %v4162_v48 = vadd.f32 %v4161_v46, %v3937_v55  ;;  %8146 = vmatprep.mubr.msk.f32.mxu0 %vm378_vm0, %v5743_v6 }
 0x46e   : > { %v3942_v7 = vadd.f32 %v10929_v41, %v3941_v39  ;;  %v3943_v20 = vpop.f32.mrb[19].mxu0  ;;  %8147 = vmatmul.mubr.msk.f32.gmra.mrb[66].mxu0 %vm378_vm0, %v5746_v17 }
 0x46f   : > { %8374 = vtanh.f32 %v4162_v48  ;;  %4532 = vrot.lane.b32.xlu1 %v11132_v18, %s8569_s11 }
 0x470   : > { %v4167_v44 = vadd.f32 %v8101_v15, %v3942_v7 }
 0x471   : > { %v11136_v42 = vld [vmem:[#allocation3 + $0x61] sm:$0xff] }
 0x472   : > { %v11138_v56 = vld [vmem:[#allocation3 + $0x60] sm:$0xff]  ;;  %8376 = vtanh.f32 %v4167_v44  ;;  %4534 = vrot.lane.b32.xlu0 %v11136_v42, %s8569_s11 }
 0x473   : > { %v5036_v29 = vld [vmem:[#allocation3 + $0x61] sm:$0xff]  ;;  %4430 = vst.msk [vmem:[#allocation2 + $0xc0] sm:$0xff] %vm378_vm0, %v11138_v56  ;;  %v3946_v3 = vpop.f32.mrb[20].mxu0 }
 0x474   : > { %5068 = vst.msk [vmem:[#allocation2 + $0x98] sm:$0xff] %vm378_vm0, %v5036_v29  ;;  %v11145_v23 = vld [vmem:[#allocation3 + $0x69] sm:$0xff]  ;;  %v3948_v13 = vpop.f32.mrb[21].mxu0  ;;  %v3947_v25 = vadd.f32 %v10929_v41, %v3946_v3 }
 0x475   : > { %v11147_v52 = vld [vmem:[#allocation3 + $0x62] sm:$0xff]  ;;  %v11149_v4 = vld [vmem:[#allocation3 + $0x6a] sm:$0xff]  ;;  %4536 = vrot.lane.b32.xlu1 %v11145_v23, %s8569_s11 }
 0x476   : > { %5707 = vst.msk [vmem:[#allocation2 + $0x70] sm:$0xff] %vm378_vm0, %v11147_v52  ;;  %5708 = vst.msk [vmem:[#allocation2 + $0x88] sm:$0xff] %vm378_vm0, %v11149_v4  ;;  %v11157_v63 = vld [vmem:[#allocation3 + $0x68] sm:$0xff] }
 0x477   : > { %v5037_v8 = vld [vmem:[#allocation3 + $0x69] sm:$0xff]  ;;  %4431 = vst.msk [vmem:[#allocation2 + $0xd8] sm:$0xff] %vm378_vm0, %v11157_v63 }
 0x478   : > { %5069 = vst.msk [vmem:[#allocation2 + $0xb0] sm:$0xff] %vm378_vm0, %v5037_v8 }
 0x479   : > { %v11162_v34 = vpop.eup %8374 }
 0x47a   : > { %13213 = vst [vmem:[#allocation12_spill] sm:$0xff] %v11162_v34  ;;  %4366 = vst.msk [vmem:[#allocation3 + $0x79] sm:$0xff] %vm378_vm0, %v11162_v34 }
 0x47b   : > { %v8104_v57 = vpop.f32.mrb[10].mxu1 }
 0x47c   : > { %v11167_v43 = vpop.eup %8376  ;;  %v3951_v35 = vpop.f32.mrb[22].mxu0 }
 0x47d   : > { %13214 = vst [vmem:[#allocation13_spill] sm:$0xff] %v11167_v43  ;;  %v4171_v21 = vpop.f32.mrb[11].mxu1  ;;  %v5749_v16 = vld [vmem:[#allocation2 + $0x70] sm:$0xff]  ;;  %v5752_v38 = vld [vmem:[#allocation2 + $0x88] sm:$0xff]  ;;  %4367 = vst.msk [vmem:[#allocation3 + $0x81] sm:$0xff] %vm378_vm0, %v11167_v43  ;;  %v3952_v32 = vadd.f32 %v10929_v41, %v3951_v35  ;;  %v3953_v22 = vpop.f32.mrb[23].mxu0 }
 0x47e   : > { %v4172_v24 = vadd.f32 %v4171_v21, %v3947_v25  ;;  %8149 = vmatprep.mubr.msk.f32.mxu0 %vm378_vm0, %v5749_v16 }
 0x47f   : > { %8150 = vmatmul.mubr.msk.f32.gmra.mrb[68].mxu0 %vm378_vm0, %v5752_v38  ;;  %v4177_v45 = vadd.f32 %v8104_v57, %v3952_v32 }
 0x480   : > { %8378 = vtanh.f32 %v4172_v24 }
 0x481   : > { %8380 = vtanh.f32 %v4177_v45  ;;  %v11174_v28 = vld [vmem:[#allocation3 + $0x79] sm:$0xff] }
 0x482   : > { %v11176_v51 = vld [vmem:[#allocation3 + $0x78] sm:$0xff]  ;;  %4538 = vrot.lane.b32.xlu0 %v11174_v28, %s8569_s11 }
 0x483   : > { %v5038_v62 = vld [vmem:[#allocation3 + $0x79] sm:$0xff]  ;;  %4432 = vst.msk [vmem:[#allocation2 + $0xf0] sm:$0xff] %vm378_vm0, %v11176_v51  ;;  %v3956_v2 = vpop.f32.mrb[24].mxu0 }
 0x484   : > { %5070 = vst.msk [vmem:[#allocation2 + $0xc8] sm:$0xff] %vm378_vm0, %v5038_v62  ;;  %v11183_v27 = vld [vmem:[#allocation3 + $0x81] sm:$0xff]  ;;  %v3958_v46 = vpop.f32.mrb[25].mxu0  ;;  %v3957_v7 = vadd.f32 %v10929_v41, %v3956_v2 }
 0x485   : > { %v11185_v55 = vld [vmem:[#allocation3 + $0x7a] sm:$0xff]  ;;  %v11187_v15 = vld [vmem:[#allocation3 + $0x82] sm:$0xff]  ;;  %4540 = vrot.lane.b32.xlu1 %v11183_v27, %s8569_s11 }
 0x486   : > { %5709 = vst.msk [vmem:[#allocation2 + $0xa0] sm:$0xff] %vm378_vm0, %v11185_v55  ;;  %5710 = vst.msk [vmem:[#allocation2 + $0xb8] sm:$0xff] %vm378_vm0, %v11187_v15  ;;  %v11195_v6 = vld [vmem:[#allocation3 + $0x80] sm:$0xff] }
 0x487   : > { %v5039_v17 = vld [vmem:[#allocation3 + $0x81] sm:$0xff]  ;;  %4433 = vst.msk [vmem:[#allocation2 + $0x108] sm:$0xff] %vm378_vm0, %v11195_v6 }
 0x488   : > { %5071 = vst.msk [vmem:[#allocation2 + $0xe0] sm:$0xff] %vm378_vm0, %v5039_v17 }
 0x48a   : > { %v11200_v39 = vpop.eup %8378 }
 0x48b   : > { %13215 = vst [vmem:[#allocation14_spill] sm:$0xff] %v11200_v39  ;;  %4368 = vst.msk [vmem:[#allocation3 + $0x91] sm:$0xff] %vm378_vm0, %v11200_v39  ;;  %v11204_v48 = vpop.eup %8380  ;;  %v8107_v20 = vpop.f32.mrb[12].mxu1 }
 0x48c   : > { %13216 = vst [vmem:[#allocation15_spill] sm:$0xff] %v11204_v48  ;;  %4369 = vst.msk [vmem:[#allocation3 + $0x99] sm:$0xff] %vm378_vm0, %v11204_v48  ;;  %v3961_v44 = vpop.f32.mrb[26].mxu0  ;;  %v4181_v29 = vpop.f32.mrb[13].mxu1  ;;  %v13221_v48 = vmov 0.0|0.0  }
 0x48d   : > { %v5755_v3 = vld [vmem:[#allocation2 + $0xa0] sm:$0xff]  ;;  %v5758_v13 = vld [vmem:[#allocation2 + $0xb8] sm:$0xff]  ;;  %v3962_v8 = vadd.f32 %v10929_v41, %v3961_v44  ;;  %v4182_v25 = vadd.f32 %v4181_v29, %v3957_v7  ;;  %v3963_v57 = vpop.f32.mrb[27].mxu0 }
 0x48e   : > { %8152 = vmatprep.mubr.msk.f32.mxu0 %vm378_vm0, %v5755_v3 }
 0x48f   : > { %8153 = vmatmul.mubr.msk.f32.gmra.mrb[70].mxu0 %vm378_vm0, %v5758_v13  ;;  %v4187_v35 = vadd.f32 %v8107_v20, %v3962_v8  ;;  %8382 = vtanh.f32 %v4182_v25 }
 0x491   : > { %8384 = vtanh.f32 %v4187_v35 }
 0x492   : > { %v11212_v21 = vld [vmem:[#allocation3 + $0x91] sm:$0xff] }
 0x493   : > { %v11214_v16 = vld [vmem:[#allocation3 + $0x90] sm:$0xff]  ;;  %4542 = vrot.lane.b32.xlu0 %v11212_v21, %s8569_s11  ;;  %v11221_v32 = vld [vmem:[#allocation3 + $0x99] sm:$0xff]  ;;  %v3966_v45 = vpop.f32.mrb[28].mxu0 }
 0x494   : > { %v5040_v38 = vld [vmem:[#allocation3 + $0x91] sm:$0xff]  ;;  %4434 = vst.msk [vmem:[#allocation2 + $0x120] sm:$0xff] %vm378_vm0, %v11214_v16  ;;  %v11225_v22 = vld [vmem:[#allocation3 + $0x9a] sm:$0xff]  ;;  %4544 = vrot.lane.b32.xlu1 %v11221_v32, %s8569_s11  ;;  %v3968_v46 = vpop.f32.mrb[29].mxu0  ;;  %v3967_v20 = vadd.f32 %v10929_v41, %v3966_v45 }
 0x495   : > { %5072 = vst.msk [vmem:[#allocation2 + $0xf8] sm:$0xff] %vm378_vm0, %v5040_v38  ;;  %v11223_v24 = vld [vmem:[#allocation3 + $0x92] sm:$0xff]  ;;  %5712 = vst.msk [vmem:[#allocation2 + $0xe8] sm:$0xff] %vm378_vm0, %v11225_v22 }
 0x496   : > { %5711 = vst.msk [vmem:[#allocation2 + $0xd0] sm:$0xff] %vm378_vm0, %v11223_v24  ;;  %v11233_v62 = vld [vmem:[#allocation3 + $0x98] sm:$0xff] }
 0x497   : > { %v5041_v2 = vld [vmem:[#allocation3 + $0x99] sm:$0xff]  ;;  %4435 = vst.msk [vmem:[#allocation2 + $0x138] sm:$0xff] %vm378_vm0, %v11233_v62 }
 0x498   : > { %5073 = vst.msk [vmem:[#allocation2 + $0x110] sm:$0xff] %vm378_vm0, %v5041_v2 }
 0x499   : > { %v11238_v17 = vpop.eup %8382 }
 0x49a   : > { %13217 = vst [vmem:[#allocation16_spill] sm:$0xff] %v11238_v17  ;;  %4370 = vst.msk [vmem:[#allocation3 + $0xa9] sm:$0xff] %vm378_vm0, %v11238_v17 }
 0x49b   : > { %v11242_v7 = vpop.eup %8384 }
 0x49c   : > { %13218 = vst [vmem:[#allocation17_spill] sm:$0xff] %v11242_v7  ;;  %v5764_v3 = vld [vmem:[#allocation2 + $0xe8] sm:$0xff]  ;;  %4371 = vst.msk [vmem:[#allocation3 + $0xb1] sm:$0xff] %vm378_vm0, %v11242_v7 }
 0x49d   : > { %v5761_v29 = vld [vmem:[#allocation2 + $0xd0] sm:$0xff] }
 0x49e   : > { %8155 = vmatprep.mubr.msk.f32.mxu0 %vm378_vm0, %v5761_v29 }
 0x49f   : > { %8156 = vmatmul.mubr.msk.f32.gmra.mrb[72].mxu0 %vm378_vm0, %v5764_v3 }
 0x4a0   : > { %v8110_v44 = vpop.f32.mrb[14].mxu1  ;;  %v3971_v13 = vpop.f32.mrb[30].mxu0 }
 0x4a1   : > { %v4191_v8 = vpop.f32.mrb[15].mxu1  ;;  %v3972_v25 = vadd.f32 %v10929_v41, %v3971_v13  ;;  %v3973_v35 = vpop.f32.mrb[31].mxu0  ;;  %v11250_v45 = vld [vmem:[#allocation3 + $0xa9] sm:$0xff] }
 0x4a2   : > { %v4192_v57 = vadd.f32 %v4191_v8, %v3967_v20  ;;  %v11252_v2 = vld [vmem:[#allocation3 + $0xa8] sm:$0xff]  ;;  %4546 = vrot.lane.b32.xlu0 %v11250_v45, %s8569_s11 }
 0x4a3   : > { %v4197_v38 = vadd.f32 %v8110_v44, %v3972_v25  ;;  %v5042_v46 = vld [vmem:[#allocation3 + $0xa9] sm:$0xff]  ;;  %4436 = vst.msk [vmem:[#allocation2 + $0x150] sm:$0xff] %vm378_vm0, %v11252_v2  ;;  %v11259_v20 = vld [vmem:[#allocation3 + $0xb1] sm:$0xff] }
 0x4a4   : > { %8386 = vtanh.f32 %v4192_v57  ;;  %5074 = vst.msk [vmem:[#allocation2 + $0x128] sm:$0xff] %vm378_vm0, %v5042_v46  ;;  %v11261_v29 = vld [vmem:[#allocation3 + $0xaa] sm:$0xff]  ;;  %v11263_v44 = vld [vmem:[#allocation3 + $0xb2] sm:$0xff]  ;;  %v3976_v3 = vpop.f32.mrb[32].mxu0  ;;  %4548 = vrot.lane.b32.xlu1 %v11259_v20, %s8569_s11  ;;  %v5831_v57 = vld [vmem:[%s13135_s5] sm:$0xff] }
 0x4a5   : > { %8388 = vtanh.f32 %v4197_v38  ;;  %5713 = vst.msk [vmem:[#allocation2 + $0x100] sm:$0xff] %vm378_vm0, %v11261_v29  ;;  %5714 = vst.msk [vmem:[#allocation2 + $0x118] sm:$0xff] %vm378_vm0, %v11263_v44  ;;  %v11271_v13 = vld [vmem:[#allocation3 + $0xb0] sm:$0xff]  ;;  %v3978_v8 = vpop.f32.mrb[33].mxu0  ;;  %v5832_v35 = vld [vmem:[%s13135_s5 + $0x8] sm:$0xff] }
 0x4a6   : > { %4437 = vst.msk [vmem:[#allocation2 + $0x168] sm:$0xff] %vm378_vm0, %v11271_v13  ;;  %v5043_v25 = vld [vmem:[#allocation3 + $0xb1] sm:$0xff]  ;;  %v8269_v38 = vpack.c.bf16 %v5832_v35, %v5831_v57 }
 0x4a7   : > { %5075 = vst.msk [vmem:[#allocation2 + $0x140] sm:$0xff] %vm378_vm0, %v5043_v25  ;;  %v5833_v8 = vld [vmem:[%s13135_s5 + $0x10] sm:$0xff]  ;;  %v3977_v25 = vadd.f32 %v10929_v41, %v3976_v3  ;;  %v5836_v3 = vld [vmem:[%s13135_s5 + $0x28] sm:$0xff] }
 0x4a8   : > { %8270 = vmatpush1.bf16.msra.mxu1 %v8269_v38  ;;  %v8272_v39 = vpack.c.bf16 %v5834_v50, %v5833_v8  ;;  %v5835_v50 = vld [vmem:[%s13135_s5 + $0x20] sm:$0xff] }
 0x4a9   : > { %8271 = vmatprep.subr.bf16.mxu1 %v13143_v19 }
 0x4ab   : > { %v8113_v57 = vpop.f32.mrb[16].mxu1  ;;  %v3981_v19 = vpop.f32.mrb[34].mxu0 }
 0x4ac   : > { %v5767_v35 = vld [vmem:[#allocation2 + $0x100] sm:$0xff]  ;;  %v5770_v38 = vld [vmem:[#allocation2 + $0x118] sm:$0xff]  ;;  %v3982_v34 = vadd.f32 %v10929_v41, %v3981_v19  ;;  %v3983_v0 = vpop.f32.mrb[35].mxu0  ;;  %8273 = vmatpush1.bf16.msra.mxu1 %v8272_v39 }
 0x4ad   : > { %8158 = vmatprep.mubr.msk.f32.mxu0 %vm378_vm0, %v5767_v35  ;;  %8274 = vmatprep.subr.bf16.mxu1 %v13221_v48  ;;  %v8275_v35 = vpack.c.bf16 %v5836_v3, %v5835_v50 }
 0x4ae   : > { %v11282_v46 = vpop.eup %8386  ;;  %8159 = vmatmul.mubr.msk.f32.gmra.mrb[74].mxu0 %vm378_vm0, %v5770_v38  ;;  %v4207_v8 = vadd.f32 %v8113_v57, %v3982_v34  ;;  %v5837_v34 = vld [vmem:[%s13135_s5 + $0x30] sm:$0xff] }
 0x4af   : > { %13219 = vst [vmem:[#allocation18_spill] sm:$0xff] %v11282_v46  ;;  %4372 = vst.msk [vmem:[#allocation3 + $0xc1] sm:$0xff] %vm378_vm0, %v11282_v46  ;;  %v11293_v17 = vpop.eup %8388  ;;  %v4201_v46 = vpop.f32.mrb[17].mxu1 }
 0x4b0   : > { %13220 = vst [vmem:[#allocation19_spill] sm:$0xff] %v11293_v17  ;;  %4373 = vst.msk [vmem:[#allocation3 + $0xc9] sm:$0xff] %vm378_vm0, %v11293_v17  ;;  %v4202_v7 = vadd.f32 %v4201_v46, %v3977_v25  ;;  %8276 = vmatpush1.bf16.msra.mxu1 %v8275_v35 }
 0x4b1   : > { %8277 = vmatprep.subr.bf16.mxu1 %v13221_v48 }
 0x4b2   : > { %8390 = vtanh.f32 %v4202_v7  ;;  %v5838_v7 = vld [vmem:[%s13135_s5 + $0x38] sm:$0xff] }
 0x4b3   : > { %8392 = vtanh.f32 %v4207_v8  ;;  %v8278_v38 = vpack.c.bf16 %v5838_v7, %v5837_v34  ;;  %v3986_v50 = vpop.f32.mrb[36].mxu0  ;;  %v5840_v34 = vld [vmem:[%s13135_s5 + $0x48] sm:$0xff] }
 0x4b4   : > { %v3988_v8 = vpop.f32.mrb[37].mxu0 }
 0x4b5   : > { %8279 = vmatpush1.bf16.msra.mxu1 %v8278_v38  ;;  %v5841_v38 = vld [vmem:[%s13135_s5 + $0x50] sm:$0xff]  ;;  %v5842_v8 = vld [vmem:[%s13135_s5 + $0x58] sm:$0xff] }
 0x4b6   : > { %v11308_v19 = vld [vmem:[#allocation3 + $0xc1] sm:$0xff]  ;;  %8280 = vmatprep.subr.bf16.mxu1 %v13221_v48  ;;  %v8284_v11 = vpack.c.bf16 %v5842_v8, %v5841_v38 }
 0x4b7   : > { %v11310_v0 = vld [vmem:[#allocation3 + $0xc0] sm:$0xff]  ;;  %4550 = vrot.lane.b32.xlu0 %v11308_v19, %s8569_s11  ;;  %v11324_v46 = vld [vmem:[#allocation3 + $0xc9] sm:$0xff] }
 0x4b8   : > { %v5044_v39 = vld [vmem:[#allocation3 + $0xc1] sm:$0xff]  ;;  %4438 = vst.msk [vmem:[#allocation2 + $0x180] sm:$0xff] %vm378_vm0, %v11310_v0  ;;  %v5684_v57 = vld [vmem:[#allocation3 + $0xca] sm:$0xff]  ;;  %4552 = vrot.lane.b32.xlu1 %v11324_v46, %s8569_s11 }
 0x4b9   : > { %5076 = vst.msk [vmem:[#allocation2 + $0x158] sm:$0xff] %vm378_vm0, %v5044_v39  ;;  %v11326_v25 = vld [vmem:[#allocation3 + $0xc2] sm:$0xff]  ;;  %5716 = vst.msk [vmem:[#allocation2 + $0x148] sm:$0xff] %vm378_vm0, %v5684_v57 }
 0x4ba   : > { %5715 = vst.msk [vmem:[#allocation2 + $0x130] sm:$0xff] %vm378_vm0, %v11326_v25  ;;  %v11333_v3 = vld [vmem:[#allocation3 + $0xc8] sm:$0xff]  ;;  %v5839_v39 = vld [vmem:[%s13135_s5 + $0x40] sm:$0xff] }
 0x4bb   : > { %4439 = vst.msk [vmem:[#allocation2 + $0x198] sm:$0xff] %vm378_vm0, %v11333_v3  ;;  %v5045_v35 = vld [vmem:[#allocation3 + $0xc9] sm:$0xff]  ;;  %v8281_v7 = vpack.c.bf16 %v5840_v34, %v5839_v39  ;;  %v8116_v39 = vpop.f32.mrb[18].mxu1 }
 0x4bc   : > { %5077 = vst.msk [vmem:[#allocation2 + $0x170] sm:$0xff] %vm378_vm0, %v5045_v35  ;;  %v11345_v57 = vpop.eup %8390  ;;  %v3987_v35 = vadd.f32 %v10929_v41, %v3986_v50  ;;  %v4211_v43 = vpop.f32.mrb[19].mxu1  ;;  %v5843_v50 = vld [vmem:[%s13135_s5 + $0x60] sm:$0xff]  ;;  %v5844_v38 = vld [vmem:[%s13135_s5 + $0x68] sm:$0xff] }
 0x4bd   : > { %13222 = vst [vmem:[#allocation20_spill] sm:$0xff] %v11345_v57  ;;  %8282 = vmatpush1.bf16.msra.mxu1 %v8281_v7  ;;  %4374 = vst.msk [vmem:[#allocation3 + $0xd9] sm:$0xff] %vm378_vm0, %v11345_v57  ;;  %v11356_v17 = vpop.eup %8392  ;;  %v3991_v57 = vpop.f32.mrb[38].mxu0 }
 0x4be   : > { %8283 = vmatprep.subr.bf16.mxu1 %v13221_v48  ;;  %13223 = vst [vmem:[#allocation21_spill] sm:$0xff] %v11356_v17  ;;  %4375 = vst.msk [vmem:[#allocation3 + $0xe1] sm:$0xff] %vm378_vm0, %v11356_v17  ;;  %v3992_v58 = vadd.f32 %v10929_v41, %v3991_v57  ;;  %v4212_v5 = vadd.f32 %v4211_v43, %v3987_v35  ;;  %v3993_v37 = vpop.f32.mrb[39].mxu0 }
 0x4c0   : > { %v5776_v7 = vld [vmem:[#allocation2 + $0x148] sm:$0xff]  ;;  %v4217_v8 = vadd.f32 %v8116_v39, %v3992_v58  ;;  %8394 = vtanh.f32 %v4212_v5  ;;  %v5845_v58 = vld [vmem:[%s13135_s5 + $0x70] sm:$0xff] }
 0x4c1   : > { %v5773_v34 = vld [vmem:[#allocation2 + $0x130] sm:$0xff]  ;;  %8285 = vmatpush1.bf16.msra.mxu1 %v8284_v11  ;;  %v5846_v11 = vld [vmem:[%s13135_s5 + $0x78] sm:$0xff] }
 0x4c2   : > { %8161 = vmatprep.mubr.msk.f32.mxu0 %vm378_vm0, %v5773_v34  ;;  %8286 = vmatprep.subr.bf16.mxu1 %v13221_v48  ;;  %v8287_v34 = vpack.c.bf16 %v5844_v38, %v5843_v50  ;;  %8396 = vtanh.f32 %v4217_v8  ;;  %v8290_v39 = vpack.c.bf16 %v5846_v11, %v5845_v58 }
 0x4c3   : > { %8162 = vmatmul.mubr.msk.f32.gmra.mrb[76].mxu0 %vm378_vm0, %v5776_v7  ;;  %v3996_v7 = vpop.f32.mrb[40].mxu0 }
 0x4c4   : > { %v4472_v41 = vld [vmem:[#allocation3 + $0xd9] sm:$0xff]  ;;  %v3998_v38 = vpop.f32.mrb[41].mxu0 }
 0x4c5   : > { %v11371_v43 = vld [vmem:[#allocation3 + $0xd8] sm:$0xff]  ;;  %8288 = vmatpush1.bf16.msra.mxu1 %v8287_v34  ;;  %4554 = vrot.lane.b32.xlu0 %v4472_v41, %s8569_s11  ;;  %v11387_v5 = vld [vmem:[#allocation3 + $0xe1] sm:$0xff] }
 0x4c6   : > { %13224 = vst [vmem:[#allocation22_spill] sm:$0xff] %v11371_v43  ;;  %v11373_v37 = vld [vmem:[#allocation3 + $0xd9] sm:$0xff]  ;;  %4440 = vst.msk [vmem:[#allocation2 + $0x1b0] sm:$0xff] %vm378_vm0, %v11371_v43  ;;  %8289 = vmatprep.subr.bf16.mxu1 %v13221_v48  ;;  %v5686_v35 = vld [vmem:[#allocation3 + $0xe2] sm:$0xff]  ;;  %4556 = vrot.lane.b32.xlu1 %v11387_v5, %s8569_s11 }
 0x4c7   : > { %13225 = vst [vmem:[#allocation23_spill] sm:$0xff] %v11373_v37  ;;  %5078 = vst.msk [vmem:[#allocation2 + $0x188] sm:$0xff] %vm378_vm0, %v11373_v37  ;;  %v11389_v57 = vld [vmem:[#allocation3 + $0xda] sm:$0xff]  ;;  %v5848_v41 = vld [vmem:[%s13135_s5 + $0x88] sm:$0xff] }
 0x4c8   : > { %13226 = vst [vmem:[#allocation24_spill] sm:$0xff] %v11387_v5  ;;  %13227 = vst [vmem:[#allocation25_spill] sm:$0xff] %v11389_v57  ;;  %v11396_v50 = vld [vmem:[#allocation3 + $0xe0] sm:$0xff] }
 0x4c9   : > { %5717 = vst.msk [vmem:[#allocation2 + $0x160] sm:$0xff] %vm378_vm0, %v11389_v57  ;;  %5718 = vst.msk [vmem:[#allocation2 + $0x178] sm:$0xff] %vm378_vm0, %v5686_v35  ;;  %8291 = vmatpush1.bf16.msra.mxu1 %v8290_v39  ;;  %v5047_v8 = vld [vmem:[#allocation3 + $0xe1] sm:$0xff]  ;;  %v5849_v35 = vld [vmem:[%s13135_s5 + $0x90] sm:$0xff] }
 0x4ca   : > { %13228 = vst [vmem:[#allocation26_spill] sm:$0xff] %v11396_v50  ;;  %4441 = vst.msk [vmem:[#allocation2 + $0x1c8] sm:$0xff] %vm378_vm0, %v11396_v50  ;;  %8292 = vmatprep.subr.bf16.mxu1 %v13221_v48  ;;  %v5847_v34 = vld [vmem:[%s13135_s5 + $0x80] sm:$0xff]  ;;  %v11408_v11 = vpop.eup %8394  ;;  %v5850_v39 = vld [vmem:[%s13135_s5 + $0x98] sm:$0xff] }
 0x4cb   : > { %5079 = vst.msk [vmem:[#allocation2 + $0x1a0] sm:$0xff] %vm378_vm0, %v5047_v8  ;;  %v8293_v58 = vpack.c.bf16 %v5848_v41, %v5847_v34  ;;  %13229 = vst [vmem:[#allocation27_spill] sm:$0xff] %v11408_v11  ;;  %v11424_v8 = vld [vmem:[%s13134_s4] ss:$0 sm:$0xff]  ;;  %v8119_v41 = vpop.f32.mrb[20].mxu1  ;;  %v8296_v17 = vpack.c.bf16 %v5850_v39, %v5849_v35  ;;  %v4001_v26 = vpop.f32.mrb[42].mxu0 }
 0x4cc   : > { %4376 = vst.msk [vmem:[#allocation3 + $0xf1] sm:$0xff] %vm378_vm0, %v11408_v11  ;;  %v11419_v38 = vpop.eup %8396  ;;  %v3997_v34 = vadd.f32 %v11424_v8, %v3996_v7  ;;  %v4221_v40 = vpop.f32.mrb[21].mxu1  ;;  %v4002_v54 = vadd.f32 %v11424_v8, %v4001_v26  ;;  %v5851_v7 = vld [vmem:[%s13135_s5 + $0xa0] sm:$0xff]  ;;  %v5852_v35 = vld [vmem:[%s13135_s5 + $0xa8] sm:$0xff] }
 0x4cd   : > { %8294 = vmatpush1.bf16.msra.mxu1 %v8293_v58  ;;  %13230 = vst [vmem:[#allocation28_spill] sm:$0xff] %v11419_v38  ;;  %4377 = vst.msk [vmem:[#allocation3 + $0xf9] sm:$0xff] %vm378_vm0, %v11419_v38  ;;  %v4003_v37 = vpop.f32.mrb[43].mxu0  ;;  %v8299_v26 = vpack.c.bf16 %v5852_v35, %v5851_v7 }
 0x4ce   : > { %8295 = vmatprep.subr.bf16.mxu1 %v13221_v48  ;;  %v4222_v57 = vadd.f32 %v4221_v40, %v3997_v34  ;;  %v11432_v5 = vpop.permute.xlu0 %3640  ;;  %v4227_v39 = vadd.f32 %v8119_v41, %v4002_v54  ;;  %v5853_v54 = vld [vmem:[%s13135_s5 + $0xb0] sm:$0xff] }
 0x4cf   : > { %13231 = vst [vmem:[#allocation29_spill] sm:$0xff] %v11432_v5 }
 0x4d0   : > { %v5779_v58 = vld [vmem:[#allocation2 + $0x160] sm:$0xff]  ;;  %v5782_v11 = vld [vmem:[#allocation2 + $0x178] sm:$0xff]  ;;  %8398 = vtanh.f32 %v4222_v57 }
 0x4d1   : > { %8164 = vmatprep.mubr.msk.f32.mxu0 %vm378_vm0, %v5779_v58  ;;  %8297 = vmatpush1.bf16.msra.mxu1 %v8296_v17  ;;  %8400 = vtanh.f32 %v4227_v39  ;;  %v11441_v40 = vpop.permute.xlu1 %3644  ;;  %v5854_v57 = vld [vmem:[%s13135_s5 + $0xb8] sm:$0xff] }
 0x4d2   : > { %8165 = vmatmul.mubr.msk.f32.gmra.mrb[78].mxu0 %vm378_vm0, %v5782_v11  ;;  %8298 = vmatprep.subr.bf16.mxu1 %v13221_v48  ;;  %13232 = vst [vmem:[#allocation30_spill] sm:$0xff] %v11441_v40  ;;  %v4519_v34 = vpop.permute.xlu0 %4518  ;;  %v8302_v35 = vpack.c.bf16 %v5854_v57, %v5853_v54  ;;  %v5855_v54 = vld [vmem:[%s13135_s5 + $0xc0] sm:$0xff] }
 0x4d3   : > { %v4474_v37 = vld [vmem:[#allocation3 + $0xf1] sm:$0xff]  ;;  %4614 = vst.msk [vmem:[#allocation2] sm:$0xff] %vm764_vm2, %v4519_v34  ;;  %v4006_v39 = vpop.f32.mrb[44].mxu0  ;;  %v11483_v57 = vld [vmem:[#allocation3 + $0x1a] sm:$0xff] }
 0x4d4   : > { %v11443_v17 = vld [vmem:[#allocation3 + $0xf0] sm:$0xff]  ;;  %4558 = vrot.lane.b32.xlu0 %v4474_v37, %s8569_s11  ;;  %v4475_v41 = vld [vmem:[#allocation3 + $0xf9] sm:$0xff]  ;;  %v4008_v40 = vpop.f32.mrb[45].mxu0 }
 0x4d5   : > { %13233 = vst [vmem:[#allocation31_spill] sm:$0xff] %v11443_v17  ;;  %8300 = vmatpush1.bf16.msra.mxu1 %v8299_v26  ;;  %v11445_v11 = vld [vmem:[#allocation3 + $0xf1] sm:$0xff]  ;;  %4442 = vst.msk [vmem:[#allocation2 + $0x1e0] sm:$0xff] %vm378_vm0, %v11443_v17  ;;  %v5688_v7 = vld [vmem:[#allocation3 + $0xfa] sm:$0xff]  ;;  %4560 = vrot.lane.b32.xlu1 %v4475_v41, %s8569_s11  ;;  %v4521_v5 = vpop.permute.xlu1 %4520 }
 0x4d6   : > { %13234 = vst [vmem:[#allocation32_spill] sm:$0xff] %v11445_v11  ;;  %8301 = vmatprep.subr.bf16.mxu1 %v13221_v48  ;;  %5080 = vst.msk [vmem:[#allocation2 + $0x1b8] sm:$0xff] %vm378_vm0, %v11445_v11  ;;  %v11460_v58 = vld [vmem:[#allocation3 + $0xf2] sm:$0xff]  ;;  %v4523_v34 = vpop.permute.xlu0 %4522  ;;  %v5856_v40 = vld [vmem:[%s13135_s5 + $0xc8] sm:$0xff] }
 0x4d7   : > { %13235 = vst [vmem:[#allocation33_spill] sm:$0xff] %v11460_v58  ;;  %5719 = vst.msk [vmem:[#allocation2 + $0x190] sm:$0xff] %vm378_vm0, %v11460_v58  ;;  %v11466_v26 = vld [vmem:[#allocation3 + $0xf8] sm:$0xff]  ;;  %v8305_v41 = vpack.c.bf16 %v5856_v40, %v5855_v54 }
 0x4d8   : > { %5720 = vst.msk [vmem:[#allocation2 + $0x1a8] sm:$0xff] %vm378_vm0, %v5688_v7  ;;  %13236 = vst [vmem:[#allocation34_spill] sm:$0xff] %v11466_v26  ;;  %v11468_v37 = vld [vmem:[#allocation3 + $0xf9] sm:$0xff] }
 0x4d9   : > { %13237 = vst [vmem:[#allocation35_spill] sm:$0xff] %v11468_v37  ;;  %4443 = vst.msk [vmem:[#allocation2 + $0x1f8] sm:$0xff] %vm378_vm0, %v11466_v26  ;;  %8303 = vmatpush1.bf16.msra.mxu1 %v8302_v35  ;;  %5158 = vrot.lane.b32.xlu1 %v11483_v57, %s8569_s11  ;;  %v4525_v7 = vpop.permute.xlu1 %4524  ;;  %v4646_v35 = vld [vmem:[#allocation3 + $0x2] sm:$0xff]  ;;  %v5858_v54 = vld [vmem:[%s13135_s5 + $0xd8] sm:$0xff] }
 0x4da   : > { %5081 = vst.msk [vmem:[#allocation2 + $0x1d0] sm:$0xff] %vm378_vm0, %v11468_v37  ;;  %8304 = vmatprep.subr.bf16.mxu1 %v13221_v48  ;;  %v4527_v38 = vpop.permute.xlu0 %4526 }
 0x4db   : > { %4615 = vst.msk [vmem:[#allocation2 + $0x18] sm:$0xff] %vm764_vm2, %v4521_v5  ;;  %4616 = vst.msk [vmem:[#allocation2 + $0x30] sm:$0xff] %vm764_vm2, %v4523_v34  ;;  %v11487_v5 = vpop.eup %8398  ;;  %v5857_v34 = vld [vmem:[%s13135_s5 + $0xd0] sm:$0xff]  ;;  %v4011_v37 = vpop.f32.mrb[46].mxu0 }
 0x4dc   : > { %13238 = vst [vmem:[#allocation36_spill] sm:$0xff] %v11487_v5  ;;  %4378 = vst.msk [vmem:[#allocation3 + $0x109] sm:$0xff] %vm378_vm0, %v11487_v5  ;;  %v11499_v40 = vpop.eup %8400  ;;  %v8122_v5 = vpop.f32.mrb[22].mxu1  ;;  %v8308_v11 = vpack.c.bf16 %v5858_v54, %v5857_v34  ;;  %v4012_v26 = vadd.f32 %v11424_v8, %v4011_v37  ;;  %v5859_v34 = vld [vmem:[%s13135_s5 + $0xe0] sm:$0xff] }
 0x4dd   : > { %8306 = vmatpush1.bf16.msra.mxu1 %v8305_v41  ;;  %4617 = vst.msk [vmem:[#allocation2 + $0x48] sm:$0xff] %vm764_vm2, %v4525_v7  ;;  %v4007_v41 = vadd.f32 %v11424_v8, %v4006_v39  ;;  %4618 = vst.msk [vmem:[#allocation2 + $0x60] sm:$0xff] %vm764_vm2, %v4527_v38  ;;  %v4231_v17 = vpop.f32.mrb[23].mxu1  ;;  %4710 = vrot.lane.b32.xlu1 %v4646_v35, %s8571_s16  ;;  %v4529_v50 = vpop.permute.xlu1 %4528 }
 0x4de   : > { %8307 = vmatprep.subr.bf16.mxu1 %v13221_v48  ;;  %v5785_v58 = vld [vmem:[#allocation2 + $0x190] sm:$0xff]  ;;  %4379 = vst.msk [vmem:[#allocation3 + $0x111] sm:$0xff] %vm378_vm0, %v11499_v40  ;;  %v4013_v39 = vpop.f32.mrb[47].mxu0  ;;  %v4531_v38 = vpop.permute.xlu0 %4530  ;;  %v4237_v37 = vadd.f32 %v8122_v5, %v4012_v26 }
 0x4df   : > { %v5788_v7 = vld [vmem:[#allocation2 + $0x1a8] sm:$0xff]  ;;  %8167 = vmatprep.mubr.msk.f32.mxu0 %vm378_vm0, %v5785_v58  ;;  %v4232_v43 = vadd.f32 %v4231_v17, %v4007_v41  ;;  %4619 = vst.msk [vmem:[#allocation2 + $0x78] sm:$0xff] %vm764_vm2, %v4529_v50  ;;  %4620 = vst.msk [vmem:[#allocation2 + $0x90] sm:$0xff] %vm764_vm2, %v4531_v38 }
 0x4e0   : > { %8168 = vmatmul.mubr.msk.f32.gmra.mrb[80].mxu0 %vm378_vm0, %v5788_v7  ;;  %v5860_v58 = vld [vmem:[%s13135_s5 + $0xe8] sm:$0xff] }
 0x4e1   : > { %8309 = vmatpush1.bf16.msra.mxu1 %v8308_v11  ;;  %8402 = vtanh.f32 %v4232_v43  ;;  %v8311_v17 = vpack.c.bf16 %v5860_v58, %v5859_v34  ;;  %4902 = vrot.lane.b32.xlu1 %v11021_v33, %s8573_s18  ;;  %v4533_v50 = vpop.permute.xlu1 %4532  ;;  %v5861_v33 = vld [vmem:[%s13135_s5 + $0xf0] sm:$0xff]  ;;  %v5862_v43 = vld [vmem:[%s13135_s5 + $0xf8] sm:$0xff] }
 0x4e2   : > { %8310 = vmatprep.subr.bf16.mxu1 %v13221_v48  ;;  %8404 = vtanh.f32 %v4237_v37  ;;  %4621 = vst.msk [vmem:[#allocation2 + $0xa8] sm:$0xff] %vm764_vm2, %v4533_v50  ;;  %v8314_v41 = vpack.c.bf16 %v5862_v43, %v5861_v33 }
 0x4e3   : > { %v4476_v11 = vld [vmem:[#allocation3 + $0x109] sm:$0xff]  ;;  %v4016_v39 = vpop.f32.mrb[48].mxu0 }
 0x4e4   : > { %v11520_v35 = vld [vmem:[#allocation3 + $0x108] sm:$0xff]  ;;  %4562 = vrot.lane.b32.xlu0 %v4476_v11, %s8569_s11  ;;  %v4535_v38 = vpop.permute.xlu0 %4534  ;;  %v4018_v58 = vpop.f32.mrb[49].mxu0  ;;  %v4017_v11 = vadd.f32 %v11424_v8, %v4016_v39 }
 0x4e5   : > { %8312 = vmatpush1.bf16.msra.mxu1 %v8311_v17  ;;  %v11522_v54 = vld [vmem:[#allocation3 + $0x109] sm:$0xff]  ;;  %4444 = vst.msk [vmem:[#allocation2 + $0x210] sm:$0xff] %vm378_vm0, %v11520_v35  ;;  %v5690_v5 = vld [vmem:[#allocation3 + $0x112] sm:$0xff]  ;;  %5353 = vrot.lane.b32.xlu1 %v11067_v31, %s8571_s16 }
 0x4e6   : > { %8313 = vmatprep.subr.bf16.mxu1 %v13221_v48  ;;  %5082 = vst.msk [vmem:[#allocation2 + $0x1e8] sm:$0xff] %vm378_vm0, %v11522_v54  ;;  %v11537_v26 = vld [vmem:[#allocation3 + $0x10a] sm:$0xff]  ;;  %5722 = vst.msk [vmem:[#allocation2 + $0x1d8] sm:$0xff] %vm378_vm0, %v5690_v5  ;;  %v11575_v39 = vld [vmem:[#allocation3 + $0x22] sm:$0xff] }
 0x4e7   : > { %v11539_v7 = vld [vmem:[#allocation3 + $0x110] sm:$0xff]  ;;  %5721 = vst.msk [vmem:[#allocation2 + $0x1c0] sm:$0xff] %vm378_vm0, %v11537_v26  ;;  %v4537_v37 = vpop.permute.xlu1 %4536 }
 0x4e8   : > { %v11546_v34 = vld [vmem:[#allocation3 + $0x111] sm:$0xff]  ;;  %4445 = vst.msk [vmem:[#allocation2 + $0x228] sm:$0xff] %vm378_vm0, %v11539_v7  ;;  %5351 = vrot.lane.b32.xlu0 %v11054_v10, %s8571_s16 }
 0x4e9   : > { %4622 = vst.msk [vmem:[#allocation2 + $0xc0] sm:$0xff] %vm764_vm2, %v4535_v38  ;;  %8315 = vmatpush1.bf16.msra.mxu1 %v8314_v41  ;;  %4623 = vst.msk [vmem:[#allocation2 + $0xd8] sm:$0xff] %vm764_vm2, %v4537_v37  ;;  %5545 = vrot.lane.b32.xlu1 %v11116_v49, %s8573_s18 }
 0x4ea   : > { %5083 = vst.msk [vmem:[#allocation2 + $0x200] sm:$0xff] %vm378_vm0, %v11546_v34  ;;  %8330 = vmatprep.subr.bf16.mxu1 %v10710_v9 }
 0x4eb   : > { %v11559_v17 = vpop.eup %8402  ;;  %v8125_v33 = vpop.f32.mrb[24].mxu1 }
 0x4ec   : > { %13239 = vst [vmem:[#allocation37_spill] sm:$0xff] %v11559_v17  ;;  %4380 = vst.msk [vmem:[#allocation3 + $0x121] sm:$0xff] %vm378_vm0, %v11559_v17  ;;  %5543 = vrot.lane.b32.xlu0 %v11108_v1, %s8573_s18  ;;  %v11565_v50 = vpop.eup %8404  ;;  %v4021_v41 = vpop.f32.mrb[50].mxu0  ;;  %v4647_v17 = vld [vmem:[#allocation3 + $0xa] sm:$0xff] }
 0x4ed   : > { %13240 = vst [vmem:[#allocation38_spill] sm:$0xff] %v11565_v50  ;;  %v5794_v5 = vld [vmem:[#allocation2 + $0x1d8] sm:$0xff]  ;;  %4381 = vst.msk [vmem:[#allocation3 + $0x129] sm:$0xff] %vm378_vm0, %v11565_v50  ;;  %v4241_v49 = vpop.f32.mrb[25].mxu1  ;;  %5162 = vrot.lane.b32.xlu1 %v11059_v12, %s8569_s11  ;;  %v4022_v38 = vadd.f32 %v11424_v8, %v4021_v41  ;;  %v4023_v58 = vpop.f32.mrb[51].mxu0 }
 0x4ee   : > { %v5791_v43 = vld [vmem:[#allocation2 + $0x1c0] sm:$0xff]  ;;  %v4242_v1 = vadd.f32 %v4241_v49, %v4017_v11 }
 0x4ef   : > { %8170 = vmatprep.mubr.msk.f32.mxu0 %vm378_vm0, %v5791_v43  ;;  %v4247_v37 = vadd.f32 %v8125_v33, %v4022_v38 }
 0x4f0   : > { %8171 = vmatmul.mubr.msk.f32.gmra.mrb[82].mxu0 %vm378_vm0, %v5794_v5  ;;  %5160 = vrot.lane.b32.xlu0 %v11575_v39, %s8569_s11  ;;  %8406 = vtanh.f32 %v4242_v1 }
 0x4f1   : > { %4714 = vrot.lane.b32.xlu1 %v11483_v57, %s8571_s16  ;;  %8408 = vtanh.f32 %v4247_v37 }
 0x4f3   : > { %v11581_v43 = vld [vmem:[#allocation3 + $0x120] sm:$0xff]  ;;  %v4026_v41 = vpop.f32.mrb[52].mxu0 }
 0x4f4   : > { %v11583_v50 = vld [vmem:[#allocation3 + $0x121] sm:$0xff]  ;;  %4712 = vrot.lane.b32.xlu0 %v4647_v17, %s8571_s16  ;;  %4446 = vst.msk [vmem:[#allocation2 + $0x240] sm:$0xff] %vm378_vm0, %v11581_v43  ;;  %v5692_v33 = vld [vmem:[#allocation3 + $0x12a] sm:$0xff]  ;;  %v4539_v57 = vpop.permute.xlu0 %4538  ;;  %v4028_v49 = vpop.f32.mrb[53].mxu0 }
 0x4f5   : > { %5084 = vst.msk [vmem:[#allocation2 + $0x218] sm:$0xff] %vm378_vm0, %v11583_v50  ;;  %v5691_v11 = vld [vmem:[#allocation3 + $0x122] sm:$0xff]  ;;  %4906 = vrot.lane.b32.xlu1 %v11054_v10, %s8573_s18  ;;  %5724 = vst.msk [vmem:[#allocation2 + $0x208] sm:$0xff] %vm378_vm0, %v5692_v33 }
 0x4f6   : > { %v11590_v5 = vld [vmem:[#allocation3 + $0x128] sm:$0xff]  ;;  %5723 = vst.msk [vmem:[#allocation2 + $0x1f0] sm:$0xff] %vm378_vm0, %v5691_v11 }
 0x4f7   : > { %v11596_v17 = vld [vmem:[#allocation3 + $0x129] sm:$0xff]  ;;  %4447 = vst.msk [vmem:[#allocation2 + $0x258] sm:$0xff] %vm378_vm0, %v11590_v5  ;;  %v4541_v10 = vpop.permute.xlu1 %4540 }
 0x4f8   : > { %4624 = vst.msk [vmem:[#allocation2 + $0xf0] sm:$0xff] %vm764_vm2, %v4539_v57  ;;  %4904 = vrot.lane.b32.xlu0 %v11028_v30, %s8573_s18  ;;  %4625 = vst.msk [vmem:[#allocation2 + $0x108] sm:$0xff] %vm764_vm2, %v4541_v10  ;;  %v4027_v30 = vadd.f32 %v11424_v8, %v4026_v41 }
 0x4f9   : > { %5085 = vst.msk [vmem:[#allocation2 + $0x230] sm:$0xff] %vm378_vm0, %v11596_v17  ;;  %5357 = vrot.lane.b32.xlu1 %v11102_v14, %s8571_s16 }
 0x4fa   : > { %v11608_v38 = vpop.eup %8406 }
 0x4fb   : > { %13241 = vst [vmem:[#allocation39_spill] sm:$0xff] %v11608_v38  ;;  %4382 = vst.msk [vmem:[#allocation3 + $0x139] sm:$0xff] %vm378_vm0, %v11608_v38  ;;  %v11614_v1 = vpop.eup %8408  ;;  %v8128_v11 = vpop.f32.mrb[26].mxu1 }
 0x4fc   : > { %5355 = vrot.lane.b32.xlu0 %v11087_v47, %s8571_s16  ;;  %13242 = vst [vmem:[#allocation40_spill] sm:$0xff] %v11614_v1  ;;  %v5800_v37 = vld [vmem:[#allocation2 + $0x208] sm:$0xff]  ;;  %4383 = vst.msk [vmem:[#allocation3 + $0x141] sm:$0xff] %vm378_vm0, %v11614_v1  ;;  %v4031_v33 = vpop.f32.mrb[54].mxu0  ;;  %v4251_v49 = vpop.f32.mrb[27].mxu1 }
 0x4fd   : > { %v5797_v58 = vld [vmem:[#allocation2 + $0x1f0] sm:$0xff]  ;;  %5549 = vrot.lane.b32.xlu1 %v11132_v18, %s8573_s18  ;;  %v4032_v57 = vadd.f32 %v11424_v8, %v4031_v33  ;;  %v4033_v10 = vpop.f32.mrb[55].mxu0  ;;  %v4252_v38 = vadd.f32 %v4251_v49, %v4027_v30 }
 0x4fe   : > { %8173 = vmatprep.mubr.msk.f32.mxu0 %vm378_vm0, %v5797_v58 }
 0x4ff   : > { %8174 = vmatmul.mubr.msk.f32.gmra.mrb[84].mxu0 %vm378_vm0, %v5800_v37  ;;  %v4257_v1 = vadd.f32 %v8128_v11, %v4032_v57  ;;  %8410 = vtanh.f32 %v4252_v38 }
 0x500   : > { %5547 = vrot.lane.b32.xlu0 %v11121_v59, %s8573_s18 }
 0x501   : > { %5166 = vrot.lane.b32.xlu1 %v11094_v53, %s8569_s11  ;;  %8412 = vtanh.f32 %v4257_v1 }
 0x502   : > { %v11628_v41 = vld [vmem:[#allocation3 + $0x138] sm:$0xff] }
 0x503   : > { %v11630_v58 = vld [vmem:[#allocation3 + $0x139] sm:$0xff]  ;;  %4448 = vst.msk [vmem:[#allocation2 + $0x270] sm:$0xff] %vm378_vm0, %v11628_v41  ;;  %v11640_v18 = vld [vmem:[#allocation3 + $0x141] sm:$0xff]  ;;  %v4036_v38 = vpop.f32.mrb[56].mxu0 }
 0x504   : > { %5164 = vrot.lane.b32.xlu0 %v11061_v36, %s8569_s11  ;;  %5086 = vst.msk [vmem:[#allocation2 + $0x248] sm:$0xff] %vm378_vm0, %v11630_v58  ;;  %v11638_v59 = vld [vmem:[#allocation3 + $0x140] sm:$0xff]  ;;  %5087 = vst.msk [vmem:[#allocation2 + $0x260] sm:$0xff] %vm378_vm0, %v11640_v18  ;;  %v4038_v11 = vpop.f32.mrb[57].mxu0 }
 0x505   : > { %4718 = vrot.lane.b32.xlu1 %v11059_v12, %s8571_s16  ;;  %v4543_v1 = vpop.permute.xlu0 %4542  ;;  %4449 = vst.msk [vmem:[#allocation2 + $0x288] sm:$0xff] %vm378_vm0, %v11638_v59  ;;  %v5693_v37 = vld [vmem:[#allocation3 + $0x13a] sm:$0xff]  ;;  %v5694_v30 = vld [vmem:[#allocation3 + $0x142] sm:$0xff] }
 0x506   : > { %4626 = vst.msk [vmem:[#allocation2 + $0x120] sm:$0xff] %vm764_vm2, %v4543_v1  ;;  %v4545_v12 = vpop.permute.xlu1 %4544 }
 0x507   : > { %5725 = vst.msk [vmem:[#allocation2 + $0x220] sm:$0xff] %vm378_vm0, %v5693_v37  ;;  %5726 = vst.msk [vmem:[#allocation2 + $0x238] sm:$0xff] %vm378_vm0, %v5694_v30 }
 0x508   : > { %4716 = vrot.lane.b32.xlu0 %v11575_v39, %s8571_s16  ;;  %4627 = vst.msk [vmem:[#allocation2 + $0x138] sm:$0xff] %vm764_vm2, %v4545_v12  ;;  %v4037_v39 = vadd.f32 %v11424_v8, %v4036_v38 }
 0x509   : > { %4910 = vrot.lane.b32.xlu1 %v11087_v47, %s8573_s18  ;;  %v11656_v33 = vpop.eup %8410 }
 0x50a   : > { %4384 = vst.msk [vmem:[#allocation3 + $0x151] sm:$0xff] %vm378_vm0, %v11656_v33 }
 0x50b   : > { %v11660_v57 = vpop.eup %8412  ;;  %v8131_v49 = vpop.f32.mrb[28].mxu1 }
 0x50c   : > { %4908 = vrot.lane.b32.xlu0 %v11067_v31, %s8573_s18  ;;  %4385 = vst.msk [vmem:[#allocation3 + $0x159] sm:$0xff] %vm378_vm0, %v11660_v57  ;;  %v4041_v10 = vpop.f32.mrb[58].mxu0  ;;  %v4261_v1 = vpop.f32.mrb[29].mxu1 }
 0x50d   : > { %5361 = vrot.lane.b32.xlu1 %v11157_v63, %s8571_s16  ;;  %v4042_v47 = vadd.f32 %v11424_v8, %v4041_v10  ;;  %v4043_v37 = vpop.f32.mrb[59].mxu0  ;;  %v4262_v31 = vadd.f32 %v4261_v1, %v4037_v39 }
 0x50f   : > { %v4267_v30 = vadd.f32 %v8131_v49, %v4042_v47  ;;  %8414 = vtanh.f32 %v4262_v31 }
 0x510   : > { %5359 = vrot.lane.b32.xlu0 %v11138_v56, %s8571_s16 }
 0x511   : > { %5553 = vrot.lane.b32.xlu1 %v11145_v23, %s8573_s18  ;;  %8416 = vtanh.f32 %v4267_v30  ;;  %v11676_v38 = vld [vmem:[#allocation3 + $0x150] sm:$0xff] }
 0x512   : > { %v11678_v11 = vld [vmem:[#allocation3 + $0x151] sm:$0xff]  ;;  %4450 = vst.msk [vmem:[#allocation2 + $0x2a0] sm:$0xff] %vm378_vm0, %v11676_v38 }
 0x513   : > { %v11680_v12 = vld [vmem:[#allocation3 + $0x158] sm:$0xff]  ;;  %5088 = vst.msk [vmem:[#allocation2 + $0x278] sm:$0xff] %vm378_vm0, %v11678_v11 }
 0x514   : > { %5551 = vrot.lane.b32.xlu0 %v11136_v42, %s8573_s18  ;;  %v11682_v10 = vld [vmem:[#allocation3 + $0x159] sm:$0xff]  ;;  %v4547_v23 = vpop.permute.xlu0 %4546  ;;  %4451 = vst.msk [vmem:[#allocation2 + $0x2b8] sm:$0xff] %vm378_vm0, %v11680_v12 }
 0x515   : > { %5170 = vrot.lane.b32.xlu1 %v11147_v52, %s8569_s11  ;;  %5089 = vst.msk [vmem:[#allocation2 + $0x290] sm:$0xff] %vm378_vm0, %v11682_v10  ;;  %v5695_v42 = vld [vmem:[#allocation3 + $0x152] sm:$0xff]  ;;  %v5696_v39 = vld [vmem:[#allocation3 + $0x15a] sm:$0xff] }
 0x516   : > { %4628 = vst.msk [vmem:[#allocation2 + $0x150] sm:$0xff] %vm764_vm2, %v4547_v23  ;;  %v4549_v49 = vpop.permute.xlu1 %4548 }
 0x517   : > { %5727 = vst.msk [vmem:[#allocation2 + $0x250] sm:$0xff] %vm378_vm0, %v5695_v42  ;;  %5728 = vst.msk [vmem:[#allocation2 + $0x268] sm:$0xff] %vm378_vm0, %v5696_v39 }
 0x518   : > { %5168 = vrot.lane.b32.xlu0 %v11096_v60, %s8569_s11  ;;  %4629 = vst.msk [vmem:[#allocation2 + $0x168] sm:$0xff] %vm764_vm2, %v4549_v49  ;;  %v4046_v47 = vpop.f32.mrb[60].mxu0 }
 0x519   : > { %4722 = vrot.lane.b32.xlu1 %v11094_v53, %s8571_s16  ;;  %v11702_v1 = vpop.eup %8414  ;;  %v4048_v37 = vpop.f32.mrb[61].mxu0  ;;  %v4047_v53 = vadd.f32 %v11424_v8, %v4046_v47 }
 0x51a   : > { %13243 = vst [vmem:[#allocation41_spill] sm:$0xff] %v11702_v1  ;;  %4386 = vst.msk [vmem:[#allocation3 + $0x169] sm:$0xff] %vm378_vm0, %v11702_v1 }
 0x51b   : > { %v11706_v31 = vpop.eup %8416 }
 0x51c   : > { %4720 = vrot.lane.b32.xlu0 %v11061_v36, %s8571_s16  ;;  %4387 = vst.msk [vmem:[#allocation3 + $0x171] sm:$0xff] %vm378_vm0, %v11706_v31 }
 0x51d   : > { %4914 = vrot.lane.b32.xlu1 %v11138_v56, %s8573_s18  ;;  %v8134_v30 = vpop.f32.mrb[30].mxu1 }
 0x51e   : > { %v4271_v23 = vpop.f32.mrb[31].mxu1 }
 0x51f   : > { %v4272_v42 = vadd.f32 %v4271_v23, %v4047_v53 }
 0x520   : > { %4912 = vrot.lane.b32.xlu0 %v11102_v14, %s8573_s18 }
 0x521   : > { %5365 = vrot.lane.b32.xlu1 %v11195_v6, %s8571_s16  ;;  %8418 = vtanh.f32 %v4272_v42  ;;  %v11721_v39 = vld [vmem:[#allocation3 + $0x168] sm:$0xff] }
 0x522   : > { %v4051_v36 = vpop.f32.mrb[62].mxu0  ;;  %v11723_v49 = vld [vmem:[#allocation3 + $0x169] sm:$0xff]  ;;  %4452 = vst.msk [vmem:[#allocation2 + $0x2d0] sm:$0xff] %vm378_vm0, %v11721_v39 }
 0x523   : > { %v4052_v56 = vadd.f32 %v11424_v8, %v4051_v36  ;;  %v4053_v47 = vpop.f32.mrb[63].mxu0  ;;  %v11726_v37 = vld [vmem:[#allocation3 + $0x170] sm:$0xff]  ;;  %5090 = vst.msk [vmem:[#allocation2 + $0x2a8] sm:$0xff] %vm378_vm0, %v11723_v49 }
 0x524   : > { %5363 = vrot.lane.b32.xlu0 %v11176_v51, %s8571_s16  ;;  %v11728_v1 = vld [vmem:[#allocation3 + $0x171] sm:$0xff]  ;;  %4453 = vst.msk [vmem:[#allocation2 + $0x2e8] sm:$0xff] %vm378_vm0, %v11726_v37 }
 0x525   : > { %v11730_v14 = vld [vmem:[#allocation3 + $0x16a] sm:$0xff]  ;;  %5557 = vrot.lane.b32.xlu1 %v11183_v27, %s8573_s18  ;;  %v11738_v23 = vld [vmem:[#allocation3 + $0x172] sm:$0xff]  ;;  %5091 = vst.msk [vmem:[#allocation2 + $0x2c0] sm:$0xff] %vm378_vm0, %v11728_v1  ;;  %v4277_v8 = vadd.f32 %v8134_v30, %v4052_v56 }
 0x526   : > { %5729 = vst.msk [vmem:[#allocation2 + $0x280] sm:$0xff] %vm378_vm0, %v11730_v14  ;;  %5730 = vst.msk [vmem:[#allocation2 + $0x298] sm:$0xff] %vm378_vm0, %v11738_v23 }
 0x527   : > { %8420 = vtanh.f32 %v4277_v8 }
 0x528   : > { %5555 = vrot.lane.b32.xlu0 %v11174_v28, %s8573_s18 }
 0x529   : > { %v4551_v53 = vpop.permute.xlu0 %4550  ;;  %5174 = vrot.lane.b32.xlu1 %v11185_v55, %s8569_s11 }
 0x52a   : > { %4630 = vst.msk [vmem:[#allocation2 + $0x180] sm:$0xff] %vm764_vm2, %v4551_v53  ;;  %v4553_v27 = vpop.permute.xlu1 %4552 }
 0x52b   : > { %4631 = vst.msk [vmem:[#allocation2 + $0x198] sm:$0xff] %vm764_vm2, %v4553_v27  ;;  %v11756_v42 = vpop.eup %8418 }
 0x52c   : > { %5172 = vrot.lane.b32.xlu0 %v11149_v4, %s8569_s11  ;;  %4388 = vst.msk [vmem:[#allocation3 + $0x181] sm:$0xff] %vm378_vm0, %v11756_v42 }
 0x52d   : > { %4726 = vrot.lane.b32.xlu1 %v11147_v52, %s8571_s16 }
 0x530   : > { %4724 = vrot.lane.b32.xlu0 %v11096_v60, %s8571_s16 }
 0x531   : > { %4918 = vrot.lane.b32.xlu1 %v11176_v51, %s8573_s18  ;;  %v11766_v28 = vpop.eup %8420  ;;  %v11768_v30 = vpop.f32.mrb[64].mxu0 }
 0x532   : > { %4389 = vst.msk [vmem:[#allocation3 + $0x189] sm:$0xff] %vm378_vm0, %v11766_v28  ;;  %v11772_v36 = vpop.f32.mrb[65].mxu0 }
 0x533   : > { %v11776_v56 = vld [vmem:[#allocation3 + $0x181] sm:$0xff] }
 0x534   : > { %4916 = vrot.lane.b32.xlu0 %v11157_v63, %s8573_s18  ;;  %5092 = vst.msk [vmem:[#allocation2 + $0x2d8] sm:$0xff] %vm378_vm0, %v11776_v56 }
 0x535   : > { %5369 = vrot.lane.b32.xlu1 %v11233_v62, %s8571_s16 }
 0x537   : > { %v4555_v60 = vpop.permute.xlu0 %4554 }
 0x538   : > { %4632 = vst.msk [vmem:[#allocation2 + $0x1b0] sm:$0xff] %vm764_vm2, %v4555_v60  ;;  %5367 = vrot.lane.b32.xlu0 %v11214_v16, %s8571_s16  ;;  %v4557_v52 = vpop.permute.xlu1 %4556 }
 0x539   : > { %4633 = vst.msk [vmem:[#allocation2 + $0x1c8] sm:$0xff] %vm764_vm2, %v4557_v52  ;;  %5561 = vrot.lane.b32.xlu1 %v11221_v32, %s8573_s18  ;;  %v11788_v63 = vld [vmem:[#allocation3 + $0x189] sm:$0xff] }
 0x53a   : > { %v11790_v51 = vld [vmem:[#allocation3 + $0x182] sm:$0xff]  ;;  %v11794_v47 = vld [vmem:[#allocation3 + $0x18a] sm:$0xff]  ;;  %5093 = vst.msk [vmem:[#allocation2 + $0x2f0] sm:$0xff] %vm378_vm0, %v11788_v63 }
 0x53b   : > { %5731 = vst.msk [vmem:[#allocation2 + $0x2b0] sm:$0xff] %vm378_vm0, %v11790_v51  ;;  %5732 = vst.msk [vmem:[#allocation2 + $0x2c8] sm:$0xff] %vm378_vm0, %v11794_v47 }
 0x53c   : > { %5559 = vrot.lane.b32.xlu0 %v11212_v21, %s8573_s18 }
 0x53d   : > { %5178 = vrot.lane.b32.xlu1 %v11223_v24, %s8569_s11 }
 0x540   : > { %5176 = vrot.lane.b32.xlu0 %v11187_v15, %s8569_s11 }
 0x541   : > { %4730 = vrot.lane.b32.xlu1 %v11185_v55, %s8571_s16  ;;  %v11808_v21 = vpop.f32.mrb[66].mxu0 }
 0x542   : > { %v11810_v32 = vpop.f32.mrb[67].mxu0 }
 0x544   : > { %4728 = vrot.lane.b32.xlu0 %v11149_v4, %s8571_s16 }
 0x545   : > { %4922 = vrot.lane.b32.xlu1 %v11214_v16, %s8573_s18 }
 0x546   : > { %v4559_v53 = vpop.permute.xlu0 %4558 }
 0x547   : > { %4634 = vst.msk [vmem:[#allocation2 + $0x1e0] sm:$0xff] %vm764_vm2, %v4559_v53  ;;  %v4561_v8 = vpop.permute.xlu1 %4560 }
 0x548   : > { %4920 = vrot.lane.b32.xlu0 %v11195_v6, %s8573_s18  ;;  %4635 = vst.msk [vmem:[#allocation2 + $0x1f8] sm:$0xff] %vm764_vm2, %v4561_v8 }
 0x549   : > { %5373 = vrot.lane.b32.xlu1 %v11271_v13, %s8571_s16 }
 0x54b   : > { %v5159_v55 = vpop.permute.xlu1 %5158 }
 0x54c   : > { %5371 = vrot.lane.b32.xlu0 %v11252_v2, %s8571_s16  ;;  %5254 = vst.msk [vmem:[#allocation2 + $0x8] sm:$0xff] %vm764_vm2, %v5159_v55 }
 0x54d   : > { %5565 = vrot.lane.b32.xlu1 %v11259_v20, %s8573_s18 }
 0x54f   : > { %v4711_v4 = vpop.permute.xlu1 %4710 }
 0x550   : > { %5563 = vrot.lane.b32.xlu0 %v11250_v45, %s8573_s18  ;;  %4806 = vst.msk [vmem:[#allocation2] sm:$0xff] %vm1150_vm4, %v4711_v4 }
 0x551   : > { %5182 = vrot.lane.b32.xlu1 %v11261_v29, %s8569_s11 }
 0x552   : > { %v11832_v6 = vpop.f32.mrb[68].mxu0 }
 0x553   : > { %v11834_v16 = vpop.f32.mrb[69].mxu0  ;;  %v4903_v27 = vpop.permute.xlu1 %4902 }
 0x554   : > { %5180 = vrot.lane.b32.xlu0 %v11225_v22, %s8569_s11  ;;  %4998 = vst.msk [vmem:[#allocation2] sm:$0xff] %vm1537_vm6, %v4903_v27 }
 0x555   : > { %4734 = vrot.lane.b32.xlu1 %v11223_v24, %s8571_s16 }
 0x556   : > { %v4563_v45 = vpop.permute.xlu0 %4562 }
 0x557   : > { %4636 = vst.msk [vmem:[#allocation2 + $0x210] sm:$0xff] %vm764_vm2, %v4563_v45  ;;  %v5354_v20 = vpop.permute.xlu1 %5353 }
 0x558   : > { %4732 = vrot.lane.b32.xlu0 %v11187_v15, %s8571_s16 }
 0x559   : > { %4926 = vrot.lane.b32.xlu1 %v11252_v2, %s8573_s18 }
 0x55a   : > { %v5352_v29 = vpop.permute.xlu0 %5351 }
 0x55b   : > { %5447 = vst.msk [vmem:[#allocation2 + $0x8] sm:$0xff] %vm1150_vm4, %v5352_v29  ;;  %v5546_v22 = vpop.permute.xlu1 %5545  ;;  %v5735_v8 = vld [vmem:[#allocation2] sm:$0xff] }
 0x55c   : > { %4924 = vrot.lane.b32.xlu0 %v11233_v62, %s8573_s18  ;;  %v13244_v29 = vld [vmem:[#allocation26_spill] sm:$0xff] }
 0x55d   : > { %5377 = vrot.lane.b32.xlu1 %v11333_v3, %s8571_s16 }
 0x55e   : > { %v5544_v24 = vpop.permute.xlu0 %5543 }
 0x55f   : > { %5639 = vst.msk [vmem:[#allocation2 + $0x8] sm:$0xff] %vm1537_vm6, %v5544_v24  ;;  %v5163_v15 = vpop.permute.xlu1 %5162 }
 0x560   : > { %5375 = vrot.lane.b32.xlu0 %v11310_v0, %s8571_s16  ;;  %5256 = vst.msk [vmem:[#allocation2 + $0x38] sm:$0xff] %vm764_vm2, %v5163_v15  ;;  %v13245_v15 = vld [vmem:[#allocation22_spill] sm:$0xff] }
 0x561   : > { %5569 = vrot.lane.b32.xlu1 %v11324_v46, %s8573_s18 }
 0x562   : > { %v5161_v2 = vpop.permute.xlu0 %5160  ;;  %v11857_v60 = vpop.f32.mrb[70].mxu0 }
 0x563   : > { %5255 = vst.msk [vmem:[#allocation2 + $0x20] sm:$0xff] %vm764_vm2, %v5161_v2  ;;  %v11861_v62 = vpop.f32.mrb[71].mxu0  ;;  %v4715_v52 = vpop.permute.xlu1 %4714 }
 0x564   : > { %5448 = vst.msk [vmem:[#allocation2 + $0x20] sm:$0xff] %vm1150_vm4, %v5354_v20  ;;  %5567 = vrot.lane.b32.xlu0 %v11308_v19, %s8573_s18  ;;  %4808 = vst.msk [vmem:[#allocation2 + $0x30] sm:$0xff] %vm1150_vm4, %v4715_v52  ;;  %v4660_v19 = vld [vmem:[#allocation3 + $0xaa] sm:$0xff] }
 0x565   : > { %5640 = vst.msk [vmem:[#allocation2 + $0x20] sm:$0xff] %vm1537_vm6, %v5546_v22  ;;  %5186 = vrot.lane.b32.xlu1 %v11326_v25, %s8569_s11  ;;  %v4659_v25 = vld [vmem:[#allocation3 + $0x9a] sm:$0xff] }
 0x566   : > { %v4713_v46 = vpop.permute.xlu0 %4712  ;;  %v5736_v53 = vld [vmem:[#allocation2 + $0x8] sm:$0xff] }
 0x567   : > { %4807 = vst.msk [vmem:[#allocation2 + $0x18] sm:$0xff] %vm1150_vm4, %v4713_v46  ;;  %6027 = vmatprep.mubr.f32.mxu1 %v5736_v53  ;;  %v4907_v55 = vpop.permute.xlu1 %4906  ;;  %v13247_v46 = vld [vmem:[#allocation23_spill] sm:$0xff]  ;;  %v13248_v53 = vld [vmem:[#allocation25_spill] sm:$0xff] }
 0x568   : > { %5184 = vrot.lane.b32.xlu0 %v11263_v44, %s8569_s11  ;;  %6028 = vmatmul.mubr.f32.vlgmr.msra.gmra.mrb[32].mxu1 %v5735_v8  ;;  %5000 = vst.msk [vmem:[#allocation2 + $0x30] sm:$0xff] %vm1537_vm6, %v4907_v55 }
 0x569   : > { %8332 = vmatpush3.bf16.msra.mxu1 %v10710_v9  ;;  %4738 = vrot.lane.b32.xlu1 %v4660_v19, %s8571_s16  ;;  %v5109_v19 = vld [vmem:[#allocation3 + $0xca] sm:$0xff] }
 0x56a   : > { %v4905_v4 = vpop.permute.xlu0 %4904  ;;  %8331 = vmatprep.subr.bf16.mxu1 %v10731_v61 }
 0x56b   : > { %4999 = vst.msk [vmem:[#allocation2 + $0x18] sm:$0xff] %vm1537_vm6, %v4905_v4  ;;  %v5358_v27 = vpop.permute.xlu1 %5357 }
 0x56c   : > { %4736 = vrot.lane.b32.xlu0 %v4659_v25, %s8571_s16  ;;  %v5739_v45 = vld [vmem:[#allocation2 + $0x20] sm:$0xff] }
 0x56d   : > { %6032 = vmatprep.mubr.f32.mxu1 %v5739_v45  ;;  %8333 = vmatpush3.bf16.msra.mxu1 %v10731_v61 }
 0x56e   : > { %4930 = vrot.lane.b32.xlu1 %v11310_v0, %s8573_s18  ;;  %v5356_v44 = vpop.permute.xlu0 %5355  ;;  %8324 = vmatprep.subr.bf16.mxu1 %v13221_v48 }
 0x56f   : > { %5449 = vst.msk [vmem:[#allocation2 + $0x38] sm:$0xff] %vm1150_vm4, %v5356_v44  ;;  %v5550_v9 = vpop.permute.xlu1 %5549  ;;  %v5741_v4 = vld [vmem:[#allocation2 + $0x30] sm:$0xff] }
 0x570   : > { %4928 = vrot.lane.b32.xlu0 %v11271_v13, %s8573_s18  ;;  %v13246_v13 = vld [vmem:[#allocation24_spill] sm:$0xff] }
 0x571   : > { %v4661_v44 = vld [vmem:[#allocation3 + $0xb2] sm:$0xff] }
 0x572   : > { %v11885_v20 = vpop.f32.mrb[72].mxu0  ;;  %5381 = vrot.lane.b32.xlu1 %v13244_v29, %s8571_s16  ;;  %v5548_v22 = vpop.permute.xlu0 %5547  ;;  %v5738_v24 = vld [vmem:[#allocation2 + $0x18] sm:$0xff] }
 0x573   : > { %5641 = vst.msk [vmem:[#allocation2 + $0x38] sm:$0xff] %vm1537_vm6, %v5548_v22  ;;  %6033 = vmatmul.mubr.f32.gmra.mrb[34].mxu1 %v5738_v24  ;;  %v11890_v61 = vpop.f32.mrb[73].mxu0  ;;  %v5167_v0 = vpop.permute.xlu1 %5166 }
 0x574   : > { %5379 = vrot.lane.b32.xlu0 %v13245_v15, %s8571_s16  ;;  %5258 = vst.msk [vmem:[#allocation2 + $0x68] sm:$0xff] %vm764_vm2, %v5167_v0 }
 0x576   : > { %5573 = vrot.lane.b32.xlu1 %v13246_v13, %s8573_s18  ;;  %v5165_v2 = vpop.permute.xlu0 %5164 }
 0x577   : > { %5257 = vst.msk [vmem:[#allocation2 + $0x50] sm:$0xff] %vm764_vm2, %v5165_v2  ;;  %v4719_v52 = vpop.permute.xlu1 %4718 }
 0x578   : > { %5450 = vst.msk [vmem:[#allocation2 + $0x50] sm:$0xff] %vm1150_vm4, %v5358_v27  ;;  %5571 = vrot.lane.b32.xlu0 %v13247_v46, %s8573_s18  ;;  %4810 = vst.msk [vmem:[#allocation2 + $0x60] sm:$0xff] %vm1150_vm4, %v4719_v52  ;;  %v4662_v27 = vld [vmem:[#allocation3 + $0xc2] sm:$0xff] }
 0x579   : > { %5642 = vst.msk [vmem:[#allocation2 + $0x50] sm:$0xff] %vm1537_vm6, %v5550_v9  ;;  %v13249_v52 = vld [vmem:[#allocation34_spill] sm:$0xff] }
 0x57a   : > { %5190 = vrot.lane.b32.xlu1 %v13248_v53, %s8569_s11  ;;  %v4717_v8 = vpop.permute.xlu0 %4716  ;;  %v5742_v55 = vld [vmem:[#allocation2 + $0x38] sm:$0xff] }
 0x57b   : > { %4809 = vst.msk [vmem:[#allocation2 + $0x48] sm:$0xff] %vm1150_vm4, %v4717_v8  ;;  %6037 = vmatprep.mubr.f32.mxu1 %v5742_v55  ;;  %v4911_v25 = vpop.permute.xlu1 %4910  ;;  %v13251_v55 = vld [vmem:[#allocation35_spill] sm:$0xff] }
 0x57c   : > { %5188 = vrot.lane.b32.xlu0 %v5109_v19, %s8569_s11  ;;  %6038 = vmatmul.mubr.f32.gmra.mrb[36].mxu1 %v5741_v4  ;;  %5002 = vst.msk [vmem:[#allocation2 + $0x60] sm:$0xff] %vm1537_vm6, %v4911_v25  ;;  %v13252_v25 = vld [vmem:[#allocation32_spill] sm:$0xff] }
 0x57e   : > { %4742 = vrot.lane.b32.xlu1 %v4662_v27, %s8571_s16  ;;  %v4909_v45 = vpop.permute.xlu0 %4908  ;;  %v13253_v27 = vld [vmem:[#allocation33_spill] sm:$0xff] }
 0x57f   : > { %5001 = vst.msk [vmem:[#allocation2 + $0x48] sm:$0xff] %vm1537_vm6, %v4909_v45  ;;  %v5362_v9 = vpop.permute.xlu1 %5361 }
 0x580   : > { %4740 = vrot.lane.b32.xlu0 %v4661_v44, %s8571_s16  ;;  %v5745_v22 = vld [vmem:[#allocation2 + $0x50] sm:$0xff] }
 0x581   : > { %6042 = vmatprep.mubr.f32.mxu1 %v5745_v22  ;;  %v11911_v24 = vpop.f32.mrb[74].mxu0  ;;  %v5111_v22 = vld [vmem:[#allocation3 + $0xe2] sm:$0xff] }
 0x582   : > { %4934 = vrot.lane.b32.xlu1 %v13245_v15, %s8573_s18  ;;  %v5360_v0 = vpop.permute.xlu0 %5359  ;;  %v11916_v13 = vpop.f32.mrb[75].mxu0  ;;  %v13250_v15 = vld [vmem:[#allocation31_spill] sm:$0xff] }
 0x583   : > { %5451 = vst.msk [vmem:[#allocation2 + $0x68] sm:$0xff] %vm1150_vm4, %v5360_v0  ;;  %v5554_v2 = vpop.permute.xlu1 %5553  ;;  %v5747_v0 = vld [vmem:[#allocation2 + $0x60] sm:$0xff] }
 0x584   : > { %4932 = vrot.lane.b32.xlu0 %v11333_v3, %s8573_s18 }
 0x586   : > { %5385 = vrot.lane.b32.xlu1 %v13249_v52, %s8571_s16  ;;  %v5552_v46 = vpop.permute.xlu0 %5551  ;;  %v5744_v53 = vld [vmem:[#allocation2 + $0x48] sm:$0xff] }
 0x587   : > { %5643 = vst.msk [vmem:[#allocation2 + $0x68] sm:$0xff] %vm1537_vm6, %v5552_v46  ;;  %6043 = vmatmul.mubr.f32.gmra.mrb[38].mxu1 %v5744_v53  ;;  %v5171_v8 = vpop.permute.xlu1 %5170 }
 0x588   : > { %5383 = vrot.lane.b32.xlu0 %v13250_v15, %s8571_s16  ;;  %5260 = vst.msk [vmem:[#allocation2 + $0x98] sm:$0xff] %vm764_vm2, %v5171_v8 }
 0x58a   : > { %5577 = vrot.lane.b32.xlu1 %v13251_v55, %s8573_s18  ;;  %v5169_v4 = vpop.permute.xlu0 %5168 }
 0x58b   : > { %5259 = vst.msk [vmem:[#allocation2 + $0x80] sm:$0xff] %vm764_vm2, %v5169_v4  ;;  %v4723_v3 = vpop.permute.xlu1 %4722 }
 0x58c   : > { %5452 = vst.msk [vmem:[#allocation2 + $0x80] sm:$0xff] %vm1150_vm4, %v5362_v9  ;;  %5575 = vrot.lane.b32.xlu0 %v13252_v25, %s8573_s18  ;;  %4812 = vst.msk [vmem:[#allocation2 + $0x90] sm:$0xff] %vm1150_vm4, %v4723_v3  ;;  %v4664_v9 = vld [vmem:[#allocation3 + $0xda] sm:$0xff] }
 0x58d   : > { %5644 = vst.msk [vmem:[#allocation2 + $0x80] sm:$0xff] %vm1537_vm6, %v5554_v2 }
 0x58e   : > { %5194 = vrot.lane.b32.xlu1 %v13253_v27, %s8569_s11  ;;  %v4721_v45 = vpop.permute.xlu0 %4720  ;;  %v5748_v44 = vld [vmem:[#allocation2 + $0x68] sm:$0xff] }
 0x58f   : > { %4811 = vst.msk [vmem:[#allocation2 + $0x78] sm:$0xff] %vm1150_vm4, %v4721_v45  ;;  %6047 = vmatprep.mubr.f32.mxu1 %v5748_v44  ;;  %v4915_v46 = vpop.permute.xlu1 %4914 }
 0x590   : > { %5192 = vrot.lane.b32.xlu0 %v5111_v22, %s8569_s11  ;;  %6048 = vmatmul.mubr.f32.gmra.mrb[40].mxu1 %v5747_v0  ;;  %5004 = vst.msk [vmem:[#allocation2 + $0x90] sm:$0xff] %vm1537_vm6, %v4915_v46 }
 0x592   : > { %4746 = vrot.lane.b32.xlu1 %v4664_v9, %s8571_s16  ;;  %v4913_v53 = vpop.permute.xlu0 %4912 }
 0x593   : > { %5003 = vst.msk [vmem:[#allocation2 + $0x78] sm:$0xff] %vm1537_vm6, %v4913_v53  ;;  %v5366_v55 = vpop.permute.xlu1 %5365  ;;  %v5113_v53 = vld [vmem:[#allocation3 + $0xfa] sm:$0xff] }
 0x594   : > { %4744 = vrot.lane.b32.xlu0 %v5109_v19, %s8571_s16  ;;  %v5751_v4 = vld [vmem:[#allocation2 + $0x80] sm:$0xff] }
 0x595   : > { %6052 = vmatprep.mubr.f32.mxu1 %v5751_v4 }
 0x596   : > { %v11939_v2 = vpop.f32.mrb[76].mxu0  ;;  %4938 = vrot.lane.b32.xlu1 %v13250_v15, %s8573_s18  ;;  %v5364_v3 = vpop.permute.xlu0 %5363 }
 0x597   : > { %v11943_v8 = vpop.f32.mrb[77].mxu0  ;;  %5453 = vst.msk [vmem:[#allocation2 + $0x98] sm:$0xff] %vm1150_vm4, %v5364_v3  ;;  %v5558_v25 = vpop.permute.xlu1 %5557 }
 0x598   : > { %4936 = vrot.lane.b32.xlu0 %v13244_v29, %s8573_s18 }
 0x59a   : > { %5389 = vrot.lane.b32.xlu1 %v11539_v7, %s8571_s16  ;;  %v5556_v27 = vpop.permute.xlu0 %5555  ;;  %v5750_v45 = vld [vmem:[#allocation2 + $0x78] sm:$0xff] }
 0x59b   : > { %5645 = vst.msk [vmem:[#allocation2 + $0x98] sm:$0xff] %vm1537_vm6, %v5556_v27  ;;  %6053 = vmatmul.mubr.f32.gmra.mrb[42].mxu1 %v5750_v45  ;;  %v5175_v19 = vpop.permute.xlu1 %5174 }
 0x59c   : > { %5387 = vrot.lane.b32.xlu0 %v11520_v35, %s8571_s16  ;;  %5262 = vst.msk [vmem:[#allocation2 + $0xc8] sm:$0xff] %vm764_vm2, %v5175_v19 }
 0x59e   : > { %5581 = vrot.lane.b32.xlu1 %v11546_v34, %s8573_s18  ;;  %v5173_v15 = vpop.permute.xlu0 %5172 }
 0x59f   : > { %5261 = vst.msk [vmem:[#allocation2 + $0xb0] sm:$0xff] %vm764_vm2, %v5173_v15  ;;  %v4727_v29 = vpop.permute.xlu1 %4726 }
 0x5a0   : > { %5454 = vst.msk [vmem:[#allocation2 + $0xb0] sm:$0xff] %vm1150_vm4, %v5366_v55  ;;  %5579 = vrot.lane.b32.xlu0 %v11522_v54, %s8573_s18  ;;  %4814 = vst.msk [vmem:[#allocation2 + $0xc0] sm:$0xff] %vm1150_vm4, %v4727_v29  ;;  %v5753_v55 = vld [vmem:[#allocation2 + $0x90] sm:$0xff] }
 0x5a1   : > { %5646 = vst.msk [vmem:[#allocation2 + $0xb0] sm:$0xff] %vm1537_vm6, %v5558_v25  ;;  %v4666_v54 = vld [vmem:[#allocation3 + $0xf2] sm:$0xff] }
 0x5a2   : > { %5198 = vrot.lane.b32.xlu1 %v11537_v26, %s8569_s11  ;;  %v4725_v0 = vpop.permute.xlu0 %4724  ;;  %v5754_v46 = vld [vmem:[#allocation2 + $0x98] sm:$0xff] }
 0x5a3   : > { %4813 = vst.msk [vmem:[#allocation2 + $0xa8] sm:$0xff] %vm1150_vm4, %v4725_v0  ;;  %6057 = vmatprep.mubr.f32.mxu1 %v5754_v46  ;;  %v4919_v4 = vpop.permute.xlu1 %4918  ;;  %v5116_v46 = vld [vmem:[#allocation3 + $0x122] sm:$0xff] }
 0x5a4   : > { %5196 = vrot.lane.b32.xlu0 %v5113_v53, %s8569_s11  ;;  %6058 = vmatmul.mubr.f32.gmra.mrb[44].mxu1 %v5753_v55  ;;  %5006 = vst.msk [vmem:[#allocation2 + $0xc0] sm:$0xff] %vm1537_vm6, %v4919_v4 }
 0x5a5   : > { %v11965_v44 = vpop.f32.mrb[78].mxu0 }
 0x5a6   : > { %v11970_v9 = vpop.f32.mrb[79].mxu0  ;;  %4750 = vrot.lane.b32.xlu1 %v4666_v54, %s8571_s16  ;;  %v4917_v3 = vpop.permute.xlu0 %4916  ;;  %v5115_v54 = vld [vmem:[#allocation3 + $0x112] sm:$0xff] }
 0x5a7   : > { %5005 = vst.msk [vmem:[#allocation2 + $0xa8] sm:$0xff] %vm1537_vm6, %v4917_v3  ;;  %v5370_v26 = vpop.permute.xlu1 %5369 }
 0x5a8   : > { %4748 = vrot.lane.b32.xlu0 %v5111_v22, %s8571_s16  ;;  %v5757_v25 = vld [vmem:[#allocation2 + $0xb0] sm:$0xff] }
 0x5a9   : > { %6062 = vmatprep.mubr.f32.mxu1 %v5757_v25 }
 0x5aa   : > { %4942 = vrot.lane.b32.xlu1 %v11520_v35, %s8573_s18  ;;  %v5368_v27 = vpop.permute.xlu0 %5367 }
 0x5ab   : > { %5455 = vst.msk [vmem:[#allocation2 + $0xc8] sm:$0xff] %vm1150_vm4, %v5368_v27  ;;  %v5562_v45 = vpop.permute.xlu1 %5561  ;;  %v5759_v3 = vld [vmem:[#allocation2 + $0xc0] sm:$0xff] }
 0x5ac   : > { %4940 = vrot.lane.b32.xlu0 %v13249_v52, %s8573_s18 }
 0x5ae   : > { %5393 = vrot.lane.b32.xlu1 %v11590_v5, %s8571_s16  ;;  %v5560_v19 = vpop.permute.xlu0 %5559  ;;  %v5756_v15 = vld [vmem:[#allocation2 + $0xa8] sm:$0xff] }
 0x5af   : > { %5647 = vst.msk [vmem:[#allocation2 + $0xc8] sm:$0xff] %vm1537_vm6, %v5560_v19  ;;  %6063 = vmatmul.mubr.f32.gmra.mrb[46].mxu1 %v5756_v15  ;;  %v5179_v22 = vpop.permute.xlu1 %5178 }
 0x5b0   : > { %5391 = vrot.lane.b32.xlu0 %v11581_v43, %s8571_s16  ;;  %5264 = vst.msk [vmem:[#allocation2 + $0xf8] sm:$0xff] %vm764_vm2, %v5179_v22 }
 0x5b2   : > { %5585 = vrot.lane.b32.xlu1 %v11596_v17, %s8573_s18  ;;  %v5177_v52 = vpop.permute.xlu0 %5176 }
 0x5b3   : > { %v11988_v35 = vpop.f32.mrb[80].mxu0  ;;  %5263 = vst.msk [vmem:[#allocation2 + $0xe0] sm:$0xff] %vm764_vm2, %v5177_v52  ;;  %v4731_v0 = vpop.permute.xlu1 %4730 }
 0x5b4   : > { %v11993_v29 = vpop.f32.mrb[81].mxu0  ;;  %5456 = vst.msk [vmem:[#allocation2 + $0xe0] sm:$0xff] %vm1150_vm4, %v5370_v26  ;;  %5583 = vrot.lane.b32.xlu0 %v11583_v50, %s8573_s18  ;;  %4816 = vst.msk [vmem:[#allocation2 + $0xf0] sm:$0xff] %vm1150_vm4, %v4731_v0  ;;  %v4668_v26 = vld [vmem:[#allocation3 + $0x10a] sm:$0xff] }
 0x5b5   : > { %5648 = vst.msk [vmem:[#allocation2 + $0xe0] sm:$0xff] %vm1537_vm6, %v5562_v45 }
 0x5b6   : > { %5202 = vrot.lane.b32.xlu1 %v5116_v46, %s8569_s11  ;;  %v4729_v55 = vpop.permute.xlu0 %4728  ;;  %v5760_v4 = vld [vmem:[#allocation2 + $0xc8] sm:$0xff] }
 0x5b7   : > { %4815 = vst.msk [vmem:[#allocation2 + $0xd8] sm:$0xff] %vm1150_vm4, %v4729_v55  ;;  %6067 = vmatprep.mubr.f32.mxu1 %v5760_v4  ;;  %v4923_v25 = vpop.permute.xlu1 %4922 }
 0x5b8   : > { %5200 = vrot.lane.b32.xlu0 %v5115_v54, %s8569_s11  ;;  %6068 = vmatmul.mubr.f32.gmra.mrb[48].mxu1 %v5759_v3  ;;  %5008 = vst.msk [vmem:[#allocation2 + $0xf0] sm:$0xff] %vm1537_vm6, %v4923_v25 }
 0x5ba   : > { %4754 = vrot.lane.b32.xlu1 %v4668_v26, %s8571_s16  ;;  %v4921_v27 = vpop.permute.xlu0 %4920 }
 0x5bb   : > { %5007 = vst.msk [vmem:[#allocation2 + $0xd8] sm:$0xff] %vm1537_vm6, %v4921_v27  ;;  %v5374_v45 = vpop.permute.xlu1 %5373 }
 0x5bc   : > { %4752 = vrot.lane.b32.xlu0 %v5113_v53, %s8571_s16  ;;  %v5763_v19 = vld [vmem:[#allocation2 + $0xe0] sm:$0xff] }
 0x5bd   : > { %6072 = vmatprep.mubr.f32.mxu1 %v5763_v19 }
 0x5be   : > { %4946 = vrot.lane.b32.xlu1 %v11581_v43, %s8573_s18  ;;  %v5372_v15 = vpop.permute.xlu0 %5371 }
 0x5bf   : > { %5457 = vst.msk [vmem:[#allocation2 + $0xf8] sm:$0xff] %vm1150_vm4, %v5372_v15  ;;  %v5566_v22 = vpop.permute.xlu1 %5565  ;;  %v5765_v25 = vld [vmem:[#allocation2 + $0xf0] sm:$0xff] }
 0x5c0   : > { %4944 = vrot.lane.b32.xlu0 %v11539_v7, %s8573_s18 }
 0x5c2   : > { %4564 = vrot.lane.b32.xlu1 %v11546_v34, %s8569_s11  ;;  %v5564_v0 = vpop.permute.xlu0 %5563  ;;  %v5762_v55 = vld [vmem:[#allocation2 + $0xd8] sm:$0xff] }
 0x5c3   : > { %v12012_v52 = vpop.f32.mrb[82].mxu0  ;;  %5649 = vst.msk [vmem:[#allocation2 + $0xf8] sm:$0xff] %vm1537_vm6, %v5564_v0  ;;  %6073 = vmatmul.mubr.f32.gmra.mrb[50].mxu1 %v5762_v55  ;;  %v5183_v43 = vpop.permute.xlu1 %5182 }
 0x5c4   : > { %v12017_v53 = vpop.f32.mrb[83].mxu0  ;;  %5395 = vrot.lane.b32.xlu0 %v11628_v41, %s8571_s16  ;;  %5266 = vst.msk [vmem:[#allocation2 + $0x128] sm:$0xff] %vm764_vm2, %v5183_v43  ;;  %v5118_v43 = vld [vmem:[#allocation3 + $0x13a] sm:$0xff] }
 0x5c6   : > { %4756 = vrot.lane.b32.xlu1 %v5115_v54, %s8571_s16  ;;  %v5181_v7 = vpop.permute.xlu0 %5180  ;;  %v5117_v54 = vld [vmem:[#allocation3 + $0x12a] sm:$0xff] }
 0x5c7   : > { %5265 = vst.msk [vmem:[#allocation2 + $0x110] sm:$0xff] %vm764_vm2, %v5181_v7  ;;  %v4735_v34 = vpop.permute.xlu1 %4734 }
 0x5c8   : > { %5458 = vst.msk [vmem:[#allocation2 + $0x110] sm:$0xff] %vm1150_vm4, %v5374_v45  ;;  %5587 = vrot.lane.b32.xlu0 %v11630_v58, %s8573_s18  ;;  %4818 = vst.msk [vmem:[#allocation2 + $0x120] sm:$0xff] %vm1150_vm4, %v4735_v34 }
 0x5c9   : > { %5650 = vst.msk [vmem:[#allocation2 + $0x110] sm:$0xff] %vm1537_vm6, %v5566_v22 }
 0x5ca   : > { %4948 = vrot.lane.b32.xlu1 %v11590_v5, %s8573_s18  ;;  %v4733_v4 = vpop.permute.xlu0 %4732  ;;  %v5766_v3 = vld [vmem:[#allocation2 + $0xf8] sm:$0xff] }
 0x5cb   : > { %4817 = vst.msk [vmem:[#allocation2 + $0x108] sm:$0xff] %vm1150_vm4, %v4733_v4  ;;  %6077 = vmatprep.mubr.f32.mxu1 %v5766_v3  ;;  %v4927_v26 = vpop.permute.xlu1 %4926 }
 0x5cc   : > { %5204 = vrot.lane.b32.xlu0 %v5117_v54, %s8569_s11  ;;  %6078 = vmatmul.mubr.f32.gmra.mrb[52].mxu1 %v5765_v25  ;;  %5010 = vst.msk [vmem:[#allocation2 + $0x120] sm:$0xff] %vm1537_vm6, %v4927_v26 }
 0x5ce   : > { %4566 = vrot.lane.b32.xlu1 %v11583_v50, %s8569_s11  ;;  %v4925_v27 = vpop.permute.xlu0 %4924 }
 0x5cf   : > { %5009 = vst.msk [vmem:[#allocation2 + $0x108] sm:$0xff] %vm1537_vm6, %v4925_v27  ;;  %v5378_v5 = vpop.permute.xlu1 %5377 }
 0x5d0   : > { %5397 = vrot.lane.b32.xlu0 %v11638_v59, %s8571_s16  ;;  %v5769_v45 = vld [vmem:[#allocation2 + $0x110] sm:$0xff] }
 0x5d1   : > { %6082 = vmatprep.mubr.f32.mxu1 %v5769_v45 }
 0x5d2   : > { %v12039_v19 = vpop.f32.mrb[84].mxu0  ;;  %4758 = vrot.lane.b32.xlu1 %v5116_v46, %s8571_s16  ;;  %v5376_v15 = vpop.permute.xlu0 %5375 }
 0x5d3   : > { %5459 = vst.msk [vmem:[#allocation2 + $0x128] sm:$0xff] %vm1150_vm4, %v5376_v15  ;;  %v12043_v22 = vpop.f32.mrb[85].mxu0  ;;  %v5570_v0 = vpop.permute.xlu1 %5569 }
 0x5d4   : > { %5589 = vrot.lane.b32.xlu0 %v11640_v18, %s8573_s18 }
 0x5d6   : > { %4950 = vrot.lane.b32.xlu1 %v11628_v41, %s8573_s18  ;;  %v5568_v50 = vpop.permute.xlu0 %5567  ;;  %v5768_v55 = vld [vmem:[#allocation2 + $0x108] sm:$0xff] }
 0x5d7   : > { %5651 = vst.msk [vmem:[#allocation2 + $0x128] sm:$0xff] %vm1537_vm6, %v5568_v50  ;;  %6083 = vmatmul.mubr.f32.gmra.mrb[54].mxu1 %v5768_v55  ;;  %v5187_v7 = vpop.permute.xlu1 %5186  ;;  %v5120_v50 = vld [vmem:[#allocation3 + $0x152] sm:$0xff] }
 0x5d8   : > { %5206 = vrot.lane.b32.xlu0 %v5118_v43, %s8569_s11  ;;  %5268 = vst.msk [vmem:[#allocation2 + $0x158] sm:$0xff] %vm764_vm2, %v5187_v7 }
 0x5da   : > { %4568 = vrot.lane.b32.xlu1 %v11596_v17, %s8569_s11  ;;  %v5185_v46 = vpop.permute.xlu0 %5184  ;;  %v5771_v17 = vld [vmem:[#allocation2 + $0x120] sm:$0xff] }
 0x5db   : > { %5267 = vst.msk [vmem:[#allocation2 + $0x140] sm:$0xff] %vm764_vm2, %v5185_v46  ;;  %v4739_v41 = vpop.permute.xlu1 %4738 }
 0x5dc   : > { %5460 = vst.msk [vmem:[#allocation2 + $0x140] sm:$0xff] %vm1150_vm4, %v5378_v5  ;;  %5399 = vrot.lane.b32.xlu0 %v11676_v38, %s8571_s16  ;;  %4820 = vst.msk [vmem:[#allocation2 + $0x150] sm:$0xff] %vm1150_vm4, %v4739_v41 }
 0x5dd   : > { %5652 = vst.msk [vmem:[#allocation2 + $0x140] sm:$0xff] %vm1537_vm6, %v5570_v0 }
 0x5de   : > { %4760 = vrot.lane.b32.xlu1 %v5117_v54, %s8571_s16  ;;  %v4737_v34 = vpop.permute.xlu0 %4736  ;;  %v5772_v4 = vld [vmem:[#allocation2 + $0x128] sm:$0xff] }
 0x5df   : > { %4819 = vst.msk [vmem:[#allocation2 + $0x138] sm:$0xff] %vm1150_vm4, %v4737_v34  ;;  %6087 = vmatprep.mubr.f32.mxu1 %v5772_v4  ;;  %v5119_v54 = vld [vmem:[#allocation3 + $0x142] sm:$0xff] }
 0x5e0   : > { %v4931_v3 = vpop.permute.xlu1 %4930  ;;  %5591 = vrot.lane.b32.xlu0 %v11678_v11, %s8573_s18  ;;  %6088 = vmatmul.mubr.f32.gmra.mrb[56].mxu1 %v5771_v17  ;;  %v5121_v17 = vld [vmem:[#allocation3 + $0x15a] sm:$0xff] }
 0x5e1   : > { %5012 = vst.msk [vmem:[#allocation2 + $0x150] sm:$0xff] %vm1537_vm6, %v4931_v3 }
 0x5e2   : > { %4952 = vrot.lane.b32.xlu1 %v11638_v59, %s8573_s18  ;;  %v4929_v25 = vpop.permute.xlu0 %4928 }
 0x5e3   : > { %5011 = vst.msk [vmem:[#allocation2 + $0x138] sm:$0xff] %vm1537_vm6, %v4929_v25 }
 0x5e4   : > { %v5382_v26 = vpop.permute.xlu1 %5381  ;;  %5208 = vrot.lane.b32.xlu0 %v5119_v54, %s8569_s11  ;;  %v5775_v27 = vld [vmem:[#allocation2 + $0x140] sm:$0xff] }
 0x5e5   : > { %6092 = vmatprep.mubr.f32.mxu1 %v5775_v27 }
 0x5e6   : > { %4570 = vrot.lane.b32.xlu1 %v11630_v58, %s8569_s11  ;;  %v5380_v5 = vpop.permute.xlu0 %5379 }
 0x5e7   : > { %5461 = vst.msk [vmem:[#allocation2 + $0x158] sm:$0xff] %vm1150_vm4, %v5380_v5 }
 0x5e8   : > { %v5574_v45 = vpop.permute.xlu1 %5573  ;;  %5401 = vrot.lane.b32.xlu0 %v11680_v12, %s8571_s16 }
 0x5ea   : > { %4762 = vrot.lane.b32.xlu1 %v5118_v43, %s8571_s16  ;;  %v5572_v59 = vpop.permute.xlu0 %5571  ;;  %v5774_v15 = vld [vmem:[#allocation2 + $0x138] sm:$0xff] }
 0x5eb   : > { %5653 = vst.msk [vmem:[#allocation2 + $0x158] sm:$0xff] %vm1537_vm6, %v5572_v59  ;;  %6093 = vmatmul.mubr.f32.gmra.mrb[58].mxu1 %v5774_v15 }
 0x5ec   : > { %v5191_v0 = vpop.permute.xlu1 %5190  ;;  %5593 = vrot.lane.b32.xlu0 %v11682_v10, %s8573_s18 }
 0x5ed   : > { %5270 = vst.msk [vmem:[#allocation2 + $0x188] sm:$0xff] %vm764_vm2, %v5191_v0 }
 0x5ee   : > { %4954 = vrot.lane.b32.xlu1 %v11676_v38, %s8573_s18  ;;  %v5189_v58 = vpop.permute.xlu0 %5188  ;;  %v5777_v38 = vld [vmem:[#allocation2 + $0x150] sm:$0xff] }
 0x5ef   : > { %5269 = vst.msk [vmem:[#allocation2 + $0x170] sm:$0xff] %vm764_vm2, %v5189_v58 }
 0x5f0   : > { %5462 = vst.msk [vmem:[#allocation2 + $0x170] sm:$0xff] %vm1150_vm4, %v5382_v26  ;;  %v4743_v55 = vpop.permute.xlu1 %4742  ;;  %5210 = vrot.lane.b32.xlu0 %v5120_v50, %s8569_s11 }
 0x5f1   : > { %5654 = vst.msk [vmem:[#allocation2 + $0x170] sm:$0xff] %vm1537_vm6, %v5574_v45 }
 0x5f2   : > { %4822 = vst.msk [vmem:[#allocation2 + $0x180] sm:$0xff] %vm1150_vm4, %v4743_v55  ;;  %4572 = vrot.lane.b32.xlu1 %v11640_v18, %s8569_s11  ;;  %v4741_v43 = vpop.permute.xlu0 %4740  ;;  %v5778_v7 = vld [vmem:[#allocation2 + $0x158] sm:$0xff] }
 0x5f3   : > { %4821 = vst.msk [vmem:[#allocation2 + $0x168] sm:$0xff] %vm1150_vm4, %v4741_v43  ;;  %6097 = vmatprep.mubr.f32.mxu1 %v5778_v7 }
 0x5f4   : > { %v4935_v46 = vpop.permute.xlu1 %4934  ;;  %5403 = vrot.lane.b32.xlu0 %v11721_v39, %s8571_s16  ;;  %6098 = vmatmul.mubr.f32.gmra.mrb[60].mxu1 %v5777_v38 }
 0x5f5   : > { %5014 = vst.msk [vmem:[#allocation2 + $0x180] sm:$0xff] %vm1537_vm6, %v4935_v46 }
 0x5f6   : > { %4764 = vrot.lane.b32.xlu1 %v5119_v54, %s8571_s16  ;;  %v4933_v41 = vpop.permute.xlu0 %4932 }
 0x5f7   : > { %5013 = vst.msk [vmem:[#allocation2 + $0x168] sm:$0xff] %vm1537_vm6, %v4933_v41 }
 0x5f8   : > { %v5386_v34 = vpop.permute.xlu1 %5385  ;;  %5595 = vrot.lane.b32.xlu0 %v11723_v49, %s8573_s18  ;;  %v5781_v18 = vld [vmem:[#allocation2 + $0x170] sm:$0xff] }
 0x5f9   : > { %6102 = vmatprep.mubr.f32.mxu1 %v5781_v18 }
 0x5fa   : > { %4956 = vrot.lane.b32.xlu1 %v11680_v12, %s8573_s18  ;;  %v5384_v4 = vpop.permute.xlu0 %5383 }
 0x5fb   : > { %5463 = vst.msk [vmem:[#allocation2 + $0x188] sm:$0xff] %vm1150_vm4, %v5384_v4 }
 0x5fc   : > { %v5578_v3 = vpop.permute.xlu1 %5577  ;;  %5212 = vrot.lane.b32.xlu0 %v5121_v17, %s8569_s11  ;;  %v5783_v45 = vld [vmem:[#allocation2 + $0x180] sm:$0xff] }
 0x5fe   : > { %4574 = vrot.lane.b32.xlu1 %v11678_v11, %s8569_s11  ;;  %v5576_v25 = vpop.permute.xlu0 %5575  ;;  %v5780_v54 = vld [vmem:[#allocation2 + $0x168] sm:$0xff] }
 0x5ff   : > { %5655 = vst.msk [vmem:[#allocation2 + $0x188] sm:$0xff] %vm1537_vm6, %v5576_v25  ;;  %6103 = vmatmul.mubr.f32.gmra.mrb[62].mxu1 %v5780_v54  ;;  %v5509_v25 = vld [vmem:[#allocation3 + $0x199] sm:$0xff] }
 0x600   : > { %v5195_v26 = vpop.permute.xlu1 %5194  ;;  %5405 = vrot.lane.b32.xlu0 %v11726_v37, %s8571_s16 }
 0x601   : > { %5272 = vst.msk [vmem:[#allocation2 + $0x1b8] sm:$0xff] %vm764_vm2, %v5195_v26 }
 0x602   : > { %4766 = vrot.lane.b32.xlu1 %v5120_v50, %s8571_s16  ;;  %v5193_v12 = vpop.permute.xlu0 %5192 }
 0x603   : > { %5271 = vst.msk [vmem:[#allocation2 + $0x1a0] sm:$0xff] %vm764_vm2, %v5193_v12 }
 0x604   : > { %5464 = vst.msk [vmem:[#allocation2 + $0x1a0] sm:$0xff] %vm1150_vm4, %v5386_v34  ;;  %v4747_v27 = vpop.permute.xlu1 %4746  ;;  %5597 = vrot.lane.b32.xlu0 %v11728_v1, %s8573_s18 }
 0x605   : > { %5656 = vst.msk [vmem:[#allocation2 + $0x1a0] sm:$0xff] %vm1537_vm6, %v5578_v3 }
 0x606   : > { %4824 = vst.msk [vmem:[#allocation2 + $0x1b0] sm:$0xff] %vm1150_vm4, %v4747_v27  ;;  %4958 = vrot.lane.b32.xlu1 %v11721_v39, %s8573_s18  ;;  %v4745_v11 = vpop.permute.xlu0 %4744  ;;  %v5784_v5 = vld [vmem:[#allocation2 + $0x188] sm:$0xff]  ;;  %v5315_v39 = vld [vmem:[#allocation3 + $0x180] sm:$0xff] }
 0x607   : > { %4823 = vst.msk [vmem:[#allocation2 + $0x198] sm:$0xff] %vm1150_vm4, %v4745_v11  ;;  %6107 = vmatprep.mubr.f32.mxu1 %v5784_v5  ;;  %v5318_v27 = vld [vmem:[#allocation3 + $0x1a0] sm:$0xff] }
 0x608   : > { %v4939_v59 = vpop.permute.xlu1 %4938  ;;  %5214 = vrot.lane.b32.xlu0 %v11730_v14, %s8569_s11  ;;  %6108 = vmatmul.mubr.f32.gmra.mrb[64].mxu1 %v5783_v45 }
 0x609   : > { %5016 = vst.msk [vmem:[#allocation2 + $0x1b0] sm:$0xff] %vm1537_vm6, %v4939_v59  ;;  %v6670_v59 = vld [vmem:[%s12164_s29 + $0x18] sm:$0xff] }
 0x60a   : > { %4576 = vrot.lane.b32.xlu1 %v11682_v10, %s8569_s11  ;;  %v4937_v15 = vpop.permute.xlu0 %4936 }
 0x60b   : > { %5015 = vst.msk [vmem:[#allocation2 + $0x198] sm:$0xff] %vm1537_vm6, %v4937_v15 }
 0x60c   : > { %v5390_v0 = vpop.permute.xlu1 %5389  ;;  %5407 = vrot.lane.b32.xlu0 %v5315_v39, %s8571_s16  ;;  %v5787_v58 = vld [vmem:[#allocation2 + $0x1a0] sm:$0xff] }
 0x60d   : > { %6112 = vmatprep.mubr.f32.mxu1 %v5787_v58 }
 0x60e   : > { %4768 = vrot.lane.b32.xlu1 %v5121_v17, %s8571_s16  ;;  %v5388_v50 = vpop.permute.xlu0 %5387  ;;  %v5317_v17 = vld [vmem:[#allocation3 + $0x198] sm:$0xff] }
 0x60f   : > { %5465 = vst.msk [vmem:[#allocation2 + $0x1b8] sm:$0xff] %vm1150_vm4, %v5388_v50 }
 0x610   : > { %v5582_v55 = vpop.permute.xlu1 %5581  ;;  %5599 = vrot.lane.b32.xlu0 %v11776_v56, %s8573_s18  ;;  %v5316_v56 = vld [vmem:[#allocation3 + $0x188] sm:$0xff] }
 0x612   : > { %4960 = vrot.lane.b32.xlu1 %v11726_v37, %s8573_s18  ;;  %v5580_v10 = vpop.permute.xlu0 %5579  ;;  %v5786_v43 = vld [vmem:[#allocation2 + $0x198] sm:$0xff] }
 0x613   : > { %5657 = vst.msk [vmem:[#allocation2 + $0x1b8] sm:$0xff] %vm1537_vm6, %v5580_v10  ;;  %6113 = vmatmul.mubr.f32.gmra.mrb[66].mxu1 %v5786_v43  ;;  %v6674_v43 = vld [vmem:[%s12164_s29 + $0x38] sm:$0xff] }
 0x614   : > { %v5199_v7 = vpop.permute.xlu1 %5198  ;;  %5216 = vrot.lane.b32.xlu0 %v11738_v23, %s8569_s11 }
 0x615   : > { %5274 = vst.msk [vmem:[#allocation2 + $0x1e8] sm:$0xff] %vm764_vm2, %v5199_v7 }
 0x616   : > { %4578 = vrot.lane.b32.xlu1 %v11723_v49, %s8569_s11  ;;  %v5197_v38 = vpop.permute.xlu0 %5196  ;;  %v5789_v49 = vld [vmem:[#allocation2 + $0x1b0] sm:$0xff] }
 0x617   : > { %5273 = vst.msk [vmem:[#allocation2 + $0x1d0] sm:$0xff] %vm764_vm2, %v5197_v38  ;;  %v6669_v38 = vld [vmem:[%s12164_s29 + $0x10] sm:$0xff] }
 0x618   : > { %5466 = vst.msk [vmem:[#allocation2 + $0x1d0] sm:$0xff] %vm1150_vm4, %v5390_v0  ;;  %v4751_v37 = vpop.permute.xlu1 %4750  ;;  %5409 = vrot.lane.b32.xlu0 %v5316_v56, %s8571_s16  ;;  %v6672_v0 = vld [vmem:[%s12164_s29 + $0x28] sm:$0xff] }
 0x619   : > { %5658 = vst.msk [vmem:[#allocation2 + $0x1d0] sm:$0xff] %vm1537_vm6, %v5582_v55  ;;  %v6667_v55 = vld [vmem:[%s12164_s29] sm:$0xff] }
 0x61a   : > { %4826 = vst.msk [vmem:[#allocation2 + $0x1e0] sm:$0xff] %vm1150_vm4, %v4751_v37  ;;  %4770 = vrot.lane.b32.xlu1 %v11730_v14, %s8571_s16  ;;  %v4749_v46 = vpop.permute.xlu0 %4748  ;;  %v5790_v41 = vld [vmem:[#allocation2 + $0x1b8] sm:$0xff] }
 0x61b   : > { %4825 = vst.msk [vmem:[#allocation2 + $0x1c8] sm:$0xff] %vm1150_vm4, %v4749_v46  ;;  %6117 = vmatprep.mubr.f32.mxu1 %v5790_v41  ;;  %v6676_v41 = vld [vmem:[%s12164_s29 + $0x48] sm:$0xff] }
 0x61c   : > { %v4943_v34 = vpop.permute.xlu1 %4942  ;;  %5601 = vrot.lane.b32.xlu0 %v11788_v63, %s8573_s18  ;;  %6118 = vmatmul.mubr.f32.gmra.mrb[68].mxu1 %v5789_v49 }
 0x61d   : > { %5018 = vst.msk [vmem:[#allocation2 + $0x1e0] sm:$0xff] %vm1537_vm6, %v4943_v34 }
 0x61e   : > { %4962 = vrot.lane.b32.xlu1 %v5315_v39, %s8573_s18  ;;  %v4941_v18 = vpop.permute.xlu0 %4940 }
 0x61f   : > { %5017 = vst.msk [vmem:[#allocation2 + $0x1c8] sm:$0xff] %vm1537_vm6, %v4941_v18 }
 0x620   : > { %v5394_v14 = vpop.permute.xlu1 %5393  ;;  %5218 = vrot.lane.b32.xlu0 %v11790_v51, %s8569_s11  ;;  %v5793_v4 = vld [vmem:[#allocation2 + $0x1d0] sm:$0xff] }
 0x621   : > { %6122 = vmatprep.mubr.f32.mxu1 %v5793_v4 }
 0x622   : > { %4580 = vrot.lane.b32.xlu1 %v11728_v1, %s8569_s11  ;;  %v5392_v63 = vpop.permute.xlu0 %5391 }
 0x623   : > { %5467 = vst.msk [vmem:[#allocation2 + $0x1e8] sm:$0xff] %vm1150_vm4, %v5392_v63 }
 0x624   : > { %v5586_v3 = vpop.permute.xlu1 %5585  ;;  %5411 = vrot.lane.b32.xlu0 %v5317_v17, %s8571_s16  ;;  %v5795_v45 = vld [vmem:[#allocation2 + $0x1e0] sm:$0xff]  ;;  %v6678_v17 = vld [vmem:[%s12164_s29 + $0x58] sm:$0xff] }
 0x626   : > { %4772 = vrot.lane.b32.xlu1 %v11738_v23, %s8571_s16  ;;  %v5584_v54 = vpop.permute.xlu0 %5583  ;;  %v5792_v51 = vld [vmem:[#allocation2 + $0x1c8] sm:$0xff] }
 0x627   : > { %5659 = vst.msk [vmem:[#allocation2 + $0x1e8] sm:$0xff] %vm1537_vm6, %v5584_v54  ;;  %6123 = vmatmul.mubr.f32.gmra.mrb[70].mxu1 %v5792_v51  ;;  %v6668_v23 = vld [vmem:[%s12164_s29 + $0x8] sm:$0xff] }
 0x628   : > { %v5203_v26 = vpop.permute.xlu1 %5202  ;;  %5603 = vrot.lane.b32.xlu0 %v5509_v25, %s8573_s18  ;;  %v6680_v51 = vld [vmem:[%s12164_s29 + $0x68] sm:$0xff] }
 0x629   : > { %5276 = vst.msk [vmem:[#allocation2 + $0x218] sm:$0xff] %vm764_vm2, %v5203_v26 }
 0x62a   : > { %4964 = vrot.lane.b32.xlu1 %v5316_v56, %s8573_s18  ;;  %v5201_v1 = vpop.permute.xlu0 %5200 }
 0x62b   : > { %5275 = vst.msk [vmem:[#allocation2 + $0x200] sm:$0xff] %vm764_vm2, %v5201_v1  ;;  %v6675_v1 = vld [vmem:[%s12164_s29 + $0x40] sm:$0xff] }
 0x62c   : > { %5468 = vst.msk [vmem:[#allocation2 + $0x200] sm:$0xff] %vm1150_vm4, %v5394_v14  ;;  %v4755_v12 = vpop.permute.xlu1 %4754  ;;  %5220 = vrot.lane.b32.xlu0 %v11794_v47, %s8569_s11  ;;  %v5510_v47 = vld [vmem:[#allocation3 + $0x1a1] sm:$0xff] }
 0x62d   : > { %5660 = vst.msk [vmem:[#allocation2 + $0x200] sm:$0xff] %vm1537_vm6, %v5586_v3  ;;  %v6671_v14 = vld [vmem:[%s12164_s29 + $0x20] sm:$0xff] }
 0x62e   : > { %4828 = vst.msk [vmem:[#allocation2 + $0x210] sm:$0xff] %vm1150_vm4, %v4755_v12  ;;  %6737 = vrot.lane.b32.xlu1 %v6668_v23, %s8569_s11  ;;  %v4753_v11 = vpop.permute.xlu0 %4752  ;;  %v5796_v5 = vld [vmem:[#allocation2 + $0x1e8] sm:$0xff] }
 0x62f   : > { %4827 = vst.msk [vmem:[#allocation2 + $0x1f8] sm:$0xff] %vm1150_vm4, %v4753_v11  ;;  %6127 = vmatprep.mubr.f32.mxu1 %v5796_v5  ;;  %v6682_v5 = vld [vmem:[%s12164_s29 + $0x78] sm:$0xff] }
 0x630   : > { %v4947_v15 = vpop.permute.xlu1 %4946  ;;  %5413 = vrot.lane.b32.xlu0 %v5318_v27, %s8571_s16  ;;  %6128 = vmatmul.mubr.f32.gmra.mrb[72].mxu1 %v5795_v45 }
 0x631   : > { %5020 = vst.msk [vmem:[#allocation2 + $0x210] sm:$0xff] %vm1537_vm6, %v4947_v15 }
 0x632   : > { %6741 = vrot.lane.b32.xlu1 %v6670_v59, %s8569_s11  ;;  %v4945_v39 = vpop.permute.xlu0 %4944  ;;  %v6677_v59 = vld [vmem:[%s12164_s29 + $0x50] sm:$0xff] }
 0x633   : > { %5019 = vst.msk [vmem:[#allocation2 + $0x1f8] sm:$0xff] %vm1537_vm6, %v4945_v39 }
 0x634   : > { %v4565_v58 = vpop.permute.xlu1 %4564  ;;  %5605 = vrot.lane.b32.xlu0 %v5510_v47, %s8573_s18  ;;  %v5799_v50 = vld [vmem:[#allocation2 + $0x200] sm:$0xff]  ;;  %v6684_v47 = vld [vmem:[%s12164_s29 + $0x88] sm:$0xff] }
 0x635   : > { %4637 = vst.msk [vmem:[#allocation2 + $0x228] sm:$0xff] %vm764_vm2, %v4565_v58  ;;  %6132 = vmatprep.mubr.f32.mxu1 %v5799_v50 }
 0x636   : > { %6745 = vrot.lane.b32.xlu1 %v6672_v0, %s8569_s11  ;;  %v5396_v10 = vpop.permute.xlu0 %5395 }
 0x637   : > { %5469 = vst.msk [vmem:[#allocation2 + $0x218] sm:$0xff] %vm1150_vm4, %v5396_v10  ;;  %v6686_v10 = vld [vmem:[%s12164_s29 + $0x98] sm:$0xff] }
 0x638   : > { %v4757_v7 = vpop.permute.xlu1 %4756  ;;  %6735 = vrot.lane.b32.xlu0 %v6667_v55, %s8569_s11  ;;  %v5801_v54 = vld [vmem:[#allocation2 + $0x210] sm:$0xff] }
 0x639   : > { %4829 = vst.msk [vmem:[#allocation2 + $0x228] sm:$0xff] %vm1150_vm4, %v4757_v7 }
 0x63a   : > { %6749 = vrot.lane.b32.xlu1 %v6674_v43, %s8569_s11  ;;  %v5588_v56 = vpop.permute.xlu0 %5587  ;;  %v5798_v37 = vld [vmem:[#allocation2 + $0x1f8] sm:$0xff] }
 0x63b   : > { %5661 = vst.msk [vmem:[#allocation2 + $0x218] sm:$0xff] %vm1537_vm6, %v5588_v56  ;;  %v6029_v46 = vpop.f32.mrb[32].mxu1  ;;  %6133 = vmatmul.mubr.f32.gmra.mrb[74].mxu1 %v5798_v37  ;;  %v6681_v56 = vld [vmem:[%s12164_s29 + $0x70] sm:$0xff] }
 0x63c   : > { %v12196_v49 = vadd.f32 %v11772_v36, %v6029_v46  ;;  %v4949_v34 = vpop.permute.xlu1 %4948  ;;  %v6031_v18 = vpop.f32.mrb[33].mxu1  ;;  %6739 = vrot.lane.b32.xlu0 %v6669_v38, %s8569_s11  ;;  %v6673_v36 = vld [vmem:[%s12164_s29 + $0x30] sm:$0xff]  ;;  %v6688_v46 = vld [vmem:[%s12164_s29 + $0xa8] sm:$0xff] }
 0x63d   : > { %5021 = vst.msk [vmem:[#allocation2 + $0x228] sm:$0xff] %vm1537_vm6, %v4949_v34  ;;  %v6690_v18 = vld [vmem:[%s12164_s29 + $0xb8] sm:$0xff] }
 0x63e   : > { %6753 = vrot.lane.b32.xlu1 %v6676_v41, %s8569_s11  ;;  %v5205_v4 = vpop.permute.xlu0 %5204 }
 0x63f   : > { %5277 = vst.msk [vmem:[#allocation2 + $0x230] sm:$0xff] %vm764_vm2, %v5205_v4  ;;  %v6685_v4 = vld [vmem:[%s12164_s29 + $0x90] sm:$0xff] }
 0x640   : > { %v4567_v63 = vpop.permute.xlu1 %4566  ;;  %6743 = vrot.lane.b32.xlu0 %v6671_v14, %s8569_s11 }
 0x641   : > { %4638 = vst.msk [vmem:[#allocation2 + $0x240] sm:$0xff] %vm764_vm2, %v4567_v63 }
 0x642   : > { %6757 = vrot.lane.b32.xlu1 %v6678_v17, %s8569_s11  ;;  %v5398_v3 = vpop.permute.xlu0 %5397  ;;  %v5802_v25 = vld [vmem:[#allocation2 + $0x218] sm:$0xff] }
 0x643   : > { %5470 = vst.msk [vmem:[#allocation2 + $0x230] sm:$0xff] %vm1150_vm4, %v5398_v3  ;;  %6137 = vmatprep.mubr.f32.mxu1 %v5802_v25 }
 0x644   : > { %v4759_v26 = vpop.permute.xlu1 %4758  ;;  %6747 = vrot.lane.b32.xlu0 %v6673_v36, %s8569_s11  ;;  %6138 = vmatmul.mubr.f32.gmra.mrb[76].mxu1 %v5801_v54  ;;  %v5804_v55 = vld [vmem:[#allocation2 + $0x228] sm:$0xff] }
 0x645   : > { %4830 = vst.msk [vmem:[#allocation2 + $0x240] sm:$0xff] %vm1150_vm4, %v4759_v26 }
 0x646   : > { %6761 = vrot.lane.b32.xlu1 %v6680_v51, %s8569_s11  ;;  %v6034_v23 = vpop.f32.mrb[34].mxu1  ;;  %v5590_v12 = vpop.permute.xlu0 %5589  ;;  %v6692_v51 = vld [vmem:[%s12164_s29 + $0xc8] sm:$0xff] }
 0x647   : > { %v12215_v27 = vadd.f32 %v11768_v30, %v6034_v23  ;;  %5662 = vst.msk [vmem:[#allocation2 + $0x230] sm:$0xff] %vm1537_vm6, %v5590_v12  ;;  %v6036_v11 = vpop.f32.mrb[35].mxu1  ;;  %v6679_v30 = vld [vmem:[%s12164_s29 + $0x60] sm:$0xff] }
 0x648   : > { %v4951_v45 = vpop.permute.xlu1 %4950  ;;  %6751 = vrot.lane.b32.xlu0 %v6675_v1, %s8569_s11  ;;  %v6687_v1 = vld [vmem:[%s12164_s29 + $0xa0] sm:$0xff]  ;;  %v6689_v11 = vld [vmem:[%s12164_s29 + $0xb0] sm:$0xff] }
 0x649   : > { %5022 = vst.msk [vmem:[#allocation2 + $0x240] sm:$0xff] %vm1537_vm6, %v4951_v45 }
 0x64a   : > { %6765 = vrot.lane.b32.xlu1 %v6682_v5, %s8569_s11  ;;  %v5207_v15 = vpop.permute.xlu0 %5206 }
 0x64b   : > { %5278 = vst.msk [vmem:[#allocation2 + $0x248] sm:$0xff] %vm764_vm2, %v5207_v15 }
 0x64c   : > { %v4569_v39 = vpop.permute.xlu1 %4568  ;;  %6755 = vrot.lane.b32.xlu0 %v6677_v59, %s8569_s11  ;;  %v6696_v59 = vld [vmem:[%s12164_s29 + $0xe8] sm:$0xff] }
 0x64d   : > { %4639 = vst.msk [vmem:[#allocation2 + $0x258] sm:$0xff] %vm764_vm2, %v4569_v39 }
 0x64e   : > { %6769 = vrot.lane.b32.xlu1 %v6684_v47, %s8569_s11  ;;  %v5400_v0 = vpop.permute.xlu0 %5399  ;;  %v5805_v58 = vld [vmem:[#allocation2 + $0x230] sm:$0xff] }
 0x64f   : > { %5471 = vst.msk [vmem:[#allocation2 + $0x248] sm:$0xff] %vm1150_vm4, %v5400_v0  ;;  %v6039_v50 = vpop.f32.mrb[36].mxu1  ;;  %6142 = vmatprep.mubr.f32.mxu1 %v5805_v58 }
 0x650   : > { %v12232_v43 = vadd.f32 %v11810_v32, %v6039_v50  ;;  %v4761_v7 = vpop.permute.xlu1 %4760  ;;  %v6041_v38 = vpop.f32.mrb[37].mxu1  ;;  %6759 = vrot.lane.b32.xlu0 %v6679_v30, %s8569_s11  ;;  %6143 = vmatmul.mubr.f32.gmra.mrb[78].mxu1 %v5804_v55  ;;  %v6683_v32 = vld [vmem:[%s12164_s29 + $0x80] sm:$0xff]  ;;  %v6698_v55 = vld [vmem:[%s12164_s29 + $0xf8] sm:$0xff] }
 0x651   : > { %4831 = vst.msk [vmem:[#allocation2 + $0x258] sm:$0xff] %vm1150_vm4, %v4761_v7  ;;  %v5807_v54 = vld [vmem:[#allocation2 + $0x240] sm:$0xff] }
 0x652   : > { %13254 = vst [vmem:[#allocation26_spill] sm:$0xff] %v12232_v43  ;;  %6773 = vrot.lane.b32.xlu1 %v6686_v10, %s8569_s11  ;;  %v5592_v37 = vpop.permute.xlu0 %5591  ;;  %v6691_v30 = vld [vmem:[%s12164_s29 + $0xc0] sm:$0xff]  ;;  %v6693_v10 = vld [vmem:[%s12164_s29 + $0xd0] sm:$0xff] }
 0x653   : > { %5663 = vst.msk [vmem:[#allocation2 + $0x248] sm:$0xff] %vm1537_vm6, %v5592_v37  ;;  %v13257_v37 = vld [vmem:[#allocation4_spill] sm:$0xff] }
 0x654   : > { %v4953_v41 = vpop.permute.xlu1 %4952  ;;  %6763 = vrot.lane.b32.xlu0 %v6681_v56, %s8569_s11  ;;  %v6695_v56 = vld [vmem:[%s12164_s29 + $0xe0] sm:$0xff] }
 0x655   : > { %5023 = vst.msk [vmem:[#allocation2 + $0x258] sm:$0xff] %vm1537_vm6, %v4953_v41 }
 0x656   : > { %6777 = vrot.lane.b32.xlu1 %v6688_v46, %s8569_s11  ;;  %v5209_v34 = vpop.permute.xlu0 %5208 }
 0x657   : > { %5279 = vst.msk [vmem:[#allocation2 + $0x260] sm:$0xff] %vm764_vm2, %v5209_v34 }
 0x658   : > { %v4571_v14 = vpop.permute.xlu1 %4570  ;;  %6767 = vrot.lane.b32.xlu0 %v6683_v32, %s8569_s11 }
 0x659   : > { %4640 = vst.msk [vmem:[#allocation2 + $0x270] sm:$0xff] %vm764_vm2, %v4571_v14  ;;  %v6697_v14 = vld [vmem:[%s12164_s29 + $0xf0] sm:$0xff] }
 0x65a   : > { %6781 = vrot.lane.b32.xlu1 %v6690_v18, %s8569_s11  ;;  %v6044_v17 = vpop.f32.mrb[38].mxu1  ;;  %v5402_v63 = vpop.permute.xlu0 %5401  ;;  %v5808_v36 = vld [vmem:[#allocation2 + $0x248] sm:$0xff] }
 0x65b   : > { %v12251_v3 = vadd.f32 %v11808_v21, %v6044_v17  ;;  %5472 = vst.msk [vmem:[#allocation2 + $0x260] sm:$0xff] %vm1150_vm4, %v5402_v63  ;;  %v6046_v25 = vpop.f32.mrb[39].mxu1  ;;  %6147 = vmatprep.mubr.f32.mxu1 %v5808_v36  ;;  %v6694_v21 = vld [vmem:[%s12164_s29 + $0xd8] sm:$0xff] }
 0x65c   : > { %v4763_v26 = vpop.permute.xlu1 %4762  ;;  %6771 = vrot.lane.b32.xlu0 %v6685_v4, %s8569_s11  ;;  %6148 = vmatmul.mubr.f32.gmra.mrb[80].mxu1 %v5807_v54  ;;  %v5810_v50 = vld [vmem:[#allocation2 + $0x258] sm:$0xff]  ;;  %v13259_v4 = vld [vmem:[#allocation7_spill] sm:$0xff] }
 0x65d   : > { %13255 = vst [vmem:[#allocation22_spill] sm:$0xff] %v12251_v3  ;;  %4832 = vst.msk [vmem:[#allocation2 + $0x270] sm:$0xff] %vm1150_vm4, %v4763_v26  ;;  %v13260_v25 = vld [vmem:[#allocation9_spill] sm:$0xff] }
 0x65e   : > { %6785 = vrot.lane.b32.xlu1 %v6692_v51, %s8569_s11  ;;  %v5594_v23 = vpop.permute.xlu0 %5593 }
 0x65f   : > { %5664 = vst.msk [vmem:[#allocation2 + $0x260] sm:$0xff] %vm1537_vm6, %v5594_v23 }
 0x660   : > { %v4955_v12 = vpop.permute.xlu1 %4954  ;;  %6775 = vrot.lane.b32.xlu0 %v6687_v1, %s8569_s11 }
 0x661   : > { %5024 = vst.msk [vmem:[#allocation2 + $0x270] sm:$0xff] %vm1537_vm6, %v4955_v12  ;;  %v13263_v12 = vld [vmem:[#allocation11_spill] sm:$0xff] }
 0x662   : > { %6789 = vrot.lane.b32.xlu1 %v6694_v21, %s8569_s11  ;;  %v5211_v5 = vpop.permute.xlu0 %5210  ;;  %v13262_v21 = vld [vmem:[#allocation5_spill] sm:$0xff] }
 0x663   : > { %5280 = vst.msk [vmem:[#allocation2 + $0x278] sm:$0xff] %vm764_vm2, %v5211_v5  ;;  %v6049_v45 = vpop.f32.mrb[40].mxu1 }
 0x664   : > { %v12268_v15 = vadd.f32 %v11834_v16, %v6049_v45  ;;  %v4573_v47 = vpop.permute.xlu1 %4572  ;;  %v6051_v39 = vpop.f32.mrb[41].mxu1  ;;  %6779 = vrot.lane.b32.xlu0 %v6689_v11, %s8569_s11  ;;  %v13264_v45 = vld [vmem:[#allocation6_spill] sm:$0xff] }
 0x665   : > { %4641 = vst.msk [vmem:[#allocation2 + $0x288] sm:$0xff] %vm764_vm2, %v4573_v47 }
 0x666   : > { %13256 = vst [vmem:[#allocation24_spill] sm:$0xff] %v12268_v15  ;;  %6793 = vrot.lane.b32.xlu1 %v6696_v59, %s8569_s11  ;;  %v5404_v0 = vpop.permute.xlu0 %5403  ;;  %v5811_v58 = vld [vmem:[#allocation2 + $0x260] sm:$0xff] }
 0x667   : > { %5473 = vst.msk [vmem:[#allocation2 + $0x278] sm:$0xff] %vm1150_vm4, %v5404_v0  ;;  %6152 = vmatprep.mubr.f32.mxu1 %v5811_v58  ;;  %v13266_v0 = vld [vmem:[#allocation8_spill] sm:$0xff]  ;;  %v13267_v58 = vld [vmem:[#allocation15_spill] sm:$0xff] }
 0x668   : > { %v4765_v16 = vpop.permute.xlu1 %4764  ;;  %6783 = vrot.lane.b32.xlu0 %v6691_v30, %s8569_s11  ;;  %6153 = vmatmul.mubr.f32.gmra.mrb[82].mxu1 %v5810_v50  ;;  %v5813_v36 = vld [vmem:[#allocation2 + $0x270] sm:$0xff] }
 0x669   : > { %4833 = vst.msk [vmem:[#allocation2 + $0x288] sm:$0xff] %vm1150_vm4, %v4765_v16 }
 0x66a   : > { %6797 = vrot.lane.b32.xlu1 %v6698_v55, %s8569_s11  ;;  %v5596_v7 = vpop.permute.xlu0 %5595 }
 0x66b   : > { %5665 = vst.msk [vmem:[#allocation2 + $0x278] sm:$0xff] %vm1537_vm6, %v5596_v7 }
 0x66c   : > { %v4957_v38 = vpop.permute.xlu1 %4956  ;;  %6787 = vrot.lane.b32.xlu0 %v6693_v10, %s8569_s11 }
 0x66d   : > { %5025 = vst.msk [vmem:[#allocation2 + $0x288] sm:$0xff] %vm1537_vm6, %v4957_v38  ;;  %v13269_v38 = vld [vmem:[#allocation10_spill] sm:$0xff] }
 0x66e   : > { %6897 = vrot.lane.b32.xlu1 %v13257_v37, %s8573_s18  ;;  %v6054_v46 = vpop.f32.mrb[42].mxu1  ;;  %v5213_v41 = vpop.permute.xlu0 %5212 }
 0x66f   : > { %v12287_v32 = vadd.f32 %v11832_v6, %v6054_v46  ;;  %5281 = vst.msk [vmem:[#allocation2 + $0x290] sm:$0xff] %vm764_vm2, %v5213_v41  ;;  %v6056_v34 = vpop.f32.mrb[43].mxu1  ;;  %v13271_v41 = vld [vmem:[#allocation12_spill] sm:$0xff] }
 0x670   : > { %v4575_v18 = vpop.permute.xlu1 %4574  ;;  %6791 = vrot.lane.b32.xlu0 %v6695_v56, %s8569_s11  ;;  %v13270_v56 = vld [vmem:[#allocation17_spill] sm:$0xff] }
 0x671   : > { %13258 = vst [vmem:[#allocation23_spill] sm:$0xff] %v12287_v32  ;;  %4642 = vst.msk [vmem:[#allocation2 + $0x2a0] sm:$0xff] %vm764_vm2, %v4575_v18 }
 0x672   : > { %6901 = vrot.lane.b32.xlu1 %v13259_v4, %s8573_s18  ;;  %v5406_v17 = vpop.permute.xlu0 %5405  ;;  %v5814_v63 = vld [vmem:[#allocation2 + $0x278] sm:$0xff] }
 0x673   : > { %5474 = vst.msk [vmem:[#allocation2 + $0x290] sm:$0xff] %vm1150_vm4, %v5406_v17  ;;  %6157 = vmatprep.mubr.f32.mxu1 %v5814_v63 }
 0x674   : > { %v4767_v6 = vpop.permute.xlu1 %4766  ;;  %6795 = vrot.lane.b32.xlu0 %v6697_v14, %s8569_s11  ;;  %6158 = vmatmul.mubr.f32.gmra.mrb[84].mxu1 %v5813_v36  ;;  %v5816_v39 = vld [vmem:[#allocation2 + $0x288] sm:$0xff] }
 0x675   : > { %4834 = vst.msk [vmem:[#allocation2 + $0x2a0] sm:$0xff] %vm1150_vm4, %v4767_v6  ;;  %v13274_v6 = vld [vmem:[#allocation14_spill] sm:$0xff] }
 0x676   : > { %6905 = vrot.lane.b32.xlu1 %v13260_v25, %s8573_s18  ;;  %v5598_v54 = vpop.permute.xlu0 %5597  ;;  %v13275_v25 = vld [vmem:[#allocation21_spill] sm:$0xff] }
 0x677   : > { %5666 = vst.msk [vmem:[#allocation2 + $0x290] sm:$0xff] %vm1537_vm6, %v5598_v54  ;;  %v6059_v51 = vpop.f32.mrb[44].mxu1 }
 0x678   : > { %v12302_v26 = vadd.f32 %v11861_v62, %v6059_v51  ;;  %v4959_v1 = vpop.permute.xlu1 %4958  ;;  %v6061_v23 = vpop.f32.mrb[45].mxu1  ;;  %6895 = vrot.lane.b32.xlu0 %v13262_v21, %s8573_s18  ;;  %v13265_v62 = vld [vmem:[#allocation13_spill] sm:$0xff] }
 0x679   : > { %5026 = vst.msk [vmem:[#allocation2 + $0x2a0] sm:$0xff] %vm1537_vm6, %v4959_v1  ;;  %v13276_v1 = vld [vmem:[#allocation16_spill] sm:$0xff] }
 0x67a   : > { %13261 = vst [vmem:[#allocation25_spill] sm:$0xff] %v12302_v26  ;;  %6909 = vrot.lane.b32.xlu1 %v13263_v12, %s8573_s18  ;;  %v5215_v11 = vpop.permute.xlu0 %5214  ;;  %v13278_v12 = vld [vmem:[#allocation18_spill] sm:$0xff] }
 0x67b   : > { %5282 = vst.msk [vmem:[#allocation2 + $0x2a8] sm:$0xff] %vm764_vm2, %v5215_v11 }
 0x67c   : > { %v4577_v5 = vpop.permute.xlu1 %4576  ;;  %6899 = vrot.lane.b32.xlu0 %v13264_v45, %s8573_s18 }
 0x67d   : > { %4643 = vst.msk [vmem:[#allocation2 + $0x2b8] sm:$0xff] %vm764_vm2, %v4577_v5 }
 0x67e   : > { %6913 = vrot.lane.b32.xlu1 %v13265_v62, %s8573_s18  ;;  %v5408_v59 = vpop.permute.xlu0 %5407  ;;  %v5817_v47 = vld [vmem:[#allocation2 + $0x290] sm:$0xff] }
 0x67f   : > { %5475 = vst.msk [vmem:[#allocation2 + $0x2a8] sm:$0xff] %vm1150_vm4, %v5408_v59  ;;  %6162 = vmatprep.mubr.f32.mxu1 %v5817_v47 }
 0x680   : > { %v4769_v30 = vpop.permute.xlu1 %4768  ;;  %6903 = vrot.lane.b32.xlu0 %v13266_v0, %s8573_s18  ;;  %6163 = vmatmul.mubr.f32.gmra.mrb[86].mxu1 %v5816_v39  ;;  %v5819_v4 = vld [vmem:[#allocation2 + $0x2a0] sm:$0xff] }
 0x681   : > { %4835 = vst.msk [vmem:[#allocation2 + $0x2b8] sm:$0xff] %vm1150_vm4, %v4769_v30  ;;  %v13280_v30 = vld [vmem:[#allocation20_spill] sm:$0xff] }
 0x682   : > { %6917 = vrot.lane.b32.xlu1 %v13267_v58, %s8573_s18  ;;  %v6064_v50 = vpop.f32.mrb[46].mxu1  ;;  %v5600_v55 = vpop.permute.xlu0 %5599  ;;  %v13282_v58 = vld [vmem:[#allocation27_spill] sm:$0xff] }
 0x683   : > { %v12322_v16 = vadd.f32 %v11857_v60, %v6064_v50  ;;  %5667 = vst.msk [vmem:[#allocation2 + $0x2a8] sm:$0xff] %vm1537_vm6, %v5600_v55  ;;  %v6066_v10 = vpop.f32.mrb[47].mxu1  ;;  %v13272_v60 = vld [vmem:[#allocation19_spill] sm:$0xff]  ;;  %v13283_v50 = vld [vmem:[#allocation40_spill] sm:$0xff] }
 0x684   : > { %v4961_v7 = vpop.permute.xlu1 %4960  ;;  %6907 = vrot.lane.b32.xlu0 %v13269_v38, %s8573_s18 }
 0x685   : > { %13268 = vst [vmem:[#allocation34_spill] sm:$0xff] %v12322_v16  ;;  %5027 = vst.msk [vmem:[#allocation2 + $0x2b8] sm:$0xff] %vm1537_vm6, %v4961_v7 }
 0x686   : > { %6921 = vrot.lane.b32.xlu1 %v13270_v56, %s8573_s18  ;;  %v5217_v37 = vpop.permute.xlu0 %5216  ;;  %v13285_v56 = vld [vmem:[#allocation36_spill] sm:$0xff] }
 0x687   : > { %5283 = vst.msk [vmem:[#allocation2 + $0x2c0] sm:$0xff] %vm764_vm2, %v5217_v37 }
 0x688   : > { %v4579_v46 = vpop.permute.xlu1 %4578  ;;  %6911 = vrot.lane.b32.xlu0 %v13271_v41, %s8573_s18 }
 0x689   : > { %4644 = vst.msk [vmem:[#allocation2 + $0x2d0] sm:$0xff] %vm764_vm2, %v4579_v46 }
 0x68a   : > { %6925 = vrot.lane.b32.xlu1 %v13272_v60, %s8573_s18  ;;  %v5410_v34 = vpop.permute.xlu0 %5409  ;;  %v5820_v18 = vld [vmem:[#allocation2 + $0x2a8] sm:$0xff]  ;;  %v13286_v60 = vld [vmem:[#allocation37_spill] sm:$0xff] }
 0x68b   : > { %5476 = vst.msk [vmem:[#allocation2 + $0x2c0] sm:$0xff] %vm1150_vm4, %v5410_v34  ;;  %v6069_v14 = vpop.f32.mrb[48].mxu1  ;;  %6167 = vmatprep.mubr.f32.mxu1 %v5820_v18  ;;  %v13287_v34 = vld [vmem:[#allocation39_spill] sm:$0xff] }
 0x68c   : > { %v12338_v17 = vadd.f32 %v11890_v61, %v6069_v14  ;;  %v4771_v63 = vpop.permute.xlu1 %4770  ;;  %v6071_v36 = vpop.f32.mrb[49].mxu1  ;;  %6915 = vrot.lane.b32.xlu0 %v13274_v6, %s8573_s18  ;;  %6168 = vmatmul.mubr.f32.gmra.mrb[88].mxu1 %v5819_v4  ;;  %v13277_v61 = vld [vmem:[#allocation28_spill] sm:$0xff]  ;;  %v5822_v47 = vld [vmem:[#allocation2 + $0x2b8] sm:$0xff] }
 0x68d   : > { %4836 = vst.msk [vmem:[#allocation2 + $0x2d0] sm:$0xff] %vm1150_vm4, %v4771_v63  ;;  %v6579_v63 = vld [vmem:[%s13136_s6 + $0x8] sm:$0xff] }
 0x68e   : > { %13273 = vst [vmem:[#allocation31_spill] sm:$0xff] %v12338_v17  ;;  %6929 = vrot.lane.b32.xlu1 %v13275_v25, %s8573_s18  ;;  %v5602_v54 = vpop.permute.xlu0 %5601  ;;  %v6581_v25 = vld [vmem:[%s13136_s6 + $0x18] sm:$0xff] }
 0x68f   : > { %5668 = vst.msk [vmem:[#allocation2 + $0x2c0] sm:$0xff] %vm1537_vm6, %v5602_v54 }
 0x690   : > { %v4963_v51 = vpop.permute.xlu1 %4962  ;;  %6919 = vrot.lane.b32.xlu0 %v13276_v1, %s8573_s18 }
 0x691   : > { %5028 = vst.msk [vmem:[#allocation2 + $0x2d0] sm:$0xff] %vm1537_vm6, %v4963_v51  ;;  %v5806_v51 = vld [vmem:[#allocation2 + $0x238] sm:$0xff] }
 0x692   : > { %6933 = vrot.lane.b32.xlu1 %v13277_v61, %s8573_s18  ;;  %v5219_v23 = vpop.permute.xlu0 %5218 }
 0x693   : > { %5284 = vst.msk [vmem:[#allocation2 + $0x2d8] sm:$0xff] %vm764_vm2, %v5219_v23  ;;  %v5809_v23 = vld [vmem:[#allocation2 + $0x250] sm:$0xff] }
 0x694   : > { %v4581_v21 = vpop.permute.xlu1 %4580  ;;  %6923 = vrot.lane.b32.xlu0 %v13278_v12, %s8573_s18  ;;  %v5812_v12 = vld [vmem:[#allocation2 + $0x268] sm:$0xff] }
 0x695   : > { %4645 = vst.msk [vmem:[#allocation2 + $0x2e8] sm:$0xff] %vm764_vm2, %v4581_v21 }
 0x696   : > { %6937 = vrot.lane.b32.xlu1 %v11499_v40, %s8573_s18  ;;  %v6074_v11 = vpop.f32.mrb[50].mxu1  ;;  %v5412_v5 = vpop.permute.xlu0 %5411  ;;  %v5823_v45 = vld [vmem:[#allocation2 + $0x2c0] sm:$0xff] }
 0x697   : > { %v12358_v62 = vadd.f32 %v11885_v20, %v6074_v11  ;;  %5477 = vst.msk [vmem:[#allocation2 + $0x2d8] sm:$0xff] %vm1150_vm4, %v5412_v5  ;;  %v6076_v59 = vpop.f32.mrb[51].mxu1  ;;  %6172 = vmatprep.mubr.f32.mxu1 %v5823_v45  ;;  %v13281_v40 = vld [vmem:[#allocation38_spill] sm:$0xff]  ;;  %v5818_v5 = vld [vmem:[#allocation2 + $0x298] sm:$0xff]  ;;  %v5821_v45 = vld [vmem:[#allocation2 + $0x2b0] sm:$0xff] }
 0x698   : > { %v4773_v39 = vpop.permute.xlu1 %4772  ;;  %6927 = vrot.lane.b32.xlu0 %v13280_v30, %s8573_s18  ;;  %6173 = vmatmul.mubr.f32.gmra.mrb[90].mxu1 %v5822_v47  ;;  %v5825_v41 = vld [vmem:[#allocation2 + $0x2d0] sm:$0xff]  ;;  %v5815_v11 = vld [vmem:[#allocation2 + $0x280] sm:$0xff]  ;;  %v5824_v30 = vld [vmem:[#allocation2 + $0x2c8] sm:$0xff] }
 0x699   : > { %13279 = vst [vmem:[#allocation35_spill] sm:$0xff] %v12358_v62  ;;  %4837 = vst.msk [vmem:[#allocation2 + $0x2e8] sm:$0xff] %vm1150_vm4, %v4773_v39  ;;  %v5827_v59 = vld [vmem:[#allocation2 + $0x2e0] sm:$0xff] }
 0x69a   : > { %6941 = vrot.lane.b32.xlu1 %v13281_v40, %s8573_s18  ;;  %v5604_v0 = vpop.permute.xlu0 %5603  ;;  %v5830_v40 = vld [vmem:[#allocation2 + $0x2f8] sm:$0xff] }
 0x69b   : > { %5669 = vst.msk [vmem:[#allocation2 + $0x2d8] sm:$0xff] %vm1537_vm6, %v5604_v0  ;;  %v13293_v0 = vld [vmem:[#allocation30_spill] sm:$0xff] }
 0x69c   : > { %v4965_v20 = vpop.permute.xlu1 %4964  ;;  %6931 = vrot.lane.b32.xlu0 %v13282_v58, %s8573_s18 }
 0x69d   : > { %5029 = vst.msk [vmem:[#allocation2 + $0x2e8] sm:$0xff] %vm1537_vm6, %v4965_v20  ;;  %v13294_v20 = vld [vmem:[#allocation29_spill] sm:$0xff] }
 0x69e   : > { %6945 = vrot.lane.b32.xlu1 %v13283_v50, %s8573_s18  ;;  %v5221_v55 = vpop.permute.xlu0 %5220 }
 0x69f   : > { %5285 = vst.msk [vmem:[#allocation2 + $0x2f0] sm:$0xff] %vm764_vm2, %v5221_v55  ;;  %v6079_v10 = vpop.f32.mrb[52].mxu1  ;;  %vm3647_vm2 = vcmask 31744  }
 0x6a0   : > { %v12374_v7 = vadd.f32 %v11916_v13, %v6079_v10  ;;  %v6081_v38 = vpop.f32.mrb[53].mxu1  ;;  %6935 = vrot.lane.b32.xlu0 %v13285_v56, %s8573_s18  ;;  %v3648_v58 = vsel %vm3647_vm2, %v13294_v20, %v13293_v0  ;;  %v6413_v20 = vsel %vm378_vm0, %v12196_v49, -inf }
 0x6a2   : > { %13284 = vst [vmem:[#allocation32_spill] sm:$0xff] %v12374_v7  ;;  %6949 = vrot.lane.b32.xlu1 %v11660_v57, %s8573_s18  ;;  %v5414_v37 = vpop.permute.xlu0 %5413  ;;  %v5826_v46 = vld [vmem:[#allocation2 + $0x2d8] sm:$0xff] }
 0x6a3   : > { %5478 = vst.msk [vmem:[#allocation2 + $0x2f0] sm:$0xff] %vm1150_vm4, %v5414_v37  ;;  %6177 = vmatprep.mubr.f32.mxu1 %v5826_v46  ;;  %vm6584_vm4 = vcmask 293888  }
 0x6a4   : > { %6939 = vrot.lane.b32.xlu0 %v13286_v60, %s8573_s18  ;;  %6178 = vmatmul.mubr.f32.gmra.mrb[92].mxu1 %v5825_v41  ;;  %v5828_v36 = vld [vmem:[#allocation2 + $0x2e8] sm:$0xff] }
 0x6a6   : > { %6953 = vrot.lane.b32.xlu1 %v11706_v31, %s8573_s18  ;;  %v5606_v13 = vpop.permute.xlu0 %5605  ;;  %v6578_v31 = vld [vmem:[%s13136_s6] sm:$0xff] }
 0x6a7   : > { %5670 = vst.msk [vmem:[#allocation2 + $0x2f0] sm:$0xff] %vm1537_vm6, %v5606_v13  ;;  %v8325_v6 = vpack.c.bf16 %v6579_v63, %v6578_v31 }
 0x6a8   : > { %6943 = vrot.lane.b32.xlu0 %v13287_v34, %s8573_s18 }
 0x6aa   : > { %6957 = vrot.lane.b32.xlu1 %v11766_v28, %s8573_s18  ;;  %v6084_v57 = vpop.f32.mrb[54].mxu1  ;;  %v13289_v28 = vld [vmem:[#allocation41_spill] sm:$0xff] }
 0x6ab   : > { %v12391_v18 = vadd.f32 %v11911_v24, %v6084_v57  ;;  %v6086_v14 = vpop.f32.mrb[55].mxu1  ;;  %v5803_v24 = vld [vmem:[#allocation2 + $0x220] sm:$0xff] }
 0x6ac   : > { %6947 = vrot.lane.b32.xlu0 %v11656_v33, %s8573_s18  ;;  %v6580_v33 = vld [vmem:[%s13136_s6 + $0x10] sm:$0xff] }
 0x6ad   : > { %13288 = vst [vmem:[#allocation33_spill] sm:$0xff] %v12391_v18  ;;  %v8328_v21 = vpack.c.bf16 %v6581_v25, %v6580_v33 }
 0x6ae   : > { %v5829_v4 = vld [vmem:[#allocation2 + $0x2f0] sm:$0xff] }
 0x6af   : > { %6182 = vmatprep.mubr.f32.mxu1 %v5829_v4 }
 0x6b0   : > { %6951 = vrot.lane.b32.xlu0 %v13289_v28, %s8573_s18  ;;  %6183 = vmatmul.mubr.f32.gmra.mrb[94].mxu1 %v5828_v36 }
 0x6b1   : > { %8176 = vmatprep.mubr.msk.f32.mxu1 %vm378_vm0, %v5803_v24 }
 0x6b3   : > { %v6089_v54 = vpop.f32.mrb[56].mxu1 }
 0x6b4   : > { %v12411_v1 = vadd.f32 %v11943_v8, %v6089_v54  ;;  %v6091_v61 = vpop.f32.mrb[57].mxu1  ;;  %6955 = vrot.lane.b32.xlu0 %v11756_v42, %s8573_s18  ;;  %8177 = vmatmul.mubr.msk.f32.vlgmr.msra.gmra.mrb[96].mxu1 %vm378_vm0, %v5806_v51  ;;  %v13291_v8 = vmov 0.0   ;;  %v6582_v42 = vld [vmem:[%s13136_s6 + $0x20] sm:$0xf] }
 0x6b5   : > { %8326 = vmatpush3.bf16.msra.mxu1 %v8325_v6  ;;  %8179 = vmatprep.mubr.msk.f32.mxu1 %vm378_vm0, %v5809_v23  ;;  %v12470_v23 = vpop.permute.xlu0 %6735 }
 0x6b6   : > { %13290 = vst [vmem:[#allocation4_spill] sm:$0xff] %v12411_v1  ;;  %8327 = vmatprep.subr.bf16.mxu1 %v13221_v48 }
 0x6b8   : > { %8180 = vmatmul.mubr.msk.f32.gmra.mrb[98].mxu1 %vm378_vm0, %v5812_v12 }
 0x6b9   : > { %8182 = vmatprep.mubr.msk.f32.mxu1 %vm378_vm0, %v5815_v11  ;;  %8329 = vmatpush3.bf16.msra.mxu1 %v8328_v21  ;;  %v12476_v11 = vpop.permute.xlu0 %6739 }
 0x6ba   : > { %8199 = vmatprep.subr.mxu1 %v13291_v8 }
 0x6bc   : > { %8183 = vmatmul.mubr.msk.f32.gmra.mrb[100].mxu1 %vm378_vm0, %v5818_v5 }
 0x6bd   : > { %8185 = vmatprep.mubr.msk.f32.mxu1 %vm378_vm0, %v5821_v45  ;;  %8200 = vmatpush3.msk.msra.mxu1 %vm3826_vm10, %v6582_v42  ;;  %v12480_v42 = vpop.permute.xlu0 %6743 }
 0x6be   : > { %v6094_v48 = vpop.f32.mrb[58].mxu1 }
 0x6bf   : > { %v12428_v47 = vadd.f32 %v11939_v2, %v6094_v48  ;;  %v6096_v39 = vpop.f32.mrb[59].mxu1 }
 0x6c0   : > { %8186 = vmatmul.mubr.msk.f32.gmra.mrb[102].mxu1 %vm378_vm0, %v5824_v30  ;;  %v6414_v39 = vsel %vm378_vm0, %v12215_v27, -inf }
 0x6c1   : > { %13292 = vst [vmem:[#allocation7_spill] sm:$0xff] %v12428_v47  ;;  %8188 = vmatprep.mubr.msk.f32.mxu1 %vm378_vm0, %v5827_v59  ;;  %v12486_v59 = vpop.permute.xlu0 %6747 }
 0x6c4   : > { %8189 = vmatmul.mubr.msk.f32.gmra.mrb[104].mxu1 %vm378_vm0, %v5830_v40 }
 0x6c5   : > { %8201 = vmatprep.mubr.msk.f32.mxu1 %vm8583_vm3, %v13291_v8  ;;  %v12492_v40 = vpop.permute.xlu0 %6751 }
 0x6c7   : > { %v6099_v50 = vpop.f32.mrb[60].mxu1 }
 0x6c8   : > { %v12437_v2 = vadd.f32 %v11970_v9, %v6099_v50  ;;  %v6101_v55 = vpop.f32.mrb[61].mxu1  ;;  %8202 = vmatmul.mubr.msk.f32.vlgmr.msra.gmra.mrb[106].mxu1 %vm6584_vm4, %v3648_v58  ;;  %v6415_v58 = vsel %vm378_vm0, %v12232_v43, -inf }
 0x6c9   : > { %v6418_v55 = vmax.f32 %v6413_v20, %v6414_v39  ;;  %v6429_v39 = vsel %vm378_vm0, %v12374_v7, -inf }
 0x6ca   : > { %13295 = vst [vmem:[#allocation9_spill] sm:$0xff] %v12437_v2 }
 0x6d2   : > { %v6104_v10 = vpop.f32.mrb[62].mxu1 }
 0x6d3   : > { %v12440_v38 = vadd.f32 %v11965_v44, %v6104_v10  ;;  %v6106_v56 = vpop.f32.mrb[63].mxu1  ;;  %v6416_v10 = vsel %vm378_vm0, %v12251_v3, -inf }
 0x6d4   : > { %v6420_v56 = vmax.f32 %v6415_v58, %v6418_v55  ;;  %v6431_v55 = vsel %vm378_vm0, %v12391_v18, -inf }
 0x6d5   : > { %13296 = vst [vmem:[#allocation5_spill] sm:$0xff] %v12440_v38 }
 0x6db   : > { %v6109_v37 = vpop.f32.mrb[64].mxu1 }
 0x6dc   : > { %v12443_v46 = vadd.f32 %v11993_v29, %v6109_v37  ;;  %v6111_v41 = vpop.f32.mrb[65].mxu1  ;;  %v6417_v37 = vsel %vm378_vm0, %v12268_v15, -inf }
 0x6de   : > { %13297 = vst [vmem:[#allocation11_spill] sm:$0xff] %v12443_v46 }
 0x6e6   : > { %v6114_v60 = vpop.f32.mrb[66].mxu1 }
 0x6e7   : > { %v12446_v13 = vadd.f32 %v11988_v35, %v6114_v60  ;;  %v6116_v34 = vpop.f32.mrb[67].mxu1  ;;  %v6422_v60 = vmax.f32 %v6416_v10, %v6420_v56  ;;  %v6433_v56 = vsel %vm378_vm0, %v12411_v1, -inf }
 0x6e8   : > { %v12506_v34 = vpop.permute.xlu0 %6755 }
 0x6e9   : > { %13298 = vst [vmem:[#allocation6_spill] sm:$0xff] %v12446_v13 }
 0x6ef   : > { %v6119_v57 = vpop.f32.mrb[68].mxu1 }
 0x6f0   : > { %v12449_v9 = vadd.f32 %v12017_v53, %v6119_v57  ;;  %v6121_v14 = vpop.f32.mrb[69].mxu1  ;;  %v6419_v57 = vsel %vm378_vm0, %v12287_v32, -inf  ;;  %v6699_v32 = vlaneseq }
 0x6f1   : > { %v6424_v14 = vmax.f32 %v6417_v37, %v6422_v60  ;;  %v6435_v60 = vsel %vm378_vm0, %v12428_v47, -inf }
 0x6f2   : > { %13299 = vst [vmem:[#allocation13_spill] sm:$0xff] %v12449_v9 }
 0x6fa   : > { %v6124_v4 = vpop.f32.mrb[70].mxu1 }
 0x6fb   : > { %v12452_v44 = vadd.f32 %v12012_v52, %v6124_v4  ;;  %v6126_v31 = vpop.f32.mrb[71].mxu1  ;;  %v6421_v4 = vsel %vm378_vm0, %v12302_v26, -inf }
 0x6fc   : > { %v6426_v31 = vmax.f32 %v6419_v57, %v6424_v14 }
 0x6fd   : > { %13300 = vst [vmem:[#allocation8_spill] sm:$0xff] %v12452_v44 }
 0x703   : > { %v6129_v63 = vpop.f32.mrb[72].mxu1 }
 0x704   : > { %v12455_v29 = vadd.f32 %v12043_v22, %v6129_v63  ;;  %v6131_v36 = vpop.f32.mrb[73].mxu1  ;;  %v12468_v22 = vpop.permute.xlu1 %6737  ;;  %v6423_v63 = vsel %vm378_vm0, %v12322_v16, -inf }
 0x706   : > { %13301 = vst [vmem:[#allocation15_spill] sm:$0xff] %v12455_v29 }
 0x708   : > { %v12474_v12 = vpop.permute.xlu1 %6741 }
 0x70c   : > { %v12478_v8 = vpop.permute.xlu1 %6745 }
 0x70e   : > { %v6134_v28 = vpop.f32.mrb[74].mxu1 }
 0x70f   : > { %v12458_v35 = vadd.f32 %v12039_v19, %v6134_v28  ;;  %v6136_v24 = vpop.f32.mrb[75].mxu1  ;;  %v6428_v28 = vmax.f32 %v6421_v4, %v6426_v31 }
 0x710   : > { %v12484_v48 = vpop.permute.xlu1 %6749  ;;  %v12516_v24 = vpop.permute.xlu0 %6759 }
 0x711   : > { %13302 = vst [vmem:[#allocation10_spill] sm:$0xff] %v12458_v35 }
 0x714   : > { %v12490_v30 = vpop.permute.xlu1 %6753 }
 0x717   : > { %v12460_v6 = vpop.f32.mrb[76].mxu1 }
 0x718   : > { %v6141_v53 = vpop.f32.mrb[77].mxu1  ;;  %v12504_v41 = vpop.permute.xlu1 %6757 }
 0x71c   : > { %v12514_v36 = vpop.permute.xlu1 %6761 }
 0x720   : > { %v12526_v20 = vpop.permute.xlu1 %6765 }
 0x723   : > { %v12462_v33 = vpop.f32.mrb[78].mxu1 }
 0x724   : > { %v6146_v25 = vpop.f32.mrb[79].mxu1  ;;  %v12536_v57 = vpop.permute.xlu1 %6769 }
 0x725   : > { %v6425_v25 = vsel %vm378_vm0, %v12338_v17, -inf }
 0x72f   : > { %v12464_v54 = vpop.f32.mrb[80].mxu1 }
 0x730   : > { %v6151_v52 = vpop.f32.mrb[81].mxu1 }
 0x73b   : > { %v12466_v51 = vpop.f32.mrb[82].mxu1 }
 0x73c   : > { %v6156_v61 = vpop.f32.mrb[83].mxu1 }
 0x73d   : > { %v6430_v61 = vmax.f32 %v6423_v63, %v6428_v28  ;;  %v6437_v63 = vsel %vm378_vm0, %v12437_v2, -inf }
 0x747   : > { %v12472_v21 = vpop.f32.mrb[84].mxu1 }
 0x748   : > { %v6161_v19 = vpop.f32.mrb[85].mxu1 }
 0x749   : > { %v6427_v19 = vsel %vm378_vm0, %v12358_v62, -inf }
 0x753   : > { %v12482_v5 = vpop.f32.mrb[86].mxu1 }
 0x754   : > { %v6166_v45 = vpop.f32.mrb[87].mxu1 }
 0x755   : > { %v6432_v45 = vmax.f32 %v6425_v25, %v6430_v61 }
 0x757   : > { %v6434_v58 = vmax.f32 %v6427_v19, %v6432_v45  ;;  %v12546_v19 = vpop.permute.xlu1 %6773  ;;  %v6441_v45 = vsel %vm378_vm0, %v12443_v46, -inf }
 0x759   : > { %v6436_v10 = vmax.f32 %v6429_v39, %v6434_v58 }
 0x75b   : > { %v6438_v37 = vmax.f32 %v6431_v55, %v6436_v10  ;;  %v6443_v55 = vsel %vm378_vm0, %v12446_v13, -inf }
 0x75d   : > { %v6440_v14 = vmax.f32 %v6433_v56, %v6438_v37  ;;  %v6445_v56 = vsel %vm378_vm0, %v12449_v9, -inf }
 0x75f   : > { %v12494_v0 = vpop.f32.mrb[88].mxu1  ;;  %v6442_v25 = vmax.f32 %v6435_v60, %v6440_v14  ;;  %v12556_v60 = vpop.permute.xlu1 %6777  ;;  %v6447_v14 = vsel %vm378_vm0, %v12452_v44, -inf }
 0x760   : > { %v6171_v50 = vpop.f32.mrb[89].mxu1 }
 0x761   : > { %v12528_v50 = vpop.permute.xlu0 %6763  ;;  %v6444_v61 = vmax.f32 %v6437_v63, %v6442_v25 }
 0x765   : > { %v12538_v4 = vpop.permute.xlu0 %6767 }
 0x769   : > { %v12550_v39 = vpop.permute.xlu0 %6771 }
 0x76b   : > { %v12518_v53 = vpop.f32.mrb[90].mxu1 }
 0x76c   : > { %v6176_v52 = vpop.f32.mrb[91].mxu1 }
 0x76d   : > { %v6439_v52 = vsel %vm378_vm0, %v12440_v38, -inf  ;;  %v12560_v63 = vpop.permute.xlu0 %6775 }
 0x76e   : > { %v6446_v58 = vmax.f32 %v6439_v52, %v6444_v61  ;;  %v6449_v52 = vsel %vm378_vm0, %v12455_v29, -inf }
 0x770   : > { %v6448_v10 = vmax.f32 %v6441_v45, %v6446_v58  ;;  %v6451_v45 = vsel %vm378_vm0, %v12458_v35, -inf }
 0x771   : > { %v12571_v13 = vpop.permute.xlu0 %6779 }
 0x772   : > { %v6450_v37 = vmax.f32 %v6443_v55, %v6448_v10  ;;  %v12566_v55 = vpop.permute.xlu1 %6781 }
 0x777   : > { %v12540_v31 = vpop.f32.mrb[92].mxu1 }
 0x778   : > { %v6181_v28 = vpop.f32.mrb[93].mxu1 }
 0x779   : > { %v6452_v28 = vmax.f32 %v6445_v56, %v6450_v37 }
 0x77b   : > { %v6456_v46 = vmax.f32 %v6447_v14, %v6452_v28 }
 0x77d   : > { %v6454_v58 = vmax.f32 %v6449_v52, %v6456_v46 }
 0x77f   : > { %v6460_v56 = vmax.f32 %v6451_v45, %v6454_v58  ;;  %v12586_v45 = vpop.permute.xlu1 %6785 }
 0x783   : > { %v6184_v25 = vpop.f32.mrb[94].mxu1 }
 0x784   : > { %v6186_v61 = vpop.f32.mrb[95].mxu1 }
 0x787   : > { %v8178_v9 = vpop.f32.mrb[96].mxu1 }
 0x788   : > { %v12569_v10 = vadd.f32 %v8178_v9, %v12462_v33  ;;  %v6364_v44 = vpop.f32.mrb[97].mxu1 }
 0x789   : > { %v12574_v37 = vadd.f32 %v6364_v44, %v12460_v6  ;;  %v12590_v6 = vpop.permute.xlu0 %6783 }
 0x78a   : > { %13303 = vst [vmem:[#allocation17_spill] sm:$0xff] %v12569_v10  ;;  %v6455_v14 = vsel %vm378_vm0, %v12569_v10, -inf }
 0x78b   : > { %v6458_v28 = vmax.f32 %v6455_v14, %v6460_v56  ;;  %v6453_v46 = vsel %vm378_vm0, %v12574_v37, -inf  ;;  %v8181_v52 = vpop.f32.mrb[98].mxu1 }
 0x78c   : > { %v12581_v61 = vadd.f32 %v8181_v52, %v12466_v51  ;;  %v6374_v9 = vpop.f32.mrb[99].mxu1 }
 0x78d   : > { %v6464_v33 = vmax.f32 %v6453_v46, %v6458_v28  ;;  %v12584_v29 = vadd.f32 %v6374_v9, %v12464_v54 }
 0x78e   : > { %v6459_v44 = vsel %vm378_vm0, %v12581_v61, -inf }
 0x78f   : > { %v6462_v58 = vmax.f32 %v6459_v44, %v6464_v33  ;;  %v6457_v56 = vsel %vm378_vm0, %v12584_v29, -inf  ;;  %v8184_v14 = vpop.f32.mrb[100].mxu1  ;;  %v12604_v44 = vpop.permute.xlu1 %6789 }
 0x790   : > { %v12595_v51 = vadd.f32 %v8184_v14, %v12482_v5  ;;  %v6384_v52 = vpop.f32.mrb[101].mxu1  ;;  %v12609_v14 = vpop.permute.xlu0 %6787 }
 0x791   : > { %v6468_v28 = vmax.f32 %v6457_v56, %v6462_v58  ;;  %v12598_v54 = vadd.f32 %v6384_v52, %v12472_v21 }
 0x792   : > { %v6463_v46 = vsel %vm378_vm0, %v12595_v51, -inf }
 0x793   : > { %v6466_v9 = vmax.f32 %v6463_v46, %v6468_v28  ;;  %v6461_v35 = vsel %vm378_vm0, %v12598_v54, -inf  ;;  %v8187_v33 = vpop.f32.mrb[102].mxu1 }
 0x794   : > { %v12607_v2 = vadd.f32 %v8187_v33, %v12518_v53  ;;  %v6394_v5 = vpop.f32.mrb[103].mxu1 }
 0x795   : > { %v6473_v58 = vmax.f32 %v6466_v9, %v6461_v35  ;;  %v12612_v21 = vadd.f32 %v6394_v5, %v12494_v0  ;;  %v6583_v35 = vld [vmem:[%s13137_s7] sm:$0x1]  ;;  %v12626_v0 = vpop.permute.xlu1 %6793  ;;  %v12630_v5 = vpop.permute.xlu0 %6791 }
 0x796   : > { %v6467_v56 = vsel %vm378_vm0, %v12607_v2, -inf }
 0x797   : > { %v6472_v52 = vmax.f32 %v6467_v56, %v6473_v58  ;;  %v6465_v28 = vsel %vm378_vm0, %v12612_v21, -inf  ;;  %v8190_v46 = vpop.f32.mrb[104].mxu1 }
 0x798   : > { %v12618_v38 = vadd.f32 %v8190_v46, %v6184_v25  ;;  %v6404_v1 = vpop.f32.mrb[105].mxu1 }
 0x799   : > { %v6470_v53 = vmax.f32 %v6465_v28, %v6472_v52  ;;  %v12621_v33 = vadd.f32 %v6404_v1, %v12540_v31  ;;  %v12634_v47 = vpop.permute.xlu1 %6797  ;;  %v12636_v18 = vpop.permute.xlu0 %6795 }
 0x79a   : > { %v6471_v9 = vsel %vm378_vm0, %v12618_v38, -inf }
 0x79b   : > { %13304 = vst [vmem:[#allocation12_spill] sm:$0xff] %v12621_v33  ;;  %v6474_v58 = vmax.f32 %v6470_v53, %v6471_v9  ;;  %v6469_v25 = vsel %vm378_vm0, %v12621_v33, -inf  ;;  %v6657_v56 = vpop.f32.mrb[106].mxu1 }
 0x79c   : > { %v6658_v52 = vadd.f32 %v6657_v56, %v6583_v35  ;;  %v8203_v28 = vpop.f32.mrb[107].mxu1 }
 0x79d   : > { %v6475_v1 = vmax.f32 %v6469_v25, %v6474_v58  ;;  %v6898_v16 = vpop.permute.xlu1 %6897  ;;  %v6896_v53 = vpop.permute.xlu0 %6895 }
 0x79e   : > { %v6661_v31 = vsub.f32 0.0, %v6658_v52 }
 0x79f   : > { %v6476_v46 = vrot.slane %v6475_v1, 4 }
 0x7a0   : > { %v6662_v7 = vmul.f32 1.442695, %v6661_v31 }
 0x7a1   : > { %v6477_v17 = vmax.f32 %v6475_v1, %v6476_v46  ;;  %v6902_v58 = vpop.permute.xlu1 %6901  ;;  %v6900_v56 = vpop.permute.xlu0 %6899 }
 0x7a2   : > { %8422 = vpow2.f32 %v6662_v7  ;;  %v6700_v7 = vshrl.u32 %v6699_v32, 7 }
 0x7a3   : > { %v6478_v62 = vrot.slane %v6477_v17, 2 }
 0x7a5   : > { %v6479_v26 = vmax.f32 %v6477_v17, %v6478_v62  ;;  %v6906_v28 = vpop.permute.xlu1 %6905  ;;  %v6904_v31 = vpop.permute.xlu0 %6903 }
 0x7a7   : > { %v6480_v9 = vrot.slane %v6479_v26, 1 }
 0x7a9   : > { %v12638_v15 = vmax.f32 %v6479_v26, %v6480_v9  ;;  %v6910_v1 = vpop.permute.xlu1 %6909  ;;  %v6908_v46 = vpop.permute.xlu0 %6907 }
 0x7ac   : > { %v8423_v25 = vpop.eup %8422 }
 0x7ad   : > { %v6664_v52 = vadd.f32 1.0, %v8423_v25  ;;  %v6914_v33 = vpop.permute.xlu1 %6913  ;;  %v6912_v43 = vpop.permute.xlu0 %6911 }
 0x7af   : > { %8424 = vrcp.f32 %v6664_v52  ;;  %v6701_v52 = vsub.s32 0, %v6700_v7 }
 0x7b1   : > { %v6918_v3 = vpop.permute.xlu1 %6917  ;;  %v6916_v17 = vpop.permute.xlu0 %6915 }
 0x7b5   : > { %v6922_v62 = vpop.permute.xlu1 %6921  ;;  %v6920_v25 = vpop.permute.xlu0 %6919 }
 0x7b9   : > { %v8425_v35 = vpop.eup %8424 }
 0x7ba   : > { %v12652_v32 = vrot.slane %v8425_v35, %v6701_v52 }
 0x7bc   : > { %v6991_v10 = vmul.f32 %v6896_v53, %v12652_v32  ;;  %v6992_v26 = vmul.f32 %v6898_v16, %v12652_v32  ;;  %v6994_v9 = vmul.f32 %v6902_v58, %v12652_v32  ;;  %v6993_v7 = vmul.f32 %v6900_v56, %v12652_v32 }
 0x7bd   : > { %v6996_v35 = vmul.f32 %v6906_v28, %v12652_v32  ;;  %v6508_v53 = vsub.f32 %v12598_v54, %v12638_v15  ;;  %v6511_v16 = vsub.f32 %v12607_v2, %v12638_v15  ;;  %v6995_v58 = vmul.f32 %v6904_v31, %v12652_v32  ;;  %v6924_v28 = vpop.permute.xlu0 %6923 }
 0x7be   : > { %7057 = vrot.lane.b32.xlu1 %v6992_v26, %s8569_s11  ;;  %7055 = vrot.lane.b32.xlu0 %v6991_v10, %s8569_s11  ;;  %v6926_v26 = vpop.permute.xlu1 %6925  ;;  %v6997_v52 = vmul.f32 %v6908_v46, %v12652_v32  ;;  %v6999_v10 = vmul.f32 %v6912_v43, %v12652_v32 }
 0x7bf   : > { %v7006_v43 = vmul.f32 %v6926_v26, %v12652_v32  ;;  %v6572_v54 = vmul.f32 1.442695, %v6511_v16 }
 0x7c1   : > { %v6928_v56 = vpop.permute.xlu0 %6927 }
 0x7c2   : > { %7061 = vrot.lane.b32.xlu1 %v6994_v9, %s8569_s11  ;;  %7059 = vrot.lane.b32.xlu0 %v6993_v7, %s8569_s11  ;;  %v6998_v9 = vmul.f32 %v6910_v1, %v12652_v32  ;;  %v7000_v7 = vmul.f32 %v6914_v33, %v12652_v32  ;;  %v6930_v31 = vpop.permute.xlu1 %6929  ;;  %v7001_v1 = vmul.f32 %v6916_v17, %v12652_v32 }
 0x7c3   : > { %v7004_v33 = vmul.f32 %v6922_v62, %v12652_v32  ;;  %v7007_v62 = vmul.f32 %v6928_v56, %v12652_v32 }
 0x7c6   : > { %7065 = vrot.lane.b32.xlu1 %v6996_v35, %s8569_s11  ;;  %7063 = vrot.lane.b32.xlu0 %v6995_v58, %s8569_s11  ;;  %v7002_v35 = vmul.f32 %v6918_v3, %v12652_v32  ;;  %v6934_v46 = vpop.permute.xlu1 %6933  ;;  %v6932_v58 = vpop.permute.xlu0 %6931  ;;  %v7005_v3 = vmul.f32 %v6924_v28, %v12652_v32 }
 0x7c7   : > { %v7010_v26 = vmul.f32 %v6934_v46, %v12652_v32 }
 0x7ca   : > { %7069 = vrot.lane.b32.xlu1 %v6998_v9, %s8569_s11  ;;  %7067 = vrot.lane.b32.xlu0 %v6997_v52, %s8569_s11  ;;  %v7003_v9 = vmul.f32 %v6920_v25, %v12652_v32  ;;  %v6936_v17 = vpop.permute.xlu0 %6935  ;;  %v7008_v52 = vmul.f32 %v6930_v31, %v12652_v32 }
 0x7cb   : > { %v7011_v31 = vmul.f32 %v6936_v17, %v12652_v32 }
 0x7ce   : > { %7073 = vrot.lane.b32.xlu1 %v7000_v7, %s8569_s11  ;;  %7071 = vrot.lane.b32.xlu0 %v6999_v10, %s8569_s11  ;;  %v6938_v10 = vpop.permute.xlu1 %6937  ;;  %v6940_v7 = vpop.permute.xlu0 %6939 }
 0x7cf   : > { %v7012_v28 = vmul.f32 %v6938_v10, %v12652_v32  ;;  %v7013_v46 = vmul.f32 %v6940_v7, %v12652_v32 }
 0x7d2   : > { %7077 = vrot.lane.b32.xlu1 %v7002_v35, %s8569_s11  ;;  %7075 = vrot.lane.b32.xlu0 %v7001_v1, %s8569_s11  ;;  %v6942_v25 = vpop.permute.xlu1 %6941  ;;  %v7009_v35 = vmul.f32 %v6932_v58, %v12652_v32  ;;  %v6944_v56 = vpop.permute.xlu0 %6943 }
 0x7d3   : > { %v7015_v10 = vmul.f32 %v6944_v56, %v12652_v32  ;;  %v6831_v56 = vmul.f32 %v12470_v23, %v12652_v32 }
 0x7d6   : > { %7081 = vrot.lane.b32.xlu1 %v7004_v33, %s8569_s11  ;;  %7079 = vrot.lane.b32.xlu0 %v7003_v9, %s8569_s11  ;;  %v6946_v1 = vpop.permute.xlu1 %6945  ;;  %v7014_v33 = vmul.f32 %v6942_v25, %v12652_v32  ;;  %v6948_v9 = vpop.permute.xlu0 %6947 }
 0x7da   : > { %7085 = vrot.lane.b32.xlu1 %v7006_v43, %s8569_s11  ;;  %7083 = vrot.lane.b32.xlu0 %v7005_v3, %s8569_s11  ;;  %v6950_v58 = vpop.permute.xlu1 %6949  ;;  %v7016_v43 = vmul.f32 %v6946_v1, %v12652_v32 }
 0x7db   : > { %v7018_v3 = vmul.f32 %v6950_v58, %v12652_v32 }
 0x7de   : > { %7089 = vrot.lane.b32.xlu1 %v7008_v52, %s8569_s11  ;;  %7087 = vrot.lane.b32.xlu0 %v7007_v62, %s8569_s11  ;;  %v6954_v17 = vpop.permute.xlu1 %6953  ;;  %v7017_v52 = vmul.f32 %v6948_v9, %v12652_v32  ;;  %v6952_v62 = vpop.permute.xlu0 %6951 }
 0x7df   : > { %v7020_v25 = vmul.f32 %v6954_v17, %v12652_v32  ;;  %v7019_v7 = vmul.f32 %v6952_v62, %v12652_v32 }
 0x7e2   : > { %7093 = vrot.lane.b32.xlu1 %v7010_v26, %s8569_s11  ;;  %7091 = vrot.lane.b32.xlu0 %v7009_v35, %s8569_s11  ;;  %v6958_v26 = vpop.permute.xlu1 %6957  ;;  %v6956_v35 = vpop.permute.xlu0 %6955 }
 0x7e3   : > { %v7021_v1 = vmul.f32 %v6956_v35, %v12652_v32 }
 0x7e6   : > { %7097 = vrot.lane.b32.xlu1 %v7012_v28, %s8569_s11  ;;  %7095 = vrot.lane.b32.xlu0 %v7011_v31, %s8569_s11  ;;  %v7022_v28 = vmul.f32 %v6958_v26, %v12652_v32  ;;  %v6832_v31 = vmul.f32 %v12468_v22, %v12652_v32  ;;  %v6838_v26 = vmul.f32 %v12484_v48, %v12652_v32 }
 0x7e7   : > { %v6840_v48 = vmul.f32 %v12490_v30, %v12652_v32  ;;  %v6842_v30 = vmul.f32 %v12504_v41, %v12652_v32  ;;  %v6844_v41 = vmul.f32 %v12514_v36, %v12652_v32  ;;  %v6846_v36 = vmul.f32 %v12526_v20, %v12652_v32 }
 0x7e8   : > { %v6848_v20 = vmul.f32 %v12536_v57, %v12652_v32  ;;  %v6850_v57 = vmul.f32 %v12546_v19, %v12652_v32  ;;  %v6852_v19 = vmul.f32 %v12556_v60, %v12652_v32  ;;  %v6854_v60 = vmul.f32 %v12566_v55, %v12652_v32 }
 0x7e9   : > { %v6856_v55 = vmul.f32 %v12586_v45, %v12652_v32  ;;  %v6858_v45 = vmul.f32 %v12604_v44, %v12652_v32  ;;  %v6860_v44 = vmul.f32 %v12626_v0, %v12652_v32  ;;  %v6862_v0 = vmul.f32 %v12634_v47, %v12652_v32 }
 0x7ea   : > { %7101 = vrot.lane.b32.xlu1 %v7014_v33, %s8569_s11  ;;  %7099 = vrot.lane.b32.xlu0 %v7013_v46, %s8569_s11 }
 0x7ee   : > { %7105 = vrot.lane.b32.xlu1 %v7016_v43, %s8569_s11  ;;  %7103 = vrot.lane.b32.xlu0 %v7015_v10, %s8569_s11  ;;  %v6834_v43 = vmul.f32 %v12474_v12, %v12652_v32  ;;  %v6833_v10 = vmul.f32 %v12476_v11, %v12652_v32  ;;  %v6835_v12 = vmul.f32 %v12480_v42, %v12652_v32 }
 0x7f2   : > { %7109 = vrot.lane.b32.xlu1 %v7018_v3, %s8569_s11  ;;  %7107 = vrot.lane.b32.xlu0 %v7017_v52, %s8569_s11  ;;  %v6836_v52 = vmul.f32 %v12478_v8, %v12652_v32  ;;  %v6837_v8 = vmul.f32 %v12486_v59, %v12652_v32  ;;  %v6839_v59 = vmul.f32 %v12492_v40, %v12652_v32 }
 0x7f3   : > { %v6841_v40 = vmul.f32 %v12506_v34, %v12652_v32  ;;  %v6843_v34 = vmul.f32 %v12516_v24, %v12652_v32  ;;  %v6845_v24 = vmul.f32 %v12528_v50, %v12652_v32  ;;  %v6847_v50 = vmul.f32 %v12538_v4, %v12652_v32 }
 0x7f4   : > { %v6849_v4 = vmul.f32 %v12550_v39, %v12652_v32  ;;  %v6851_v39 = vmul.f32 %v12560_v63, %v12652_v32  ;;  %v6853_v63 = vmul.f32 %v12571_v13, %v12652_v32  ;;  %v6855_v13 = vmul.f32 %v12590_v6, %v12652_v32 }
 0x7f5   : > { %v6857_v6 = vmul.f32 %v12609_v14, %v12652_v32  ;;  %v6859_v14 = vmul.f32 %v12630_v5, %v12652_v32  ;;  %v6861_v5 = vmul.f32 %v12636_v18, %v12652_v32 }
 0x7f6   : > { %7113 = vrot.lane.b32.xlu1 %v7020_v25, %s8569_s11  ;;  %7111 = vrot.lane.b32.xlu0 %v7019_v7, %s8569_s11 }
 0x7fa   : > { %7117 = vrot.lane.b32.xlu1 %v7022_v28, %s8569_s11  ;;  %7115 = vrot.lane.b32.xlu0 %v7021_v1, %s8569_s11 }
 0x830   : > { %v7058_v33 = vpop.permute.xlu1 %7057  ;;  %v7056_v58 = vpop.permute.xlu0 %7055 }
 0x831   : > { %v12730_v46 = vadd.f32 %v7058_v33, %v6832_v31  ;;  %v12732_v9 = vadd.f32 %v7056_v58, %v6831_v56 }
 0x833   : > { %8426 = vtanh.f32 %v12730_v46 }
 0x834   : > { %8428 = vtanh.f32 %v12732_v9  ;;  %v7062_v22 = vpop.permute.xlu1 %7061  ;;  %v7060_v23 = vpop.permute.xlu0 %7059 }
 0x835   : > { %v12740_v3 = vadd.f32 %v7062_v22, %v6834_v43  ;;  %v12742_v17 = vadd.f32 %v7060_v23, %v6833_v10 }
 0x837   : > { %8430 = vtanh.f32 %v12740_v3 }
 0x838   : > { %8432 = vtanh.f32 %v12742_v17  ;;  %v7066_v62 = vpop.permute.xlu1 %7065  ;;  %v7064_v25 = vpop.permute.xlu0 %7063 }
 0x839   : > { %v12750_v11 = vadd.f32 %v7066_v62, %v6836_v52  ;;  %v12752_v7 = vadd.f32 %v7064_v25, %v6835_v12 }
 0x83b   : > { %8434 = vtanh.f32 %v12750_v11 }
 0x83c   : > { %8436 = vtanh.f32 %v12752_v7  ;;  %v7070_v35 = vpop.permute.xlu1 %7069  ;;  %v7068_v1 = vpop.permute.xlu0 %7067 }
 0x83d   : > { %v8427_v42 = vpop.eup %8426  ;;  %v12760_v28 = vadd.f32 %v7070_v35, %v6838_v26  ;;  %v12762_v56 = vadd.f32 %v7068_v1, %v6837_v8 }
 0x83e   : > { %v8429_v31 = vpop.eup %8428  ;;  %7249 = vrot.lane.b32.xlu1 %v8427_v42, %s8573_s18 }
 0x83f   : > { %8438 = vtanh.f32 %v12760_v28  ;;  %7247 = vrot.lane.b32.xlu0 %v8429_v31, %s8573_s18 }
 0x840   : > { %8440 = vtanh.f32 %v12762_v56  ;;  %v7074_v33 = vpop.permute.xlu1 %7073  ;;  %v7072_v10 = vpop.permute.xlu0 %7071 }
 0x841   : > { %v8431_v58 = vpop.eup %8430  ;;  %v12772_v43 = vadd.f32 %v7074_v33, %v6840_v48  ;;  %v12774_v23 = vadd.f32 %v7072_v10, %v6839_v59 }
 0x842   : > { %v8433_v22 = vpop.eup %8432  ;;  %7253 = vrot.lane.b32.xlu1 %v8431_v58, %s8573_s18 }
 0x843   : > { %8442 = vtanh.f32 %v12772_v43  ;;  %7251 = vrot.lane.b32.xlu0 %v8433_v22, %s8573_s18 }
 0x844   : > { %8444 = vtanh.f32 %v12774_v23  ;;  %v7078_v52 = vpop.permute.xlu1 %7077  ;;  %v7076_v25 = vpop.permute.xlu0 %7075 }
 0x845   : > { %v8435_v12 = vpop.eup %8434  ;;  %v12784_v62 = vadd.f32 %v7078_v52, %v6842_v30  ;;  %v12786_v8 = vadd.f32 %v7076_v25, %v6841_v40 }
 0x846   : > { %v8437_v26 = vpop.eup %8436  ;;  %7257 = vrot.lane.b32.xlu1 %v8435_v12, %s8573_s18 }
 0x847   : > { %8446 = vtanh.f32 %v12784_v62  ;;  %7255 = vrot.lane.b32.xlu0 %v8437_v26, %s8573_s18 }
 0x848   : > { %8448 = vtanh.f32 %v12786_v8  ;;  %v7082_v35 = vpop.permute.xlu1 %7081  ;;  %v7080_v31 = vpop.permute.xlu0 %7079 }
 0x849   : > { %v8439_v42 = vpop.eup %8438  ;;  %v12796_v1 = vadd.f32 %v7082_v35, %v6844_v41  ;;  %v12798_v59 = vadd.f32 %v7080_v31, %v6843_v34 }
 0x84a   : > { %v8441_v48 = vpop.eup %8440  ;;  %7261 = vrot.lane.b32.xlu1 %v8439_v42, %s8573_s18 }
 0x84b   : > { %8450 = vtanh.f32 %v12796_v1  ;;  %7259 = vrot.lane.b32.xlu0 %v8441_v48, %s8573_s18 }
 0x84c   : > { %8452 = vtanh.f32 %v12798_v59  ;;  %v7086_v33 = vpop.permute.xlu1 %7085  ;;  %v7084_v22 = vpop.permute.xlu0 %7083 }
 0x84d   : > { %v8443_v58 = vpop.eup %8442  ;;  %v12808_v10 = vadd.f32 %v7086_v33, %v6846_v36  ;;  %v12810_v40 = vadd.f32 %v7084_v22, %v6845_v24 }
 0x84e   : > { %v8445_v30 = vpop.eup %8444  ;;  %7265 = vrot.lane.b32.xlu1 %v8443_v58, %s8573_s18 }
 0x84f   : > { %8454 = vtanh.f32 %v12808_v10  ;;  %7263 = vrot.lane.b32.xlu0 %v8445_v30, %s8573_s18 }
 0x850   : > { %8456 = vtanh.f32 %v12810_v40  ;;  %v7090_v52 = vpop.permute.xlu1 %7089  ;;  %v7088_v26 = vpop.permute.xlu0 %7087 }
 0x851   : > { %v8447_v12 = vpop.eup %8446  ;;  %v12820_v25 = vadd.f32 %v7090_v52, %v6848_v20  ;;  %v12822_v34 = vadd.f32 %v7088_v26, %v6847_v50 }
 0x852   : > { %v8449_v41 = vpop.eup %8448  ;;  %7269 = vrot.lane.b32.xlu1 %v8447_v12, %s8573_s18 }
 0x853   : > { %8458 = vtanh.f32 %v12820_v25  ;;  %7267 = vrot.lane.b32.xlu0 %v8449_v41, %s8573_s18 }
 0x854   : > { %8460 = vtanh.f32 %v12822_v34  ;;  %v7094_v35 = vpop.permute.xlu1 %7093  ;;  %v7092_v48 = vpop.permute.xlu0 %7091 }
 0x855   : > { %v8451_v42 = vpop.eup %8450  ;;  %v12832_v31 = vadd.f32 %v7094_v35, %v6850_v57  ;;  %v12834_v24 = vadd.f32 %v7092_v48, %v6849_v4 }
 0x856   : > { %v8453_v36 = vpop.eup %8452  ;;  %7273 = vrot.lane.b32.xlu1 %v8451_v42, %s8573_s18 }
 0x857   : > { %8462 = vtanh.f32 %v12832_v31  ;;  %7271 = vrot.lane.b32.xlu0 %v8453_v36, %s8573_s18 }
 0x858   : > { %8464 = vtanh.f32 %v12834_v24  ;;  %v7098_v33 = vpop.permute.xlu1 %7097  ;;  %v7096_v30 = vpop.permute.xlu0 %7095 }
 0x859   : > { %v8455_v58 = vpop.eup %8454  ;;  %v12844_v22 = vadd.f32 %v7098_v33, %v6852_v19  ;;  %v12846_v50 = vadd.f32 %v7096_v30, %v6851_v39 }
 0x85a   : > { %v8457_v20 = vpop.eup %8456  ;;  %7277 = vrot.lane.b32.xlu1 %v8455_v58, %s8573_s18 }
 0x85b   : > { %8466 = vtanh.f32 %v12844_v22  ;;  %7275 = vrot.lane.b32.xlu0 %v8457_v20, %s8573_s18 }
 0x85c   : > { %8468 = vtanh.f32 %v12846_v50  ;;  %v7102_v52 = vpop.permute.xlu1 %7101  ;;  %v7100_v41 = vpop.permute.xlu0 %7099 }
 0x85d   : > { %v8459_v12 = vpop.eup %8458  ;;  %v12856_v26 = vadd.f32 %v7102_v52, %v6854_v60  ;;  %v12858_v4 = vadd.f32 %v7100_v41, %v6853_v63 }
 0x85e   : > { %v8461_v57 = vpop.eup %8460  ;;  %7281 = vrot.lane.b32.xlu1 %v8459_v12, %s8573_s18 }
 0x85f   : > { %8470 = vtanh.f32 %v12856_v26  ;;  %7279 = vrot.lane.b32.xlu0 %v8461_v57, %s8573_s18 }
 0x860   : > { %8472 = vtanh.f32 %v12858_v4  ;;  %v7106_v35 = vpop.permute.xlu1 %7105  ;;  %v7104_v36 = vpop.permute.xlu0 %7103 }
 0x861   : > { %v8463_v42 = vpop.eup %8462  ;;  %v12868_v48 = vadd.f32 %v7106_v35, %v6856_v55  ;;  %v12870_v39 = vadd.f32 %v7104_v36, %v6855_v13 }
 0x862   : > { %v8465_v19 = vpop.eup %8464  ;;  %7285 = vrot.lane.b32.xlu1 %v8463_v42, %s8573_s18 }
 0x863   : > { %8474 = vtanh.f32 %v12868_v48  ;;  %7283 = vrot.lane.b32.xlu0 %v8465_v19, %s8573_s18 }
 0x864   : > { %8476 = vtanh.f32 %v12870_v39  ;;  %v7110_v33 = vpop.permute.xlu1 %7109  ;;  %v7108_v20 = vpop.permute.xlu0 %7107 }
 0x865   : > { %v8467_v58 = vpop.eup %8466  ;;  %v12880_v30 = vadd.f32 %v7110_v33, %v6858_v45  ;;  %v12882_v63 = vadd.f32 %v7108_v20, %v6857_v6 }
 0x866   : > { %v8469_v60 = vpop.eup %8468  ;;  %7289 = vrot.lane.b32.xlu1 %v8467_v58, %s8573_s18 }
 0x867   : > { %8478 = vtanh.f32 %v12880_v30  ;;  %7287 = vrot.lane.b32.xlu0 %v8469_v60, %s8573_s18  ;;  %v6483_v60 = vsub.f32 %v12215_v27, %v12638_v15  ;;  %v13308_v27 = vld [vmem:[#allocation24_spill] sm:$0xff] }
 0x868   : > { %8480 = vtanh.f32 %v12882_v63  ;;  %v7114_v52 = vpop.permute.xlu1 %7113  ;;  %v7112_v57 = vpop.permute.xlu0 %7111 }
 0x869   : > { %v8471_v12 = vpop.eup %8470  ;;  %v12892_v41 = vadd.f32 %v7114_v52, %v6860_v44  ;;  %v12894_v13 = vadd.f32 %v7112_v57, %v6859_v14  ;;  %v6482_v44 = vsub.f32 %v12196_v49, %v12638_v15  ;;  %v6516_v14 = vmul.f32 1.442695, %v6483_v60  ;;  %v13305_v52 = vld [vmem:[#allocation22_spill] sm:$0xff]  ;;  %v13311_v60 = vld [vmem:[#allocation35_spill] sm:$0xff] }
 0x86a   : > { %v8473_v55 = vpop.eup %8472  ;;  %7293 = vrot.lane.b32.xlu1 %v8471_v12, %s8573_s18  ;;  %v6485_v12 = vsub.f32 %v13305_v52, %v12638_v15  ;;  %v13312_v52 = vld [vmem:[#allocation31_spill] sm:$0xff] }
 0x86b   : > { %8482 = vtanh.f32 %v12892_v41  ;;  %7291 = vrot.lane.b32.xlu0 %v8473_v55, %s8573_s18  ;;  %v6514_v57 = vmul.f32 1.442695, %v6482_v44  ;;  %v13306_v55 = vld [vmem:[#allocation26_spill] sm:$0xff]  ;;  %v6491_v44 = vsub.f32 %v13311_v60, %v12638_v15 }
 0x86c   : > { %8484 = vtanh.f32 %v12894_v13  ;;  %v7118_v35 = vpop.permute.xlu1 %7117  ;;  %v7116_v19 = vpop.permute.xlu0 %7115 }
 0x86d   : > { %v8475_v42 = vpop.eup %8474  ;;  %v12904_v36 = vadd.f32 %v7118_v35, %v6862_v0  ;;  %v12906_v6 = vadd.f32 %v7116_v19, %v6861_v5  ;;  %v6484_v0 = vsub.f32 %v13306_v55, %v12638_v15  ;;  %v6520_v5 = vmul.f32 1.442695, %v6485_v12  ;;  %v13307_v35 = vld [vmem:[#allocation23_spill] sm:$0xff] }
 0x86e   : > { %v8477_v45 = vpop.eup %8476  ;;  %7297 = vrot.lane.b32.xlu1 %v8475_v42, %s8573_s18  ;;  %v6487_v42 = vsub.f32 %v13307_v35, %v12638_v15  ;;  %v6490_v12 = vsub.f32 %v13312_v52, %v12638_v15 }
 0x86f   : > { %8486 = vtanh.f32 %v12904_v36  ;;  %7295 = vrot.lane.b32.xlu0 %v8477_v45, %s8573_s18  ;;  %v6518_v19 = vmul.f32 1.442695, %v6484_v0  ;;  %v6486_v45 = vsub.f32 %v13308_v27, %v12638_v15  ;;  %v13313_v27 = vld [vmem:[#allocation33_spill] sm:$0xff] }
 0x870   : > { %8488 = vtanh.f32 %v12906_v6  ;;  %v6524_v49 = vmul.f32 1.442695, %v6487_v42 }
 0x871   : > { %v8479_v47 = vpop.eup %8478  ;;  %8490 = vpow2.f32 %v6516_v14 }
 0x872   : > { %v8481_v18 = vpop.eup %8480  ;;  %7301 = vrot.lane.b32.xlu1 %v8479_v47, %s8573_s18  ;;  %8492 = vpow2.f32 %v6514_v57  ;;  %v13309_v47 = vld [vmem:[#allocation34_spill] sm:$0xff] }
 0x873   : > { %7299 = vrot.lane.b32.xlu0 %v8481_v18, %s8573_s18  ;;  %8494 = vpow2.f32 %v6520_v5  ;;  %v6489_v18 = vsub.f32 %v13309_v47, %v12638_v15  ;;  %v6530_v47 = vmul.f32 1.442695, %v6490_v12  ;;  %v13315_v12 = vld [vmem:[#allocation7_spill] sm:$0xff] }
 0x874   : > { %8496 = vpow2.f32 %v6518_v19  ;;  %v6532_v19 = vmul.f32 1.442695, %v6491_v44 }
 0x875   : > { %v8483_v32 = vpop.eup %8482  ;;  %8498 = vpow2.f32 %v6524_v49 }
 0x876   : > { %v8485_v33 = vpop.eup %8484  ;;  %7305 = vrot.lane.b32.xlu1 %v8483_v32, %s8573_s18  ;;  %v6522_v32 = vmul.f32 1.442695, %v6486_v45  ;;  %v6493_v45 = vsub.f32 %v13313_v27, %v12638_v15 }
 0x877   : > { %7303 = vrot.lane.b32.xlu0 %v8485_v33, %s8573_s18  ;;  %v13310_v33 = vld [vmem:[#allocation25_spill] sm:$0xff] }
 0x878   : > { %8500 = vpow2.f32 %v6522_v32 }
 0x879   : > { %v8487_v58 = vpop.eup %8486 }
 0x87a   : > { %v8489_v20 = vpop.eup %8488  ;;  %7309 = vrot.lane.b32.xlu1 %v8487_v58, %s8573_s18  ;;  %v6488_v58 = vsub.f32 %v13310_v33, %v12638_v15 }
 0x87b   : > { %7307 = vrot.lane.b32.xlu0 %v8489_v20, %s8573_s18  ;;  %v6528_v20 = vmul.f32 1.442695, %v6489_v18  ;;  %v8491_v57 = vpop.eup %8490  ;;  %v13314_v18 = vld [vmem:[#allocation32_spill] sm:$0xff] }
 0x87c   : > { %v6526_v14 = vmul.f32 1.442695, %v6488_v58  ;;  %v8493_v0 = vpop.eup %8492  ;;  %v6492_v32 = vsub.f32 %v13314_v18, %v12638_v15  ;;  %v13317_v18 = vld [vmem:[#allocation5_spill] sm:$0xff] }
 0x87d   : > { %8502 = vpow2.f32 %v6528_v20  ;;  %v8495_v33 = vpop.eup %8494 }
 0x87e   : > { %8504 = vpow2.f32 %v6526_v14  ;;  %v8497_v60 = vpop.eup %8496  ;;  %v6536_v14 = vmul.f32 1.442695, %v6493_v45 }
 0x87f   : > { %8506 = vpow2.f32 %v6532_v19 }
 0x880   : > { %8508 = vpow2.f32 %v6530_v47 }
 0x881   : > { %8510 = vpow2.f32 %v6536_v14 }
 0x8b0   : > { %v7250_v55 = vpop.permute.xlu1 %7249 }
 0x8b1   : > { %v7344_v5 = vmul.f32 %v8491_v57, %v7250_v55  ;;  %v7248_v35 = vpop.permute.xlu0 %7247  ;;  %v6495_v57 = vsub.f32 %v13315_v12, %v12638_v15 }
 0x8b2   : > { %v7343_v42 = vmul.f32 %v8493_v0, %v7248_v35  ;;  %v6534_v0 = vmul.f32 1.442695, %v6492_v32  ;;  %v8499_v35 = vpop.eup %8498  ;;  %v6497_v32 = vsub.f32 %v13317_v18, %v12638_v15  ;;  %v13321_v18 = vld [vmem:[#allocation8_spill] sm:$0xff] }
 0x8b3   : > { %v7376_v49 = vsel %vm378_vm0, %v7344_v5, %v12730_v46  ;;  %v8501_v27 = vpop.eup %8500  ;;  %v6540_v47 = vmul.f32 1.442695, %v6495_v57 }
 0x8b4   : > { %7409 = vst.msk [vmem:[%s12943_s23 + $0x8] sm:$0xff] %vm7407_vm5, %v7376_v49  ;;  %v7375_v58 = vsel %vm378_vm0, %v7343_v42, %v12732_v9  ;;  %v7254_v20 = vpop.permute.xlu1 %7253  ;;  %v13316_v9 = vld [vmem:[#allocation4_spill] sm:$0xff]  ;;  %8512 = vpow2.f32 %v6534_v0  ;;  %v6544_v57 = vmul.f32 1.442695, %v6497_v32  ;;  %v6501_v32 = vsub.f32 %v13321_v18, %v12638_v15 }
 0x8b5   : > { %7408 = vst.msk [vmem:[%s12943_s23] sm:$0xff] %vm7407_vm5, %v7375_v58  ;;  %v7346_v44 = vmul.f32 %v8495_v33, %v7254_v20  ;;  %v7252_v52 = vpop.permute.xlu0 %7251  ;;  %v6494_v5 = vsub.f32 %v13316_v9, %v12638_v15  ;;  %8514 = vpow2.f32 %v6540_v47 }
 0x8b6   : > { %v7345_v46 = vmul.f32 %v8497_v60, %v7252_v52  ;;  %v8503_v60 = vpop.eup %8502 }
 0x8b7   : > { %v7378_v55 = vsel %vm378_vm0, %v7346_v44, %v12740_v3  ;;  %v6538_v58 = vmul.f32 1.442695, %v6494_v5 }
 0x8b8   : > { %7411 = vst.msk [vmem:[%s12943_s23 + $0x18] sm:$0xff] %vm7407_vm5, %v7378_v55  ;;  %v7377_v42 = vsel %vm378_vm0, %v7345_v46, %v12742_v17  ;;  %v7258_v19 = vpop.permute.xlu1 %7257  ;;  %v13318_v17 = vld [vmem:[#allocation9_spill] sm:$0xff]  ;;  %v8505_v46 = vpop.eup %8504  ;;  %v13319_v55 = vld [vmem:[#allocation6_spill] sm:$0xff] }
 0x8b9   : > { %7410 = vst.msk [vmem:[%s12943_s23 + $0x10] sm:$0xff] %vm7407_vm5, %v7377_v42  ;;  %v7348_v45 = vmul.f32 %v8499_v35, %v7258_v19  ;;  %v7256_v49 = vpop.permute.xlu0 %7255  ;;  %v6496_v20 = vsub.f32 %v13318_v17, %v12638_v15  ;;  %v6499_v0 = vsub.f32 %v13319_v55, %v12638_v15  ;;  %8516 = vpow2.f32 %v6538_v58  ;;  %v8507_v42 = vpop.eup %8506 }
 0x8ba   : > { %v7347_v3 = vmul.f32 %v8501_v27, %v7256_v49  ;;  %8518 = vpow2.f32 %v6544_v57 }
 0x8bb   : > { %v7380_v33 = vsel %vm378_vm0, %v7348_v45, %v12750_v11  ;;  %v6542_v5 = vmul.f32 1.442695, %v6496_v20  ;;  %v8509_v45 = vpop.eup %8508  ;;  %v6548_v47 = vmul.f32 1.442695, %v6499_v0 }
 0x8bc   : > { %7413 = vst.msk [vmem:[%s12943_s23 + $0x28] sm:$0xff] %vm7407_vm5, %v7380_v33  ;;  %v7379_v44 = vsel %vm378_vm0, %v7347_v3, %v12752_v7  ;;  %v7262_v52 = vpop.permute.xlu1 %7261  ;;  %v13320_v7 = vld [vmem:[#allocation11_spill] sm:$0xff]  ;;  %v8511_v20 = vpop.eup %8510 }
 0x8bd   : > { %7412 = vst.msk [vmem:[%s12943_s23 + $0x20] sm:$0xff] %vm7407_vm5, %v7379_v44  ;;  %v7350_v14 = vmul.f32 %v8503_v60, %v7262_v52  ;;  %v7260_v12 = vpop.permute.xlu0 %7259  ;;  %v6498_v35 = vsub.f32 %v13320_v7, %v12638_v15  ;;  %8520 = vpow2.f32 %v6542_v5 }
 0x8be   : > { %v7349_v11 = vmul.f32 %v8505_v46, %v7260_v12  ;;  %v8513_v52 = vpop.eup %8512  ;;  %8522 = vpow2.f32 %v6548_v47  ;;  %v6552_v12 = vmul.f32 1.442695, %v6501_v32 }
 0x8bf   : > { %v7382_v9 = vsel %vm378_vm0, %v7350_v14, %v12760_v28  ;;  %v6546_v58 = vmul.f32 1.442695, %v6498_v35  ;;  %v8515_v5 = vpop.eup %8514 }
 0x8c0   : > { %7415 = vst.msk [vmem:[%s12943_s23 + $0x38] sm:$0xff] %vm7407_vm5, %v7382_v9  ;;  %v7381_v19 = vsel %vm378_vm0, %v7349_v11, %v12762_v56  ;;  %v7266_v27 = vpop.permute.xlu1 %7265  ;;  %v13322_v56 = vld [vmem:[#allocation13_spill] sm:$0xff]  ;;  %v13323_v11 = vld [vmem:[#allocation10_spill] sm:$0xff] }
 0x8c1   : > { %7414 = vst.msk [vmem:[%s12943_s23 + $0x30] sm:$0xff] %vm7407_vm5, %v7381_v19  ;;  %v7352_v49 = vmul.f32 %v8507_v42, %v7266_v27  ;;  %v7264_v3 = vpop.permute.xlu0 %7263  ;;  %v6500_v17 = vsub.f32 %v13322_v56, %v12638_v15  ;;  %v6503_v57 = vsub.f32 %v13323_v11, %v12638_v15  ;;  %8524 = vpow2.f32 %v6546_v58  ;;  %v13325_v56 = vld [vmem:[#allocation17_spill] sm:$0xff] }
 0x8c2   : > { %v7351_v28 = vmul.f32 %v8509_v45, %v7264_v3  ;;  %8526 = vpow2.f32 %v6552_v12 }
 0x8c3   : > { %v7384_v33 = vsel %vm378_vm0, %v7352_v49, %v12772_v43  ;;  %v6550_v0 = vmul.f32 1.442695, %v6500_v17  ;;  %v8517_v42 = vpop.eup %8516  ;;  %v6556_v45 = vmul.f32 1.442695, %v6503_v57 }
 0x8c4   : > { %7417 = vst.msk [vmem:[%s12943_s23 + $0x48] sm:$0xff] %vm7407_vm5, %v7384_v33  ;;  %v7383_v60 = vsel %vm378_vm0, %v7351_v28, %v12774_v23  ;;  %v7270_v44 = vpop.permute.xlu1 %7269  ;;  %v13324_v23 = vld [vmem:[#allocation15_spill] sm:$0xff]  ;;  %v8519_v28 = vpop.eup %8518 }
 0x8c5   : > { %7416 = vst.msk [vmem:[%s12943_s23 + $0x40] sm:$0xff] %vm7407_vm5, %v7383_v60  ;;  %v7354_v46 = vmul.f32 %v8511_v20, %v7270_v44  ;;  %v7268_v14 = vpop.permute.xlu0 %7267  ;;  %v6502_v9 = vsub.f32 %v13324_v23, %v12638_v15  ;;  %8528 = vpow2.f32 %v6550_v0 }
 0x8c6   : > { %v7353_v43 = vmul.f32 %v8513_v52, %v7268_v14  ;;  %8530 = vpow2.f32 %v6556_v45 }
 0x8c7   : > { %v7386_v55 = vsel %vm378_vm0, %v7354_v46, %v12784_v62  ;;  %v6554_v3 = vmul.f32 1.442695, %v6502_v9  ;;  %v8521_v18 = vpop.eup %8520 }
 0x8c8   : > { %7419 = vst.msk [vmem:[%s12943_s23 + $0x58] sm:$0xff] %vm7407_vm5, %v7386_v55  ;;  %v7385_v7 = vsel %vm378_vm0, %v7353_v43, %v12786_v8  ;;  %v7274_v35 = vpop.permute.xlu1 %7273  ;;  %v8523_v44 = vpop.eup %8522 }
 0x8c9   : > { %7418 = vst.msk [vmem:[%s12943_s23 + $0x50] sm:$0xff] %vm7407_vm5, %v7385_v7  ;;  %v7356_v19 = vmul.f32 %v8515_v5, %v7274_v35  ;;  %v7272_v27 = vpop.permute.xlu0 %7271  ;;  %8532 = vpow2.f32 %v6554_v3 }
 0x8ca   : > { %v7355_v62 = vmul.f32 %v8517_v42, %v7272_v27 }
 0x8cb   : > { %v7388_v49 = vsel %vm378_vm0, %v7356_v19, %v12796_v1  ;;  %v13326_v1 = vsub.f32 %v13325_v56, %v12638_v15  ;;  %v8525_v14 = vpop.eup %8524 }
 0x8cc   : > { %7421 = vst.msk [vmem:[%s12943_s23 + $0x68] sm:$0xff] %vm7407_vm5, %v7388_v49  ;;  %v7387_v8 = vsel %vm378_vm0, %v7355_v62, %v12798_v59  ;;  %v7278_v47 = vpop.permute.xlu1 %7277  ;;  %v13327_v59 = vsub.f32 %v12574_v37, %v12638_v15  ;;  %v13328_v37 = vsub.f32 %v12581_v61, %v12638_v15  ;;  %v8527_v0 = vpop.eup %8526 }
 0x8cd   : > { %7420 = vst.msk [vmem:[%s12943_s23 + $0x60] sm:$0xff] %vm7407_vm5, %v7387_v8  ;;  %v7358_v32 = vmul.f32 %v8519_v28, %v7278_v47  ;;  %v7276_v33 = vpop.permute.xlu0 %7275  ;;  %v6560_v17 = vmul.f32 1.442695, %v13326_v1 }
 0x8ce   : > { %v7357_v58 = vmul.f32 %v8521_v18, %v7276_v33  ;;  %v6558_v60 = vmul.f32 1.442695, %v13327_v59  ;;  %v6564_v11 = vmul.f32 1.442695, %v13328_v37  ;;  %v13333_v33 = vld [vmem:[#allocation12_spill] sm:$0xff] }
 0x8cf   : > { %v7390_v20 = vsel %vm378_vm0, %v7358_v32, %v12808_v10  ;;  %8534 = vpow2.f32 %v6560_v17  ;;  %v8529_v5 = vpop.eup %8528 }
 0x8d0   : > { %7423 = vst.msk [vmem:[%s12943_s23 + $0x78] sm:$0xff] %vm7407_vm5, %v7390_v20  ;;  %v7389_v52 = vsel %vm378_vm0, %v7357_v58, %v12810_v40  ;;  %v7282_v46 = vpop.permute.xlu1 %7281  ;;  %8536 = vpow2.f32 %v6558_v60  ;;  %v13329_v40 = vsub.f32 %v12584_v29, %v12638_v15  ;;  %v13330_v29 = vsub.f32 %v12595_v51, %v12638_v15  ;;  %v8531_v19 = vpop.eup %8530 }
 0x8d1   : > { %7422 = vst.msk [vmem:[%s12943_s23 + $0x70] sm:$0xff] %vm7407_vm5, %v7389_v52  ;;  %v7360_v43 = vmul.f32 %v8523_v44, %v7282_v46  ;;  %v7280_v12 = vpop.permute.xlu0 %7279  ;;  %8538 = vpow2.f32 %v6564_v11  ;;  %v13334_v58 = vsub.f32 %v13333_v33, %v12638_v15 }
 0x8d2   : > { %v7359_v10 = vmul.f32 %v8525_v14, %v7280_v12  ;;  %v6562_v55 = vmul.f32 1.442695, %v13329_v40  ;;  %v6568_v35 = vmul.f32 1.442695, %v13330_v29 }
 0x8d3   : > { %v7392_v57 = vsel %vm378_vm0, %v7360_v43, %v12820_v25  ;;  %v8533_v45 = vpop.eup %8532  ;;  %v6574_v56 = vmul.f32 1.442695, %v13334_v58 }
 0x8d4   : > { %7425 = vst.msk [vmem:[%s12943_s23 + $0x88] sm:$0xff] %vm7407_vm5, %v7392_v57  ;;  %v7391_v23 = vsel %vm378_vm0, %v7359_v10, %v12822_v34  ;;  %v7286_v9 = vpop.permute.xlu1 %7285  ;;  %8540 = vpow2.f32 %v6562_v55  ;;  %v6566_v34 = vmul.f32 1.442695, %v6508_v53 }
 0x8d5   : > { %7424 = vst.msk [vmem:[%s12943_s23 + $0x80] sm:$0xff] %vm7407_vm5, %v7391_v23  ;;  %v7362_v61 = vmul.f32 %v8527_v0, %v7286_v9  ;;  %v7284_v7 = vpop.permute.xlu0 %7283  ;;  %8542 = vpow2.f32 %v6568_v35 }
 0x8d6   : > { %v7361_v25 = vmul.f32 %v8529_v5, %v7284_v7  ;;  %8544 = vpow2.f32 %v6566_v34 }
 0x8d7   : > { %v7394_v42 = vsel %vm378_vm0, %v7362_v61, %v12832_v31  ;;  %8546 = vpow2.f32 %v6572_v54 }
 0x8d8   : > { %7427 = vst.msk [vmem:[%s12943_s23 + $0x98] sm:$0xff] %vm7407_vm5, %v7394_v42  ;;  %v7393_v27 = vsel %vm378_vm0, %v7361_v25, %v12834_v24  ;;  %v7290_v62 = vpop.permute.xlu1 %7289  ;;  %v13331_v24 = vsub.f32 %v12612_v21, %v12638_v15  ;;  %v13332_v21 = vsub.f32 %v12618_v38, %v12638_v15 }
 0x8d9   : > { %7426 = vst.msk [vmem:[%s12943_s23 + $0x90] sm:$0xff] %vm7407_vm5, %v7393_v27  ;;  %v7364_v51 = vmul.f32 %v8531_v19, %v7290_v62  ;;  %v7288_v49 = vpop.permute.xlu0 %7287  ;;  %v8535_v28 = vpop.eup %8534 }
 0x8da   : > { %v7363_v31 = vmul.f32 %v8533_v45, %v7288_v49  ;;  %v6570_v3 = vmul.f32 1.442695, %v13331_v24  ;;  %v8537_v18 = vpop.eup %8536  ;;  %v6576_v32 = vmul.f32 1.442695, %v13332_v21 }
 0x8db   : > { %v7396_v53 = vsel %vm378_vm0, %v7364_v51, %v12844_v22  ;;  %v8539_v1 = vpop.eup %8538 }
 0x8dc   : > { %7429 = vst.msk [vmem:[%s12943_s23 + $0xa8] sm:$0xff] %vm7407_vm5, %v7396_v53  ;;  %v7395_v8 = vsel %vm378_vm0, %v7363_v31, %v12846_v50  ;;  %v7294_v47 = vpop.permute.xlu1 %7293  ;;  %8548 = vpow2.f32 %v6570_v3 }
 0x8dd   : > { %7428 = vst.msk [vmem:[%s12943_s23 + $0xa0] sm:$0xff] %vm7407_vm5, %v7395_v8  ;;  %v7366_v2 = vmul.f32 %v8535_v28, %v7294_v47  ;;  %v7292_v16 = vpop.permute.xlu0 %7291  ;;  %8550 = vpow2.f32 %v6576_v32 }
 0x8de   : > { %v7365_v22 = vmul.f32 %v8537_v18, %v7292_v16  ;;  %v8541_v59 = vpop.eup %8540  ;;  %8552 = vpow2.f32 %v6574_v56 }
 0x8df   : > { %v7398_v50 = vsel %vm378_vm0, %v7366_v2, %v12856_v26  ;;  %v8543_v44 = vpop.eup %8542 }
 0x8e0   : > { %7431 = vst.msk [vmem:[%s12943_s23 + $0xb8] sm:$0xff] %vm7407_vm5, %v7398_v50  ;;  %v7397_v17 = vsel %vm378_vm0, %v7365_v22, %v12858_v4  ;;  %v7298_v20 = vpop.permute.xlu1 %7297  ;;  %v8545_v46 = vpop.eup %8544 }
 0x8e1   : > { %7430 = vst.msk [vmem:[%s12943_s23 + $0xb0] sm:$0xff] %vm7407_vm5, %v7397_v17  ;;  %v7368_v38 = vmul.f32 %v8539_v1, %v7298_v20  ;;  %v7296_v60 = vpop.permute.xlu0 %7295 }
 0x8e2   : > { %v7367_v15 = vmul.f32 %v8541_v59, %v7296_v60 }
 0x8e3   : > { %v7400_v26 = vsel %vm378_vm0, %v7368_v38, %v12868_v48  ;;  %v8547_v48 = vpop.eup %8546 }
 0x8e4   : > { %7433 = vst.msk [vmem:[%s12943_s23 + $0xc8] sm:$0xff] %vm7407_vm5, %v7400_v26  ;;  %v7399_v4 = vsel %vm378_vm0, %v7367_v15, %v12870_v39  ;;  %v7302_v52 = vpop.permute.xlu1 %7301 }
 0x8e5   : > { %7432 = vst.msk [vmem:[%s12943_s23 + $0xc0] sm:$0xff] %vm7407_vm5, %v7399_v4  ;;  %v7370_v14 = vmul.f32 %v8543_v44, %v7302_v52  ;;  %v7300_v43 = vpop.permute.xlu0 %7299 }
 0x8e6   : > { %v7369_v12 = vmul.f32 %v8545_v46, %v7300_v43  ;;  %v8549_v39 = vpop.eup %8548 }
 0x8e7   : > { %v7402_v10 = vsel %vm378_vm0, %v7370_v14, %v12880_v30  ;;  %v8551_v30 = vpop.eup %8550 }
 0x8e8   : > { %7435 = vst.msk [vmem:[%s12943_s23 + $0xd8] sm:$0xff] %vm7407_vm5, %v7402_v10  ;;  %v7401_v37 = vsel %vm378_vm0, %v7369_v12, %v12882_v63  ;;  %v7306_v11 = vpop.permute.xlu1 %7305  ;;  %v8553_v63 = vpop.eup %8552 }
 0x8e9   : > { %7434 = vst.msk [vmem:[%s12943_s23 + $0xd0] sm:$0xff] %vm7407_vm5, %v7401_v37  ;;  %v7372_v57 = vmul.f32 %v8547_v48, %v7306_v11  ;;  %v7304_v40 = vpop.permute.xlu0 %7303 }
 0x8ea   : > { %v7371_v55 = vmul.f32 %v8549_v39, %v7304_v40 }
 0x8eb   : > { %v7404_v0 = vsel %vm378_vm0, %v7372_v57, %v12892_v41 }
 0x8ec   : > { %7437 = vst.msk [vmem:[%s12943_s23 + $0xe8] sm:$0xff] %vm7407_vm5, %v7404_v0  ;;  %v7403_v23 = vsel %vm378_vm0, %v7371_v55, %v12894_v13  ;;  %v7310_v9 = vpop.permute.xlu1 %7309 }
 0x8ed   : > { %7436 = vst.msk [vmem:[%s12943_s23 + $0xe0] sm:$0xff] %vm7407_vm5, %v7403_v23  ;;  %v7374_v5 = vmul.f32 %v8551_v30, %v7310_v9  ;;  %v7308_v61 = vpop.permute.xlu0 %7307 }
 0x8ee   : > { %v7373_v7 = vmul.f32 %v8553_v63, %v7308_v61 }
 0x8ef   : > { %v7406_v25 = vsel %vm378_vm0, %v7374_v5, %v12904_v36 }
 0x8f0   : > { %7439 = vst.msk [vmem:[%s12943_s23 + $0xf8] sm:$0xff] %vm7407_vm5, %v7406_v25  ;;  %v7405_v41 = vsel %vm378_vm0, %v7373_v7, %v12906_v6 }
 0x8f1   : > { %7438 = vst.msk [vmem:[%s12943_s23 + $0xf0] sm:$0xff] %vm7407_vm5, %v7405_v41 }
 0x8f2 PF: > { %s18_s27 = sadd.s32 1, %s8567_s27  }
 0x8f3   : > { %p15_p4 = scmp.ge.s32.totalorder %s18_s27, 4  }
 0x8f5   :  { %17 = sbr.rel (!%p15_p4) target bundleno = 1 (0x1), region = 95 }

</bundles_post_ra>
